<compile_context>
chip_gen: v5e
topology: v5e:2x2
jax: 0.10.0
libtpu: 0.0.40
codegen_flags: <defaults>
</compile_context>

<pallas_src>
import functools

import jax
import jax.numpy as jnp
from jax.experimental import pallas as pl
from jax.experimental.pallas import tpu as pltpu


def _round_up(x, m):
    return ((x + m - 1) // m) * m


def _pad_to(a, axis, target):
    pad = target - a.shape[axis]
    if pad == 0:
        return a
    widths = [(0, 0)] * a.ndim
    widths[axis] = (0, pad)
    return jnp.pad(a, widths)


def _vmem_capacity_bytes():
    try:
        return int(pltpu.get_tpu_info().vmem_capacity_bytes)
    except Exception:
        return 64 << 20  # conservative: v7x per-core VMEM


# ----------------------------------------------------------------------------
# Pallas kernel: fused {spatial avg-pool, Linear, ReLU, Linear, L2-normalize}
# Grid: (batch tiles [parallel], spatial tiles [arbitrary, reduction])
# ----------------------------------------------------------------------------
def supcon_head_kernel(emb_ref, w1_ref, b1_ref, w2_ref, b2_ref, out_ref, acc_ref,
                       *, chunk, inv_s):
    # emb_ref : (TB, TS, Dp_in)  bf16 embedding block (spatial flattened)
    # w1_ref  : (Dp_in, Dp_in)   bf16, VMEM-resident across the whole grid
    # b1_ref  : (1, Dp_in)       f32
    # w2_ref  : (Dp_in, Dp_out)  bf16, VMEM-resident across the whole grid
    # b2_ref  : (1, Dp_out)      f32
    # out_ref : (TB, Dp_out)     f32, L2-normalized projection (written at last S step)
    # acc_ref : (TB, Dp_in)      f32 scratch accumulator for the spatial sum
    s = pl.program_id(1)

    @pl.when(s == 0)
    def _init():
        acc_ref[...] = jnp.zeros_like(acc_ref)

    # Fused convert-and-accumulate spatial reduction: 16-sublane bf16 chunks are
    # upcast and summed into f32, so no full-tile f32 copy is ever materialized
    # (bounded ~4 MiB temporaries instead of 2x the emb block). Chosen over a
    # batched M=1 MXU einsum for robustness; accumulation stays exact in f32.
    tb, ts, _ = emb_ref.shape
    dpi = acc_ref.shape[1]
    psum = jnp.zeros((tb, dpi), jnp.float32)
    for c in range(ts // chunk):
        blk = emb_ref[:, c * chunk:(c + 1) * chunk, :]          # (TB, chunk, Dp_in) bf16
        psum = psum + jnp.sum(blk.astype(jnp.float32), axis=1)
    acc_ref[...] += psum

    @pl.when(s == pl.num_programs(1) - 1)
    def _finalize():
        # backbone.pool == AdaptiveAvgPool2d(1): divide by the TRUE spatial size
        # (zero-padded spatial rows contribute 0 to the sum -> exact).
        feat = acc_ref[...] * inv_s                              # (TB, Dp_in) f32

        # head: Linear -> ReLU -> Linear (bf16 MXU inputs, f32 accumulation).
        h = jnp.dot(feat.astype(jnp.bfloat16), w1_ref[...],
                    preferred_element_type=jnp.float32) + b1_ref[...]
        h = jnp.maximum(h, 0.0)                                  # ReLU(inplace=True)
        z = jnp.dot(h.astype(jnp.bfloat16), w2_ref[...],
                    preferred_element_type=jnp.float32) + b2_ref[...]

        # F.normalize(z, dim=1): z / max(||z||_2, eps), eps = 1e-12.
        sq = jnp.sum(z * z, axis=1, keepdims=True)
        out_ref[...] = z * jax.lax.rsqrt(jnp.maximum(sq, 1e-24))


def _choose_tiles(B, S, dp_in, vmem_cap):
    cs = 16                                        # bf16 sublane-packing granularity
    # Per-generation per-block target: bigger blocks on 128 MiB parts (v5e/v6e),
    # tighter on 64 MiB parts (v7x).
    target = (16 << 20) if vmem_cap >= (100 << 20) else (8 << 20)

    b_pad = _round_up(B, 8)
    # Batch tile: multiple of 8 that divides b_pad exactly (no ragged-tile
    # waste), capped so one chunk's f32 temporaries stay <= ~4 MiB, and halved
    # when possible so the "parallel" axis has >= 2 steps (dual-TC v7x).
    tb_cap = min(128, b_pad, max(8, ((4 << 20) // (cs * dp_in * 4)) // 8 * 8))
    if b_pad >= 16:
        tb_cap = min(tb_cap, b_pad // 2)
    tb_cap = max(8, (tb_cap // 8) * 8)
    tb = 8
    for cand in range(tb_cap, 7, -8):
        if b_pad % cand == 0:
            tb = cand
            break

    # Spatial tile: fill the per-block byte budget, cap the in-kernel unroll at
    # 32 chunks, and balance tiles so zero-padding of S stays minimal.
    s_pad = _round_up(S, cs)
    ts_cap = max(cs, min((target // (tb * dp_in * 2)) // cs * cs, 32 * cs))
    if s_pad <= ts_cap:
        ts, n_s = s_pad, 1
    else:
        n_s = (s_pad + ts_cap - 1) // ts_cap
        ts = _round_up((s_pad + n_s - 1) // n_s, cs)
        n_s = (s_pad + ts - 1) // ts
    s_pad = n_s * ts
    return tb, b_pad, ts, s_pad, n_s, cs


def supcon_head(emb_bsd, w1, b1, w2, b2):
    """emb_bsd: (B, S, D_in) feature map (bf16 preferred so no cast pass is
    needed). Returns (B, D_out) f32, L2-normalized."""
    B, S, d_in = emb_bsd.shape
    d_out = w2.shape[1]
    dp_in = _round_up(d_in, 128)
    dp_out = _round_up(d_out, 128)

    vmem_cap = _vmem_capacity_bytes()
    tb, b_pad, ts, s_pad, n_s, cs = _choose_tiles(B, S, dp_in, vmem_cap)

    # Lane-dense zero padding is exact (padded channels/rows contribute 0 to the
    # sums/matmuls; padded output columns are 0 so the L2 norm is unchanged).
    # In the common case (D_in % 128 == 0, S % 16 == 0, backbone emits bf16)
    # every pad/cast below is a no-op => no extra wrapper-side HBM pass.
    emb = emb_bsd
    if emb.dtype != jnp.bfloat16:
        emb = emb.astype(jnp.bfloat16)
    emb = _pad_to(emb, 2, dp_in)
    emb = _pad_to(emb, 1, s_pad)
    emb = _pad_to(emb, 0, b_pad)

    w1p = _pad_to(_pad_to(w1, 0, dp_in), 1, dp_in).astype(jnp.bfloat16)
    b1p = _pad_to(b1.reshape(1, -1), 1, dp_in).astype(jnp.float32)
    w2p = _pad_to(_pad_to(w2, 0, dp_in), 1, dp_out).astype(jnp.bfloat16)
    b2p = _pad_to(b2.reshape(1, -1), 1, dp_out).astype(jnp.float32)

    grid = (b_pad // tb, n_s)

    # Explicit VMEM budget (no full-tile f32 upcast term any more).
    vmem_bytes = (
        2 * tb * ts * dp_in * 2                       # bf16 emb blocks (double buffered)
        + 2 * tb * cs * dp_in * 4                     # per-chunk f32 convert temporaries
        + 2 * tb * dp_in * 4                          # acc scratch + psum
        + 2 * tb * dp_out * 4                         # out blocks (double buffered)
        + 2 * (dp_in * dp_in + dp_in * dp_out) * 2    # resident bf16 weights (2 bufs)
        + 2 * (dp_in + dp_out) * 4                    # biases
        + 4 * tb * (dp_in + dp_out) * 4               # head temporaries (feat/h/z)
        + (2 << 20)                                   # slack
    )
    vmem_limit = int(min(max(vmem_bytes, 16 << 20), (vmem_cap * 3) // 4))

    kernel = functools.partial(supcon_head_kernel, chunk=cs, inv_s=1.0 / float(S))

    out = pl.pallas_call(
        kernel,
        out_shape=jax.ShapeDtypeStruct((b_pad, dp_out), jnp.float32),
        grid=grid,
        in_specs=[
            pl.BlockSpec((tb, ts, dp_in), lambda i, s: (i, s, 0)),   # streamed emb tiles
            pl.BlockSpec((dp_in, dp_in), lambda i, s: (0, 0)),       # VMEM-resident weights
            pl.BlockSpec((1, dp_in), lambda i, s: (0, 0)),
            pl.BlockSpec((dp_in, dp_out), lambda i, s: (0, 0)),
            pl.BlockSpec((1, dp_out), lambda i, s: (0, 0)),
        ],
        out_specs=pl.BlockSpec((tb, dp_out), lambda i, s: (i, 0)),   # resident over S axis
        scratch_shapes=[pltpu.VMEM((tb, dp_in), jnp.float32)],       # spatial-sum accumulator
        compiler_params=pltpu.CompilerParams(
            dimension_semantics=("parallel", "arbitrary"),
            vmem_limit_bytes=vmem_limit,
        ),
    )(emb, w1p, b1p, w2p, b2p)

    return out[:B, :d_out]


# ----------------------------------------------------------------------------
# Synthetic backbone (glue, plain JAX): pointwise conv -> (cls_out, embedding)
# TODO(synk): the real backbone is an injected nn.Module in the PyTorch code;
# this stand-in only reproduces the required interface (logits + NHWC feature
# map). It emits the feature map directly in bf16 so the head kernel's streamed
# read is 2 B/elem with no separate cast pass over HBM.
# ----------------------------------------------------------------------------
def synthetic_backbone(x_nchw, params):
    wc, bc, wcls, bcls = params
    x_nhwc = jnp.transpose(x_nchw, (0, 2, 3, 1))                 # NCHW -> NHWC
    emb_nhwc = jnp.maximum(jnp.einsum("bhwc,cd->bhwd", x_nhwc, wc) + bc, 0.0)
    pooled = jnp.mean(emb_nhwc, axis=(1, 2))                     # (B, dim_in)
    cls_out = pooled @ wcls + bcls                               # (B, num_classes)
    return cls_out, emb_nhwc.astype(jnp.bfloat16)


# ----------------------------------------------------------------------------
# SupConNet forward
# ----------------------------------------------------------------------------
def supcon_net_forward(x_nchw, backbone_params, head_params):
    w1, b1, w2, b2 = head_params
    cls_out, emb_nhwc = synthetic_backbone(x_nchw, backbone_params)
    B, H, W, D = emb_nhwc.shape
    emb_bsd = emb_nhwc.reshape(B, H * W, D)                      # (B, S, D_in)
    # TODO(synk): if the real backbone exposes its pooled (B, D_in) feature,
    # feed it to the head kernel directly and skip the S x HBM read of the map.
    feat = supcon_head(emb_bsd, w1, b1, w2, b2)                  # Pallas kernel
    return cls_out, feat


# ----------------------------------------------------------------------------
# Pure-JAX reference (mirrors the kernel's bf16 input / f32-accum strategy)
# ----------------------------------------------------------------------------
def reference_forward(x_nchw, backbone_params, head_params):
    w1, b1, w2, b2 = head_params
    cls_out, emb_bf16 = synthetic_backbone(x_nchw, backbone_params)
    feat = jnp.mean(emb_bf16.astype(jnp.float32), axis=(1, 2))
    h = jnp.dot(feat.astype(jnp.bfloat16), w1.astype(jnp.bfloat16),
                preferred_element_type=jnp.float32) + b1
    h = jnp.maximum(h, 0.0)
    z = jnp.dot(h.astype(jnp.bfloat16), w2.astype(jnp.bfloat16),
                preferred_element_type=jnp.float32) + b2
    nrm = jnp.maximum(jnp.sqrt(jnp.sum(z * z, axis=1, keepdims=True)), 1e-12)
    return cls_out, z / nrm


if __name__ == "__main__":
    # Small shapes consistent with the module defaults (dim_in=512, feat_dim=128).
    B, C_in, H, W = 2, 4, 16, 16
    dim_in, feat_dim, num_classes = 512, 128, 10

    key = jax.random.PRNGKey(0)
    ks = jax.random.split(key, 9)

    wc = jax.random.normal(ks[0], (C_in, dim_in), jnp.float32) * 0.05
    bc = jax.random.normal(ks[1], (dim_in,), jnp.float32) * 0.05
    wcls = jax.random.normal(ks[2], (dim_in, num_classes), jnp.float32) * 0.05
    bcls = jax.random.normal(ks[3], (num_classes,), jnp.float32) * 0.05
    backbone_params = (wc, bc, wcls, bcls)

    w1 = jax.random.normal(ks[4], (dim_in, dim_in), jnp.float32) * 0.05
    b1 = jax.random.normal(ks[5], (dim_in,), jnp.float32) * 0.05
    w2 = jax.random.normal(ks[6], (dim_in, feat_dim), jnp.float32) * 0.05
    b2 = jax.random.normal(ks[7], (feat_dim,), jnp.float32) * 0.05
    head_params = (w1, b1, w2, b2)

    x = jax.random.normal(ks[8], (B, C_in, H, W), jnp.float32)

    cls_out, feat = supcon_net_forward(x, backbone_params, head_params)
    cls_out = jax.block_until_ready(cls_out)
    feat = jax.block_until_ready(feat)

    ref_cls, ref_feat = reference_forward(x, backbone_params, head_params)
    assert cls_out.shape == (B, num_classes)
    assert feat.shape == (B, feat_dim)
    # Tolerance reflects the deliberate bf16 emb/MXU traffic (mirrored in the
    # reference); the output is a unit-norm vector so this is a tight check.
    assert jnp.allclose(feat, ref_feat, atol=1e-3, rtol=1e-3)
    assert jnp.allclose(jnp.sum(feat * feat, axis=1), 1.0, atol=1e-3)

    print("KERNEL_OK")
</pallas_src>

<mosaic_0001>
module attributes {stable_mosaic.version = 11 : i64} {
  func.func @supcon_head_kernel(%arg0: i32, %arg1: i32, %arg2: memref<8x256x512xbf16, #tpu.memory_space<vmem>>, %arg3: memref<512x512xbf16, #tpu.memory_space<vmem>>, %arg4: memref<1x512xf32, #tpu.memory_space<vmem>>, %arg5: memref<512x128xbf16, #tpu.memory_space<vmem>>, %arg6: memref<1x128xf32, #tpu.memory_space<vmem>>, %arg7: memref<8x128xf32, #tpu.memory_space<vmem>>, %arg8: memref<8x512xf32, #tpu.memory_space<vmem>>) attributes {dimension_semantics = [#tpu.dimension_semantics<parallel>, #tpu.dimension_semantics<arbitrary>], iteration_bounds = array<i64: 1, 1>, scalar_prefetch = 0 : i64, scratch_operands = 1 : i64, tpu.core_type = #tpu.core_type<tc>, window_params = [{transform_indices = @transform_0, window_bounds = array<i64: 8, 256, 512>}, {pipeline_mode = #tpu.pipeline_mode<synchronous>, transform_indices = @transform_1, window_bounds = array<i64: 512, 512>}, {pipeline_mode = #tpu.pipeline_mode<synchronous>, transform_indices = @transform_2, window_bounds = array<i64: 1, 512>}, {pipeline_mode = #tpu.pipeline_mode<synchronous>, transform_indices = @transform_3, window_bounds = array<i64: 512, 128>}, {pipeline_mode = #tpu.pipeline_mode<synchronous>, transform_indices = @transform_4, window_bounds = array<i64: 1, 128>}, {transform_indices = @transform_5, window_bounds = array<i64: 8, 128>}]} {
    %c0_i32 = arith.constant 0 : i32
    %0 = arith.cmpi eq, %arg1, %c0_i32 : i32
    %1 = arith.extui %0 : i1 to i32
    %c0_i32_0 = arith.constant 0 : i32
    %2 = arith.cmpi ne, %1, %c0_i32_0 : i32
    scf.if %2 {
      %cst_55 = arith.constant 0.000000e+00 : f32
      %74 = vector.broadcast %cst_55 : f32 to vector<8x512xf32>
      %c0_56 = arith.constant 0 : index
      %c0_57 = arith.constant 0 : index
      %75 = vector.load %arg8[%c0_56, %c0_57] : memref<8x512xf32, #tpu.memory_space<vmem>>, vector<8x512xf32>
      tpu.vector_store %arg8[%c0_56, %c0_57], %74 {strides = array<i32>} : memref<8x512xf32, #tpu.memory_space<vmem>>, vector<8x512xf32>,
    } else {
    }
    %cst = arith.constant 0.000000e+00 : f32
    %3 = vector.broadcast %cst : f32 to vector<8x512xf32>
    %c0 = arith.constant 0 : index
    %c0_1 = arith.constant 0 : index
    %c0_2 = arith.constant 0 : index
    %4 = vector.load %arg2[%c0, %c0_1, %c0_2] : memref<8x256x512xbf16, #tpu.memory_space<vmem>>, vector<8x16x512xbf16>
    %5 = arith.extf %4 : vector<8x16x512xbf16> to vector<8x16x512xf32>
    %cst_3 = arith.constant dense<0.000000e+00> : vector<8x512xf32>
    %6 = vector.multi_reduction <add>, %5, %cst_3 [1] : vector<8x16x512xf32> to vector<8x512xf32>
    %7 = arith.addf %3, %6 : vector<8x512xf32>
    %c0_4 = arith.constant 0 : index
    %c16 = arith.constant 16 : index
    %c0_5 = arith.constant 0 : index
    %8 = vector.load %arg2[%c0_4, %c16, %c0_5] : memref<8x256x512xbf16, #tpu.memory_space<vmem>>, vector<8x16x512xbf16>
    %9 = arith.extf %8 : vector<8x16x512xbf16> to vector<8x16x512xf32>
    %cst_6 = arith.constant dense<0.000000e+00> : vector<8x512xf32>
    %10 = vector.multi_reduction <add>, %9, %cst_6 [1] : vector<8x16x512xf32> to vector<8x512xf32>
    %11 = arith.addf %7, %10 : vector<8x512xf32>
    %c0_7 = arith.constant 0 : index
    %c32 = arith.constant 32 : index
    %c0_8 = arith.constant 0 : index
    %12 = vector.load %arg2[%c0_7, %c32, %c0_8] : memref<8x256x512xbf16, #tpu.memory_space<vmem>>, vector<8x16x512xbf16>
    %13 = arith.extf %12 : vector<8x16x512xbf16> to vector<8x16x512xf32>
    %cst_9 = arith.constant dense<0.000000e+00> : vector<8x512xf32>
    %14 = vector.multi_reduction <add>, %13, %cst_9 [1] : vector<8x16x512xf32> to vector<8x512xf32>
    %15 = arith.addf %11, %14 : vector<8x512xf32>
    %c0_10 = arith.constant 0 : index
    %c48 = arith.constant 48 : index
    %c0_11 = arith.constant 0 : index
    %16 = vector.load %arg2[%c0_10, %c48, %c0_11] : memref<8x256x512xbf16, #tpu.memory_space<vmem>>, vector<8x16x512xbf16>
    %17 = arith.extf %16 : vector<8x16x512xbf16> to vector<8x16x512xf32>
    %cst_12 = arith.constant dense<0.000000e+00> : vector<8x512xf32>
    %18 = vector.multi_reduction <add>, %17, %cst_12 [1] : vector<8x16x512xf32> to vector<8x512xf32>
    %19 = arith.addf %15, %18 : vector<8x512xf32>
    %c0_13 = arith.constant 0 : index
    %c64 = arith.constant 64 : index
    %c0_14 = arith.constant 0 : index
    %20 = vector.load %arg2[%c0_13, %c64, %c0_14] : memref<8x256x512xbf16, #tpu.memory_space<vmem>>, vector<8x16x512xbf16>
    %21 = arith.extf %20 : vector<8x16x512xbf16> to vector<8x16x512xf32>
    %cst_15 = arith.constant dense<0.000000e+00> : vector<8x512xf32>
    %22 = vector.multi_reduction <add>, %21, %cst_15 [1] : vector<8x16x512xf32> to vector<8x512xf32>
    %23 = arith.addf %19, %22 : vector<8x512xf32>
    %c0_16 = arith.constant 0 : index
    %c80 = arith.constant 80 : index
    %c0_17 = arith.constant 0 : index
    %24 = vector.load %arg2[%c0_16, %c80, %c0_17] : memref<8x256x512xbf16, #tpu.memory_space<vmem>>, vector<8x16x512xbf16>
    %25 = arith.extf %24 : vector<8x16x512xbf16> to vector<8x16x512xf32>
    %cst_18 = arith.constant dense<0.000000e+00> : vector<8x512xf32>
    %26 = vector.multi_reduction <add>, %25, %cst_18 [1] : vector<8x16x512xf32> to vector<8x512xf32>
    %27 = arith.addf %23, %26 : vector<8x512xf32>
    %c0_19 = arith.constant 0 : index
    %c96 = arith.constant 96 : index
    %c0_20 = arith.constant 0 : index
    %28 = vector.load %arg2[%c0_19, %c96, %c0_20] : memref<8x256x512xbf16, #tpu.memory_space<vmem>>, vector<8x16x512xbf16>
    %29 = arith.extf %28 : vector<8x16x512xbf16> to vector<8x16x512xf32>
    %cst_21 = arith.constant dense<0.000000e+00> : vector<8x512xf32>
    %30 = vector.multi_reduction <add>, %29, %cst_21 [1] : vector<8x16x512xf32> to vector<8x512xf32>
    %31 = arith.addf %27, %30 : vector<8x512xf32>
    %c0_22 = arith.constant 0 : index
    %c112 = arith.constant 112 : index
    %c0_23 = arith.constant 0 : index
    %32 = vector.load %arg2[%c0_22, %c112, %c0_23] : memref<8x256x512xbf16, #tpu.memory_space<vmem>>, vector<8x16x512xbf16>
    %33 = arith.extf %32 : vector<8x16x512xbf16> to vector<8x16x512xf32>
    %cst_24 = arith.constant dense<0.000000e+00> : vector<8x512xf32>
    %34 = vector.multi_reduction <add>, %33, %cst_24 [1] : vector<8x16x512xf32> to vector<8x512xf32>
    %35 = arith.addf %31, %34 : vector<8x512xf32>
    %c0_25 = arith.constant 0 : index
    %c128 = arith.constant 128 : index
    %c0_26 = arith.constant 0 : index
    %36 = vector.load %arg2[%c0_25, %c128, %c0_26] : memref<8x256x512xbf16, #tpu.memory_space<vmem>>, vector<8x16x512xbf16>
    %37 = arith.extf %36 : vector<8x16x512xbf16> to vector<8x16x512xf32>
    %cst_27 = arith.constant dense<0.000000e+00> : vector<8x512xf32>
    %38 = vector.multi_reduction <add>, %37, %cst_27 [1] : vector<8x16x512xf32> to vector<8x512xf32>
    %39 = arith.addf %35, %38 : vector<8x512xf32>
    %c0_28 = arith.constant 0 : index
    %c144 = arith.constant 144 : index
    %c0_29 = arith.constant 0 : index
    %40 = vector.load %arg2[%c0_28, %c144, %c0_29] : memref<8x256x512xbf16, #tpu.memory_space<vmem>>, vector<8x16x512xbf16>
    %41 = arith.extf %40 : vector<8x16x512xbf16> to vector<8x16x512xf32>
    %cst_30 = arith.constant dense<0.000000e+00> : vector<8x512xf32>
    %42 = vector.multi_reduction <add>, %41, %cst_30 [1] : vector<8x16x512xf32> to vector<8x512xf32>
    %43 = arith.addf %39, %42 : vector<8x512xf32>
    %c0_31 = arith.constant 0 : index
    %c160 = arith.constant 160 : index
    %c0_32 = arith.constant 0 : index
    %44 = vector.load %arg2[%c0_31, %c160, %c0_32] : memref<8x256x512xbf16, #tpu.memory_space<vmem>>, vector<8x16x512xbf16>
    %45 = arith.extf %44 : vector<8x16x512xbf16> to vector<8x16x512xf32>
    %cst_33 = arith.constant dense<0.000000e+00> : vector<8x512xf32>
    %46 = vector.multi_reduction <add>, %45, %cst_33 [1] : vector<8x16x512xf32> to vector<8x512xf32>
    %47 = arith.addf %43, %46 : vector<8x512xf32>
    %c0_34 = arith.constant 0 : index
    %c176 = arith.constant 176 : index
    %c0_35 = arith.constant 0 : index
    %48 = vector.load %arg2[%c0_34, %c176, %c0_35] : memref<8x256x512xbf16, #tpu.memory_space<vmem>>, vector<8x16x512xbf16>
    %49 = arith.extf %48 : vector<8x16x512xbf16> to vector<8x16x512xf32>
    %cst_36 = arith.constant dense<0.000000e+00> : vector<8x512xf32>
    %50 = vector.multi_reduction <add>, %49, %cst_36 [1] : vector<8x16x512xf32> to vector<8x512xf32>
    %51 = arith.addf %47, %50 : vector<8x512xf32>
    %c0_37 = arith.constant 0 : index
    %c192 = arith.constant 192 : index
    %c0_38 = arith.constant 0 : index
    %52 = vector.load %arg2[%c0_37, %c192, %c0_38] : memref<8x256x512xbf16, #tpu.memory_space<vmem>>, vector<8x16x512xbf16>
    %53 = arith.extf %52 : vector<8x16x512xbf16> to vector<8x16x512xf32>
    %cst_39 = arith.constant dense<0.000000e+00> : vector<8x512xf32>
    %54 = vector.multi_reduction <add>, %53, %cst_39 [1] : vector<8x16x512xf32> to vector<8x512xf32>
    %55 = arith.addf %51, %54 : vector<8x512xf32>
    %c0_40 = arith.constant 0 : index
    %c208 = arith.constant 208 : index
    %c0_41 = arith.constant 0 : index
    %56 = vector.load %arg2[%c0_40, %c208, %c0_41] : memref<8x256x512xbf16, #tpu.memory_space<vmem>>, vector<8x16x512xbf16>
    %57 = arith.extf %56 : vector<8x16x512xbf16> to vector<8x16x512xf32>
    %cst_42 = arith.constant dense<0.000000e+00> : vector<8x512xf32>
    %58 = vector.multi_reduction <add>, %57, %cst_42 [1] : vector<8x16x512xf32> to vector<8x512xf32>
    %59 = arith.addf %55, %58 : vector<8x512xf32>
    %c0_43 = arith.constant 0 : index
    %c224 = arith.constant 224 : index
    %c0_44 = arith.constant 0 : index
    %60 = vector.load %arg2[%c0_43, %c224, %c0_44] : memref<8x256x512xbf16, #tpu.memory_space<vmem>>, vector<8x16x512xbf16>
    %61 = arith.extf %60 : vector<8x16x512xbf16> to vector<8x16x512xf32>
    %cst_45 = arith.constant dense<0.000000e+00> : vector<8x512xf32>
    %62 = vector.multi_reduction <add>, %61, %cst_45 [1] : vector<8x16x512xf32> to vector<8x512xf32>
    %63 = arith.addf %59, %62 : vector<8x512xf32>
    %c0_46 = arith.constant 0 : index
    %c240 = arith.constant 240 : index
    %c0_47 = arith.constant 0 : index
    %64 = vector.load %arg2[%c0_46, %c240, %c0_47] : memref<8x256x512xbf16, #tpu.memory_space<vmem>>, vector<8x16x512xbf16>
    %65 = arith.extf %64 : vector<8x16x512xbf16> to vector<8x16x512xf32>
    %cst_48 = arith.constant dense<0.000000e+00> : vector<8x512xf32>
    %66 = vector.multi_reduction <add>, %65, %cst_48 [1] : vector<8x16x512xf32> to vector<8x512xf32>
    %67 = arith.addf %63, %66 : vector<8x512xf32>
    %c0_49 = arith.constant 0 : index
    %c0_50 = arith.constant 0 : index
    %68 = vector.load %arg8[%c0_49, %c0_50] : memref<8x512xf32, #tpu.memory_space<vmem>>, vector<8x512xf32>
    %69 = arith.addf %68, %67 : vector<8x512xf32>
    %c0_51 = arith.constant 0 : index
    %c0_52 = arith.constant 0 : index
    %70 = vector.load %arg8[%c0_51, %c0_52] : memref<8x512xf32, #tpu.memory_space<vmem>>, vector<8x512xf32>
    tpu.vector_store %arg8[%c0_51, %c0_52], %69 {strides = array<i32>} : memref<8x512xf32, #tpu.memory_space<vmem>>, vector<8x512xf32>,
    %c0_i32_53 = arith.constant 0 : i32
    %71 = arith.cmpi eq, %arg1, %c0_i32_53 : i32
    %72 = arith.extui %71 : i1 to i32
    %c0_i32_54 = arith.constant 0 : i32
    %73 = arith.cmpi ne, %72, %c0_i32_54 : i32
    scf.if %73 {
      %c0_55 = arith.constant 0 : index
      %c0_56 = arith.constant 0 : index
      %74 = vector.load %arg8[%c0_55, %c0_56] : memref<8x512xf32, #tpu.memory_space<vmem>>, vector<8x512xf32>
      %cst_57 = arith.constant 3.906250e-03 : f32
      %75 = vector.broadcast %cst_57 : f32 to vector<8x512xf32>
      %76 = arith.mulf %74, %75 : vector<8x512xf32>
      %77 = arith.truncf %76 : vector<8x512xf32> to vector<8x512xbf16>
      %c0_58 = arith.constant 0 : index
      %c0_59 = arith.constant 0 : index
      %78 = vector.load %arg3[%c0_58, %c0_59] : memref<512x512xbf16, #tpu.memory_space<vmem>>, vector<512x512xbf16>
      %cst_60 = arith.constant dense<0.000000e+00> : vector<8x512xf32>
      %79 = tpu.matmul %77, %78, %cst_60 {dimension_numbers = #tpu.dot_dimension_numbers<[1], [0], [0], [1], [0, 0, 1, 1], [], []>} : vector<8x512xbf16>, vector<512x512xbf16>, vector<8x512xf32> -> vector<8x512xf32>
      %c0_61 = arith.constant 0 : index
      %c0_62 = arith.constant 0 : index
      %80 = vector.load %arg4[%c0_61, %c0_62] : memref<1x512xf32, #tpu.memory_space<vmem>>, vector<1x512xf32>
      %81 = vector.broadcast %80 : vector<1x512xf32> to vector<8x512xf32>
      %82 = arith.addf %79, %81 : vector<8x512xf32>
      %cst_63 = arith.constant 0.000000e+00 : f32
      %83 = vector.broadcast %cst_63 : f32 to vector<8x512xf32>
      %84 = arith.maximumf %82, %83 : vector<8x512xf32>
      %85 = arith.truncf %84 : vector<8x512xf32> to vector<8x512xbf16>
      %c0_64 = arith.constant 0 : index
      %c0_65 = arith.constant 0 : index
      %86 = vector.load %arg5[%c0_64, %c0_65] : memref<512x128xbf16, #tpu.memory_space<vmem>>, vector<512x128xbf16>
      %cst_66 = arith.constant dense<0.000000e+00> : vector<8x128xf32>
      %87 = tpu.matmul %85, %86, %cst_66 {dimension_numbers = #tpu.dot_dimension_numbers<[1], [0], [0], [1], [0, 0, 1, 1], [], []>} : vector<8x512xbf16>, vector<512x128xbf16>, vector<8x128xf32> -> vector<8x128xf32>
      %c0_67 = arith.constant 0 : index
      %c0_68 = arith.constant 0 : index
      %88 = vector.load %arg6[%c0_67, %c0_68] : memref<1x128xf32, #tpu.memory_space<vmem>>, vector<1x128xf32>
      %89 = vector.broadcast %88 : vector<1x128xf32> to vector<8x128xf32>
      %90 = arith.addf %87, %89 : vector<8x128xf32>
      %91 = arith.mulf %90, %90 : vector<8x128xf32>
      %cst_69 = arith.constant dense<0.000000e+00> : vector<8xf32>
      %92 = vector.multi_reduction <add>, %91, %cst_69 [1] : vector<8x128xf32> to vector<8xf32>
      %93 = vector.shape_cast %92 : vector<8xf32> to vector<8x1xf32>
      %cst_70 = arith.constant 1.000000e-24 : f32
      %94 = vector.broadcast %cst_70 : f32 to vector<8x1xf32>
      %95 = arith.maximumf %93, %94 : vector<8x1xf32>
      %96 = math.rsqrt %95 : vector<8x1xf32>
      %97 = vector.broadcast %96 : vector<8x1xf32> to vector<8x128xf32>
      %98 = arith.mulf %90, %97 : vector<8x128xf32>
      %c0_71 = arith.constant 0 : index
      %c0_72 = arith.constant 0 : index
      %99 = vector.load %arg7[%c0_71, %c0_72] : memref<8x128xf32, #tpu.memory_space<vmem>>, vector<8x128xf32>
      tpu.vector_store %arg7[%c0_71, %c0_72], %98 {strides = array<i32>} : memref<8x128xf32, #tpu.memory_space<vmem>>, vector<8x128xf32>,
    } else {
    }
    return
  }
  func.func @transform_0(%arg0: i32, %arg1: i32) -> (i32, i32, i32) {
    %c0_i32 = arith.constant 0 : i32
    %c0_i32_0 = arith.constant 0 : i32
    return %arg0, %arg1, %c0_i32 : i32, i32, i32
  }
  func.func @transform_1(%arg0: i32, %arg1: i32) -> (i32, i32) {
    %c0_i32 = arith.constant 0 : i32
    %c0_i32_0 = arith.constant 0 : i32
    %c0_i32_1 = arith.constant 0 : i32
    return %c0_i32, %c0_i32_0 : i32, i32
  }
  func.func @transform_2(%arg0: i32, %arg1: i32) -> (i32, i32) {
    %c0_i32 = arith.constant 0 : i32
    %c0_i32_0 = arith.constant 0 : i32
    %c0_i32_1 = arith.constant 0 : i32
    return %c0_i32, %c0_i32_0 : i32, i32
  }
  func.func @transform_3(%arg0: i32, %arg1: i32) -> (i32, i32) {
    %c0_i32 = arith.constant 0 : i32
    %c0_i32_0 = arith.constant 0 : i32
    %c0_i32_1 = arith.constant 0 : i32
    return %c0_i32, %c0_i32_0 : i32, i32
  }
  func.func @transform_4(%arg0: i32, %arg1: i32) -> (i32, i32) {
    %c0_i32 = arith.constant 0 : i32
    %c0_i32_0 = arith.constant 0 : i32
    %c0_i32_1 = arith.constant 0 : i32
    return %c0_i32, %c0_i32_0 : i32, i32
  }
  func.func @transform_5(%arg0: i32, %arg1: i32) -> (i32, i32) {
    %c0_i32 = arith.constant 0 : i32
    %c0_i32_0 = arith.constant 0 : i32
    return %arg0, %c0_i32 : i32, i32
  }
}

</mosaic_0001>

<bundles_post_ra>
// kernel: tpu_custom_call.1
= control target key start
LH: loop header
LB: loop body
LE: loop exit
PB: predicated region body
PF: predicated region fallthrough
CT: control target
= control target key end

     0   :  { %10 = vsyncpa [#allocation4], 0  ;;  %s10384_s0 = inlined_call_operand.hbm [shape: bf16[8,256,512], index: 0, kind: input, shape index: {}]   ;;  %s10385_s1 = inlined_call_operand.hbm [shape: bf16[512,512], index: 1, kind: input, shape index: {}]   ;;  %s10386_s2 = inlined_call_operand.hbm [shape: f32[1,512], index: 2, kind: input, shape index: {}]   ;;  %s10387_s3 = inlined_call_operand.hbm [shape: bf16[512,128], index: 3, kind: input, shape index: {}]   ;;  %s10388_s4 = inlined_call_operand.hbm [shape: f32[1,128], index: 4, kind: input, shape index: {}]   ;;  %s10389_s5 = inlined_call_operand.hbm [shape: f32[8,128], index: 5, kind: output, shape index: {}]  }
   0x1   :  { %11 = vsyncpa [#allocation7], 0 }
   0x2   :  { %12 = vsyncpa [#allocation10], 0 }
   0x3   :  { %13 = vsyncpa [#allocation5], 0  ;;  %s31_s20 = sshll.u32 %s10385_s1, 4  ;;  %s8651_s21 = smov [#allocation6]   ;;  %s32_s20 = int_to_ptr.hbm [resolvable:$true] %s31_s20 }
   0x4   :  { %s33_s22 = sshll.u32 %s8651_s21, 4  ;;  %s55_s25 = sshll.u32 %s10387_s3, 4  ;;  %s34_s22 = int_to_ptr.vmem [resolvable:$true] %s33_s22  ;;  %s56_s25 = int_to_ptr.hbm [resolvable:$true] %s55_s25 }
   0x5   :  { %s8652_s26 = smov 256   ;;  %s8653_s27 = smov 16  }
   0x6   :  { %39 = dma.hbm_to_vmem [thread:$0]  %s32_s20, 16384, %s34_s22, [#allocation7], %s8652_s26, %s8652_s26, %s8653_s27  }
   0x7   :  { %s8654_s28 = smov [#allocation9]   ;;  %s8655_s30 = smov 64  }
   0x8   :  { %s57_s29 = sshll.u32 %s8654_s28, 4  ;;  %s8656_s6 = smov 4   ;;  %s58_s29 = int_to_ptr.vmem [resolvable:$true] %s57_s29 }
   0x9   :  { %63 = dma.hbm_to_vmem [thread:$0]  %s56_s25, 4096, %s58_s29, [#allocation10], %s8655_s30, %s8655_s30, %s8656_s6  }
   0xa   :  { %s18_s8 = sshll.u32 %s10384_s0, 4  ;;  %s8657_s9 = smov [#allocation3]   ;;  %s19_s8 = int_to_ptr.hbm [resolvable:$true] %s18_s8 }
   0xb   :  { %s20_s10 = sshll.u32 %s8657_s9, 4  ;;  %s45_s12 = sshll.u32 %s10386_s2, 4  ;;  %s21_s10 = int_to_ptr.vmem [resolvable:$true] %s20_s10  ;;  %s46_s12 = int_to_ptr.hbm [resolvable:$true] %s45_s12 }
   0xc   :  { %26 = dma.hbm_to_vmem [thread:$0]  %s19_s8, 65536, %s21_s10, [#allocation4], %s8652_s26, %s8652_s26, %s8653_s27  }
   0xd   :  { %s8658_s13 = smov [#allocation8]   ;;  %s69_s17 = sshll.u32 %s10388_s4, 4  ;;  %s70_s17 = int_to_ptr.hbm [resolvable:$true] %s69_s17 }
   0xe   :  { %s47_s14 = sshll.u32 %s8658_s13, 4  ;;  %s8659_s0 = smov [#allocation11]   ;;  %s48_s14 = int_to_ptr.vmem [resolvable:$true] %s47_s14 }
   0xf   :  { %50 = dma.hbm_to_vmem [thread:$0]  %s46_s12, 64, %s48_s14, [#allocation7]  }
  0x10   :  { %s71_s18 = sshll.u32 %s8659_s0, 4  ;;  %s72_s18 = int_to_ptr.vmem [resolvable:$true] %s71_s18 }
  0x11   :  { %74 = dma.hbm_to_vmem [thread:$0]  %s70_s17, 16, %s72_s18, [#allocation10]  }
  0x12   :  { %8643 = dma.done.wait [#allocation4], 65536  }
  0x13   :  { %8644 = vsyncadd [#allocation4], 4294901760 }
  0x14   :  { %8645 = dma.done.wait [#allocation7], 16448  }
  0x15   :  { %8646 = vsyncadd [#allocation7], 4294950848 }
  0x16   :  { %8647 = dma.done.wait [#allocation10], 4112  }
  0x17   :  { %8648 = vsyncadd [#allocation10], 4294963184  ;;  %v7288_v0 = vld [vmem:[#allocation6 + $0xe0] sm:$0xf]  ;;  %v7844_v1 = vld [vmem:[#allocation6 + $0xec] sm:$0xf0] }
  0x18   :  { %v7416_v2 = vld [vmem:[#allocation6 + $0x1e0] sm:$0xf]  ;;  %v7289_v3 = vor.u32 %v7844_v1, %v7288_v0  ;;  %v7876_v4 = vld [vmem:[#allocation6 + $0x1ec] sm:$0xf0]  ;;  %vm5771_vm0 = vcmask 1041409   ;;  %vm5773_vm1 = vcmask 1042434  }
  0x19   :  { %v7544_v5 = vld [vmem:[#allocation6 + $0x2e0] sm:$0xf]  ;;  %v7908_v6 = vld [vmem:[#allocation6 + $0x2ec] sm:$0xf0]  ;;  %v7417_v7 = vor.u32 %v7876_v4, %v7416_v2  ;;  %vm5775_vm2 = vcmask 1043459   ;;  %vm5777_vm3 = vcmask 1044484  }
  0x1a   :  { %v7545_v8 = vor.u32 %v7908_v6, %v7544_v5  ;;  %v7672_v9 = vld [vmem:[#allocation6 + $0x3e0] sm:$0xf]  ;;  %v7940_v10 = vld [vmem:[#allocation6 + $0x3ec] sm:$0xf0]  ;;  %6611 = vmatpush.bf16.msra.mxu0 %v7289_v3  ;;  %vm5779_vm4 = vcmask 1045509   ;;  %vm5781_vm5 = vcmask 1046534  }
  0x1b   :  { %v7272_v11 = vld [vmem:[#allocation6 + $0xc0] sm:$0xf]  ;;  %v7673_v12 = vor.u32 %v7940_v10, %v7672_v9  ;;  %v7840_v13 = vld [vmem:[#allocation6 + $0xcc] sm:$0xf0]  ;;  %6624 = vmatpush.bf16.msra.mxu1 %v7417_v7  ;;  %vm5783_vm6 = vcmask 1047559   ;;  %s8660_s2 = smov [#allocation12]  }
  0x1c   :  { %v7400_v14 = vld [vmem:[#allocation6 + $0x1c0] sm:$0xf]  ;;  %v7872_v15 = vld [vmem:[#allocation6 + $0x1cc] sm:$0xf0]  ;;  %6637 = vmatpush.bf16.msra.mxu2 %v7545_v8  ;;  %v7273_v16 = vor.u32 %v7840_v13, %v7272_v11  ;;  %s7160_s4 = sshll.u32 %s8660_s2, 4  ;;  %s7162_s21 = sshll.u32 %s10389_s5, 4  ;;  %s7161_s4 = int_to_ptr.vmem [resolvable:$true] %s7160_s4  ;;  %s7163_s21 = int_to_ptr.hbm [resolvable:$true] %s7162_s21 }
  0x1d   :  { %v7401_v17 = vor.u32 %v7872_v15, %v7400_v14  ;;  %v7528_v18 = vld [vmem:[#allocation6 + $0x2c0] sm:$0xf]  ;;  %v7904_v19 = vld [vmem:[#allocation6 + $0x2cc] sm:$0xf0]  ;;  %6650 = vmatpush.bf16.msra.mxu3 %v7673_v12 }
  0x1e   :  { %v7656_v20 = vld [vmem:[#allocation6 + $0x3c0] sm:$0xf]  ;;  %v7529_v21 = vor.u32 %v7904_v19, %v7528_v18  ;;  %v7936_v22 = vld [vmem:[#allocation6 + $0x3cc] sm:$0xf0]  ;;  %6612 = vmatpush.bf16.msra.mxu0 %v7273_v16 }
  0x1f   :  { %v7256_v23 = vld [vmem:[#allocation6 + $0xa0] sm:$0xf]  ;;  %v7836_v24 = vld [vmem:[#allocation6 + $0xac] sm:$0xf0]  ;;  %v7657_v25 = vor.u32 %v7936_v22, %v7656_v20  ;;  %6625 = vmatpush.bf16.msra.mxu1 %v7401_v17 }
  0x20   :  { %v7384_v26 = vld [vmem:[#allocation6 + $0x1a0] sm:$0xf]  ;;  %v7868_v27 = vld [vmem:[#allocation6 + $0x1ac] sm:$0xf0]  ;;  %v7257_v29 = vor.u32 %v7836_v24, %v7256_v23  ;;  %6638 = vmatpush.bf16.msra.mxu2 %v7529_v21 }
  0x21   :  { %v7512_v28 = vld [vmem:[#allocation6 + $0x2a0] sm:$0xf]  ;;  %v7900_v30 = vld [vmem:[#allocation6 + $0x2ac] sm:$0xf0]  ;;  %v7385_v33 = vor.u32 %v7868_v27, %v7384_v26  ;;  %6651 = vmatpush.bf16.msra.mxu3 %v7657_v25 }
  0x22   :  { %v7640_v31 = vld [vmem:[#allocation6 + $0x3a0] sm:$0xf]  ;;  %v7932_v32 = vld [vmem:[#allocation6 + $0x3ac] sm:$0xf0]  ;;  %v7513_v34 = vor.u32 %v7900_v30, %v7512_v28  ;;  %6613 = vmatpush.bf16.msra.mxu0 %v7257_v29  ;;  %v7842_v28 = vld [vmem:[#allocation6 + $0xe4] sm:$0xf] }
  0x23   :  { %v7240_v35 = vld [vmem:[#allocation6 + $0x80] sm:$0xf]  ;;  %v7832_v36 = vld [vmem:[#allocation6 + $0x8c] sm:$0xf0]  ;;  %v7641_v38 = vor.u32 %v7932_v32, %v7640_v31  ;;  %6626 = vmatpush.bf16.msra.mxu1 %v7385_v33  ;;  %v7290_v29 = vld [vmem:[#allocation6 + $0xf0] sm:$0xf0] }
  0x24   :  { %v7368_v37 = vld [vmem:[#allocation6 + $0x180] sm:$0xf]  ;;  %v7864_v39 = vld [vmem:[#allocation6 + $0x18c] sm:$0xf0]  ;;  %v7241_v44 = vor.u32 %v7832_v36, %v7240_v35  ;;  %6639 = vmatpush.bf16.msra.mxu2 %v7513_v34  ;;  %v7874_v30 = vld [vmem:[#allocation6 + $0x1e4] sm:$0xf] }
  0x25   :  { %v7496_v40 = vld [vmem:[#allocation6 + $0x280] sm:$0xf]  ;;  %v7896_v41 = vld [vmem:[#allocation6 + $0x28c] sm:$0xf0]  ;;  %v7369_v45 = vor.u32 %v7864_v39, %v7368_v37  ;;  %6652 = vmatpush.bf16.msra.mxu3 %v7641_v38  ;;  %v7418_v31 = vld [vmem:[#allocation6 + $0x1f0] sm:$0xf0] }
  0x26   :  { %v7624_v42 = vld [vmem:[#allocation6 + $0x380] sm:$0xf]  ;;  %v7928_v43 = vld [vmem:[#allocation6 + $0x38c] sm:$0xf0]  ;;  %v7497_v46 = vor.u32 %v7896_v41, %v7496_v40  ;;  %6614 = vmatpush.bf16.msra.mxu0 %v7241_v44  ;;  %v7906_v33 = vld [vmem:[#allocation6 + $0x2e4] sm:$0xf] }
  0x27   :  { %v7224_v47 = vld [vmem:[#allocation6 + $0x60] sm:$0xf]  ;;  %v7828_v48 = vld [vmem:[#allocation6 + $0x6c] sm:$0xf0]  ;;  %v7625_v50 = vor.u32 %v7928_v43, %v7624_v42  ;;  %6627 = vmatpush.bf16.msra.mxu1 %v7369_v45  ;;  %v7546_v34 = vld [vmem:[#allocation6 + $0x2f0] sm:$0xf0]  ;;  %v7293_v42 = vor.u32 %v7842_v28, %v7290_v29 }
  0x28   :  { %v7352_v49 = vld [vmem:[#allocation6 + $0x160] sm:$0xf]  ;;  %v7860_v51 = vld [vmem:[#allocation6 + $0x16c] sm:$0xf0]  ;;  %v7225_v56 = vor.u32 %v7828_v48, %v7224_v47  ;;  %6640 = vmatpush.bf16.msra.mxu2 %v7497_v46  ;;  %v7938_v35 = vld [vmem:[#allocation6 + $0x3e4] sm:$0xf]  ;;  %v7421_v46 = vor.u32 %v7874_v30, %v7418_v31  ;;  %v7549_v47 = vor.u32 %v7906_v33, %v7546_v34 }
  0x29   :  { %v7480_v52 = vld [vmem:[#allocation6 + $0x260] sm:$0xf]  ;;  %v7892_v53 = vld [vmem:[#allocation6 + $0x26c] sm:$0xf0]  ;;  %v7353_v57 = vor.u32 %v7860_v51, %v7352_v49  ;;  %6653 = vmatpush.bf16.msra.mxu3 %v7625_v50  ;;  %v7674_v38 = vld [vmem:[#allocation6 + $0x3f0] sm:$0xf0] }
  0x2a   :  { %v7608_v54 = vld [vmem:[#allocation6 + $0x360] sm:$0xf]  ;;  %v7924_v55 = vld [vmem:[#allocation6 + $0x36c] sm:$0xf0]  ;;  %v7481_v58 = vor.u32 %v7892_v53, %v7480_v52  ;;  %6615 = vmatpush.bf16.msra.mxu0 %v7225_v56  ;;  %v7838_v39 = vld [vmem:[#allocation6 + $0xc4] sm:$0xf]  ;;  %v7677_v51 = vor.u32 %v7938_v35, %v7674_v38 }
  0x2b   :  { %v7208_v59 = vld [vmem:[#allocation6 + $0x40] sm:$0xf]  ;;  %v7824_v60 = vld [vmem:[#allocation6 + $0x4c] sm:$0xf0]  ;;  %v7609_v62 = vor.u32 %v7924_v55, %v7608_v54  ;;  %6628 = vmatpush.bf16.msra.mxu1 %v7353_v57  ;;  %v7274_v40 = vld [vmem:[#allocation6 + $0xd0] sm:$0xf0] }
  0x2c   :  { %v7336_v61 = vld [vmem:[#allocation6 + $0x140] sm:$0xf]  ;;  %v7856_v63 = vld [vmem:[#allocation6 + $0x14c] sm:$0xf0]  ;;  %v7209_v4 = vor.u32 %v7824_v60, %v7208_v59  ;;  %6641 = vmatpush.bf16.msra.mxu2 %v7481_v58  ;;  %v8706_v43 = vld [vmem:[#allocation6 + $0x1c4] sm:$0xf] }
  0x2d   :  { %v7464_v0 = vld [vmem:[#allocation6 + $0x240] sm:$0xf]  ;;  %v7888_v1 = vld [vmem:[#allocation6 + $0x24c] sm:$0xf0]  ;;  %v7337_v5 = vor.u32 %v7856_v63, %v7336_v61  ;;  %6654 = vmatpush.bf16.msra.mxu3 %v7609_v62  ;;  %v7402_v44 = vld [vmem:[#allocation6 + $0x1d0] sm:$0xf0] }
  0x2e   :  { %v7592_v2 = vld [vmem:[#allocation6 + $0x340] sm:$0xf]  ;;  %v7920_v3 = vld [vmem:[#allocation6 + $0x34c] sm:$0xf0]  ;;  %v7465_v6 = vor.u32 %v7888_v1, %v7464_v0  ;;  %6616 = vmatpush.bf16.msra.mxu0 %v7209_v4  ;;  %v7902_v45 = vld [vmem:[#allocation6 + $0x2c4] sm:$0xf] }
  0x2f   :  { %v7192_v7 = vld [vmem:[#allocation6 + $0x20] sm:$0xf]  ;;  %v7820_v8 = vld [vmem:[#allocation6 + $0x2c] sm:$0xf0]  ;;  %v7593_v10 = vor.u32 %v7920_v3, %v7592_v2  ;;  %6629 = vmatpush.bf16.msra.mxu1 %v7337_v5  ;;  %v7530_v48 = vld [vmem:[#allocation6 + $0x2d0] sm:$0xf0]  ;;  %v7277_v2 = vor.u32 %v7838_v39, %v7274_v40 }
  0x30   :  { %v7320_v9 = vld [vmem:[#allocation6 + $0x120] sm:$0xf]  ;;  %v7852_v11 = vld [vmem:[#allocation6 + $0x12c] sm:$0xf0]  ;;  %v7193_v16 = vor.u32 %v7820_v8, %v7192_v7  ;;  %6642 = vmatpush.bf16.msra.mxu2 %v7465_v6  ;;  %v8708_v49 = vld [vmem:[#allocation6 + $0x3c4] sm:$0xf] }
  0x31   :  { %v7448_v12 = vld [vmem:[#allocation6 + $0x220] sm:$0xf]  ;;  %v7884_v13 = vld [vmem:[#allocation6 + $0x22c] sm:$0xf0]  ;;  %v7321_v20 = vor.u32 %v7852_v11, %v7320_v9  ;;  %6655 = vmatpush.bf16.msra.mxu3 %v7593_v10  ;;  %v8710_v50 = vld [vmem:[#allocation6 + $0x3d0] sm:$0xf0]  ;;  %v7405_v9 = vor.u32 %v8706_v43, %v7402_v44  ;;  %v7533_v10 = vor.u32 %v7902_v45, %v7530_v48 }
  0x32   :  { %v7576_v14 = vld [vmem:[#allocation6 + $0x320] sm:$0xf]  ;;  %v7916_v15 = vld [vmem:[#allocation6 + $0x32c] sm:$0xf0]  ;;  %v7449_v21 = vor.u32 %v7884_v13, %v7448_v12  ;;  %6617 = vmatpush.bf16.msra.mxu0 %v7193_v16  ;;  %v8712_v52 = vld [vmem:[#allocation6 + $0xa4] sm:$0xf]  ;;  %v7661_v16 = vor.u32 %v8708_v49, %v8710_v50 }
  0x33   :  { %v7176_v17 = vld [vmem:[#allocation6] sm:$0xf]  ;;  %v7816_v18 = vld [vmem:[#allocation6 + $0xc] sm:$0xf0]  ;;  %v7577_v25 = vor.u32 %v7916_v15, %v7576_v14  ;;  %6630 = vmatpush.bf16.msra.mxu1 %v7321_v20  ;;  %v8714_v53 = vld [vmem:[#allocation6 + $0xb0] sm:$0xf0] }
  0x34   :  { %v7304_v19 = vld [vmem:[#allocation6 + $0x100] sm:$0xf]  ;;  %v7848_v22 = vld [vmem:[#allocation6 + $0x10c] sm:$0xf0]  ;;  %v7177_v32 = vor.u32 %v7816_v18, %v7176_v17  ;;  %6643 = vmatpush.bf16.msra.mxu2 %v7449_v21  ;;  %v8716_v54 = vld [vmem:[#allocation6 + $0x1a4] sm:$0xf]  ;;  %v7261_v20 = vor.u32 %v8712_v52, %v8714_v53 }
  0x35   :  { %v7432_v23 = vld [vmem:[#allocation6 + $0x200] sm:$0xf]  ;;  %v7880_v24 = vld [vmem:[#allocation6 + $0x20c] sm:$0xf0]  ;;  %v7305_v36 = vor.u32 %v7848_v22, %v7304_v19  ;;  %6656 = vmatpush.bf16.msra.mxu3 %v7577_v25  ;;  %v8718_v55 = vld [vmem:[#allocation6 + $0x1b0] sm:$0xf0] }
  0x36   :  { %v7560_v26 = vld [vmem:[#allocation6 + $0x300] sm:$0xf]  ;;  %v7912_v27 = vld [vmem:[#allocation6 + $0x30c] sm:$0xf0]  ;;  %v7433_v37 = vor.u32 %v7880_v24, %v7432_v23  ;;  %6618 = vmatpush.bf16.msra.mxu0 %v7177_v32  ;;  %v8720_v56 = vld [vmem:[#allocation6 + $0x2a4] sm:$0xf]  ;;  %v7389_v21 = vor.u32 %v8716_v54, %v8718_v55 }
  0x37   :  { %v7561_v41 = vor.u32 %v7912_v27, %v7560_v26  ;;  %v8722_v57 = vld [vmem:[#allocation6 + $0x2b0] sm:$0xf0]  ;;  %6631 = vmatpush.bf16.msra.mxu1 %v7305_v36  ;;  %v8724_v58 = vld [vmem:[#allocation6 + $0x3a4] sm:$0xf] }
  0x38   :  { %6644 = vmatpush.bf16.msra.mxu2 %v7433_v37  ;;  %v8726_v59 = vld [vmem:[#allocation6 + $0x3b0] sm:$0xf0]  ;;  %v8728_v60 = vld [vmem:[#allocation6 + $0x84] sm:$0xf]  ;;  %v7517_v22 = vor.u32 %v8720_v56, %v8722_v57 }
  0x39   :  { %v8730_v61 = vld [vmem:[#allocation6 + $0x90] sm:$0xf0]  ;;  %v8732_v62 = vld [vmem:[#allocation6 + $0x184] sm:$0xf]  ;;  %6657 = vmatpush.bf16.msra.mxu3 %v7561_v41  ;;  %v7645_v26 = vor.u32 %v8724_v58, %v8726_v59 }
  0x3a   :  { %v8734_v63 = vld [vmem:[#allocation6 + $0x190] sm:$0xf0]  ;;  %v8736_v0 = vld [vmem:[#allocation6 + $0x284] sm:$0xf]  ;;  %6663 = vmatpush.bf16.msrb.mxu0 %v7293_v42  ;;  %v7245_v27 = vor.u32 %v8728_v60, %v8730_v61 }
  0x3b   :  { %v8738_v1 = vld [vmem:[#allocation6 + $0x290] sm:$0xf0]  ;;  %v8740_v3 = vld [vmem:[#allocation6 + $0x384] sm:$0xf]  ;;  %6676 = vmatpush.bf16.msrb.mxu1 %v7421_v46  ;;  %v7373_v28 = vor.u32 %v8732_v62, %v8734_v63 }
  0x3c   :  { %v8742_v4 = vld [vmem:[#allocation6 + $0x390] sm:$0xf0]  ;;  %v8744_v5 = vld [vmem:[#allocation6 + $0x64] sm:$0xf]  ;;  %6689 = vmatpush.bf16.msrb.mxu2 %v7549_v47  ;;  %v7501_v29 = vor.u32 %v8736_v0, %v8738_v1 }
  0x3d   :  { %v8746_v6 = vld [vmem:[#allocation6 + $0x70] sm:$0xf0]  ;;  %v8748_v7 = vld [vmem:[#allocation6 + $0x164] sm:$0xf]  ;;  %6702 = vmatpush.bf16.msrb.mxu3 %v7677_v51  ;;  %v7629_v33 = vor.u32 %v8740_v3, %v8742_v4 }
  0x3e   :  { %v8750_v8 = vld [vmem:[#allocation6 + $0x170] sm:$0xf0]  ;;  %v8753_v11 = vld [vmem:[#allocation6 + $0x264] sm:$0xf]  ;;  %6664 = vmatpush.bf16.msrb.mxu0 %v7277_v2  ;;  %v7229_v34 = vor.u32 %v8744_v5, %v8746_v6 }
  0x3f   :  { %v8755_v12 = vld [vmem:[#allocation6 + $0x270] sm:$0xf0]  ;;  %v8757_v13 = vld [vmem:[#allocation6 + $0x364] sm:$0xf]  ;;  %6677 = vmatpush.bf16.msrb.mxu1 %v7405_v9  ;;  %v7357_v35 = vor.u32 %v8748_v7, %v8750_v8 }
  0x40   :  { %v8759_v14 = vld [vmem:[#allocation6 + $0x370] sm:$0xf0]  ;;  %v8761_v15 = vld [vmem:[#allocation6 + $0x44] sm:$0xf]  ;;  %6690 = vmatpush.bf16.msrb.mxu2 %v7533_v10  ;;  %v10390_v3 = vor.u32 %v8753_v11, %v8755_v12 }
  0x41   :  { %v8765_v17 = vld [vmem:[#allocation6 + $0x50] sm:$0xf0]  ;;  %v8767_v18 = vld [vmem:[#allocation6 + $0x144] sm:$0xf]  ;;  %6703 = vmatpush.bf16.msrb.mxu3 %v7661_v16  ;;  %v10391_v5 = vor.u32 %v8757_v13, %v8759_v14 }
  0x42   :  { %v8769_v19 = vld [vmem:[#allocation6 + $0x150] sm:$0xf0]  ;;  %v8777_v23 = vld [vmem:[#allocation6 + $0x244] sm:$0xf]  ;;  %6665 = vmatpush.bf16.msrb.mxu0 %v7261_v20  ;;  %v10392_v11 = vor.u32 %v8761_v15, %v8765_v17 }
  0x43   :  { %v8779_v24 = vld [vmem:[#allocation6 + $0x250] sm:$0xf0]  ;;  %v8781_v25 = vld [vmem:[#allocation6 + $0x344] sm:$0xf]  ;;  %6678 = vmatpush.bf16.msrb.mxu1 %v7389_v21  ;;  %v10393_v13 = vor.u32 %v8767_v18, %v8769_v19 }
  0x44   :  { %v8791_v30 = vld [vmem:[#allocation6 + $0x350] sm:$0xf0]  ;;  %v8793_v31 = vld [vmem:[#allocation6 + $0x24] sm:$0xf]  ;;  %6691 = vmatpush.bf16.msrb.mxu2 %v7517_v22  ;;  %v10394_v14 = vor.u32 %v8777_v23, %v8779_v24 }
  0x45   :  { %v8795_v32 = vld [vmem:[#allocation6 + $0x30] sm:$0xf0]  ;;  %v8803_v36 = vld [vmem:[#allocation6 + $0x124] sm:$0xf]  ;;  %6704 = vmatpush.bf16.msrb.mxu3 %v7645_v26  ;;  %v10395_v15 = vor.u32 %v8781_v25, %v8791_v30 }
  0x46   :  { %v8805_v37 = vld [vmem:[#allocation6 + $0x130] sm:$0xf0]  ;;  %v8807_v38 = vld [vmem:[#allocation6 + $0x224] sm:$0xf]  ;;  %6666 = vmatpush.bf16.msrb.mxu0 %v7245_v27 }
  0x47   :  { %v8817_v43 = vld [vmem:[#allocation6 + $0x230] sm:$0xf0]  ;;  %v8819_v44 = vld [vmem:[#allocation6 + $0x324] sm:$0xf]  ;;  %6679 = vmatpush.bf16.msrb.mxu1 %v7373_v28 }
  0x48   :  { %v8821_v45 = vld [vmem:[#allocation6 + $0x330] sm:$0xf0]  ;;  %v103_v50 = vld [vmem:[#allocation3] sm:$0xff]  ;;  %6692 = vmatpush.bf16.msrb.mxu2 %v7501_v29 }
  0x49   :  { %v105_v51 = vld [vmem:[#allocation3 + $0x10] sm:$0xff]  ;;  %v107_v52 = vld [vmem:[#allocation3 + $0x200] sm:$0xff]  ;;  %v135_v57 = vunpack.c.l.bf16 %v103_v50  ;;  %6705 = vmatpush.bf16.msrb.mxu3 %v7629_v33 }
  0x4a   :  { %v109_v54 = vld [vmem:[#allocation3 + $0x210] sm:$0xff]  ;;  %v111_v55 = vld [vmem:[#allocation3 + $0x400] sm:$0xff]  ;;  %v139_v58 = vunpack.c.l.bf16 %v105_v51  ;;  %v143_v59 = vunpack.c.l.bf16 %v107_v52  ;;  %6667 = vmatpush.bf16.msrb.mxu0 %v7229_v34 }
  0x4b   :  { %v113_v56 = vld [vmem:[#allocation3 + $0x410] sm:$0xff]  ;;  %v115_v61 = vld [vmem:[#allocation3 + $0x600] sm:$0xff]  ;;  %v147_v10 = vunpack.c.l.bf16 %v109_v54  ;;  %v151_v16 = vunpack.c.l.bf16 %v111_v55  ;;  %6680 = vmatpush.bf16.msrb.mxu1 %v7357_v35 }
  0x4c   :  { %v117_v2 = vld [vmem:[#allocation3 + $0x610] sm:$0xff]  ;;  %v119_v9 = vld [vmem:[#allocation3 + $0x800] sm:$0xff]  ;;  %v155_v20 = vunpack.c.l.bf16 %v113_v56  ;;  %v159_v47 = vunpack.c.l.bf16 %v115_v61  ;;  %v199_v51 = vadd.f32 %v139_v58, %v135_v57  ;;  %6693 = vmatpush.bf16.msrb.mxu2 %v10390_v3 }
  0x4d   :  { %v121_v49 = vld [vmem:[#allocation3 + $0x810] sm:$0xff]  ;;  %v123_v53 = vld [vmem:[#allocation3 + $0xa00] sm:$0xff]  ;;  %v163_v46 = vunpack.c.l.bf16 %v117_v2  ;;  %v167_v50 = vunpack.c.l.bf16 %v119_v9  ;;  %v227_v40 = vadd.f32 %v147_v10, %v143_v59  ;;  %6706 = vmatpush.bf16.msrb.mxu3 %v10391_v5 }
  0x4e   :  { %v125_v48 = vld [vmem:[#allocation3 + $0xa10] sm:$0xff]  ;;  %v127_v52 = vld [vmem:[#allocation3 + $0xc00] sm:$0xff]  ;;  %v171_v42 = vunpack.c.l.bf16 %v121_v49  ;;  %v175_v41 = vunpack.c.l.bf16 %v123_v53  ;;  %v200_v26 = vrot.slane %v199_v51, 4  ;;  %v255_v49 = vadd.f32 %v155_v20, %v151_v16  ;;  %6668 = vmatpush.bf16.msrb.mxu0 %v10392_v11 }
  0x4f   :  { %v129_v21 = vld [vmem:[#allocation3 + $0xc10] sm:$0xff]  ;;  %v131_v22 = vld [vmem:[#allocation3 + $0xe00] sm:$0xff]  ;;  %v179_v60 = vunpack.c.l.bf16 %v125_v48  ;;  %v183_v54 = vunpack.c.l.bf16 %v127_v52  ;;  %v228_v58 = vrot.slane %v227_v40, 4  ;;  %v283_v53 = vadd.f32 %v163_v46, %v159_v47  ;;  %6681 = vmatpush.bf16.msrb.mxu1 %v10393_v13 }
  0x50   :  { %v133_v39 = vld [vmem:[#allocation3 + $0xe10] sm:$0xff]  ;;  %v187_v55 = vunpack.c.l.bf16 %v129_v21  ;;  %v191_v56 = vunpack.c.l.bf16 %v131_v22  ;;  %v201_v27 = vadd.f32 %v200_v26, %v199_v51  ;;  %v311_v48 = vadd.f32 %v171_v42, %v167_v50  ;;  %6694 = vmatpush.bf16.msrb.mxu2 %v10394_v14  ;;  %v455_v52 = vld [vmem:[#allocation3 + $0x20] sm:$0xff] }
  0x51   :  { %v195_v57 = vunpack.c.l.bf16 %v133_v39  ;;  %v339_v59 = vadd.f32 %v179_v60, %v175_v41  ;;  %v229_v2 = vadd.f32 %v228_v58, %v227_v40  ;;  %v256_v9 = vrot.slane %v255_v49, 4  ;;  %6707 = vmatpush.bf16.msrb.mxu3 %v10395_v15  ;;  %v457_v18 = vld [vmem:[#allocation3 + $0x30] sm:$0xff] }
  0x52   :  { %v367_v61 = vadd.f32 %v187_v55, %v183_v54  ;;  %v284_v62 = vrot.slane %v283_v53, 4  ;;  %v202_v0 = vrot.slane %v201_v27, 2  ;;  %v312_v1 = vrot.slane %v311_v48, 4  ;;  %v461_v26 = vld [vmem:[#allocation3 + $0x230] sm:$0xff] }
  0x53   :  { %v395_v63 = vadd.f32 %v195_v57, %v191_v56  ;;  %v340_v28 = vrot.slane %v339_v59, 4  ;;  %v230_v4 = vrot.slane %v229_v2, 2  ;;  %v257_v33 = vadd.f32 %v256_v9, %v255_v49  ;;  %v459_v56 = vld [vmem:[#allocation3 + $0x220] sm:$0xff]  ;;  %v481_v3 = vld [vmem:[#allocation3 + $0xc30] sm:$0xff] }
  0x54   :  { %v368_v29 = vrot.slane %v367_v61, 4  ;;  %v285_v39 = vadd.f32 %v284_v62, %v283_v53  ;;  %v203_v6 = vadd.f32 %v202_v0, %v201_v27  ;;  %v313_v34 = vadd.f32 %v312_v1, %v311_v48  ;;  %v463_v57 = vld [vmem:[#allocation3 + $0x420] sm:$0xff]  ;;  %v465_v53 = vld [vmem:[#allocation3 + $0x430] sm:$0xff] }
  0x55   :  { %v396_v40 = vrot.slane %v395_v63, 4  ;;  %v341_v41 = vadd.f32 %v340_v28, %v339_v59  ;;  %v231_v46 = vadd.f32 %v230_v4, %v229_v2  ;;  %v258_v47 = vrot.slane %v257_v33, 2  ;;  %v467_v27 = vld [vmem:[#allocation3 + $0x620] sm:$0xff]  ;;  %v469_v48 = vld [vmem:[#allocation3 + $0x630] sm:$0xff] }
  0x56   :  { %v369_v42 = vadd.f32 %v368_v29, %v367_v61  ;;  %v286_v7 = vrot.slane %v285_v39, 2  ;;  %v204_v12 = vrot.slane %v203_v6, 1  ;;  %v314_v35 = vrot.slane %v313_v34, 2  ;;  %v475_v0 = vld [vmem:[#allocation3 + $0xa20] sm:$0xff] }
  0x57   :  { %v397_v8 = vadd.f32 %v396_v40, %v395_v63  ;;  %v342_v60 = vrot.slane %v341_v41, 2  ;;  %v232_v16 = vrot.slane %v231_v46, 1  ;;  %v259_v20 = vadd.f32 %v258_v47, %v257_v33  ;;  %v473_v63 = vld [vmem:[#allocation3 + $0x830] sm:$0xff] }
  0x58   :  { %v370_v10 = vrot.slane %v369_v42, 2  ;;  %v287_v50 = vadd.f32 %v286_v7, %v285_v39  ;;  %v8868_v17 = vadd.f32 %v204_v12, %v203_v6  ;;  %v315_v21 = vadd.f32 %v314_v35, %v313_v34  ;;  %v483_v39 = vld [vmem:[#allocation3 + $0xe20] sm:$0xff]  ;;  %v485_v40 = vld [vmem:[#allocation3 + $0xe30] sm:$0xff] }
  0x59   :  { %v398_v51 = vrot.slane %v397_v8, 2  ;;  %v343_v22 = vadd.f32 %v342_v60, %v341_v41  ;;  %v8870_v19 = vadd.f32 %v232_v16, %v231_v46  ;;  %v260_v55 = vrot.slane %v259_v20, 1 }
  0x5a   :  { %v371_v54 = vadd.f32 %v370_v10, %v369_v42  ;;  %v288_v23 = vrot.slane %v287_v50, 1  ;;  %v10396_v58 = vor.u32 %v8793_v31, %v8795_v32  ;;  %v316_v25 = vrot.slane %v315_v21, 1  ;;  %v471_v32 = vld [vmem:[#allocation3 + $0x820] sm:$0xff] }
  0x5b   :  { %v399_v24 = vadd.f32 %v398_v51, %v397_v8  ;;  %v344_v30 = vrot.slane %v343_v22, 1  ;;  %v487_v59 = vunpack.c.l.bf16 %v455_v52  ;;  %v10397_v61 = vor.u32 %v8803_v36, %v8805_v37 }
  0x5c   :  { %6669 = vmatpush.bf16.msrb.mxu0 %v10396_v58  ;;  %v372_v49 = vrot.slane %v371_v54, 1  ;;  %v10398_v2 = vor.u32 %v8807_v38, %v8817_v43  ;;  %v8881_v9 = vadd.f32 %v260_v55, %v259_v20  ;;  %v8883_v62 = vadd.f32 %v288_v23, %v287_v50  ;;  %v477_v38 = vld [vmem:[#allocation3 + $0xa30] sm:$0xff]  ;;  %v479_v43 = vld [vmem:[#allocation3 + $0xc20] sm:$0xff] }
  0x5d   :  { %6682 = vmatpush.bf16.msrb.mxu1 %v10397_v61  ;;  %v400_v31 = vrot.slane %v399_v24, 1  ;;  %v491_v1 = vunpack.c.l.bf16 %v457_v18  ;;  %v10399_v28 = vor.u32 %v8819_v44, %v8821_v45  ;;  %v8888_v29 = vadd.f32 %v316_v25, %v315_v21 }
  0x5e   :  { %6695 = vmatpush.bf16.msrb.mxu2 %v10398_v2  ;;  %v8890_v36 = vadd.f32 %v344_v30, %v343_v22  ;;  %v8892_v37 = vadd.f32 %v372_v49, %v371_v54  ;;  %v495_v4 = vunpack.c.l.bf16 %v459_v56  ;;  %v499_v5 = vunpack.c.l.bf16 %v461_v26 }
  0x5f   :  { %6708 = vmatpush.bf16.msrb.mxu3 %v10399_v28  ;;  %v8894_v33 = vadd.f32 %v400_v31, %v399_v24  ;;  %v503_v6 = vunpack.c.l.bf16 %v463_v57  ;;  %v507_v34 = vunpack.c.l.bf16 %v465_v53  ;;  %v511_v41 = vunpack.c.l.bf16 %v467_v27 }
  0x60   :  { %v515_v44 = vunpack.c.l.bf16 %v469_v48  ;;  %v519_v45 = vunpack.c.l.bf16 %v471_v32  ;;  %v523_v42 = vunpack.c.l.bf16 %v473_v63  ;;  %v527_v46 = vunpack.c.l.bf16 %v475_v0 }
  0x61   :  { %v531_v47 = vunpack.c.l.bf16 %v477_v38  ;;  %v535_v7 = vunpack.c.l.bf16 %v479_v43  ;;  %v539_v8 = vunpack.c.l.bf16 %v481_v3  ;;  %v543_v11 = vunpack.c.l.bf16 %v483_v39 }
  0x62   :  { %v547_v12 = vunpack.c.l.bf16 %v485_v40  ;;  %v551_v35 = vadd.f32 %v491_v1, %v487_v59  ;;  %v579_v60 = vadd.f32 %v499_v5, %v495_v4  ;;  %v607_v10 = vadd.f32 %v507_v34, %v503_v6 }
  0x63   :  { %v635_v13 = vadd.f32 %v515_v44, %v511_v41  ;;  %v663_v14 = vadd.f32 %v523_v42, %v519_v45  ;;  %v691_v16 = vadd.f32 %v531_v47, %v527_v46  ;;  %v719_v51 = vadd.f32 %v539_v8, %v535_v7  ;;  %v807_v46 = vld [vmem:[#allocation3 + $0x40] sm:$0xff]  ;;  %v809_v47 = vld [vmem:[#allocation3 + $0x50] sm:$0xff] }
  0x64   :  { %v552_v20 = vrot.slane %v551_v35, 4  ;;  %v580_v50 = vrot.slane %v579_v60, 4  ;;  %v747_v52 = vadd.f32 %v547_v12, %v543_v11  ;;  %v608_v15 = vrot.slane %v607_v10, 4 }
  0x65   :  { %v636_v21 = vrot.slane %v635_v13, 4  ;;  %v664_v22 = vrot.slane %v663_v14, 4  ;;  %v692_v54 = vrot.slane %v691_v16, 4  ;;  %v720_v23 = vrot.slane %v719_v51, 4 }
  0x66   :  { %v553_v18 = vadd.f32 %v552_v20, %v551_v35  ;;  %v581_v55 = vadd.f32 %v580_v50, %v579_v60  ;;  %v748_v24 = vrot.slane %v747_v52, 4  ;;  %v609_v56 = vadd.f32 %v608_v15, %v607_v10  ;;  %v811_v35 = vld [vmem:[#allocation3 + $0x240] sm:$0xff]  ;;  %v813_v60 = vld [vmem:[#allocation3 + $0x250] sm:$0xff] }
  0x67   :  { %v637_v26 = vadd.f32 %v636_v21, %v635_v13  ;;  %v665_v57 = vadd.f32 %v664_v22, %v663_v14  ;;  %v693_v58 = vadd.f32 %v692_v54, %v691_v16  ;;  %v721_v49 = vadd.f32 %v720_v23, %v719_v51  ;;  %v815_v10 = vld [vmem:[#allocation3 + $0x440] sm:$0xff]  ;;  %v817_v50 = vld [vmem:[#allocation3 + $0x450] sm:$0xff] }
  0x68   :  { %v554_v25 = vrot.slane %v553_v18, 2  ;;  %v582_v30 = vrot.slane %v581_v55, 2  ;;  %v749_v53 = vadd.f32 %v748_v24, %v747_v52  ;;  %v610_v27 = vrot.slane %v609_v56, 2  ;;  %v819_v51 = vld [vmem:[#allocation3 + $0x640] sm:$0xff]  ;;  %v821_v52 = vld [vmem:[#allocation3 + $0x650] sm:$0xff] }
  0x69   :  { %v638_v48 = vrot.slane %v637_v26, 2  ;;  %v666_v59 = vrot.slane %v665_v57, 2  ;;  %v694_v61 = vrot.slane %v693_v58, 2  ;;  %v722_v32 = vrot.slane %v721_v49, 2  ;;  %v831_v24 = vld [vmem:[#allocation3 + $0xc40] sm:$0xff] }
  0x6a   :  { %v555_v2 = vadd.f32 %v554_v25, %v553_v18  ;;  %v583_v31 = vadd.f32 %v582_v30, %v581_v55  ;;  %v750_v63 = vrot.slane %v749_v53, 2  ;;  %v611_v0 = vadd.f32 %v610_v27, %v609_v56  ;;  %v825_v18 = vld [vmem:[#allocation3 + $0x850] sm:$0xff]  ;;  %v827_v55 = vld [vmem:[#allocation3 + $0xa40] sm:$0xff] }
  0x6b   :  { %v639_v1 = vadd.f32 %v638_v48, %v637_v26  ;;  %v667_v28 = vadd.f32 %v666_v59, %v665_v57  ;;  %v695_v38 = vadd.f32 %v694_v61, %v693_v58  ;;  %v723_v4 = vadd.f32 %v722_v32, %v721_v49  ;;  %v833_v56 = vld [vmem:[#allocation3 + $0xc50] sm:$0xff]  ;;  %v835_v57 = vld [vmem:[#allocation3 + $0xe40] sm:$0xff] }
  0x6c   :  { %v556_v43 = vrot.slane %v555_v2, 1  ;;  %v584_v3 = vrot.slane %v583_v31, 1  ;;  %v751_v39 = vadd.f32 %v750_v63, %v749_v53  ;;  %v612_v40 = vrot.slane %v611_v0, 1 }
  0x6d   :  { %v640_v5 = vrot.slane %v639_v1, 1  ;;  %v668_v6 = vrot.slane %v667_v28, 1  ;;  %v696_v34 = vrot.slane %v695_v38, 1  ;;  %v724_v45 = vrot.slane %v723_v4, 1 }
  0x6e   :  { %v557_v41 = vadd.f32 %v556_v43, %v555_v2  ;;  %v585_v44 = vadd.f32 %v584_v3, %v583_v31  ;;  %v752_v42 = vrot.slane %v751_v39, 1  ;;  %v613_v7 = vadd.f32 %v612_v40, %v611_v0 }
  0x6f   :  { %v641_v8 = vadd.f32 %v640_v5, %v639_v1  ;;  %v669_v11 = vadd.f32 %v668_v6, %v667_v28  ;;  %v697_v12 = vadd.f32 %v696_v34, %v695_v38  ;;  %v725_v13 = vadd.f32 %v724_v45, %v723_v4 }
  0x70   :  { %v753_v14 = vadd.f32 %v752_v42, %v751_v39  ;;  %v8897_v16 = vadd.f32 %v557_v41, %v8868_v17  ;;  %v8900_v20 = vadd.f32 %v585_v44, %v8870_v19  ;;  %v8903_v15 = vadd.f32 %v613_v7, %v8881_v9  ;;  %v823_v17 = vld [vmem:[#allocation3 + $0x840] sm:$0xff]  ;;  %v829_v9 = vld [vmem:[#allocation3 + $0xa50] sm:$0xff] }
  0x71   :  { %v8906_v21 = vadd.f32 %v641_v8, %v8883_v62  ;;  %v8909_v22 = vadd.f32 %v669_v11, %v8888_v29  ;;  %v8912_v54 = vadd.f32 %v697_v12, %v8890_v36  ;;  %v8915_v19 = vadd.f32 %v725_v13, %v8892_v37  ;;  %v837_v29 = vld [vmem:[#allocation3 + $0xe50] sm:$0xff] }
  0x72   :  { %v8918_v23 = vadd.f32 %v753_v14, %v8894_v33  ;;  %v839_v62 = vunpack.c.l.bf16 %v807_v46  ;;  %v843_v26 = vunpack.c.l.bf16 %v809_v47  ;;  %v847_v58 = vunpack.c.l.bf16 %v811_v35 }
  0x73   :  { %v851_v25 = vunpack.c.l.bf16 %v813_v60  ;;  %v855_v36 = vunpack.c.l.bf16 %v815_v10  ;;  %v859_v30 = vunpack.c.l.bf16 %v817_v50  ;;  %v863_v49 = vunpack.c.l.bf16 %v819_v51 }
  0x74   :  { %v867_v53 = vunpack.c.l.bf16 %v821_v52  ;;  %v871_v27 = vunpack.c.l.bf16 %v823_v17  ;;  %v875_v48 = vunpack.c.l.bf16 %v825_v18  ;;  %v879_v37 = vunpack.c.l.bf16 %v827_v55 }
  0x75   :  { %v883_v59 = vunpack.c.l.bf16 %v829_v9  ;;  %v887_v61 = vunpack.c.l.bf16 %v831_v24  ;;  %v891_v33 = vunpack.c.l.bf16 %v833_v56  ;;  %v895_v2 = vunpack.c.l.bf16 %v835_v57 }
  0x76   :  { %v899_v31 = vunpack.c.l.bf16 %v837_v29  ;;  %v903_v32 = vadd.f32 %v843_v26, %v839_v62  ;;  %v931_v63 = vadd.f32 %v851_v25, %v847_v58  ;;  %v959_v0 = vadd.f32 %v859_v30, %v855_v36 }
  0x77   :  { %v987_v1 = vadd.f32 %v867_v53, %v863_v49  ;;  %v1015_v28 = vadd.f32 %v875_v48, %v871_v27  ;;  %v1043_v38 = vadd.f32 %v883_v59, %v879_v37  ;;  %v1071_v4 = vadd.f32 %v891_v33, %v887_v61  ;;  %v1159_v37 = vld [vmem:[#allocation3 + $0x60] sm:$0xff]  ;;  %v1161_v59 = vld [vmem:[#allocation3 + $0x70] sm:$0xff] }
  0x78   :  { %v904_v43 = vrot.slane %v903_v32, 4  ;;  %v932_v3 = vrot.slane %v931_v63, 4  ;;  %v1099_v39 = vadd.f32 %v899_v31, %v895_v2  ;;  %v960_v40 = vrot.slane %v959_v0, 4 }
  0x79   :  { %v988_v5 = vrot.slane %v987_v1, 4  ;;  %v1016_v6 = vrot.slane %v1015_v28, 4  ;;  %v1044_v34 = vrot.slane %v1043_v38, 4  ;;  %v1072_v45 = vrot.slane %v1071_v4, 4 }
  0x7a   :  { %v905_v41 = vadd.f32 %v904_v43, %v903_v32  ;;  %v933_v44 = vadd.f32 %v932_v3, %v931_v63  ;;  %v1100_v42 = vrot.slane %v1099_v39, 4  ;;  %v961_v46 = vadd.f32 %v960_v40, %v959_v0  ;;  %v1163_v32 = vld [vmem:[#allocation3 + $0x260] sm:$0xff]  ;;  %v1165_v63 = vld [vmem:[#allocation3 + $0x270] sm:$0xff] }
  0x7b   :  { %v989_v47 = vadd.f32 %v988_v5, %v987_v1  ;;  %v1017_v7 = vadd.f32 %v1016_v6, %v1015_v28  ;;  %v1045_v8 = vadd.f32 %v1044_v34, %v1043_v38  ;;  %v1073_v35 = vadd.f32 %v1072_v45, %v1071_v4  ;;  %v1167_v0 = vld [vmem:[#allocation3 + $0x460] sm:$0xff]  ;;  %v1169_v3 = vld [vmem:[#allocation3 + $0x470] sm:$0xff] }
  0x7c   :  { %v906_v11 = vrot.slane %v905_v41, 2  ;;  %v934_v12 = vrot.slane %v933_v44, 2  ;;  %v1101_v60 = vadd.f32 %v1100_v42, %v1099_v39  ;;  %v962_v10 = vrot.slane %v961_v46, 2  ;;  %v1171_v4 = vld [vmem:[#allocation3 + $0x660] sm:$0xff]  ;;  %v1173_v39 = vld [vmem:[#allocation3 + $0x670] sm:$0xff] }
  0x7d   :  { %v990_v13 = vrot.slane %v989_v47, 2  ;;  %v1018_v14 = vrot.slane %v1017_v7, 2  ;;  %v1046_v50 = vrot.slane %v1045_v8, 2  ;;  %v1074_v17 = vrot.slane %v1073_v35, 2  ;;  %v1183_v42 = vld [vmem:[#allocation3 + $0xc60] sm:$0xff] }
  0x7e   :  { %v907_v51 = vadd.f32 %v906_v11, %v905_v41  ;;  %v935_v52 = vadd.f32 %v934_v12, %v933_v44  ;;  %v1102_v18 = vrot.slane %v1101_v60, 2  ;;  %v963_v55 = vadd.f32 %v962_v10, %v961_v46  ;;  %v1177_v41 = vld [vmem:[#allocation3 + $0x870] sm:$0xff]  ;;  %v1179_v44 = vld [vmem:[#allocation3 + $0xa60] sm:$0xff] }
  0x7f   :  { %v991_v9 = vadd.f32 %v990_v13, %v989_v47  ;;  %v1019_v24 = vadd.f32 %v1018_v14, %v1017_v7  ;;  %v1047_v56 = vadd.f32 %v1046_v50, %v1045_v8  ;;  %v1075_v57 = vadd.f32 %v1074_v17, %v1073_v35  ;;  %v1185_v46 = vld [vmem:[#allocation3 + $0xc70] sm:$0xff]  ;;  %v1187_v7 = vld [vmem:[#allocation3 + $0xe60] sm:$0xff] }
  0x80   :  { %v908_v62 = vrot.slane %v907_v51, 1  ;;  %v936_v26 = vrot.slane %v935_v52, 1  ;;  %v1103_v29 = vadd.f32 %v1102_v18, %v1101_v60  ;;  %v964_v58 = vrot.slane %v963_v55, 1 }
  0x81   :  { %v992_v25 = vrot.slane %v991_v9, 1  ;;  %v1020_v36 = vrot.slane %v1019_v24, 1  ;;  %v1048_v30 = vrot.slane %v1047_v56, 1  ;;  %v1076_v27 = vrot.slane %v1075_v57, 1 }
  0x82   :  { %v909_v49 = vadd.f32 %v908_v62, %v907_v51  ;;  %v937_v53 = vadd.f32 %v936_v26, %v935_v52  ;;  %v1104_v48 = vrot.slane %v1103_v29, 1  ;;  %v965_v61 = vadd.f32 %v964_v58, %v963_v55 }
  0x83   :  { %v993_v33 = vadd.f32 %v992_v25, %v991_v9  ;;  %v1021_v2 = vadd.f32 %v1020_v36, %v1019_v24  ;;  %v1049_v31 = vadd.f32 %v1048_v30, %v1047_v56  ;;  %v1077_v1 = vadd.f32 %v1076_v27, %v1075_v57 }
  0x84   :  { %v1105_v28 = vadd.f32 %v1104_v48, %v1103_v29  ;;  %v8921_v38 = vadd.f32 %v909_v49, %v8897_v16  ;;  %v8924_v43 = vadd.f32 %v937_v53, %v8900_v20  ;;  %v8927_v40 = vadd.f32 %v965_v61, %v8903_v15  ;;  %v1175_v16 = vld [vmem:[#allocation3 + $0x860] sm:$0xff]  ;;  %v1181_v15 = vld [vmem:[#allocation3 + $0xa70] sm:$0xff] }
  0x85   :  { %v8930_v5 = vadd.f32 %v993_v33, %v8906_v21  ;;  %v8933_v6 = vadd.f32 %v1021_v2, %v8909_v22  ;;  %v8936_v34 = vadd.f32 %v1049_v31, %v8912_v54  ;;  %v8939_v20 = vadd.f32 %v1077_v1, %v8915_v19  ;;  %v1189_v22 = vld [vmem:[#allocation3 + $0xe70] sm:$0xff] }
  0x86   :  { %v8942_v45 = vadd.f32 %v1105_v28, %v8918_v23  ;;  %v1191_v21 = vunpack.c.l.bf16 %v1159_v37  ;;  %v1195_v47 = vunpack.c.l.bf16 %v1161_v59  ;;  %v1199_v8 = vunpack.c.l.bf16 %v1163_v32 }
  0x87   :  { %v1203_v11 = vunpack.c.l.bf16 %v1165_v63  ;;  %v1207_v54 = vunpack.c.l.bf16 %v1167_v0  ;;  %v1211_v12 = vunpack.c.l.bf16 %v1169_v3  ;;  %v1215_v35 = vunpack.c.l.bf16 %v1171_v4 }
  0x88   :  { %v1219_v60 = vunpack.c.l.bf16 %v1173_v39  ;;  %v1223_v10 = vunpack.c.l.bf16 %v1175_v16  ;;  %v1227_v13 = vunpack.c.l.bf16 %v1177_v41  ;;  %v1231_v19 = vunpack.c.l.bf16 %v1179_v44 }
  0x89   :  { %v1235_v14 = vunpack.c.l.bf16 %v1181_v15  ;;  %v1239_v50 = vunpack.c.l.bf16 %v1183_v42  ;;  %v1243_v23 = vunpack.c.l.bf16 %v1185_v46  ;;  %v1247_v51 = vunpack.c.l.bf16 %v1187_v7 }
  0x8a   :  { %v1251_v52 = vunpack.c.l.bf16 %v1189_v22  ;;  %v1255_v17 = vadd.f32 %v1195_v47, %v1191_v21  ;;  %v1283_v18 = vadd.f32 %v1203_v11, %v1199_v8  ;;  %v1311_v55 = vadd.f32 %v1211_v12, %v1207_v54 }
  0x8b   :  { %v1339_v9 = vadd.f32 %v1219_v60, %v1215_v35  ;;  %v1367_v24 = vadd.f32 %v1227_v13, %v1223_v10  ;;  %v1395_v56 = vadd.f32 %v1235_v14, %v1231_v19  ;;  %v1423_v57 = vadd.f32 %v1243_v23, %v1239_v50  ;;  %v1511_v19 = vld [vmem:[#allocation3 + $0x80] sm:$0xff]  ;;  %v1513_v14 = vld [vmem:[#allocation3 + $0x90] sm:$0xff] }
  0x8c   :  { %v1256_v62 = vrot.slane %v1255_v17, 4  ;;  %v1284_v26 = vrot.slane %v1283_v18, 4  ;;  %v1451_v29 = vadd.f32 %v1251_v52, %v1247_v51  ;;  %v1312_v58 = vrot.slane %v1311_v55, 4 }
  0x8d   :  { %v1340_v25 = vrot.slane %v1339_v9, 4  ;;  %v1368_v36 = vrot.slane %v1367_v24, 4  ;;  %v1396_v30 = vrot.slane %v1395_v56, 4  ;;  %v1424_v27 = vrot.slane %v1423_v57, 4 }
  0x8e   :  { %v1257_v49 = vadd.f32 %v1256_v62, %v1255_v17  ;;  %v1285_v53 = vadd.f32 %v1284_v26, %v1283_v18  ;;  %v1452_v48 = vrot.slane %v1451_v29, 4  ;;  %v1313_v37 = vadd.f32 %v1312_v58, %v1311_v55  ;;  %v1515_v17 = vld [vmem:[#allocation3 + $0x280] sm:$0xff]  ;;  %v1517_v18 = vld [vmem:[#allocation3 + $0x290] sm:$0xff] }
  0x8f   :  { %v1341_v59 = vadd.f32 %v1340_v25, %v1339_v9  ;;  %v1369_v61 = vadd.f32 %v1368_v36, %v1367_v24  ;;  %v1397_v33 = vadd.f32 %v1396_v30, %v1395_v56  ;;  %v1425_v32 = vadd.f32 %v1424_v27, %v1423_v57  ;;  %v1519_v55 = vld [vmem:[#allocation3 + $0x480] sm:$0xff]  ;;  %v1521_v26 = vld [vmem:[#allocation3 + $0x490] sm:$0xff] }
  0x90   :  { %v1258_v2 = vrot.slane %v1257_v49, 2  ;;  %v1286_v31 = vrot.slane %v1285_v53, 2  ;;  %v1453_v63 = vadd.f32 %v1452_v48, %v1451_v29  ;;  %v1314_v0 = vrot.slane %v1313_v37, 2  ;;  %v1523_v57 = vld [vmem:[#allocation3 + $0x680] sm:$0xff]  ;;  %v1525_v29 = vld [vmem:[#allocation3 + $0x690] sm:$0xff] }
  0x91   :  { %v1342_v1 = vrot.slane %v1341_v59, 2  ;;  %v1370_v28 = vrot.slane %v1369_v61, 2  ;;  %v1398_v3 = vrot.slane %v1397_v33, 2  ;;  %v1426_v16 = vrot.slane %v1425_v32, 2  ;;  %v1535_v48 = vld [vmem:[#allocation3 + $0xc80] sm:$0xff] }
  0x92   :  { %v1259_v4 = vadd.f32 %v1258_v2, %v1257_v49  ;;  %v1287_v39 = vadd.f32 %v1286_v31, %v1285_v53  ;;  %v1454_v41 = vrot.slane %v1453_v63, 2  ;;  %v1315_v44 = vadd.f32 %v1314_v0, %v1313_v37  ;;  %v1529_v49 = vld [vmem:[#allocation3 + $0x890] sm:$0xff]  ;;  %v1531_v53 = vld [vmem:[#allocation3 + $0xa80] sm:$0xff] }
  0x93   :  { %v1343_v15 = vadd.f32 %v1342_v1, %v1341_v59  ;;  %v1371_v42 = vadd.f32 %v1370_v28, %v1369_v61  ;;  %v1399_v46 = vadd.f32 %v1398_v3, %v1397_v33  ;;  %v1427_v7 = vadd.f32 %v1426_v16, %v1425_v32  ;;  %v1537_v37 = vld [vmem:[#allocation3 + $0xc90] sm:$0xff]  ;;  %v1539_v61 = vld [vmem:[#allocation3 + $0xe80] sm:$0xff] }
  0x94   :  { %v1260_v21 = vrot.slane %v1259_v4, 1  ;;  %v1288_v47 = vrot.slane %v1287_v39, 1  ;;  %v1455_v22 = vadd.f32 %v1454_v41, %v1453_v63  ;;  %v1316_v8 = vrot.slane %v1315_v44, 1 }
  0x95   :  { %v1344_v11 = vrot.slane %v1343_v15, 1  ;;  %v1372_v54 = vrot.slane %v1371_v42, 1  ;;  %v1400_v12 = vrot.slane %v1399_v46, 1  ;;  %v1428_v10 = vrot.slane %v1427_v7, 1 }
  0x96   :  { %v1261_v35 = vadd.f32 %v1260_v21, %v1259_v4  ;;  %v1289_v60 = vadd.f32 %v1288_v47, %v1287_v39  ;;  %v1456_v13 = vrot.slane %v1455_v22, 1  ;;  %v1317_v50 = vadd.f32 %v1316_v8, %v1315_v44 }
  0x97   :  { %v1345_v23 = vadd.f32 %v1344_v11, %v1343_v15  ;;  %v1373_v51 = vadd.f32 %v1372_v54, %v1371_v42  ;;  %v1401_v52 = vadd.f32 %v1400_v12, %v1399_v46  ;;  %v1429_v9 = vadd.f32 %v1428_v10, %v1427_v7 }
  0x98   :  { %v1457_v24 = vadd.f32 %v1456_v13, %v1455_v22  ;;  %v8945_v56 = vadd.f32 %v1261_v35, %v8921_v38  ;;  %v8948_v62 = vadd.f32 %v1289_v60, %v8924_v43  ;;  %v8951_v58 = vadd.f32 %v1317_v50, %v8927_v40  ;;  %v1527_v38 = vld [vmem:[#allocation3 + $0x880] sm:$0xff]  ;;  %v1533_v40 = vld [vmem:[#allocation3 + $0xa90] sm:$0xff] }
  0x99   :  { %v8954_v25 = vadd.f32 %v1345_v23, %v8930_v5  ;;  %v8957_v36 = vadd.f32 %v1373_v51, %v8933_v6  ;;  %v8960_v30 = vadd.f32 %v1401_v52, %v8936_v34  ;;  %v8963_v43 = vadd.f32 %v1429_v9, %v8939_v20  ;;  %v1541_v6 = vld [vmem:[#allocation3 + $0xe90] sm:$0xff] }
  0x9a   :  { %v8966_v27 = vadd.f32 %v1457_v24, %v8942_v45  ;;  %v1543_v5 = vunpack.c.l.bf16 %v1511_v19  ;;  %v1547_v59 = vunpack.c.l.bf16 %v1513_v14  ;;  %v1551_v33 = vunpack.c.l.bf16 %v1515_v17 }
  0x9b   :  { %v1555_v2 = vunpack.c.l.bf16 %v1517_v18  ;;  %v1559_v34 = vunpack.c.l.bf16 %v1519_v55  ;;  %v1563_v31 = vunpack.c.l.bf16 %v1521_v26  ;;  %v1567_v32 = vunpack.c.l.bf16 %v1523_v57 }
  0x9c   :  { %v1571_v63 = vunpack.c.l.bf16 %v1525_v29  ;;  %v1575_v0 = vunpack.c.l.bf16 %v1527_v38  ;;  %v1579_v1 = vunpack.c.l.bf16 %v1529_v49  ;;  %v1583_v20 = vunpack.c.l.bf16 %v1531_v53 }
  0x9d   :  { %v1587_v28 = vunpack.c.l.bf16 %v1533_v40  ;;  %v1591_v3 = vunpack.c.l.bf16 %v1535_v48  ;;  %v1595_v45 = vunpack.c.l.bf16 %v1537_v37  ;;  %v1599_v4 = vunpack.c.l.bf16 %v1539_v61 }
  0x9e   :  { %v1603_v39 = vunpack.c.l.bf16 %v1541_v6  ;;  %v1607_v16 = vadd.f32 %v1547_v59, %v1543_v5  ;;  %v1635_v41 = vadd.f32 %v1555_v2, %v1551_v33  ;;  %v1663_v44 = vadd.f32 %v1563_v31, %v1559_v34 }
  0x9f   :  { %v1691_v15 = vadd.f32 %v1571_v63, %v1567_v32  ;;  %v1719_v42 = vadd.f32 %v1579_v1, %v1575_v0  ;;  %v1747_v46 = vadd.f32 %v1587_v28, %v1583_v20  ;;  %v1775_v7 = vadd.f32 %v1595_v45, %v1591_v3  ;;  %v1863_v20 = vld [vmem:[#allocation3 + $0xa0] sm:$0xff]  ;;  %v1865_v28 = vld [vmem:[#allocation3 + $0xb0] sm:$0xff] }
  0xa0   :  { %v1608_v21 = vrot.slane %v1607_v16, 4  ;;  %v1636_v47 = vrot.slane %v1635_v41, 4  ;;  %v1803_v22 = vadd.f32 %v1603_v39, %v1599_v4  ;;  %v1664_v8 = vrot.slane %v1663_v44, 4 }
  0xa1   :  { %v1692_v11 = vrot.slane %v1691_v15, 4  ;;  %v1720_v54 = vrot.slane %v1719_v42, 4  ;;  %v1748_v12 = vrot.slane %v1747_v46, 4  ;;  %v1776_v10 = vrot.slane %v1775_v7, 4 }
  0xa2   :  { %v1609_v35 = vadd.f32 %v1608_v21, %v1607_v16  ;;  %v1637_v60 = vadd.f32 %v1636_v47, %v1635_v41  ;;  %v1804_v13 = vrot.slane %v1803_v22, 4  ;;  %v1665_v19 = vadd.f32 %v1664_v8, %v1663_v44  ;;  %v1867_v16 = vld [vmem:[#allocation3 + $0x2a0] sm:$0xff]  ;;  %v1869_v41 = vld [vmem:[#allocation3 + $0x2b0] sm:$0xff] }
  0xa3   :  { %v1693_v14 = vadd.f32 %v1692_v11, %v1691_v15  ;;  %v1721_v50 = vadd.f32 %v1720_v54, %v1719_v42  ;;  %v1749_v23 = vadd.f32 %v1748_v12, %v1747_v46  ;;  %v1777_v17 = vadd.f32 %v1776_v10, %v1775_v7  ;;  %v1871_v44 = vld [vmem:[#allocation3 + $0x4a0] sm:$0xff]  ;;  %v1873_v47 = vld [vmem:[#allocation3 + $0x4b0] sm:$0xff] }
  0xa4   :  { %v1610_v51 = vrot.slane %v1609_v35, 2  ;;  %v1638_v52 = vrot.slane %v1637_v60, 2  ;;  %v1805_v18 = vadd.f32 %v1804_v13, %v1803_v22  ;;  %v1666_v55 = vrot.slane %v1665_v19, 2  ;;  %v1875_v7 = vld [vmem:[#allocation3 + $0x6a0] sm:$0xff]  ;;  %v1877_v22 = vld [vmem:[#allocation3 + $0x6b0] sm:$0xff] }
  0xa5   :  { %v1694_v9 = vrot.slane %v1693_v14, 2  ;;  %v1722_v24 = vrot.slane %v1721_v50, 2  ;;  %v1750_v26 = vrot.slane %v1749_v23, 2  ;;  %v1778_v38 = vrot.slane %v1777_v17, 2  ;;  %v1887_v13 = vld [vmem:[#allocation3 + $0xca0] sm:$0xff] }
  0xa6   :  { %v1611_v57 = vadd.f32 %v1610_v51, %v1609_v35  ;;  %v1639_v29 = vadd.f32 %v1638_v52, %v1637_v60  ;;  %v1806_v49 = vrot.slane %v1805_v18, 2  ;;  %v1667_v53 = vadd.f32 %v1666_v55, %v1665_v19  ;;  %v1881_v35 = vld [vmem:[#allocation3 + $0x8b0] sm:$0xff]  ;;  %v1883_v60 = vld [vmem:[#allocation3 + $0xaa0] sm:$0xff] }
  0xa7   :  { %v1695_v40 = vadd.f32 %v1694_v9, %v1693_v14  ;;  %v1723_v48 = vadd.f32 %v1722_v24, %v1721_v50  ;;  %v1751_v37 = vadd.f32 %v1750_v26, %v1749_v23  ;;  %v1779_v61 = vadd.f32 %v1778_v38, %v1777_v17  ;;  %v1889_v19 = vld [vmem:[#allocation3 + $0xcb0] sm:$0xff]  ;;  %v1891_v50 = vld [vmem:[#allocation3 + $0xea0] sm:$0xff] }
  0xa8   :  { %v1612_v5 = vrot.slane %v1611_v57, 1  ;;  %v1640_v59 = vrot.slane %v1639_v29, 1  ;;  %v1807_v6 = vadd.f32 %v1806_v49, %v1805_v18  ;;  %v1668_v33 = vrot.slane %v1667_v53, 1 }
  0xa9   :  { %v1696_v2 = vrot.slane %v1695_v40, 1  ;;  %v1724_v34 = vrot.slane %v1723_v48, 1  ;;  %v1752_v31 = vrot.slane %v1751_v37, 1  ;;  %v1780_v0 = vrot.slane %v1779_v61, 1 }
  0xaa   :  { %v1613_v32 = vadd.f32 %v1612_v5, %v1611_v57  ;;  %v1641_v63 = vadd.f32 %v1640_v59, %v1639_v29  ;;  %v1808_v1 = vrot.slane %v1807_v6, 1  ;;  %v1669_v3 = vadd.f32 %v1668_v33, %v1667_v53 }
  0xab   :  { %v1697_v45 = vadd.f32 %v1696_v2, %v1695_v40  ;;  %v1725_v4 = vadd.f32 %v1724_v34, %v1723_v48  ;;  %v1753_v39 = vadd.f32 %v1752_v31, %v1751_v37  ;;  %v1781_v15 = vadd.f32 %v1780_v0, %v1779_v61 }
  0xac   :  { %v1809_v42 = vadd.f32 %v1808_v1, %v1807_v6  ;;  %v8969_v46 = vadd.f32 %v1613_v32, %v8945_v56  ;;  %v8972_v21 = vadd.f32 %v1641_v63, %v8948_v62  ;;  %v8975_v8 = vadd.f32 %v1669_v3, %v8951_v58  ;;  %v1879_v56 = vld [vmem:[#allocation3 + $0x8a0] sm:$0xff]  ;;  %v1885_v58 = vld [vmem:[#allocation3 + $0xab0] sm:$0xff] }
  0xad   :  { %v8978_v11 = vadd.f32 %v1697_v45, %v8954_v25  ;;  %v8981_v54 = vadd.f32 %v1725_v4, %v8957_v36  ;;  %v8984_v12 = vadd.f32 %v1753_v39, %v8960_v30  ;;  %v8987_v62 = vadd.f32 %v1781_v15, %v8963_v43  ;;  %v1893_v36 = vld [vmem:[#allocation3 + $0xeb0] sm:$0xff] }
  0xae   :  { %v8990_v10 = vadd.f32 %v1809_v42, %v8966_v27  ;;  %v1895_v25 = vunpack.c.l.bf16 %v1863_v20  ;;  %v1899_v14 = vunpack.c.l.bf16 %v1865_v28  ;;  %v1903_v23 = vunpack.c.l.bf16 %v1867_v16 }
  0xaf   :  { %v1907_v51 = vunpack.c.l.bf16 %v1869_v41  ;;  %v1911_v30 = vunpack.c.l.bf16 %v1871_v44  ;;  %v1915_v52 = vunpack.c.l.bf16 %v1873_v47  ;;  %v1919_v17 = vunpack.c.l.bf16 %v1875_v7 }
  0xb0   :  { %v1923_v18 = vunpack.c.l.bf16 %v1877_v22  ;;  %v1927_v55 = vunpack.c.l.bf16 %v1879_v56  ;;  %v1931_v9 = vunpack.c.l.bf16 %v1881_v35  ;;  %v1935_v43 = vunpack.c.l.bf16 %v1883_v60 }
  0xb1   :  { %v1939_v24 = vunpack.c.l.bf16 %v1885_v58  ;;  %v1943_v26 = vunpack.c.l.bf16 %v1887_v13  ;;  %v1947_v27 = vunpack.c.l.bf16 %v1889_v19  ;;  %v1951_v57 = vunpack.c.l.bf16 %v1891_v50 }
  0xb2   :  { %v1955_v29 = vunpack.c.l.bf16 %v1893_v36  ;;  %v1959_v38 = vadd.f32 %v1899_v14, %v1895_v25  ;;  %v1987_v49 = vadd.f32 %v1907_v51, %v1903_v23  ;;  %v2015_v53 = vadd.f32 %v1915_v52, %v1911_v30 }
  0xb3   :  { %v2043_v40 = vadd.f32 %v1923_v18, %v1919_v17  ;;  %v2071_v48 = vadd.f32 %v1931_v9, %v1927_v55  ;;  %v2099_v37 = vadd.f32 %v1939_v24, %v1935_v43  ;;  %v2127_v61 = vadd.f32 %v1947_v27, %v1943_v26  ;;  %v2215_v43 = vld [vmem:[#allocation3 + $0xc0] sm:$0xff]  ;;  %v2217_v24 = vld [vmem:[#allocation3 + $0xd0] sm:$0xff] }
  0xb4   :  { %v1960_v5 = vrot.slane %v1959_v38, 4  ;;  %v1988_v59 = vrot.slane %v1987_v49, 4  ;;  %v2155_v6 = vadd.f32 %v1955_v29, %v1951_v57  ;;  %v2016_v33 = vrot.slane %v2015_v53, 4 }
  0xb5   :  { %v2044_v2 = vrot.slane %v2043_v40, 4  ;;  %v2072_v34 = vrot.slane %v2071_v48, 4  ;;  %v2100_v31 = vrot.slane %v2099_v37, 4  ;;  %v2128_v0 = vrot.slane %v2127_v61, 4 }
  0xb6   :  { %v1961_v32 = vadd.f32 %v1960_v5, %v1959_v38  ;;  %v1989_v63 = vadd.f32 %v1988_v59, %v1987_v49  ;;  %v2156_v1 = vrot.slane %v2155_v6, 4  ;;  %v2017_v20 = vadd.f32 %v2016_v33, %v2015_v53  ;;  %v2219_v38 = vld [vmem:[#allocation3 + $0x2c0] sm:$0xff]  ;;  %v2221_v49 = vld [vmem:[#allocation3 + $0x2d0] sm:$0xff] }
  0xb7   :  { %v2045_v28 = vadd.f32 %v2044_v2, %v2043_v40  ;;  %v2073_v3 = vadd.f32 %v2072_v34, %v2071_v48  ;;  %v2101_v45 = vadd.f32 %v2100_v31, %v2099_v37  ;;  %v2129_v16 = vadd.f32 %v2128_v0, %v2127_v61  ;;  %v2223_v53 = vld [vmem:[#allocation3 + $0x4c0] sm:$0xff]  ;;  %v2225_v59 = vld [vmem:[#allocation3 + $0x4d0] sm:$0xff] }
  0xb8   :  { %v1962_v4 = vrot.slane %v1961_v32, 2  ;;  %v1990_v39 = vrot.slane %v1989_v63, 2  ;;  %v2157_v41 = vadd.f32 %v2156_v1, %v2155_v6  ;;  %v2018_v44 = vrot.slane %v2017_v20, 2  ;;  %v2227_v61 = vld [vmem:[#allocation3 + $0x6c0] sm:$0xff]  ;;  %v2229_v6 = vld [vmem:[#allocation3 + $0x6d0] sm:$0xff] }
  0xb9   :  { %v2046_v15 = vrot.slane %v2045_v28, 2  ;;  %v2074_v42 = vrot.slane %v2073_v3, 2  ;;  %v2102_v47 = vrot.slane %v2101_v45, 2  ;;  %v2130_v56 = vrot.slane %v2129_v16, 2  ;;  %v2239_v1 = vld [vmem:[#allocation3 + $0xcc0] sm:$0xff] }
  0xba   :  { %v1963_v7 = vadd.f32 %v1962_v4, %v1961_v32  ;;  %v1991_v22 = vadd.f32 %v1990_v39, %v1989_v63  ;;  %v2158_v35 = vrot.slane %v2157_v41, 2  ;;  %v2019_v60 = vadd.f32 %v2018_v44, %v2017_v20  ;;  %v2233_v32 = vld [vmem:[#allocation3 + $0x8d0] sm:$0xff]  ;;  %v2235_v63 = vld [vmem:[#allocation3 + $0xac0] sm:$0xff] }
  0xbb   :  { %v2047_v58 = vadd.f32 %v2046_v15, %v2045_v28  ;;  %v2075_v13 = vadd.f32 %v2074_v42, %v2073_v3  ;;  %v2103_v19 = vadd.f32 %v2102_v47, %v2101_v45  ;;  %v2131_v50 = vadd.f32 %v2130_v56, %v2129_v16  ;;  %v2241_v20 = vld [vmem:[#allocation3 + $0xcd0] sm:$0xff]  ;;  %v2243_v3 = vld [vmem:[#allocation3 + $0xec0] sm:$0xff] }
  0xbc   :  { %v1964_v25 = vrot.slane %v1963_v7, 1  ;;  %v1992_v14 = vrot.slane %v1991_v22, 1  ;;  %v2159_v36 = vadd.f32 %v2158_v35, %v2157_v41  ;;  %v2020_v23 = vrot.slane %v2019_v60, 1 }
  0xbd   :  { %v2048_v51 = vrot.slane %v2047_v58, 1  ;;  %v2076_v30 = vrot.slane %v2075_v13, 1  ;;  %v2104_v52 = vrot.slane %v2103_v19, 1  ;;  %v2132_v55 = vrot.slane %v2131_v50, 1 }
  0xbe   :  { %v1965_v17 = vadd.f32 %v1964_v25, %v1963_v7  ;;  %v1993_v18 = vadd.f32 %v1992_v14, %v1991_v22  ;;  %v2160_v9 = vrot.slane %v2159_v36, 1  ;;  %v2021_v26 = vadd.f32 %v2020_v23, %v2019_v60 }
  0xbf   :  { %v2049_v27 = vadd.f32 %v2048_v51, %v2047_v58  ;;  %v2077_v57 = vadd.f32 %v2076_v30, %v2075_v13  ;;  %v2105_v29 = vadd.f32 %v2104_v52, %v2103_v19  ;;  %v2133_v40 = vadd.f32 %v2132_v55, %v2131_v50 }
  0xc0   :  { %v2161_v48 = vadd.f32 %v2160_v9, %v2159_v36  ;;  %v8993_v37 = vadd.f32 %v1965_v17, %v8969_v46  ;;  %v8996_v5 = vadd.f32 %v1993_v18, %v8972_v21  ;;  %v8999_v33 = vadd.f32 %v2021_v26, %v8975_v8  ;;  %v2231_v46 = vld [vmem:[#allocation3 + $0x8c0] sm:$0xff]  ;;  %v2237_v8 = vld [vmem:[#allocation3 + $0xad0] sm:$0xff] }
  0xc1   :  { %v9002_v2 = vadd.f32 %v2049_v27, %v8978_v11  ;;  %v9005_v34 = vadd.f32 %v2077_v57, %v8981_v54  ;;  %v9008_v31 = vadd.f32 %v2105_v29, %v8984_v12  ;;  %v9011_v21 = vadd.f32 %v2133_v40, %v8987_v62  ;;  %v2245_v54 = vld [vmem:[#allocation3 + $0xed0] sm:$0xff] }
  0xc2   :  { %v9014_v0 = vadd.f32 %v2161_v48, %v8990_v10  ;;  %v2247_v11 = vunpack.c.l.bf16 %v2215_v43  ;;  %v2251_v28 = vunpack.c.l.bf16 %v2217_v24  ;;  %v2255_v45 = vunpack.c.l.bf16 %v2219_v38 }
  0xc3   :  { %v2259_v4 = vunpack.c.l.bf16 %v2221_v49  ;;  %v2263_v12 = vunpack.c.l.bf16 %v2223_v53  ;;  %v2267_v39 = vunpack.c.l.bf16 %v2225_v59  ;;  %v2271_v16 = vunpack.c.l.bf16 %v2227_v61 }
  0xc4   :  { %v2275_v41 = vunpack.c.l.bf16 %v2229_v6  ;;  %v2279_v44 = vunpack.c.l.bf16 %v2231_v46  ;;  %v2283_v15 = vunpack.c.l.bf16 %v2233_v32  ;;  %v2287_v62 = vunpack.c.l.bf16 %v2235_v63 }
  0xc5   :  { %v2291_v42 = vunpack.c.l.bf16 %v2237_v8  ;;  %v2295_v47 = vunpack.c.l.bf16 %v2239_v1  ;;  %v2299_v10 = vunpack.c.l.bf16 %v2241_v20  ;;  %v2303_v7 = vunpack.c.l.bf16 %v2243_v3 }
  0xc6   :  { %v2307_v22 = vunpack.c.l.bf16 %v2245_v54  ;;  %v2311_v56 = vadd.f32 %v2251_v28, %v2247_v11  ;;  %v2339_v35 = vadd.f32 %v2259_v4, %v2255_v45  ;;  %v2367_v60 = vadd.f32 %v2267_v39, %v2263_v12 }
  0xc7   :  { %v2395_v58 = vadd.f32 %v2275_v41, %v2271_v16  ;;  %v2423_v13 = vadd.f32 %v2283_v15, %v2279_v44  ;;  %v2451_v19 = vadd.f32 %v2291_v42, %v2287_v62  ;;  %v2479_v50 = vadd.f32 %v2299_v10, %v2295_v47  ;;  %v2567_v62 = vld [vmem:[#allocation3 + $0xe0] sm:$0xff]  ;;  %v2569_v42 = vld [vmem:[#allocation3 + $0xf0] sm:$0xff] }
  0xc8   :  { %v2312_v25 = vrot.slane %v2311_v56, 4  ;;  %v2340_v14 = vrot.slane %v2339_v35, 4  ;;  %v2507_v36 = vadd.f32 %v2307_v22, %v2303_v7  ;;  %v2368_v23 = vrot.slane %v2367_v60, 4 }
  0xc9   :  { %v2396_v51 = vrot.slane %v2395_v58, 4  ;;  %v2424_v30 = vrot.slane %v2423_v13, 4  ;;  %v2452_v52 = vrot.slane %v2451_v19, 4  ;;  %v2480_v55 = vrot.slane %v2479_v50, 4 }
  0xca   :  { %v2313_v17 = vadd.f32 %v2312_v25, %v2311_v56  ;;  %v2341_v18 = vadd.f32 %v2340_v14, %v2339_v35  ;;  %v2508_v9 = vrot.slane %v2507_v36, 4  ;;  %v2369_v43 = vadd.f32 %v2368_v23, %v2367_v60  ;;  %v2571_v56 = vld [vmem:[#allocation3 + $0x2e0] sm:$0xff]  ;;  %v2573_v35 = vld [vmem:[#allocation3 + $0x2f0] sm:$0xff] }
  0xcb   :  { %v2397_v24 = vadd.f32 %v2396_v51, %v2395_v58  ;;  %v2425_v26 = vadd.f32 %v2424_v30, %v2423_v13  ;;  %v2453_v27 = vadd.f32 %v2452_v52, %v2451_v19  ;;  %v2481_v38 = vadd.f32 %v2480_v55, %v2479_v50  ;;  %v2575_v60 = vld [vmem:[#allocation3 + $0x4e0] sm:$0xff]  ;;  %v2577_v14 = vld [vmem:[#allocation3 + $0x4f0] sm:$0xff] }
  0xcc   :  { %v2314_v57 = vrot.slane %v2313_v17, 2  ;;  %v2342_v29 = vrot.slane %v2341_v18, 2  ;;  %v2509_v49 = vadd.f32 %v2508_v9, %v2507_v36  ;;  %v2370_v53 = vrot.slane %v2369_v43, 2  ;;  %v2579_v50 = vld [vmem:[#allocation3 + $0x6e0] sm:$0xff]  ;;  %v2581_v36 = vld [vmem:[#allocation3 + $0x6f0] sm:$0xff] }
  0xcd   :  { %v2398_v40 = vrot.slane %v2397_v24, 2  ;;  %v2426_v48 = vrot.slane %v2425_v26, 2  ;;  %v2454_v59 = vrot.slane %v2453_v27, 2  ;;  %v2482_v46 = vrot.slane %v2481_v38, 2  ;;  %v2591_v9 = vld [vmem:[#allocation3 + $0xce0] sm:$0xff] }
  0xce   :  { %v2315_v61 = vadd.f32 %v2314_v57, %v2313_v17  ;;  %v2343_v6 = vadd.f32 %v2342_v29, %v2341_v18  ;;  %v2510_v32 = vrot.slane %v2509_v49, 2  ;;  %v2371_v63 = vadd.f32 %v2370_v53, %v2369_v43  ;;  %v2585_v17 = vld [vmem:[#allocation3 + $0x8f0] sm:$0xff]  ;;  %v2587_v18 = vld [vmem:[#allocation3 + $0xae0] sm:$0xff] }
  0xcf   :  { %v2399_v8 = vadd.f32 %v2398_v40, %v2397_v24  ;;  %v2427_v1 = vadd.f32 %v2426_v48, %v2425_v26  ;;  %v2455_v20 = vadd.f32 %v2454_v59, %v2453_v27  ;;  %v2483_v3 = vadd.f32 %v2482_v46, %v2481_v38  ;;  %v2593_v43 = vld [vmem:[#allocation3 + $0xcf0] sm:$0xff]  ;;  %v2595_v26 = vld [vmem:[#allocation3 + $0xee0] sm:$0xff] }
  0xd0   :  { %v2316_v11 = vrot.slane %v2315_v61, 1  ;;  %v2344_v28 = vrot.slane %v2343_v6, 1  ;;  %v2511_v54 = vadd.f32 %v2510_v32, %v2509_v49  ;;  %v2372_v45 = vrot.slane %v2371_v63, 1 }
  0xd1   :  { %v2400_v4 = vrot.slane %v2399_v8, 1  ;;  %v2428_v12 = vrot.slane %v2427_v1, 1  ;;  %v2456_v39 = vrot.slane %v2455_v20, 1  ;;  %v2484_v44 = vrot.slane %v2483_v3, 1 }
  0xd2   :  { %v2317_v16 = vadd.f32 %v2316_v11, %v2315_v61  ;;  %v2345_v41 = vadd.f32 %v2344_v28, %v2343_v6  ;;  %v2512_v15 = vrot.slane %v2511_v54, 1  ;;  %v2373_v47 = vadd.f32 %v2372_v45, %v2371_v63 }
  0xd3   :  { %v2401_v10 = vadd.f32 %v2400_v4, %v2399_v8  ;;  %v2429_v7 = vadd.f32 %v2428_v12, %v2427_v1  ;;  %v2457_v22 = vadd.f32 %v2456_v39, %v2455_v20  ;;  %v2485_v58 = vadd.f32 %v2484_v44, %v2483_v3 }
  0xd4   :  { %v2513_v13 = vadd.f32 %v2512_v15, %v2511_v54  ;;  %v9017_v19 = vadd.f32 %v2317_v16, %v8993_v37  ;;  %v9020_v25 = vadd.f32 %v2345_v41, %v8996_v5  ;;  %v9023_v23 = vadd.f32 %v2373_v47, %v8999_v33  ;;  %v2583_v37 = vld [vmem:[#allocation3 + $0x8e0] sm:$0xff]  ;;  %v2589_v33 = vld [vmem:[#allocation3 + $0xaf0] sm:$0xff] }
  0xd5   :  { %v9026_v51 = vadd.f32 %v2401_v10, %v9002_v2  ;;  %v9029_v30 = vadd.f32 %v2429_v7, %v9005_v34  ;;  %v9032_v52 = vadd.f32 %v2457_v22, %v9008_v31  ;;  %v9035_v5 = vadd.f32 %v2485_v58, %v9011_v21  ;;  %v2597_v34 = vld [vmem:[#allocation3 + $0xef0] sm:$0xff] }
  0xd6   :  { %v9038_v55 = vadd.f32 %v2513_v13, %v9014_v0  ;;  %v2599_v2 = vunpack.c.l.bf16 %v2567_v62  ;;  %v2603_v24 = vunpack.c.l.bf16 %v2569_v42  ;;  %v2607_v27 = vunpack.c.l.bf16 %v2571_v56 }
  0xd7   :  { %v2611_v57 = vunpack.c.l.bf16 %v2573_v35  ;;  %v2615_v31 = vunpack.c.l.bf16 %v2575_v60  ;;  %v2619_v29 = vunpack.c.l.bf16 %v2577_v14  ;;  %v2623_v38 = vunpack.c.l.bf16 %v2579_v50 }
  0xd8   :  { %v2627_v49 = vunpack.c.l.bf16 %v2581_v36  ;;  %v2631_v53 = vunpack.c.l.bf16 %v2583_v37  ;;  %v2635_v40 = vunpack.c.l.bf16 %v2585_v17  ;;  %v2639_v21 = vunpack.c.l.bf16 %v2587_v18 }
  0xd9   :  { %v2643_v48 = vunpack.c.l.bf16 %v2589_v33  ;;  %v2647_v59 = vunpack.c.l.bf16 %v2591_v9  ;;  %v2651_v0 = vunpack.c.l.bf16 %v2593_v43  ;;  %v2655_v61 = vunpack.c.l.bf16 %v2595_v26 }
  0xda   :  { %v2659_v6 = vunpack.c.l.bf16 %v2597_v34  ;;  %v2663_v46 = vadd.f32 %v2603_v24, %v2599_v2  ;;  %v2691_v32 = vadd.f32 %v2611_v57, %v2607_v27  ;;  %v2719_v63 = vadd.f32 %v2619_v29, %v2615_v31 }
  0xdb   :  { %v2747_v8 = vadd.f32 %v2627_v49, %v2623_v38  ;;  %v2775_v1 = vadd.f32 %v2635_v40, %v2631_v53  ;;  %v2803_v20 = vadd.f32 %v2643_v48, %v2639_v21  ;;  %v2831_v3 = vadd.f32 %v2651_v0, %v2647_v59  ;;  %v2919_v21 = vld [vmem:[#allocation3 + $0x100] sm:$0xff]  ;;  %v2921_v48 = vld [vmem:[#allocation3 + $0x110] sm:$0xff] }
  0xdc   :  { %v2664_v11 = vrot.slane %v2663_v46, 4  ;;  %v2692_v28 = vrot.slane %v2691_v32, 4  ;;  %v2859_v54 = vadd.f32 %v2659_v6, %v2655_v61  ;;  %v2720_v45 = vrot.slane %v2719_v63, 4 }
  0xdd   :  { %v2748_v4 = vrot.slane %v2747_v8, 4  ;;  %v2776_v12 = vrot.slane %v2775_v1, 4  ;;  %v2804_v39 = vrot.slane %v2803_v20, 4  ;;  %v2832_v44 = vrot.slane %v2831_v3, 4 }
  0xde   :  { %v2665_v16 = vadd.f32 %v2664_v11, %v2663_v46  ;;  %v2693_v41 = vadd.f32 %v2692_v28, %v2691_v32  ;;  %v2860_v15 = vrot.slane %v2859_v54, 4  ;;  %v2721_v62 = vadd.f32 %v2720_v45, %v2719_v63  ;;  %v2923_v46 = vld [vmem:[#allocation3 + $0x300] sm:$0xff]  ;;  %v2925_v32 = vld [vmem:[#allocation3 + $0x310] sm:$0xff] }
  0xdf   :  { %v2749_v42 = vadd.f32 %v2748_v4, %v2747_v8  ;;  %v2777_v47 = vadd.f32 %v2776_v12, %v2775_v1  ;;  %v2805_v10 = vadd.f32 %v2804_v39, %v2803_v20  ;;  %v2833_v56 = vadd.f32 %v2832_v44, %v2831_v3  ;;  %v2927_v63 = vld [vmem:[#allocation3 + $0x500] sm:$0xff]  ;;  %v2929_v28 = vld [vmem:[#allocation3 + $0x510] sm:$0xff] }
  0xe0   :  { %v2666_v7 = vrot.slane %v2665_v16, 2  ;;  %v2694_v22 = vrot.slane %v2693_v41, 2  ;;  %v2861_v35 = vadd.f32 %v2860_v15, %v2859_v54  ;;  %v2722_v60 = vrot.slane %v2721_v62, 2  ;;  %v2931_v3 = vld [vmem:[#allocation3 + $0x700] sm:$0xff]  ;;  %v2933_v54 = vld [vmem:[#allocation3 + $0x710] sm:$0xff] }
  0xe1   :  { %v2750_v58 = vrot.slane %v2749_v42, 2  ;;  %v2778_v13 = vrot.slane %v2777_v47, 2  ;;  %v2806_v14 = vrot.slane %v2805_v10, 2  ;;  %v2834_v37 = vrot.slane %v2833_v56, 2  ;;  %v2943_v15 = vld [vmem:[#allocation3 + $0xd00] sm:$0xff] }
  0xe2   :  { %v2667_v50 = vadd.f32 %v2666_v7, %v2665_v16  ;;  %v2695_v36 = vadd.f32 %v2694_v22, %v2693_v41  ;;  %v2862_v17 = vrot.slane %v2861_v35, 2  ;;  %v2723_v18 = vadd.f32 %v2722_v60, %v2721_v62  ;;  %v2937_v16 = vld [vmem:[#allocation3 + $0x910] sm:$0xff]  ;;  %v2939_v41 = vld [vmem:[#allocation3 + $0xb00] sm:$0xff] }
  0xe3   :  { %v2751_v33 = vadd.f32 %v2750_v58, %v2749_v42  ;;  %v2779_v9 = vadd.f32 %v2778_v13, %v2777_v47  ;;  %v2807_v43 = vadd.f32 %v2806_v14, %v2805_v10  ;;  %v2835_v26 = vadd.f32 %v2834_v37, %v2833_v56  ;;  %v2945_v62 = vld [vmem:[#allocation3 + $0xd10] sm:$0xff]  ;;  %v2947_v47 = vld [vmem:[#allocation3 + $0xf00] sm:$0xff] }
  0xe4   :  { %v2668_v2 = vrot.slane %v2667_v50, 1  ;;  %v2696_v24 = vrot.slane %v2695_v36, 1  ;;  %v2863_v34 = vadd.f32 %v2862_v17, %v2861_v35  ;;  %v2724_v27 = vrot.slane %v2723_v18, 1 }
  0xe5   :  { %v2752_v57 = vrot.slane %v2751_v33, 1  ;;  %v2780_v31 = vrot.slane %v2779_v9, 1  ;;  %v2808_v29 = vrot.slane %v2807_v43, 1  ;;  %v2836_v53 = vrot.slane %v2835_v26, 1 }
  0xe6   :  { %v2669_v38 = vadd.f32 %v2668_v2, %v2667_v50  ;;  %v2697_v49 = vadd.f32 %v2696_v24, %v2695_v36  ;;  %v2864_v40 = vrot.slane %v2863_v34, 1  ;;  %v2725_v59 = vadd.f32 %v2724_v27, %v2723_v18 }
  0xe7   :  { %v2753_v0 = vadd.f32 %v2752_v57, %v2751_v33  ;;  %v2781_v61 = vadd.f32 %v2780_v31, %v2779_v9  ;;  %v2809_v6 = vadd.f32 %v2808_v29, %v2807_v43  ;;  %v2837_v8 = vadd.f32 %v2836_v53, %v2835_v26 }
  0xe8   :  { %v2865_v1 = vadd.f32 %v2864_v40, %v2863_v34  ;;  %v9041_v20 = vadd.f32 %v2669_v38, %v9017_v19  ;;  %v9044_v11 = vadd.f32 %v2697_v49, %v9020_v25  ;;  %v9047_v45 = vadd.f32 %v2725_v59, %v9023_v23  ;;  %v2935_v19 = vld [vmem:[#allocation3 + $0x900] sm:$0xff]  ;;  %v2941_v23 = vld [vmem:[#allocation3 + $0xb10] sm:$0xff] }
  0xe9   :  { %v9050_v4 = vadd.f32 %v2753_v0, %v9026_v51  ;;  %v9053_v12 = vadd.f32 %v2781_v61, %v9029_v30  ;;  %v9056_v39 = vadd.f32 %v2809_v6, %v9032_v52  ;;  %v9059_v25 = vadd.f32 %v2837_v8, %v9035_v5  ;;  %v2949_v30 = vld [vmem:[#allocation3 + $0xf10] sm:$0xff] }
  0xea   :  { %v9062_v44 = vadd.f32 %v2865_v1, %v9038_v55  ;;  %v2951_v51 = vunpack.c.l.bf16 %v2919_v21  ;;  %v2955_v42 = vunpack.c.l.bf16 %v2921_v48  ;;  %v2959_v10 = vunpack.c.l.bf16 %v2923_v46 }
  0xeb   :  { %v2963_v7 = vunpack.c.l.bf16 %v2925_v32  ;;  %v2967_v52 = vunpack.c.l.bf16 %v2927_v63  ;;  %v2971_v22 = vunpack.c.l.bf16 %v2929_v28  ;;  %v2975_v56 = vunpack.c.l.bf16 %v2931_v3 }
  0xec   :  { %v2979_v35 = vunpack.c.l.bf16 %v2933_v54  ;;  %v2983_v60 = vunpack.c.l.bf16 %v2935_v19  ;;  %v2987_v58 = vunpack.c.l.bf16 %v2937_v16  ;;  %v2991_v5 = vunpack.c.l.bf16 %v2939_v41 }
  0xed   :  { %v2995_v13 = vunpack.c.l.bf16 %v2941_v23  ;;  %v2999_v14 = vunpack.c.l.bf16 %v2943_v15  ;;  %v3003_v55 = vunpack.c.l.bf16 %v2945_v62  ;;  %v3007_v50 = vunpack.c.l.bf16 %v2947_v47 }
  0xee   :  { %v3011_v36 = vunpack.c.l.bf16 %v2949_v30  ;;  %v3015_v37 = vadd.f32 %v2955_v42, %v2951_v51  ;;  %v3043_v17 = vadd.f32 %v2963_v7, %v2959_v10  ;;  %v3071_v18 = vadd.f32 %v2971_v22, %v2967_v52 }
  0xef   :  { %v3099_v33 = vadd.f32 %v2979_v35, %v2975_v56  ;;  %v3127_v9 = vadd.f32 %v2987_v58, %v2983_v60  ;;  %v3155_v43 = vadd.f32 %v2995_v13, %v2991_v5  ;;  %v3183_v26 = vadd.f32 %v3003_v55, %v2999_v14  ;;  %v3271_v5 = vld [vmem:[#allocation3 + $0x120] sm:$0xff]  ;;  %v3273_v13 = vld [vmem:[#allocation3 + $0x130] sm:$0xff] }
  0xf0   :  { %v3016_v2 = vrot.slane %v3015_v37, 4  ;;  %v3044_v24 = vrot.slane %v3043_v17, 4  ;;  %v3211_v34 = vadd.f32 %v3011_v36, %v3007_v50  ;;  %v3072_v27 = vrot.slane %v3071_v18, 4 }
  0xf1   :  { %v3100_v57 = vrot.slane %v3099_v33, 4  ;;  %v3128_v31 = vrot.slane %v3127_v9, 4  ;;  %v3156_v29 = vrot.slane %v3155_v43, 4  ;;  %v3184_v53 = vrot.slane %v3183_v26, 4 }
  0xf2   :  { %v3017_v38 = vadd.f32 %v3016_v2, %v3015_v37  ;;  %v3045_v49 = vadd.f32 %v3044_v24, %v3043_v17  ;;  %v3212_v40 = vrot.slane %v3211_v34, 4  ;;  %v3073_v21 = vadd.f32 %v3072_v27, %v3071_v18  ;;  %v3275_v37 = vld [vmem:[#allocation3 + $0x320] sm:$0xff]  ;;  %v3277_v17 = vld [vmem:[#allocation3 + $0x330] sm:$0xff] }
  0xf3   :  { %v3101_v48 = vadd.f32 %v3100_v57, %v3099_v33  ;;  %v3129_v59 = vadd.f32 %v3128_v31, %v3127_v9  ;;  %v3157_v0 = vadd.f32 %v3156_v29, %v3155_v43  ;;  %v3185_v46 = vadd.f32 %v3184_v53, %v3183_v26  ;;  %v3279_v18 = vld [vmem:[#allocation3 + $0x520] sm:$0xff]  ;;  %v3281_v24 = vld [vmem:[#allocation3 + $0x530] sm:$0xff] }
  0xf4   :  { %v3018_v61 = vrot.slane %v3017_v38, 2  ;;  %v3046_v6 = vrot.slane %v3045_v49, 2  ;;  %v3213_v32 = vadd.f32 %v3212_v40, %v3211_v34  ;;  %v3074_v63 = vrot.slane %v3073_v21, 2  ;;  %v3283_v26 = vld [vmem:[#allocation3 + $0x720] sm:$0xff]  ;;  %v3285_v34 = vld [vmem:[#allocation3 + $0x730] sm:$0xff] }
  0xf5   :  { %v3102_v8 = vrot.slane %v3101_v48, 2  ;;  %v3130_v1 = vrot.slane %v3129_v59, 2  ;;  %v3158_v28 = vrot.slane %v3157_v0, 2  ;;  %v3186_v19 = vrot.slane %v3185_v46, 2  ;;  %v3295_v40 = vld [vmem:[#allocation3 + $0xd20] sm:$0xff] }
  0xf6   :  { %v3019_v3 = vadd.f32 %v3018_v61, %v3017_v38  ;;  %v3047_v54 = vadd.f32 %v3046_v6, %v3045_v49  ;;  %v3214_v16 = vrot.slane %v3213_v32, 2  ;;  %v3075_v41 = vadd.f32 %v3074_v63, %v3073_v21  ;;  %v3289_v38 = vld [vmem:[#allocation3 + $0x930] sm:$0xff]  ;;  %v3291_v49 = vld [vmem:[#allocation3 + $0xb20] sm:$0xff] }
  0xf7   :  { %v3103_v23 = vadd.f32 %v3102_v8, %v3101_v48  ;;  %v3131_v15 = vadd.f32 %v3130_v1, %v3129_v59  ;;  %v3159_v62 = vadd.f32 %v3158_v28, %v3157_v0  ;;  %v3187_v47 = vadd.f32 %v3186_v19, %v3185_v46  ;;  %v3297_v21 = vld [vmem:[#allocation3 + $0xd30] sm:$0xff]  ;;  %v3299_v59 = vld [vmem:[#allocation3 + $0xf20] sm:$0xff] }
  0xf8   :  { %v3020_v51 = vrot.slane %v3019_v3, 1  ;;  %v3048_v42 = vrot.slane %v3047_v54, 1  ;;  %v3215_v30 = vadd.f32 %v3214_v16, %v3213_v32  ;;  %v3076_v10 = vrot.slane %v3075_v41, 1 }
  0xf9   :  { %v3104_v7 = vrot.slane %v3103_v23, 1  ;;  %v3132_v52 = vrot.slane %v3131_v15, 1  ;;  %v3160_v22 = vrot.slane %v3159_v62, 1  ;;  %v3188_v60 = vrot.slane %v3187_v47, 1 }
  0xfa   :  { %v3021_v56 = vadd.f32 %v3020_v51, %v3019_v3  ;;  %v3049_v35 = vadd.f32 %v3048_v42, %v3047_v54  ;;  %v3216_v58 = vrot.slane %v3215_v30, 1  ;;  %v3077_v14 = vadd.f32 %v3076_v10, %v3075_v41 }
  0xfb   :  { %v3105_v55 = vadd.f32 %v3104_v7, %v3103_v23  ;;  %v3133_v50 = vadd.f32 %v3132_v52, %v3131_v15  ;;  %v3161_v36 = vadd.f32 %v3160_v22, %v3159_v62  ;;  %v3189_v33 = vadd.f32 %v3188_v60, %v3187_v47 }
  0xfc   :  { %v3217_v9 = vadd.f32 %v3216_v58, %v3215_v30  ;;  %v9065_v43 = vadd.f32 %v3021_v56, %v9041_v20  ;;  %v9068_v2 = vadd.f32 %v3049_v35, %v9044_v11  ;;  %v9071_v27 = vadd.f32 %v3077_v14, %v9047_v45  ;;  %v3287_v20 = vld [vmem:[#allocation3 + $0x920] sm:$0xff]  ;;  %v3293_v45 = vld [vmem:[#allocation3 + $0xb30] sm:$0xff] }
  0xfd   :  { %v9074_v57 = vadd.f32 %v3105_v55, %v9050_v4  ;;  %v9077_v31 = vadd.f32 %v3133_v50, %v9053_v12  ;;  %v9080_v29 = vadd.f32 %v3161_v36, %v9056_v39  ;;  %v9083_v11 = vadd.f32 %v3189_v33, %v9059_v25  ;;  %v3301_v12 = vld [vmem:[#allocation3 + $0xf30] sm:$0xff] }
  0xfe   :  { %v9086_v53 = vadd.f32 %v3217_v9, %v9062_v44  ;;  %v3303_v4 = vunpack.c.l.bf16 %v3271_v5  ;;  %v3307_v48 = vunpack.c.l.bf16 %v3273_v13  ;;  %v3311_v0 = vunpack.c.l.bf16 %v3275_v37 }
  0xff   :  { %v3315_v61 = vunpack.c.l.bf16 %v3277_v17  ;;  %v3319_v39 = vunpack.c.l.bf16 %v3279_v18  ;;  %v3323_v6 = vunpack.c.l.bf16 %v3281_v24  ;;  %v3327_v46 = vunpack.c.l.bf16 %v3283_v26 }
 0x100   :  { %v3331_v32 = vunpack.c.l.bf16 %v3285_v34  ;;  %v3335_v63 = vunpack.c.l.bf16 %v3287_v20  ;;  %v3339_v8 = vunpack.c.l.bf16 %v3289_v38  ;;  %v3343_v25 = vunpack.c.l.bf16 %v3291_v49 }
 0x101   :  { %v3347_v1 = vunpack.c.l.bf16 %v3293_v45  ;;  %v3351_v28 = vunpack.c.l.bf16 %v3295_v40  ;;  %v3355_v44 = vunpack.c.l.bf16 %v3297_v21  ;;  %v3359_v3 = vunpack.c.l.bf16 %v3299_v59 }
 0x102   :  { %v3363_v54 = vunpack.c.l.bf16 %v3301_v12  ;;  %v3367_v19 = vadd.f32 %v3307_v48, %v3303_v4  ;;  %v3395_v16 = vadd.f32 %v3315_v61, %v3311_v0  ;;  %v3423_v41 = vadd.f32 %v3323_v6, %v3319_v39 }
 0x103   :  { %v3451_v23 = vadd.f32 %v3331_v32, %v3327_v46  ;;  %v3479_v15 = vadd.f32 %v3339_v8, %v3335_v63  ;;  %v3507_v62 = vadd.f32 %v3347_v1, %v3343_v25  ;;  %v3535_v47 = vadd.f32 %v3355_v44, %v3351_v28  ;;  %v3623_v25 = vld [vmem:[#allocation3 + $0x140] sm:$0xff]  ;;  %v3625_v1 = vld [vmem:[#allocation3 + $0x150] sm:$0xff] }
 0x104   :  { %v3368_v51 = vrot.slane %v3367_v19, 4  ;;  %v3396_v42 = vrot.slane %v3395_v16, 4  ;;  %v3563_v30 = vadd.f32 %v3363_v54, %v3359_v3  ;;  %v3424_v10 = vrot.slane %v3423_v41, 4 }
 0x105   :  { %v3452_v7 = vrot.slane %v3451_v23, 4  ;;  %v3480_v52 = vrot.slane %v3479_v15, 4  ;;  %v3508_v22 = vrot.slane %v3507_v62, 4  ;;  %v3536_v60 = vrot.slane %v3535_v47, 4 }
 0x106   :  { %v3369_v56 = vadd.f32 %v3368_v51, %v3367_v19  ;;  %v3397_v35 = vadd.f32 %v3396_v42, %v3395_v16  ;;  %v3564_v58 = vrot.slane %v3563_v30, 4  ;;  %v3425_v5 = vadd.f32 %v3424_v10, %v3423_v41  ;;  %v3627_v19 = vld [vmem:[#allocation3 + $0x340] sm:$0xff]  ;;  %v3629_v16 = vld [vmem:[#allocation3 + $0x350] sm:$0xff] }
 0x107   :  { %v3453_v13 = vadd.f32 %v3452_v7, %v3451_v23  ;;  %v3481_v14 = vadd.f32 %v3480_v52, %v3479_v15  ;;  %v3509_v55 = vadd.f32 %v3508_v22, %v3507_v62  ;;  %v3537_v37 = vadd.f32 %v3536_v60, %v3535_v47  ;;  %v3631_v41 = vld [vmem:[#allocation3 + $0x540] sm:$0xff]  ;;  %v3633_v42 = vld [vmem:[#allocation3 + $0x550] sm:$0xff] }
 0x108   :  { %v3370_v50 = vrot.slane %v3369_v56, 2  ;;  %v3398_v36 = vrot.slane %v3397_v35, 2  ;;  %v3565_v17 = vadd.f32 %v3564_v58, %v3563_v30  ;;  %v3426_v18 = vrot.slane %v3425_v5, 2  ;;  %v3635_v47 = vld [vmem:[#allocation3 + $0x740] sm:$0xff]  ;;  %v3637_v30 = vld [vmem:[#allocation3 + $0x750] sm:$0xff] }
 0x109   :  { %v3454_v33 = vrot.slane %v3453_v13, 2  ;;  %v3482_v9 = vrot.slane %v3481_v14, 2  ;;  %v3510_v24 = vrot.slane %v3509_v55, 2  ;;  %v3538_v20 = vrot.slane %v3537_v37, 2  ;;  %v3647_v58 = vld [vmem:[#allocation3 + $0xd40] sm:$0xff] }
 0x10a   :  { %v3371_v26 = vadd.f32 %v3370_v50, %v3369_v56  ;;  %v3399_v34 = vadd.f32 %v3398_v36, %v3397_v35  ;;  %v3566_v38 = vrot.slane %v3565_v17, 2  ;;  %v3427_v49 = vadd.f32 %v3426_v18, %v3425_v5  ;;  %v3641_v56 = vld [vmem:[#allocation3 + $0x950] sm:$0xff]  ;;  %v3643_v35 = vld [vmem:[#allocation3 + $0xb40] sm:$0xff] }
 0x10b   :  { %v3455_v45 = vadd.f32 %v3454_v33, %v3453_v13  ;;  %v3483_v40 = vadd.f32 %v3482_v9, %v3481_v14  ;;  %v3511_v21 = vadd.f32 %v3510_v24, %v3509_v55  ;;  %v3539_v59 = vadd.f32 %v3538_v20, %v3537_v37  ;;  %v3649_v5 = vld [vmem:[#allocation3 + $0xd50] sm:$0xff]  ;;  %v3651_v14 = vld [vmem:[#allocation3 + $0xf40] sm:$0xff] }
 0x10c   :  { %v3372_v4 = vrot.slane %v3371_v26, 1  ;;  %v3400_v48 = vrot.slane %v3399_v34, 1  ;;  %v3567_v12 = vadd.f32 %v3566_v38, %v3565_v17  ;;  %v3428_v0 = vrot.slane %v3427_v49, 1 }
 0x10d   :  { %v3456_v61 = vrot.slane %v3455_v45, 1  ;;  %v3484_v39 = vrot.slane %v3483_v40, 1  ;;  %v3512_v6 = vrot.slane %v3511_v21, 1  ;;  %v3540_v63 = vrot.slane %v3539_v59, 1 }
 0x10e   :  { %v3373_v46 = vadd.f32 %v3372_v4, %v3371_v26  ;;  %v3401_v32 = vadd.f32 %v3400_v48, %v3399_v34  ;;  %v3568_v8 = vrot.slane %v3567_v12, 1  ;;  %v3429_v28 = vadd.f32 %v3428_v0, %v3427_v49 }
 0x10f   :  { %v3457_v44 = vadd.f32 %v3456_v61, %v3455_v45  ;;  %v3485_v3 = vadd.f32 %v3484_v39, %v3483_v40  ;;  %v3513_v54 = vadd.f32 %v3512_v6, %v3511_v21  ;;  %v3541_v23 = vadd.f32 %v3540_v63, %v3539_v59 }
 0x110   :  { %v3569_v15 = vadd.f32 %v3568_v8, %v3567_v12  ;;  %v9089_v62 = vadd.f32 %v3373_v46, %v9065_v43  ;;  %v9092_v51 = vadd.f32 %v3401_v32, %v9068_v2  ;;  %v9095_v10 = vadd.f32 %v3429_v28, %v9071_v27  ;;  %v3639_v43 = vld [vmem:[#allocation3 + $0x940] sm:$0xff]  ;;  %v3645_v27 = vld [vmem:[#allocation3 + $0xb50] sm:$0xff] }
 0x111   :  { %v9098_v7 = vadd.f32 %v3457_v44, %v9074_v57  ;;  %v9101_v52 = vadd.f32 %v3485_v3, %v9077_v31  ;;  %v9104_v22 = vadd.f32 %v3513_v54, %v9080_v29  ;;  %v9107_v2 = vadd.f32 %v3541_v23, %v9083_v11  ;;  %v3653_v31 = vld [vmem:[#allocation3 + $0xf50] sm:$0xff] }
 0x112   :  { %v9110_v60 = vadd.f32 %v3569_v15, %v9086_v53  ;;  %v3655_v57 = vunpack.c.l.bf16 %v3623_v25  ;;  %v3659_v13 = vunpack.c.l.bf16 %v3625_v1  ;;  %v3663_v55 = vunpack.c.l.bf16 %v3627_v19 }
 0x113   :  { %v3667_v50 = vunpack.c.l.bf16 %v3629_v16  ;;  %v3671_v29 = vunpack.c.l.bf16 %v3631_v41  ;;  %v3675_v36 = vunpack.c.l.bf16 %v3633_v42  ;;  %v3679_v37 = vunpack.c.l.bf16 %v3635_v47 }
 0x114   :  { %v3683_v17 = vunpack.c.l.bf16 %v3637_v30  ;;  %v3687_v18 = vunpack.c.l.bf16 %v3639_v43  ;;  %v3691_v33 = vunpack.c.l.bf16 %v3641_v56  ;;  %v3695_v11 = vunpack.c.l.bf16 %v3643_v35 }
 0x115   :  { %v3699_v9 = vunpack.c.l.bf16 %v3645_v27  ;;  %v3703_v24 = vunpack.c.l.bf16 %v3647_v58  ;;  %v3707_v53 = vunpack.c.l.bf16 %v3649_v5  ;;  %v3711_v26 = vunpack.c.l.bf16 %v3651_v14 }
 0x116   :  { %v3715_v34 = vunpack.c.l.bf16 %v3653_v31  ;;  %v3719_v20 = vadd.f32 %v3659_v13, %v3655_v57  ;;  %v3747_v38 = vadd.f32 %v3667_v50, %v3663_v55  ;;  %v3775_v49 = vadd.f32 %v3675_v36, %v3671_v29 }
 0x117   :  { %v3803_v45 = vadd.f32 %v3683_v17, %v3679_v37  ;;  %v3831_v40 = vadd.f32 %v3691_v33, %v3687_v18  ;;  %v3859_v21 = vadd.f32 %v3699_v9, %v3695_v11  ;;  %v3887_v59 = vadd.f32 %v3707_v53, %v3703_v24  ;;  %v3975_v11 = vld [vmem:[#allocation3 + $0x160] sm:$0xff]  ;;  %v3977_v9 = vld [vmem:[#allocation3 + $0x170] sm:$0xff] }
 0x118   :  { %v3720_v4 = vrot.slane %v3719_v20, 4  ;;  %v3748_v48 = vrot.slane %v3747_v38, 4  ;;  %v3915_v12 = vadd.f32 %v3715_v34, %v3711_v26  ;;  %v3776_v0 = vrot.slane %v3775_v49, 4 }
 0x119   :  { %v3804_v61 = vrot.slane %v3803_v45, 4  ;;  %v3832_v39 = vrot.slane %v3831_v40, 4  ;;  %v3860_v6 = vrot.slane %v3859_v21, 4  ;;  %v3888_v63 = vrot.slane %v3887_v59, 4 }
 0x11a   :  { %v3721_v46 = vadd.f32 %v3720_v4, %v3719_v20  ;;  %v3749_v32 = vadd.f32 %v3748_v48, %v3747_v38  ;;  %v3916_v8 = vrot.slane %v3915_v12, 4  ;;  %v3777_v25 = vadd.f32 %v3776_v0, %v3775_v49  ;;  %v3979_v20 = vld [vmem:[#allocation3 + $0x360] sm:$0xff]  ;;  %v3981_v38 = vld [vmem:[#allocation3 + $0x370] sm:$0xff] }
 0x11b   :  { %v3805_v1 = vadd.f32 %v3804_v61, %v3803_v45  ;;  %v3833_v28 = vadd.f32 %v3832_v39, %v3831_v40  ;;  %v3861_v44 = vadd.f32 %v3860_v6, %v3859_v21  ;;  %v3889_v19 = vadd.f32 %v3888_v63, %v3887_v59  ;;  %v3983_v49 = vld [vmem:[#allocation3 + $0x560] sm:$0xff]  ;;  %v3985_v48 = vld [vmem:[#allocation3 + $0x570] sm:$0xff] }
 0x11c   :  { %v3722_v3 = vrot.slane %v3721_v46, 2  ;;  %v3750_v54 = vrot.slane %v3749_v32, 2  ;;  %v3917_v16 = vadd.f32 %v3916_v8, %v3915_v12  ;;  %v3778_v41 = vrot.slane %v3777_v25, 2  ;;  %v3987_v59 = vld [vmem:[#allocation3 + $0x760] sm:$0xff]  ;;  %v3989_v12 = vld [vmem:[#allocation3 + $0x770] sm:$0xff] }
 0x11d   :  { %v3806_v23 = vrot.slane %v3805_v1, 2  ;;  %v3834_v15 = vrot.slane %v3833_v28, 2  ;;  %v3862_v42 = vrot.slane %v3861_v44, 2  ;;  %v3890_v43 = vrot.slane %v3889_v19, 2  ;;  %v3999_v8 = vld [vmem:[#allocation3 + $0xd60] sm:$0xff] }
 0x11e   :  { %v3723_v47 = vadd.f32 %v3722_v3, %v3721_v46  ;;  %v3751_v30 = vadd.f32 %v3750_v54, %v3749_v32  ;;  %v3918_v56 = vrot.slane %v3917_v16, 2  ;;  %v3779_v35 = vadd.f32 %v3778_v41, %v3777_v25  ;;  %v3993_v46 = vld [vmem:[#allocation3 + $0x970] sm:$0xff]  ;;  %v3995_v32 = vld [vmem:[#allocation3 + $0xb60] sm:$0xff] }
 0x11f   :  { %v3807_v27 = vadd.f32 %v3806_v23, %v3805_v1  ;;  %v3835_v58 = vadd.f32 %v3834_v15, %v3833_v28  ;;  %v3863_v5 = vadd.f32 %v3862_v42, %v3861_v44  ;;  %v3891_v14 = vadd.f32 %v3890_v43, %v3889_v19  ;;  %v4001_v25 = vld [vmem:[#allocation3 + $0xd70] sm:$0xff]  ;;  %v4003_v28 = vld [vmem:[#allocation3 + $0xf60] sm:$0xff] }
 0x120   :  { %v3724_v57 = vrot.slane %v3723_v47, 1  ;;  %v3752_v13 = vrot.slane %v3751_v30, 1  ;;  %v3919_v31 = vadd.f32 %v3918_v56, %v3917_v16  ;;  %v3780_v55 = vrot.slane %v3779_v35, 1 }
 0x121   :  { %v3808_v50 = vrot.slane %v3807_v27, 1  ;;  %v3836_v29 = vrot.slane %v3835_v58, 1  ;;  %v3864_v36 = vrot.slane %v3863_v5, 1  ;;  %v3892_v18 = vrot.slane %v3891_v14, 1 }
 0x122   :  { %v3725_v37 = vadd.f32 %v3724_v57, %v3723_v47  ;;  %v3753_v17 = vadd.f32 %v3752_v13, %v3751_v30  ;;  %v3920_v33 = vrot.slane %v3919_v31, 1  ;;  %v3781_v24 = vadd.f32 %v3780_v55, %v3779_v35 }
 0x123   :  { %v3809_v53 = vadd.f32 %v3808_v50, %v3807_v27  ;;  %v3837_v26 = vadd.f32 %v3836_v29, %v3835_v58  ;;  %v3865_v34 = vadd.f32 %v3864_v36, %v3863_v5  ;;  %v3893_v45 = vadd.f32 %v3892_v18, %v3891_v14 }
 0x124   :  { %v3921_v40 = vadd.f32 %v3920_v33, %v3919_v31  ;;  %v9113_v21 = vadd.f32 %v3725_v37, %v9089_v62  ;;  %v9116_v4 = vadd.f32 %v3753_v17, %v9092_v51  ;;  %v9119_v0 = vadd.f32 %v3781_v24, %v9095_v10  ;;  %v3991_v62 = vld [vmem:[#allocation3 + $0x960] sm:$0xff]  ;;  %v3997_v10 = vld [vmem:[#allocation3 + $0xb70] sm:$0xff] }
 0x125   :  { %v9122_v61 = vadd.f32 %v3809_v53, %v9098_v7  ;;  %v9125_v39 = vadd.f32 %v3837_v26, %v9101_v52  ;;  %v9128_v6 = vadd.f32 %v3865_v34, %v9104_v22  ;;  %v9131_v51 = vadd.f32 %v3893_v45, %v9107_v2  ;;  %v4005_v52 = vld [vmem:[#allocation3 + $0xf70] sm:$0xff] }
 0x126   :  { %v9134_v63 = vadd.f32 %v3921_v40, %v9110_v60  ;;  %v4007_v7 = vunpack.c.l.bf16 %v3975_v11  ;;  %v4011_v1 = vunpack.c.l.bf16 %v3977_v9  ;;  %v4015_v44 = vunpack.c.l.bf16 %v3979_v20 }
 0x127   :  { %v4019_v3 = vunpack.c.l.bf16 %v3981_v38  ;;  %v4023_v22 = vunpack.c.l.bf16 %v3983_v49  ;;  %v4027_v54 = vunpack.c.l.bf16 %v3985_v48  ;;  %v4031_v19 = vunpack.c.l.bf16 %v3987_v59 }
 0x128   :  { %v4035_v16 = vunpack.c.l.bf16 %v3989_v12  ;;  %v4039_v41 = vunpack.c.l.bf16 %v3991_v62  ;;  %v4043_v23 = vunpack.c.l.bf16 %v3993_v46  ;;  %v4047_v2 = vunpack.c.l.bf16 %v3995_v32 }
 0x129   :  { %v4051_v15 = vunpack.c.l.bf16 %v3997_v10  ;;  %v4055_v42 = vunpack.c.l.bf16 %v3999_v8  ;;  %v4059_v60 = vunpack.c.l.bf16 %v4001_v25  ;;  %v4063_v47 = vunpack.c.l.bf16 %v4003_v28 }
 0x12a   :  { %v4067_v30 = vunpack.c.l.bf16 %v4005_v52  ;;  %v4071_v43 = vadd.f32 %v4011_v1, %v4007_v7  ;;  %v4099_v56 = vadd.f32 %v4019_v3, %v4015_v44  ;;  %v4127_v35 = vadd.f32 %v4027_v54, %v4023_v22 }
 0x12b   :  { %v4155_v27 = vadd.f32 %v4035_v16, %v4031_v19  ;;  %v4183_v58 = vadd.f32 %v4043_v23, %v4039_v41  ;;  %v4211_v5 = vadd.f32 %v4051_v15, %v4047_v2  ;;  %v4239_v14 = vadd.f32 %v4059_v60, %v4055_v42  ;;  %v4327_v2 = vld [vmem:[#allocation3 + $0x180] sm:$0xff]  ;;  %v4329_v15 = vld [vmem:[#allocation3 + $0x190] sm:$0xff] }
 0x12c   :  { %v4072_v57 = vrot.slane %v4071_v43, 4  ;;  %v4100_v13 = vrot.slane %v4099_v56, 4  ;;  %v4267_v31 = vadd.f32 %v4067_v30, %v4063_v47  ;;  %v4128_v55 = vrot.slane %v4127_v35, 4 }
 0x12d   :  { %v4156_v50 = vrot.slane %v4155_v27, 4  ;;  %v4184_v29 = vrot.slane %v4183_v58, 4  ;;  %v4212_v36 = vrot.slane %v4211_v5, 4  ;;  %v4240_v18 = vrot.slane %v4239_v14, 4 }
 0x12e   :  { %v4073_v37 = vadd.f32 %v4072_v57, %v4071_v43  ;;  %v4101_v17 = vadd.f32 %v4100_v13, %v4099_v56  ;;  %v4268_v33 = vrot.slane %v4267_v31, 4  ;;  %v4129_v11 = vadd.f32 %v4128_v55, %v4127_v35  ;;  %v4331_v43 = vld [vmem:[#allocation3 + $0x380] sm:$0xff]  ;;  %v4333_v56 = vld [vmem:[#allocation3 + $0x390] sm:$0xff] }
 0x12f   :  { %v4157_v9 = vadd.f32 %v4156_v50, %v4155_v27  ;;  %v4185_v24 = vadd.f32 %v4184_v29, %v4183_v58  ;;  %v4213_v53 = vadd.f32 %v4212_v36, %v4211_v5  ;;  %v4241_v20 = vadd.f32 %v4240_v18, %v4239_v14  ;;  %v4335_v35 = vld [vmem:[#allocation3 + $0x580] sm:$0xff]  ;;  %v4337_v13 = vld [vmem:[#allocation3 + $0x590] sm:$0xff] }
 0x130   :  { %v4074_v26 = vrot.slane %v4073_v37, 2  ;;  %v4102_v34 = vrot.slane %v4101_v17, 2  ;;  %v4269_v38 = vadd.f32 %v4268_v33, %v4267_v31  ;;  %v4130_v49 = vrot.slane %v4129_v11, 2  ;;  %v4339_v14 = vld [vmem:[#allocation3 + $0x780] sm:$0xff]  ;;  %v4341_v31 = vld [vmem:[#allocation3 + $0x790] sm:$0xff] }
 0x131   :  { %v4158_v45 = vrot.slane %v4157_v9, 2  ;;  %v4186_v40 = vrot.slane %v4185_v24, 2  ;;  %v4214_v48 = vrot.slane %v4213_v53, 2  ;;  %v4242_v62 = vrot.slane %v4241_v20, 2  ;;  %v4351_v33 = vld [vmem:[#allocation3 + $0xd80] sm:$0xff] }
 0x132   :  { %v4075_v59 = vadd.f32 %v4074_v26, %v4073_v37  ;;  %v4103_v12 = vadd.f32 %v4102_v34, %v4101_v17  ;;  %v4270_v46 = vrot.slane %v4269_v38, 2  ;;  %v4131_v32 = vadd.f32 %v4130_v49, %v4129_v11  ;;  %v4345_v37 = vld [vmem:[#allocation3 + $0x990] sm:$0xff]  ;;  %v4347_v17 = vld [vmem:[#allocation3 + $0xb80] sm:$0xff] }
 0x133   :  { %v4159_v10 = vadd.f32 %v4158_v45, %v4157_v9  ;;  %v4187_v8 = vadd.f32 %v4186_v40, %v4185_v24  ;;  %v4215_v25 = vadd.f32 %v4214_v48, %v4213_v53  ;;  %v4243_v28 = vadd.f32 %v4242_v62, %v4241_v20  ;;  %v4353_v11 = vld [vmem:[#allocation3 + $0xd90] sm:$0xff]  ;;  %v4355_v24 = vld [vmem:[#allocation3 + $0xf80] sm:$0xff] }
 0x134   :  { %v4076_v7 = vrot.slane %v4075_v59, 1  ;;  %v4104_v1 = vrot.slane %v4103_v12, 1  ;;  %v4271_v52 = vadd.f32 %v4270_v46, %v4269_v38  ;;  %v4132_v44 = vrot.slane %v4131_v32, 1 }
 0x135   :  { %v4160_v3 = vrot.slane %v4159_v10, 1  ;;  %v4188_v22 = vrot.slane %v4187_v8, 1  ;;  %v4216_v54 = vrot.slane %v4215_v25, 1  ;;  %v4244_v41 = vrot.slane %v4243_v28, 1 }
 0x136   :  { %v4077_v19 = vadd.f32 %v4076_v7, %v4075_v59  ;;  %v4105_v16 = vadd.f32 %v4104_v1, %v4103_v12  ;;  %v4272_v23 = vrot.slane %v4271_v52, 1  ;;  %v4133_v42 = vadd.f32 %v4132_v44, %v4131_v32 }
 0x137   :  { %v4161_v60 = vadd.f32 %v4160_v3, %v4159_v10  ;;  %v4189_v47 = vadd.f32 %v4188_v22, %v4187_v8  ;;  %v4217_v30 = vadd.f32 %v4216_v54, %v4215_v25  ;;  %v4245_v27 = vadd.f32 %v4244_v41, %v4243_v28 }
 0x138   :  { %v4273_v58 = vadd.f32 %v4272_v23, %v4271_v52  ;;  %v9137_v5 = vadd.f32 %v4077_v19, %v9113_v21  ;;  %v9140_v57 = vadd.f32 %v4105_v16, %v9116_v4  ;;  %v9143_v55 = vadd.f32 %v4133_v42, %v9119_v0  ;;  %v4343_v21 = vld [vmem:[#allocation3 + $0x980] sm:$0xff]  ;;  %v4349_v0 = vld [vmem:[#allocation3 + $0xb90] sm:$0xff] }
 0x139   :  { %v9146_v50 = vadd.f32 %v4161_v60, %v9122_v61  ;;  %v9149_v29 = vadd.f32 %v4189_v47, %v9125_v39  ;;  %v9152_v36 = vadd.f32 %v4217_v30, %v9128_v6  ;;  %v9155_v4 = vadd.f32 %v4245_v27, %v9131_v51  ;;  %v4357_v39 = vld [vmem:[#allocation3 + $0xf90] sm:$0xff] }
 0x13a   :  { %v9158_v18 = vadd.f32 %v4273_v58, %v9134_v63  ;;  %v4359_v61 = vunpack.c.l.bf16 %v4327_v2  ;;  %v4363_v9 = vunpack.c.l.bf16 %v4329_v15  ;;  %v4367_v53 = vunpack.c.l.bf16 %v4331_v43 }
 0x13b   :  { %v4371_v26 = vunpack.c.l.bf16 %v4333_v56  ;;  %v4375_v6 = vunpack.c.l.bf16 %v4335_v35  ;;  %v4379_v34 = vunpack.c.l.bf16 %v4337_v13  ;;  %v4383_v20 = vunpack.c.l.bf16 %v4339_v14 }
 0x13c   :  { %v4387_v38 = vunpack.c.l.bf16 %v4341_v31  ;;  %v4391_v49 = vunpack.c.l.bf16 %v4343_v21  ;;  %v4395_v45 = vunpack.c.l.bf16 %v4345_v37  ;;  %v4399_v51 = vunpack.c.l.bf16 %v4347_v17 }
 0x13d   :  { %v4403_v40 = vunpack.c.l.bf16 %v4349_v0  ;;  %v4407_v48 = vunpack.c.l.bf16 %v4351_v33  ;;  %v4411_v63 = vunpack.c.l.bf16 %v4353_v11  ;;  %v4415_v59 = vunpack.c.l.bf16 %v4355_v24 }
 0x13e   :  { %v4419_v12 = vunpack.c.l.bf16 %v4357_v39  ;;  %v4423_v62 = vadd.f32 %v4363_v9, %v4359_v61  ;;  %v4451_v46 = vadd.f32 %v4371_v26, %v4367_v53  ;;  %v4479_v32 = vadd.f32 %v4379_v34, %v4375_v6 }
 0x13f   :  { %v4507_v10 = vadd.f32 %v4387_v38, %v4383_v20  ;;  %v4535_v8 = vadd.f32 %v4395_v45, %v4391_v49  ;;  %v4563_v25 = vadd.f32 %v4403_v40, %v4399_v51  ;;  %v4591_v28 = vadd.f32 %v4411_v63, %v4407_v48  ;;  %v4679_v51 = vld [vmem:[#allocation3 + $0x1a0] sm:$0xff]  ;;  %v4681_v40 = vld [vmem:[#allocation3 + $0x1b0] sm:$0xff] }
 0x140   :  { %v4424_v7 = vrot.slane %v4423_v62, 4  ;;  %v4452_v1 = vrot.slane %v4451_v46, 4  ;;  %v4619_v52 = vadd.f32 %v4419_v12, %v4415_v59  ;;  %v4480_v44 = vrot.slane %v4479_v32, 4 }
 0x141   :  { %v4508_v3 = vrot.slane %v4507_v10, 4  ;;  %v4536_v22 = vrot.slane %v4535_v8, 4  ;;  %v4564_v54 = vrot.slane %v4563_v25, 4  ;;  %v4592_v41 = vrot.slane %v4591_v28, 4 }
 0x142   :  { %v4425_v19 = vadd.f32 %v4424_v7, %v4423_v62  ;;  %v4453_v16 = vadd.f32 %v4452_v1, %v4451_v46  ;;  %v4620_v23 = vrot.slane %v4619_v52, 4  ;;  %v4481_v2 = vadd.f32 %v4480_v44, %v4479_v32  ;;  %v4683_v62 = vld [vmem:[#allocation3 + $0x3a0] sm:$0xff]  ;;  %v4685_v46 = vld [vmem:[#allocation3 + $0x3b0] sm:$0xff] }
 0x143   :  { %v4509_v15 = vadd.f32 %v4508_v3, %v4507_v10  ;;  %v4537_v42 = vadd.f32 %v4536_v22, %v4535_v8  ;;  %v4565_v60 = vadd.f32 %v4564_v54, %v4563_v25  ;;  %v4593_v43 = vadd.f32 %v4592_v41, %v4591_v28  ;;  %v4687_v32 = vld [vmem:[#allocation3 + $0x5a0] sm:$0xff]  ;;  %v4689_v1 = vld [vmem:[#allocation3 + $0x5b0] sm:$0xff] }
 0x144   :  { %v4426_v47 = vrot.slane %v4425_v19, 2  ;;  %v4454_v30 = vrot.slane %v4453_v16, 2  ;;  %v4621_v56 = vadd.f32 %v4620_v23, %v4619_v52  ;;  %v4482_v35 = vrot.slane %v4481_v2, 2  ;;  %v4691_v28 = vld [vmem:[#allocation3 + $0x7a0] sm:$0xff]  ;;  %v4693_v52 = vld [vmem:[#allocation3 + $0x7b0] sm:$0xff] }
 0x145   :  { %v4510_v27 = vrot.slane %v4509_v15, 2  ;;  %v4538_v58 = vrot.slane %v4537_v42, 2  ;;  %v4566_v13 = vrot.slane %v4565_v60, 2  ;;  %v4594_v21 = vrot.slane %v4593_v43, 2  ;;  %v4703_v23 = vld [vmem:[#allocation3 + $0xda0] sm:$0xff] }
 0x146   :  { %v4427_v14 = vadd.f32 %v4426_v47, %v4425_v19  ;;  %v4455_v31 = vadd.f32 %v4454_v30, %v4453_v16  ;;  %v4622_v37 = vrot.slane %v4621_v56, 2  ;;  %v4483_v17 = vadd.f32 %v4482_v35, %v4481_v2  ;;  %v4697_v19 = vld [vmem:[#allocation3 + $0x9b0] sm:$0xff]  ;;  %v4699_v16 = vld [vmem:[#allocation3 + $0xba0] sm:$0xff] }
 0x147   :  { %v4511_v0 = vadd.f32 %v4510_v27, %v4509_v15  ;;  %v4539_v33 = vadd.f32 %v4538_v58, %v4537_v42  ;;  %v4567_v11 = vadd.f32 %v4566_v13, %v4565_v60  ;;  %v4595_v24 = vadd.f32 %v4594_v21, %v4593_v43  ;;  %v4705_v2 = vld [vmem:[#allocation3 + $0xdb0] sm:$0xff]  ;;  %v4707_v42 = vld [vmem:[#allocation3 + $0xfa0] sm:$0xff] }
 0x148   :  { %v4428_v61 = vrot.slane %v4427_v14, 1  ;;  %v4456_v9 = vrot.slane %v4455_v31, 1  ;;  %v4623_v39 = vadd.f32 %v4622_v37, %v4621_v56  ;;  %v4484_v53 = vrot.slane %v4483_v17, 1 }
 0x149   :  { %v4512_v26 = vrot.slane %v4511_v0, 1  ;;  %v4540_v6 = vrot.slane %v4539_v33, 1  ;;  %v4568_v34 = vrot.slane %v4567_v11, 1  ;;  %v4596_v49 = vrot.slane %v4595_v24, 1 }
 0x14a   :  { %v4429_v20 = vadd.f32 %v4428_v61, %v4427_v14  ;;  %v4457_v38 = vadd.f32 %v4456_v9, %v4455_v31  ;;  %v4624_v45 = vrot.slane %v4623_v39, 1  ;;  %v4485_v48 = vadd.f32 %v4484_v53, %v4483_v17 }
 0x14b   :  { %v4513_v63 = vadd.f32 %v4512_v26, %v4511_v0  ;;  %v4541_v59 = vadd.f32 %v4540_v6, %v4539_v33  ;;  %v4569_v12 = vadd.f32 %v4568_v34, %v4567_v11  ;;  %v4597_v10 = vadd.f32 %v4596_v49, %v4595_v24 }
 0x14c   :  { %v4625_v8 = vadd.f32 %v4624_v45, %v4623_v39  ;;  %v9161_v25 = vadd.f32 %v4429_v20, %v9137_v5  ;;  %v9164_v7 = vadd.f32 %v4457_v38, %v9140_v57  ;;  %v9167_v44 = vadd.f32 %v4485_v48, %v9143_v55  ;;  %v4695_v5 = vld [vmem:[#allocation3 + $0x9a0] sm:$0xff]  ;;  %v4701_v55 = vld [vmem:[#allocation3 + $0xbb0] sm:$0xff] }
 0x14d   :  { %v9170_v3 = vadd.f32 %v4513_v63, %v9146_v50  ;;  %v9173_v22 = vadd.f32 %v4541_v59, %v9149_v29  ;;  %v9176_v54 = vadd.f32 %v4569_v12, %v9152_v36  ;;  %v9179_v57 = vadd.f32 %v4597_v10, %v9155_v4  ;;  %v4709_v29 = vld [vmem:[#allocation3 + $0xfb0] sm:$0xff] }
 0x14e   :  { %v9182_v41 = vadd.f32 %v4625_v8, %v9158_v18  ;;  %v4711_v50 = vunpack.c.l.bf16 %v4679_v51  ;;  %v4715_v15 = vunpack.c.l.bf16 %v4681_v40  ;;  %v4719_v60 = vunpack.c.l.bf16 %v4683_v62 }
 0x14f   :  { %v4723_v47 = vunpack.c.l.bf16 %v4685_v46  ;;  %v4727_v36 = vunpack.c.l.bf16 %v4687_v32  ;;  %v4731_v30 = vunpack.c.l.bf16 %v4689_v1  ;;  %v4735_v43 = vunpack.c.l.bf16 %v4691_v28 }
 0x150   :  { %v4739_v56 = vunpack.c.l.bf16 %v4693_v52  ;;  %v4743_v35 = vunpack.c.l.bf16 %v4695_v5  ;;  %v4747_v27 = vunpack.c.l.bf16 %v4697_v19  ;;  %v4751_v4 = vunpack.c.l.bf16 %v4699_v16 }
 0x151   :  { %v4755_v58 = vunpack.c.l.bf16 %v4701_v55  ;;  %v4759_v13 = vunpack.c.l.bf16 %v4703_v23  ;;  %v4763_v18 = vunpack.c.l.bf16 %v4705_v2  ;;  %v4767_v14 = vunpack.c.l.bf16 %v4707_v42 }
 0x152   :  { %v4771_v31 = vunpack.c.l.bf16 %v4709_v29  ;;  %v4775_v21 = vadd.f32 %v4715_v15, %v4711_v50  ;;  %v4803_v37 = vadd.f32 %v4723_v47, %v4719_v60  ;;  %v4831_v17 = vadd.f32 %v4731_v30, %v4727_v36 }
 0x153   :  { %v4859_v0 = vadd.f32 %v4739_v56, %v4735_v43  ;;  %v4887_v33 = vadd.f32 %v4747_v27, %v4743_v35  ;;  %v4915_v11 = vadd.f32 %v4755_v58, %v4751_v4  ;;  %v4943_v24 = vadd.f32 %v4763_v18, %v4759_v13  ;;  %v5031_v4 = vld [vmem:[#allocation3 + $0x1c0] sm:$0xff]  ;;  %v5033_v58 = vld [vmem:[#allocation3 + $0x1d0] sm:$0xff] }
 0x154   :  { %v4776_v61 = vrot.slane %v4775_v21, 4  ;;  %v4804_v9 = vrot.slane %v4803_v37, 4  ;;  %v4971_v39 = vadd.f32 %v4771_v31, %v4767_v14  ;;  %v4832_v53 = vrot.slane %v4831_v17, 4 }
 0x155   :  { %v4860_v26 = vrot.slane %v4859_v0, 4  ;;  %v4888_v6 = vrot.slane %v4887_v33, 4  ;;  %v4916_v34 = vrot.slane %v4915_v11, 4  ;;  %v4944_v49 = vrot.slane %v4943_v24, 4 }
 0x156   :  { %v4777_v20 = vadd.f32 %v4776_v61, %v4775_v21  ;;  %v4805_v38 = vadd.f32 %v4804_v9, %v4803_v37  ;;  %v4972_v45 = vrot.slane %v4971_v39, 4  ;;  %v4833_v51 = vadd.f32 %v4832_v53, %v4831_v17  ;;  %v5035_v21 = vld [vmem:[#allocation3 + $0x3c0] sm:$0xff]  ;;  %v5037_v37 = vld [vmem:[#allocation3 + $0x3d0] sm:$0xff] }
 0x157   :  { %v4861_v40 = vadd.f32 %v4860_v26, %v4859_v0  ;;  %v4889_v48 = vadd.f32 %v4888_v6, %v4887_v33  ;;  %v4917_v63 = vadd.f32 %v4916_v34, %v4915_v11  ;;  %v4945_v62 = vadd.f32 %v4944_v49, %v4943_v24  ;;  %v5039_v17 = vld [vmem:[#allocation3 + $0x5c0] sm:$0xff]  ;;  %v5041_v9 = vld [vmem:[#allocation3 + $0x5d0] sm:$0xff] }
 0x158   :  { %v4778_v59 = vrot.slane %v4777_v20, 2  ;;  %v4806_v12 = vrot.slane %v4805_v38, 2  ;;  %v4973_v46 = vadd.f32 %v4972_v45, %v4971_v39  ;;  %v4834_v32 = vrot.slane %v4833_v51, 2  ;;  %v5043_v24 = vld [vmem:[#allocation3 + $0x7c0] sm:$0xff]  ;;  %v5045_v39 = vld [vmem:[#allocation3 + $0x7d0] sm:$0xff] }
 0x159   :  { %v4862_v10 = vrot.slane %v4861_v40, 2  ;;  %v4890_v8 = vrot.slane %v4889_v48, 2  ;;  %v4918_v1 = vrot.slane %v4917_v63, 2  ;;  %v4946_v5 = vrot.slane %v4945_v62, 2  ;;  %v5055_v45 = vld [vmem:[#allocation3 + $0xdc0] sm:$0xff] }
 0x15a   :  { %v4779_v28 = vadd.f32 %v4778_v59, %v4777_v20  ;;  %v4807_v52 = vadd.f32 %v4806_v12, %v4805_v38  ;;  %v4974_v19 = vrot.slane %v4973_v46, 2  ;;  %v4835_v16 = vadd.f32 %v4834_v32, %v4833_v51  ;;  %v5049_v20 = vld [vmem:[#allocation3 + $0x9d0] sm:$0xff]  ;;  %v5051_v38 = vld [vmem:[#allocation3 + $0xbc0] sm:$0xff] }
 0x15b   :  { %v4863_v55 = vadd.f32 %v4862_v10, %v4861_v40  ;;  %v4891_v23 = vadd.f32 %v4890_v8, %v4889_v48  ;;  %v4919_v2 = vadd.f32 %v4918_v1, %v4917_v63  ;;  %v4947_v42 = vadd.f32 %v4946_v5, %v4945_v62  ;;  %v5057_v51 = vld [vmem:[#allocation3 + $0xdd0] sm:$0xff]  ;;  %v5059_v48 = vld [vmem:[#allocation3 + $0xfc0] sm:$0xff] }
 0x15c   :  { %v4780_v50 = vrot.slane %v4779_v28, 1  ;;  %v4808_v15 = vrot.slane %v4807_v52, 1  ;;  %v4975_v29 = vadd.f32 %v4974_v19, %v4973_v46  ;;  %v4836_v60 = vrot.slane %v4835_v16, 1 }
 0x15d   :  { %v4864_v47 = vrot.slane %v4863_v55, 1  ;;  %v4892_v36 = vrot.slane %v4891_v23, 1  ;;  %v4920_v30 = vrot.slane %v4919_v2, 1  ;;  %v4948_v35 = vrot.slane %v4947_v42, 1 }
 0x15e   :  { %v4781_v43 = vadd.f32 %v4780_v50, %v4779_v28  ;;  %v4809_v56 = vadd.f32 %v4808_v15, %v4807_v52  ;;  %v4976_v27 = vrot.slane %v4975_v29, 1  ;;  %v4837_v13 = vadd.f32 %v4836_v60, %v4835_v16 }
 0x15f   :  { %v4865_v18 = vadd.f32 %v4864_v47, %v4863_v55  ;;  %v4893_v14 = vadd.f32 %v4892_v36, %v4891_v23  ;;  %v4921_v31 = vadd.f32 %v4920_v30, %v4919_v2  ;;  %v4949_v0 = vadd.f32 %v4948_v35, %v4947_v42 }
 0x160   :  { %v4977_v33 = vadd.f32 %v4976_v27, %v4975_v29  ;;  %v9185_v11 = vadd.f32 %v4781_v43, %v9161_v25  ;;  %v9188_v61 = vadd.f32 %v4809_v56, %v9164_v7  ;;  %v9191_v53 = vadd.f32 %v4837_v13, %v9167_v44  ;;  %v5047_v25 = vld [vmem:[#allocation3 + $0x9c0] sm:$0xff]  ;;  %v5053_v44 = vld [vmem:[#allocation3 + $0xbd0] sm:$0xff] }
 0x161   :  { %v9194_v26 = vadd.f32 %v4865_v18, %v9170_v3  ;;  %v9197_v6 = vadd.f32 %v4893_v14, %v9173_v22  ;;  %v9200_v34 = vadd.f32 %v4921_v31, %v9176_v54  ;;  %v9203_v7 = vadd.f32 %v4949_v0, %v9179_v57  ;;  %v5061_v22 = vld [vmem:[#allocation3 + $0xfd0] sm:$0xff] }
 0x162   :  { %v9206_v49 = vadd.f32 %v4977_v33, %v9182_v41  ;;  %v5063_v3 = vunpack.c.l.bf16 %v5031_v4  ;;  %v5067_v40 = vunpack.c.l.bf16 %v5033_v58  ;;  %v5071_v63 = vunpack.c.l.bf16 %v5035_v21 }
 0x163   :  { %v5075_v59 = vunpack.c.l.bf16 %v5037_v37  ;;  %v5079_v54 = vunpack.c.l.bf16 %v5039_v17  ;;  %v5083_v12 = vunpack.c.l.bf16 %v5041_v9  ;;  %v5087_v62 = vunpack.c.l.bf16 %v5043_v24 }
 0x164   :  { %v5091_v46 = vunpack.c.l.bf16 %v5045_v39  ;;  %v5095_v32 = vunpack.c.l.bf16 %v5047_v25  ;;  %v5099_v10 = vunpack.c.l.bf16 %v5049_v20  ;;  %v5103_v57 = vunpack.c.l.bf16 %v5051_v38 }
 0x165   :  { %v5107_v8 = vunpack.c.l.bf16 %v5053_v44  ;;  %v5111_v1 = vunpack.c.l.bf16 %v5055_v45  ;;  %v5115_v41 = vunpack.c.l.bf16 %v5057_v51  ;;  %v5119_v28 = vunpack.c.l.bf16 %v5059_v48 }
 0x166   :  { %v5123_v52 = vunpack.c.l.bf16 %v5061_v22  ;;  %v5127_v5 = vadd.f32 %v5067_v40, %v5063_v3  ;;  %v5155_v19 = vadd.f32 %v5075_v59, %v5071_v63  ;;  %v5183_v16 = vadd.f32 %v5083_v12, %v5079_v54 }
 0x167   :  { %v5211_v55 = vadd.f32 %v5091_v46, %v5087_v62  ;;  %v5239_v23 = vadd.f32 %v5099_v10, %v5095_v32  ;;  %v5267_v2 = vadd.f32 %v5107_v8, %v5103_v57  ;;  %v5295_v42 = vadd.f32 %v5115_v41, %v5111_v1  ;;  %v5383_v57 = vld [vmem:[#allocation3 + $0x1e0] sm:$0xff]  ;;  %v5385_v8 = vld [vmem:[#allocation3 + $0x1f0] sm:$0xff] }
 0x168   :  { %v5128_v50 = vrot.slane %v5127_v5, 4  ;;  %v5156_v15 = vrot.slane %v5155_v19, 4  ;;  %v5323_v29 = vadd.f32 %v5123_v52, %v5119_v28  ;;  %v5184_v60 = vrot.slane %v5183_v16, 4 }
 0x169   :  { %v5212_v47 = vrot.slane %v5211_v55, 4  ;;  %v5240_v36 = vrot.slane %v5239_v23, 4  ;;  %v5268_v30 = vrot.slane %v5267_v2, 4  ;;  %v5296_v35 = vrot.slane %v5295_v42, 4 }
 0x16a   :  { %v5129_v43 = vadd.f32 %v5128_v50, %v5127_v5  ;;  %v5157_v56 = vadd.f32 %v5156_v15, %v5155_v19  ;;  %v5324_v27 = vrot.slane %v5323_v29, 4  ;;  %v5185_v4 = vadd.f32 %v5184_v60, %v5183_v16  ;;  %v5387_v5 = vld [vmem:[#allocation3 + $0x3e0] sm:$0xff]  ;;  %v5389_v19 = vld [vmem:[#allocation3 + $0x3f0] sm:$0xff] }
 0x16b   :  { %v5213_v58 = vadd.f32 %v5212_v47, %v5211_v55  ;;  %v5241_v13 = vadd.f32 %v5240_v36, %v5239_v23  ;;  %v5269_v18 = vadd.f32 %v5268_v30, %v5267_v2  ;;  %v5297_v21 = vadd.f32 %v5296_v35, %v5295_v42  ;;  %v5391_v16 = vld [vmem:[#allocation3 + $0x5e0] sm:$0xff]  ;;  %v5393_v15 = vld [vmem:[#allocation3 + $0x5f0] sm:$0xff] }
 0x16c   :  { %v5130_v14 = vrot.slane %v5129_v43, 2  ;;  %v5158_v31 = vrot.slane %v5157_v56, 2  ;;  %v5325_v37 = vadd.f32 %v5324_v27, %v5323_v29  ;;  %v5186_v17 = vrot.slane %v5185_v4, 2  ;;  %v5395_v42 = vld [vmem:[#allocation3 + $0x7e0] sm:$0xff]  ;;  %v5397_v29 = vld [vmem:[#allocation3 + $0x7f0] sm:$0xff] }
 0x16d   :  { %v5214_v0 = vrot.slane %v5213_v58, 2  ;;  %v5242_v33 = vrot.slane %v5241_v13, 2  ;;  %v5270_v9 = vrot.slane %v5269_v18, 2  ;;  %v5298_v25 = vrot.slane %v5297_v21, 2  ;;  %v5407_v27 = vld [vmem:[#allocation3 + $0xde0] sm:$0xff] }
 0x16e   :  { %v5131_v24 = vadd.f32 %v5130_v14, %v5129_v43  ;;  %v5159_v39 = vadd.f32 %v5158_v31, %v5157_v56  ;;  %v5326_v20 = vrot.slane %v5325_v37, 2  ;;  %v5187_v38 = vadd.f32 %v5186_v17, %v5185_v4  ;;  %v5401_v43 = vld [vmem:[#allocation3 + $0x9f0] sm:$0xff]  ;;  %v5403_v56 = vld [vmem:[#allocation3 + $0xbe0] sm:$0xff] }
 0x16f   :  { %v5215_v44 = vadd.f32 %v5214_v0, %v5213_v58  ;;  %v5243_v45 = vadd.f32 %v5242_v33, %v5241_v13  ;;  %v5271_v51 = vadd.f32 %v5270_v9, %v5269_v18  ;;  %v5299_v48 = vadd.f32 %v5298_v25, %v5297_v21  ;;  %v5409_v4 = vld [vmem:[#allocation3 + $0xdf0] sm:$0xff]  ;;  %v5411_v13 = vld [vmem:[#allocation3 + $0xfe0] sm:$0xff] }
 0x170   :  { %v5132_v3 = vrot.slane %v5131_v24, 1  ;;  %v5160_v40 = vrot.slane %v5159_v39, 1  ;;  %v5327_v22 = vadd.f32 %v5326_v20, %v5325_v37  ;;  %v5188_v63 = vrot.slane %v5187_v38, 1 }
 0x171   :  { %v5216_v59 = vrot.slane %v5215_v44, 1  ;;  %v5244_v54 = vrot.slane %v5243_v45, 1  ;;  %v5272_v12 = vrot.slane %v5271_v51, 1  ;;  %v5300_v32 = vrot.slane %v5299_v48, 1 }
 0x172   :  { %v5133_v62 = vadd.f32 %v5132_v3, %v5131_v24  ;;  %v5161_v46 = vadd.f32 %v5160_v40, %v5159_v39  ;;  %v5328_v10 = vrot.slane %v5327_v22, 1  ;;  %v5189_v1 = vadd.f32 %v5188_v63, %v5187_v38 }
 0x173   :  { %v5217_v41 = vadd.f32 %v5216_v59, %v5215_v44  ;;  %v5245_v28 = vadd.f32 %v5244_v54, %v5243_v45  ;;  %v5273_v52 = vadd.f32 %v5272_v12, %v5271_v51  ;;  %v5301_v55 = vadd.f32 %v5300_v32, %v5299_v48 }
 0x174   :  { %v5329_v23 = vadd.f32 %v5328_v10, %v5327_v22  ;;  %v9209_v2 = vadd.f32 %v5133_v62, %v9185_v11  ;;  %v9212_v50 = vadd.f32 %v5161_v46, %v9188_v61  ;;  %v9215_v60 = vadd.f32 %v5189_v1, %v9191_v53  ;;  %v5399_v11 = vld [vmem:[#allocation3 + $0x9e0] sm:$0xff]  ;;  %v5405_v53 = vld [vmem:[#allocation3 + $0xbf0] sm:$0xff] }
 0x175   :  { %v9218_v47 = vadd.f32 %v5217_v41, %v9194_v26  ;;  %v9221_v36 = vadd.f32 %v5245_v28, %v9197_v6  ;;  %v9224_v30 = vadd.f32 %v5273_v52, %v9200_v34  ;;  %v9227_v61 = vadd.f32 %v5301_v55, %v9203_v7  ;;  %v5413_v6 = vld [vmem:[#allocation3 + $0xff0] sm:$0xff] }
 0x176   :  { %v9230_v35 = vadd.f32 %v5329_v23, %v9206_v49  ;;  %v5415_v26 = vunpack.c.l.bf16 %v5383_v57  ;;  %v5419_v58 = vunpack.c.l.bf16 %v5385_v8  ;;  %v5423_v18 = vunpack.c.l.bf16 %v5387_v5 }
 0x177   :  { %v5427_v14 = vunpack.c.l.bf16 %v5389_v19  ;;  %v5431_v34 = vunpack.c.l.bf16 %v5391_v16  ;;  %v5435_v31 = vunpack.c.l.bf16 %v5393_v15  ;;  %v5439_v21 = vunpack.c.l.bf16 %v5395_v42 }
 0x178   :  { %v5443_v37 = vunpack.c.l.bf16 %v5397_v29  ;;  %v5447_v17 = vunpack.c.l.bf16 %v5399_v11  ;;  %v5451_v0 = vunpack.c.l.bf16 %v5401_v43  ;;  %v5455_v7 = vunpack.c.l.bf16 %v5403_v56 }
 0x179   :  { %v5459_v33 = vunpack.c.l.bf16 %v5405_v53  ;;  %v5463_v9 = vunpack.c.l.bf16 %v5407_v27  ;;  %v5467_v49 = vunpack.c.l.bf16 %v5409_v4  ;;  %v5471_v24 = vunpack.c.l.bf16 %v5411_v13 }
 0x17a   :  { %v5475_v39 = vunpack.c.l.bf16 %v5413_v6  ;;  %v5479_v25 = vadd.f32 %v5419_v58, %v5415_v26  ;;  %v5507_v20 = vadd.f32 %v5427_v14, %v5423_v18  ;;  %v5535_v38 = vadd.f32 %v5435_v31, %v5431_v34 }
 0x17b   :  { %v5563_v44 = vadd.f32 %v5443_v37, %v5439_v21  ;;  %v5591_v45 = vadd.f32 %v5451_v0, %v5447_v17  ;;  %v5619_v51 = vadd.f32 %v5459_v33, %v5455_v7  ;;  %v5647_v48 = vadd.f32 %v5467_v49, %v5463_v9 }
 0x17c   :  { %v5480_v3 = vrot.slane %v5479_v25, 4  ;;  %v5508_v40 = vrot.slane %v5507_v20, 4  ;;  %v5675_v22 = vadd.f32 %v5475_v39, %v5471_v24  ;;  %v5536_v63 = vrot.slane %v5535_v38, 4 }
 0x17d   :  { %v5564_v59 = vrot.slane %v5563_v44, 4  ;;  %v5592_v54 = vrot.slane %v5591_v45, 4  ;;  %v5620_v12 = vrot.slane %v5619_v51, 4  ;;  %v5648_v32 = vrot.slane %v5647_v48, 4 }
 0x17e   :  { %v5481_v62 = vadd.f32 %v5480_v3, %v5479_v25  ;;  %v5509_v46 = vadd.f32 %v5508_v40, %v5507_v20  ;;  %v5676_v10 = vrot.slane %v5675_v22, 4  ;;  %v5537_v57 = vadd.f32 %v5536_v63, %v5535_v38 }
 0x17f   :  { %v5565_v8 = vadd.f32 %v5564_v59, %v5563_v44  ;;  %v5593_v1 = vadd.f32 %v5592_v54, %v5591_v45  ;;  %v5621_v41 = vadd.f32 %v5620_v12, %v5619_v51  ;;  %v5649_v5 = vadd.f32 %v5648_v32, %v5647_v48  ;;  %v7991_v54 = vld [vmem:[#allocation3 + $0x400] sm:$0xff] }
 0x180   :  { %v5482_v28 = vrot.slane %v5481_v62, 2  ;;  %v5510_v52 = vrot.slane %v5509_v46, 2  ;;  %v5677_v19 = vadd.f32 %v5676_v10, %v5675_v22  ;;  %v5538_v16 = vrot.slane %v5537_v57, 2  ;;  %v7993_v32 = vld [vmem:[#allocation3 + $0x600] sm:$0xff] }
 0x181   :  { %v5566_v55 = vrot.slane %v5565_v8, 2  ;;  %v5594_v23 = vrot.slane %v5593_v1, 2  ;;  %v5622_v15 = vrot.slane %v5621_v41, 2  ;;  %v5650_v11 = vrot.slane %v5649_v5, 2 }
 0x182   :  { %v5483_v42 = vadd.f32 %v5482_v28, %v5481_v62  ;;  %v5511_v29 = vadd.f32 %v5510_v52, %v5509_v46  ;;  %v5678_v43 = vrot.slane %v5677_v19, 2  ;;  %v5539_v56 = vadd.f32 %v5538_v16, %v5537_v57  ;;  %v7992_v62 = vld [vmem:[#allocation3 + $0x410] sm:$0xff]  ;;  %v7997_v16 = vld [vmem:[#allocation3 + $0xa00] sm:$0xff] }
 0x183   :  { %v5567_v53 = vadd.f32 %v5566_v55, %v5565_v8  ;;  %v5595_v27 = vadd.f32 %v5594_v23, %v5593_v1  ;;  %v5623_v4 = vadd.f32 %v5622_v15, %v5621_v41  ;;  %v5651_v13 = vadd.f32 %v5650_v11, %v5649_v5  ;;  %v7994_v8 = vld [vmem:[#allocation3 + $0x610] sm:$0xff]  ;;  %v7995_v41 = vld [vmem:[#allocation3 + $0x800] sm:$0xff] }
 0x184   :  { %v5484_v26 = vrot.slane %v5483_v42, 1  ;;  %v5512_v58 = vrot.slane %v5511_v29, 1  ;;  %v5679_v6 = vadd.f32 %v5678_v43, %v5677_v19  ;;  %v5540_v18 = vrot.slane %v5539_v56, 1  ;;  %v7996_v52 = vld [vmem:[#allocation3 + $0x810] sm:$0xff] }
 0x185   :  { %v5568_v14 = vrot.slane %v5567_v53, 1  ;;  %v5596_v34 = vrot.slane %v5595_v27, 1  ;;  %v5624_v31 = vrot.slane %v5623_v4, 1  ;;  %v5652_v17 = vrot.slane %v5651_v13, 1  ;;  %v7998_v23 = vld [vmem:[#allocation3 + $0xa10] sm:$0xff] }
 0x186   :  { %v5485_v21 = vadd.f32 %v5484_v26, %v5483_v42  ;;  %v5513_v37 = vadd.f32 %v5512_v58, %v5511_v29  ;;  %v5680_v0 = vrot.slane %v5679_v6, 1  ;;  %v5541_v7 = vadd.f32 %v5540_v18, %v5539_v56  ;;  %v7999_v42 = vld [vmem:[#allocation3 + $0xc00] sm:$0xff]  ;;  %v8000_v43 = vld [vmem:[#allocation3 + $0xc10] sm:$0xff] }
 0x187   :  { %v5569_v33 = vadd.f32 %v5568_v14, %v5567_v53  ;;  %v5597_v9 = vadd.f32 %v5596_v34, %v5595_v27  ;;  %v5625_v49 = vadd.f32 %v5624_v31, %v5623_v4  ;;  %v5653_v24 = vadd.f32 %v5652_v17, %v5651_v13  ;;  %v8001_v53 = vld [vmem:[#allocation3 + $0xe00] sm:$0xff]  ;;  %v8002_v4 = vld [vmem:[#allocation3 + $0xe10] sm:$0xff] }
 0x188   :  { %v5681_v39 = vadd.f32 %v5680_v0, %v5679_v6  ;;  %v5703_v25 = vadd.f32 %v5485_v21, %v9209_v2  ;;  %v5707_v20 = vadd.f32 %v5513_v37, %v9212_v50  ;;  %v5711_v38 = vadd.f32 %v5541_v7, %v9215_v60  ;;  %v7987_v50 = vld [vmem:[#allocation3] sm:$0xff] }
 0x189   :  { %v5715_v44 = vadd.f32 %v5569_v33, %v9218_v47  ;;  %v5719_v45 = vadd.f32 %v5597_v9, %v9221_v36  ;;  %v5723_v51 = vadd.f32 %v5625_v49, %v9224_v30  ;;  %v5727_v3 = vadd.f32 %v5653_v24, %v9227_v61  ;;  %v7988_v36 = vld [vmem:[#allocation3 + $0x10] sm:$0xff]  ;;  %v7989_v61 = vld [vmem:[#allocation3 + $0x200] sm:$0xff] }
 0x18a   :  { %v5731_v40 = vadd.f32 %v5681_v39, %v9230_v35  ;;  %v5772_v48 = vsel %vm5771_vm0, %v5707_v20, %v5703_v25  ;;  %v136_v60 = vunpack.c.h.bf16 %v7987_v50  ;;  %v140_v30 = vunpack.c.h.bf16 %v7988_v36  ;;  %v7990_v35 = vld [vmem:[#allocation3 + $0x210] sm:$0xff] }
 0x18b   :  { %v5774_v2 = vsel %vm5773_vm1, %v5711_v38, %v5772_v48  ;;  %v144_v22 = vunpack.c.h.bf16 %v7989_v61  ;;  %v148_v63 = vunpack.c.h.bf16 %v7990_v35  ;;  %v152_v12 = vunpack.c.h.bf16 %v7991_v54 }
 0x18c   :  { %v5776_v47 = vsel %vm5775_vm2, %v5715_v44, %v5774_v2  ;;  %v156_v46 = vunpack.c.h.bf16 %v7992_v62  ;;  %v160_v10 = vunpack.c.h.bf16 %v7993_v32  ;;  %v164_v1 = vunpack.c.h.bf16 %v7994_v8 }
 0x18d   :  { %v5778_v59 = vsel %vm5777_vm3, %v5719_v45, %v5776_v47  ;;  %v168_v28 = vunpack.c.h.bf16 %v7995_v41  ;;  %v172_v5 = vunpack.c.h.bf16 %v7996_v52  ;;  %v176_v55 = vunpack.c.h.bf16 %v7997_v16 }
 0x18e   :  { %v5780_v57 = vsel %vm5779_vm4, %v5723_v51, %v5778_v59  ;;  %v180_v15 = vunpack.c.h.bf16 %v7998_v23  ;;  %v184_v29 = vunpack.c.h.bf16 %v7999_v42  ;;  %v188_v56 = vunpack.c.h.bf16 %v8000_v43 }
 0x18f   :  { %v5782_v19 = vsel %vm5781_vm5, %v5727_v3, %v5780_v57  ;;  %v192_v27 = vunpack.c.h.bf16 %v8001_v53  ;;  %v196_v26 = vunpack.c.h.bf16 %v8002_v4  ;;  %v206_v13 = vadd.f32 %v140_v30, %v136_v60 }
 0x190   :  { %v5784_v11 = vsel %vm5783_vm6, %v5731_v40, %v5782_v19  ;;  %v234_v6 = vadd.f32 %v148_v63, %v144_v22  ;;  %v262_v18 = vadd.f32 %v156_v46, %v152_v12  ;;  %v290_v14 = vadd.f32 %v164_v1, %v160_v10 }
 0x191   :  { %v5825_v58 = vmul.f32 0.00390625, %v5784_v11  ;;  %v318_v34 = vadd.f32 %v172_v5, %v168_v28  ;;  %v346_v31 = vadd.f32 %v180_v15, %v176_v55  ;;  %v374_v21 = vadd.f32 %v188_v56, %v184_v29  ;;  %v8003_v11 = vld [vmem:[#allocation3 + $0x20] sm:$0xff]  ;;  %v8004_v56 = vld [vmem:[#allocation3 + $0x30] sm:$0xff] }
 0x192   :  { %v207_v17 = vrot.slane %v206_v13, 4  ;;  %v235_v0 = vrot.slane %v234_v6, 4  ;;  %v263_v7 = vrot.slane %v262_v18, 4  ;;  %v291_v33 = vrot.slane %v290_v14, 4 }
 0x193   :  { %v9247_v37 = vpack.c.bf16 %v5825_v58, %v5825_v58  ;;  %v319_v9 = vrot.slane %v318_v34, 4  ;;  %v347_v49 = vrot.slane %v346_v31, 4  ;;  %v375_v24 = vrot.slane %v374_v21, 4 }
 0x194   :  { %v208_v39 = vadd.f32 %v207_v17, %v206_v13  ;;  %v236_v25 = vadd.f32 %v235_v0, %v234_v6  ;;  %v264_v20 = vadd.f32 %v263_v7, %v262_v18  ;;  %v402_v38 = vadd.f32 %v196_v26, %v192_v27  ;;  %v8005_v27 = vld [vmem:[#allocation3 + $0x220] sm:$0xff]  ;;  %v8006_v26 = vld [vmem:[#allocation3 + $0x230] sm:$0xff] }
 0x195   :  { %6619 = vmatmul.bf16.vlgmr.msra.gmra.mxu0 %v9247_v37  ;;  %v292_v44 = vadd.f32 %v291_v33, %v290_v14  ;;  %v320_v45 = vadd.f32 %v319_v9, %v318_v34  ;;  %v348_v51 = vadd.f32 %v347_v49, %v346_v31  ;;  %v376_v3 = vadd.f32 %v375_v24, %v374_v21  ;;  %v8007_v13 = vld [vmem:[#allocation3 + $0x420] sm:$0xff]  ;;  %v8008_v18 = vld [vmem:[#allocation3 + $0x430] sm:$0xff] }
 0x196   :  { %v209_v40 = vrot.slane %v208_v39, 2  ;;  %v237_v48 = vrot.slane %v236_v25, 2  ;;  %v265_v2 = vrot.slane %v264_v20, 2  ;;  %v403_v50 = vrot.slane %v402_v38, 4  ;;  %v8009_v34 = vld [vmem:[#allocation3 + $0x620] sm:$0xff]  ;;  %v8010_v17 = vld [vmem:[#allocation3 + $0x630] sm:$0xff] }
 0x197   :  { %v293_v60 = vrot.slane %v292_v44, 2  ;;  %v321_v47 = vrot.slane %v320_v45, 2  ;;  %v349_v36 = vrot.slane %v348_v51, 2  ;;  %v377_v30 = vrot.slane %v376_v3, 2  ;;  %v8011_v7 = vld [vmem:[#allocation3 + $0x820] sm:$0xff]  ;;  %v8012_v9 = vld [vmem:[#allocation3 + $0x830] sm:$0xff] }
 0x198   :  { %v210_v61 = vadd.f32 %v209_v40, %v208_v39  ;;  %v238_v22 = vadd.f32 %v237_v48, %v236_v25  ;;  %v266_v35 = vadd.f32 %v265_v2, %v264_v20  ;;  %v404_v63 = vadd.f32 %v403_v50, %v402_v38  ;;  %v8013_v24 = vld [vmem:[#allocation3 + $0xa20] sm:$0xff]  ;;  %v8014_v25 = vld [vmem:[#allocation3 + $0xa30] sm:$0xff] }
 0x199   :  { %v294_v59 = vadd.f32 %v293_v60, %v292_v44  ;;  %v322_v54 = vadd.f32 %v321_v47, %v320_v45  ;;  %v350_v12 = vadd.f32 %v349_v36, %v348_v51  ;;  %v378_v62 = vadd.f32 %v377_v30, %v376_v3  ;;  %v8015_v38 = vld [vmem:[#allocation3 + $0xc20] sm:$0xff]  ;;  %v8016_v45 = vld [vmem:[#allocation3 + $0xc30] sm:$0xff] }
 0x19a   :  { %v211_v46 = vrot.slane %v210_v61, 1  ;;  %v239_v32 = vrot.slane %v238_v22, 1  ;;  %v267_v10 = vrot.slane %v266_v35, 1  ;;  %v405_v57 = vrot.slane %v404_v63, 2  ;;  %v8017_v3 = vld [vmem:[#allocation3 + $0xe20] sm:$0xff]  ;;  %v8018_v48 = vld [vmem:[#allocation3 + $0xe30] sm:$0xff] }
 0x19b   :  { %v295_v8 = vrot.slane %v294_v59, 1  ;;  %v323_v1 = vrot.slane %v322_v54, 1  ;;  %v351_v41 = vrot.slane %v350_v12, 1  ;;  %v379_v28 = vrot.slane %v378_v62, 1 }
 0x19c   :  { %v9250_v52 = vadd.f32 %v211_v46, %v210_v61  ;;  %v9252_v5 = vadd.f32 %v239_v32, %v238_v22  ;;  %v9254_v19 = vadd.f32 %v267_v10, %v266_v35  ;;  %v406_v16 = vadd.f32 %v405_v57, %v404_v63 }
 0x19d   :  { %v9256_v55 = vadd.f32 %v295_v8, %v294_v59  ;;  %v9258_v23 = vadd.f32 %v323_v1, %v322_v54  ;;  %v9260_v15 = vadd.f32 %v351_v41, %v350_v12  ;;  %v9262_v42 = vadd.f32 %v379_v28, %v378_v62 }
 0x19e   :  { %v407_v29 = vrot.slane %v406_v16, 1  ;;  %v488_v43 = vunpack.c.h.bf16 %v8003_v11  ;;  %v492_v53 = vunpack.c.h.bf16 %v8004_v56  ;;  %v496_v4 = vunpack.c.h.bf16 %v8005_v27 }
 0x19f   :  { %v500_v58 = vunpack.c.h.bf16 %v8006_v26  ;;  %v504_v6 = vunpack.c.h.bf16 %v8007_v13  ;;  %v508_v14 = vunpack.c.h.bf16 %v8008_v18  ;;  %v512_v31 = vunpack.c.h.bf16 %v8009_v34 }
 0x1a0   :  { %v9264_v21 = vadd.f32 %v407_v29, %v406_v16  ;;  %v516_v0 = vunpack.c.h.bf16 %v8010_v17  ;;  %v520_v33 = vunpack.c.h.bf16 %v8011_v7  ;;  %v524_v49 = vunpack.c.h.bf16 %v8012_v9 }
 0x1a1   :  { %v528_v39 = vunpack.c.h.bf16 %v8013_v24  ;;  %v532_v20 = vunpack.c.h.bf16 %v8014_v25  ;;  %v536_v44 = vunpack.c.h.bf16 %v8015_v38  ;;  %v540_v51 = vunpack.c.h.bf16 %v8016_v45 }
 0x1a2   :  { %v544_v40 = vunpack.c.h.bf16 %v8017_v3  ;;  %v548_v2 = vunpack.c.h.bf16 %v8018_v48  ;;  %v558_v50 = vadd.f32 %v492_v53, %v488_v43  ;;  %v586_v60 = vadd.f32 %v500_v58, %v496_v4 }
 0x1a3   :  { %v614_v47 = vadd.f32 %v508_v14, %v504_v6  ;;  %v642_v36 = vadd.f32 %v516_v0, %v512_v31  ;;  %v670_v30 = vadd.f32 %v524_v49, %v520_v33  ;;  %v698_v61 = vadd.f32 %v532_v20, %v528_v39 }
 0x1a4   :  { %v559_v22 = vrot.slane %v558_v50, 4  ;;  %v587_v35 = vrot.slane %v586_v60, 4  ;;  %v726_v63 = vadd.f32 %v540_v51, %v536_v44  ;;  %v754_v59 = vadd.f32 %v548_v2, %v544_v40 }
 0x1a5   :  { %v615_v54 = vrot.slane %v614_v47, 4  ;;  %v643_v12 = vrot.slane %v642_v36, 4  ;;  %v671_v62 = vrot.slane %v670_v30, 4  ;;  %v699_v46 = vrot.slane %v698_v61, 4 }
 0x1a6   :  { %v560_v32 = vadd.f32 %v559_v22, %v558_v50  ;;  %v588_v10 = vadd.f32 %v587_v35, %v586_v60  ;;  %v727_v57 = vrot.slane %v726_v63, 4  ;;  %v755_v8 = vrot.slane %v754_v59, 4 }
 0x1a7   :  { %v616_v1 = vadd.f32 %v615_v54, %v614_v47  ;;  %v644_v41 = vadd.f32 %v643_v12, %v642_v36  ;;  %v672_v28 = vadd.f32 %v671_v62, %v670_v30  ;;  %v700_v16 = vadd.f32 %v699_v46, %v698_v61  ;;  %v8021_v54 = vld [vmem:[#allocation3 + $0x240] sm:$0xff] }
 0x1a8   :  { %v561_v29 = vrot.slane %v560_v32, 2  ;;  %v589_v11 = vrot.slane %v588_v10, 2  ;;  %v728_v43 = vadd.f32 %v727_v57, %v726_v63  ;;  %v756_v56 = vadd.f32 %v755_v8, %v754_v59  ;;  %v8020_v59 = vld [vmem:[#allocation3 + $0x50] sm:$0xff]  ;;  %v8023_v46 = vld [vmem:[#allocation3 + $0x440] sm:$0xff] }
 0x1a9   :  { %v617_v53 = vrot.slane %v616_v1, 2  ;;  %v645_v27 = vrot.slane %v644_v41, 2  ;;  %v673_v4 = vrot.slane %v672_v28, 2  ;;  %v701_v26 = vrot.slane %v700_v16, 2  ;;  %v8026_v8 = vld [vmem:[#allocation3 + $0x650] sm:$0xff] }
 0x1aa   :  { %v562_v58 = vadd.f32 %v561_v29, %v560_v32  ;;  %v590_v13 = vadd.f32 %v589_v11, %v588_v10  ;;  %v729_v6 = vrot.slane %v728_v43, 2  ;;  %v757_v18 = vrot.slane %v756_v56, 2  ;;  %v8024_v32 = vld [vmem:[#allocation3 + $0x450] sm:$0xff] }
 0x1ab   :  { %v618_v14 = vadd.f32 %v617_v53, %v616_v1  ;;  %v646_v34 = vadd.f32 %v645_v27, %v644_v41  ;;  %v674_v31 = vadd.f32 %v673_v4, %v672_v28  ;;  %v702_v17 = vadd.f32 %v701_v26, %v700_v16  ;;  %v8027_v1 = vld [vmem:[#allocation3 + $0x840] sm:$0xff]  ;;  %v8030_v11 = vld [vmem:[#allocation3 + $0xa50] sm:$0xff] }
 0x1ac   :  { %v563_v0 = vrot.slane %v562_v58, 1  ;;  %v591_v7 = vrot.slane %v590_v13, 1  ;;  %v730_v33 = vadd.f32 %v729_v6, %v728_v43  ;;  %v758_v9 = vadd.f32 %v757_v18, %v756_v56  ;;  %v8029_v16 = vld [vmem:[#allocation3 + $0xa40] sm:$0xff]  ;;  %v8032_v27 = vld [vmem:[#allocation3 + $0xc50] sm:$0xff] }
 0x1ad   :  { %v619_v49 = vrot.slane %v618_v14, 1  ;;  %v647_v24 = vrot.slane %v646_v34, 1  ;;  %v675_v39 = vrot.slane %v674_v31, 1  ;;  %v703_v25 = vrot.slane %v702_v17, 1  ;;  %v8031_v56 = vld [vmem:[#allocation3 + $0xc40] sm:$0xff] }
 0x1ae   :  { %v564_v20 = vadd.f32 %v563_v0, %v562_v58  ;;  %v592_v38 = vadd.f32 %v591_v7, %v590_v13  ;;  %v731_v44 = vrot.slane %v730_v33, 1  ;;  %v759_v45 = vrot.slane %v758_v9, 1  ;;  %v8033_v26 = vld [vmem:[#allocation3 + $0xe40] sm:$0xff]  ;;  %v8034_v13 = vld [vmem:[#allocation3 + $0xe50] sm:$0xff] }
 0x1af   :  { %v620_v51 = vadd.f32 %v619_v49, %v618_v14  ;;  %v648_v3 = vadd.f32 %v647_v24, %v646_v34  ;;  %v676_v40 = vadd.f32 %v675_v39, %v674_v31  ;;  %v704_v48 = vadd.f32 %v703_v25, %v702_v17 }
 0x1b0   :  { %v732_v2 = vadd.f32 %v731_v44, %v730_v33  ;;  %v760_v50 = vadd.f32 %v759_v45, %v758_v9  ;;  %v9267_v60 = vadd.f32 %v564_v20, %v9250_v52  ;;  %v9270_v47 = vadd.f32 %v592_v38, %v9252_v5  ;;  %v8019_v5 = vld [vmem:[#allocation3 + $0x40] sm:$0xff] }
 0x1b1   :  { %v9273_v36 = vadd.f32 %v620_v51, %v9254_v19  ;;  %v9276_v30 = vadd.f32 %v648_v3, %v9256_v55  ;;  %v9279_v61 = vadd.f32 %v676_v40, %v9258_v23  ;;  %v9282_v22 = vadd.f32 %v704_v48, %v9260_v15  ;;  %v8022_v55 = vld [vmem:[#allocation3 + $0x250] sm:$0xff]  ;;  %v8025_v15 = vld [vmem:[#allocation3 + $0x640] sm:$0xff] }
 0x1b2   :  { %v9285_v35 = vadd.f32 %v732_v2, %v9262_v42  ;;  %v9288_v52 = vadd.f32 %v760_v50, %v9264_v21  ;;  %v840_v63 = vunpack.c.h.bf16 %v8019_v5  ;;  %v844_v19 = vunpack.c.h.bf16 %v8020_v59  ;;  %v8028_v21 = vld [vmem:[#allocation3 + $0x850] sm:$0xff] }
 0x1b3   :  { %v848_v12 = vunpack.c.h.bf16 %v8021_v54  ;;  %v852_v62 = vunpack.c.h.bf16 %v8022_v55  ;;  %v856_v23 = vunpack.c.h.bf16 %v8023_v46  ;;  %v860_v10 = vunpack.c.h.bf16 %v8024_v32 }
 0x1b4   :  { %v864_v57 = vunpack.c.h.bf16 %v8025_v15  ;;  %v868_v42 = vunpack.c.h.bf16 %v8026_v8  ;;  %v872_v41 = vunpack.c.h.bf16 %v8027_v1  ;;  %v876_v28 = vunpack.c.h.bf16 %v8028_v21 }
 0x1b5   :  { %v880_v29 = vunpack.c.h.bf16 %v8029_v16  ;;  %v884_v43 = vunpack.c.h.bf16 %v8030_v11  ;;  %v888_v53 = vunpack.c.h.bf16 %v8031_v56  ;;  %v892_v4 = vunpack.c.h.bf16 %v8032_v27 }
 0x1b6   :  { %v896_v58 = vunpack.c.h.bf16 %v8033_v26  ;;  %v900_v6 = vunpack.c.h.bf16 %v8034_v13  ;;  %v910_v18 = vadd.f32 %v844_v19, %v840_v63  ;;  %v938_v14 = vadd.f32 %v852_v62, %v848_v12 }
 0x1b7   :  { %v966_v34 = vadd.f32 %v860_v10, %v856_v23  ;;  %v994_v31 = vadd.f32 %v868_v42, %v864_v57  ;;  %v1022_v17 = vadd.f32 %v876_v28, %v872_v41  ;;  %v1050_v0 = vadd.f32 %v884_v43, %v880_v29 }
 0x1b8   :  { %v911_v7 = vrot.slane %v910_v18, 4  ;;  %v939_v33 = vrot.slane %v938_v14, 4  ;;  %v1078_v9 = vadd.f32 %v892_v4, %v888_v53  ;;  %v1106_v49 = vadd.f32 %v900_v6, %v896_v58 }
 0x1b9   :  { %v967_v24 = vrot.slane %v966_v34, 4  ;;  %v995_v39 = vrot.slane %v994_v31, 4  ;;  %v1023_v25 = vrot.slane %v1022_v17, 4  ;;  %v1051_v20 = vrot.slane %v1050_v0, 4 }
 0x1ba   :  { %v912_v38 = vadd.f32 %v911_v7, %v910_v18  ;;  %v940_v44 = vadd.f32 %v939_v33, %v938_v14  ;;  %v1079_v45 = vrot.slane %v1078_v9, 4  ;;  %v1107_v51 = vrot.slane %v1106_v49, 4 }
 0x1bb   :  { %v968_v3 = vadd.f32 %v967_v24, %v966_v34  ;;  %v996_v40 = vadd.f32 %v995_v39, %v994_v31  ;;  %v1024_v48 = vadd.f32 %v1023_v25, %v1022_v17  ;;  %v1052_v2 = vadd.f32 %v1051_v20, %v1050_v0  ;;  %v8037_v24 = vld [vmem:[#allocation3 + $0x260] sm:$0xff] }
 0x1bc   :  { %v913_v50 = vrot.slane %v912_v38, 2  ;;  %v941_v5 = vrot.slane %v940_v44, 2  ;;  %v1080_v63 = vadd.f32 %v1079_v45, %v1078_v9  ;;  %v1108_v59 = vadd.f32 %v1107_v51, %v1106_v49  ;;  %v8036_v49 = vld [vmem:[#allocation3 + $0x70] sm:$0xff]  ;;  %v8039_v20 = vld [vmem:[#allocation3 + $0x460] sm:$0xff] }
 0x1bd   :  { %v969_v19 = vrot.slane %v968_v3, 2  ;;  %v997_v54 = vrot.slane %v996_v40, 2  ;;  %v1025_v12 = vrot.slane %v1024_v48, 2  ;;  %v1053_v55 = vrot.slane %v1052_v2, 2  ;;  %v8042_v51 = vld [vmem:[#allocation3 + $0x670] sm:$0xff] }
 0x1be   :  { %v914_v62 = vadd.f32 %v913_v50, %v912_v38  ;;  %v942_v46 = vadd.f32 %v941_v5, %v940_v44  ;;  %v1081_v23 = vrot.slane %v1080_v63, 2  ;;  %v1109_v32 = vrot.slane %v1108_v59, 2  ;;  %v8040_v38 = vld [vmem:[#allocation3 + $0x470] sm:$0xff] }
 0x1bf   :  { %v970_v10 = vadd.f32 %v969_v19, %v968_v3  ;;  %v998_v15 = vadd.f32 %v997_v54, %v996_v40  ;;  %v1026_v57 = vadd.f32 %v1025_v12, %v1024_v48  ;;  %v1054_v8 = vadd.f32 %v1053_v55, %v1052_v2  ;;  %v8043_v3 = vld [vmem:[#allocation3 + $0x860] sm:$0xff]  ;;  %v8046_v5 = vld [vmem:[#allocation3 + $0xa70] sm:$0xff] }
 0x1c0   :  { %v915_v42 = vrot.slane %v914_v62, 1  ;;  %v943_v1 = vrot.slane %v942_v46, 1  ;;  %v1082_v41 = vadd.f32 %v1081_v23, %v1080_v63  ;;  %v1110_v21 = vadd.f32 %v1109_v32, %v1108_v59  ;;  %v8045_v2 = vld [vmem:[#allocation3 + $0xa60] sm:$0xff]  ;;  %v8048_v54 = vld [vmem:[#allocation3 + $0xc70] sm:$0xff] }
 0x1c1   :  { %v971_v28 = vrot.slane %v970_v10, 1  ;;  %v999_v16 = vrot.slane %v998_v15, 1  ;;  %v1027_v29 = vrot.slane %v1026_v57, 1  ;;  %v1055_v11 = vrot.slane %v1054_v8, 1  ;;  %v8047_v59 = vld [vmem:[#allocation3 + $0xc60] sm:$0xff] }
 0x1c2   :  { %v916_v43 = vadd.f32 %v915_v42, %v914_v62  ;;  %v944_v56 = vadd.f32 %v943_v1, %v942_v46  ;;  %v1083_v53 = vrot.slane %v1082_v41, 1  ;;  %v1111_v27 = vrot.slane %v1110_v21, 1  ;;  %v8049_v55 = vld [vmem:[#allocation3 + $0xe60] sm:$0xff]  ;;  %v8050_v46 = vld [vmem:[#allocation3 + $0xe70] sm:$0xff] }
 0x1c3   :  { %v972_v4 = vadd.f32 %v971_v28, %v970_v10  ;;  %v1000_v26 = vadd.f32 %v999_v16, %v998_v15  ;;  %v1028_v58 = vadd.f32 %v1027_v29, %v1026_v57  ;;  %v1056_v13 = vadd.f32 %v1055_v11, %v1054_v8 }
 0x1c4   :  { %v1084_v6 = vadd.f32 %v1083_v53, %v1082_v41  ;;  %v1112_v18 = vadd.f32 %v1111_v27, %v1110_v21  ;;  %v9291_v14 = vadd.f32 %v916_v43, %v9267_v60  ;;  %v9294_v34 = vadd.f32 %v944_v56, %v9270_v47  ;;  %v8035_v47 = vld [vmem:[#allocation3 + $0x60] sm:$0xff] }
 0x1c5   :  { %v9297_v31 = vadd.f32 %v972_v4, %v9273_v36  ;;  %v9300_v17 = vadd.f32 %v1000_v26, %v9276_v30  ;;  %v9303_v0 = vadd.f32 %v1028_v58, %v9279_v61  ;;  %v9306_v7 = vadd.f32 %v1056_v13, %v9282_v22  ;;  %v8038_v30 = vld [vmem:[#allocation3 + $0x270] sm:$0xff]  ;;  %v8041_v22 = vld [vmem:[#allocation3 + $0x660] sm:$0xff] }
 0x1c6   :  { %v9309_v33 = vadd.f32 %v1084_v6, %v9285_v35  ;;  %v9312_v60 = vadd.f32 %v1112_v18, %v9288_v52  ;;  %v1192_v9 = vunpack.c.h.bf16 %v8035_v47  ;;  %v1196_v36 = vunpack.c.h.bf16 %v8036_v49  ;;  %v8044_v52 = vld [vmem:[#allocation3 + $0x870] sm:$0xff] }
 0x1c7   :  { %v1200_v39 = vunpack.c.h.bf16 %v8037_v24  ;;  %v1204_v25 = vunpack.c.h.bf16 %v8038_v30  ;;  %v1208_v61 = vunpack.c.h.bf16 %v8039_v20  ;;  %v1212_v44 = vunpack.c.h.bf16 %v8040_v38 }
 0x1c8   :  { %v1216_v45 = vunpack.c.h.bf16 %v8041_v22  ;;  %v1220_v35 = vunpack.c.h.bf16 %v8042_v51  ;;  %v1224_v40 = vunpack.c.h.bf16 %v8043_v3  ;;  %v1228_v48 = vunpack.c.h.bf16 %v8044_v52 }
 0x1c9   :  { %v1232_v50 = vunpack.c.h.bf16 %v8045_v2  ;;  %v1236_v63 = vunpack.c.h.bf16 %v8046_v5  ;;  %v1240_v19 = vunpack.c.h.bf16 %v8047_v59  ;;  %v1244_v12 = vunpack.c.h.bf16 %v8048_v54 }
 0x1ca   :  { %v1248_v62 = vunpack.c.h.bf16 %v8049_v55  ;;  %v1252_v23 = vunpack.c.h.bf16 %v8050_v46  ;;  %v1262_v32 = vadd.f32 %v1196_v36, %v1192_v9  ;;  %v1290_v10 = vadd.f32 %v1204_v25, %v1200_v39 }
 0x1cb   :  { %v1318_v15 = vadd.f32 %v1212_v44, %v1208_v61  ;;  %v1346_v57 = vadd.f32 %v1220_v35, %v1216_v45  ;;  %v1374_v8 = vadd.f32 %v1228_v48, %v1224_v40  ;;  %v1402_v42 = vadd.f32 %v1236_v63, %v1232_v50 }
 0x1cc   :  { %v1263_v1 = vrot.slane %v1262_v32, 4  ;;  %v1291_v41 = vrot.slane %v1290_v10, 4  ;;  %v1430_v21 = vadd.f32 %v1244_v12, %v1240_v19  ;;  %v1458_v28 = vadd.f32 %v1252_v23, %v1248_v62 }
 0x1cd   :  { %v1319_v16 = vrot.slane %v1318_v15, 4  ;;  %v1347_v29 = vrot.slane %v1346_v57, 4  ;;  %v1375_v11 = vrot.slane %v1374_v8, 4  ;;  %v1403_v43 = vrot.slane %v1402_v42, 4 }
 0x1ce   :  { %v1264_v56 = vadd.f32 %v1263_v1, %v1262_v32  ;;  %v1292_v53 = vadd.f32 %v1291_v41, %v1290_v10  ;;  %v1431_v27 = vrot.slane %v1430_v21, 4  ;;  %v1459_v4 = vrot.slane %v1458_v28, 4 }
 0x1cf   :  { %v1320_v26 = vadd.f32 %v1319_v16, %v1318_v15  ;;  %v1348_v58 = vadd.f32 %v1347_v29, %v1346_v57  ;;  %v1376_v13 = vadd.f32 %v1375_v11, %v1374_v8  ;;  %v1404_v6 = vadd.f32 %v1403_v43, %v1402_v42  ;;  %v8053_v16 = vld [vmem:[#allocation3 + $0x280] sm:$0xff] }
 0x1d0   :  { %v1265_v18 = vrot.slane %v1264_v56, 2  ;;  %v1293_v47 = vrot.slane %v1292_v53, 2  ;;  %v1432_v9 = vadd.f32 %v1431_v27, %v1430_v21  ;;  %v1460_v49 = vadd.f32 %v1459_v4, %v1458_v28  ;;  %v8052_v28 = vld [vmem:[#allocation3 + $0x90] sm:$0xff]  ;;  %v8055_v43 = vld [vmem:[#allocation3 + $0x480] sm:$0xff] }
 0x1d1   :  { %v1321_v36 = vrot.slane %v1320_v26, 2  ;;  %v1349_v24 = vrot.slane %v1348_v58, 2  ;;  %v1377_v39 = vrot.slane %v1376_v13, 2  ;;  %v1405_v30 = vrot.slane %v1404_v6, 2  ;;  %v8058_v4 = vld [vmem:[#allocation3 + $0x690] sm:$0xff] }
 0x1d2   :  { %v1266_v25 = vadd.f32 %v1265_v18, %v1264_v56  ;;  %v1294_v20 = vadd.f32 %v1293_v47, %v1292_v53  ;;  %v1433_v61 = vrot.slane %v1432_v9, 2  ;;  %v1461_v38 = vrot.slane %v1460_v49, 2  ;;  %v8056_v56 = vld [vmem:[#allocation3 + $0x490] sm:$0xff] }
 0x1d3   :  { %v1322_v44 = vadd.f32 %v1321_v36, %v1320_v26  ;;  %v1350_v22 = vadd.f32 %v1349_v24, %v1348_v58  ;;  %v1378_v45 = vadd.f32 %v1377_v39, %v1376_v13  ;;  %v1406_v51 = vadd.f32 %v1405_v30, %v1404_v6  ;;  %v8059_v26 = vld [vmem:[#allocation3 + $0x880] sm:$0xff]  ;;  %v8062_v47 = vld [vmem:[#allocation3 + $0xa90] sm:$0xff] }
 0x1d4   :  { %v1267_v35 = vrot.slane %v1266_v25, 1  ;;  %v1295_v3 = vrot.slane %v1294_v20, 1  ;;  %v1434_v40 = vadd.f32 %v1433_v61, %v1432_v9  ;;  %v1462_v52 = vadd.f32 %v1461_v38, %v1460_v49  ;;  %v8061_v6 = vld [vmem:[#allocation3 + $0xa80] sm:$0xff]  ;;  %v8064_v24 = vld [vmem:[#allocation3 + $0xc90] sm:$0xff] }
 0x1d5   :  { %v1323_v48 = vrot.slane %v1322_v44, 1  ;;  %v1351_v2 = vrot.slane %v1350_v22, 1  ;;  %v1379_v50 = vrot.slane %v1378_v45, 1  ;;  %v1407_v5 = vrot.slane %v1406_v51, 1  ;;  %v8063_v49 = vld [vmem:[#allocation3 + $0xc80] sm:$0xff] }
 0x1d6   :  { %v1268_v63 = vadd.f32 %v1267_v35, %v1266_v25  ;;  %v1296_v59 = vadd.f32 %v1295_v3, %v1294_v20  ;;  %v1435_v19 = vrot.slane %v1434_v40, 1  ;;  %v1463_v54 = vrot.slane %v1462_v52, 1  ;;  %v8065_v30 = vld [vmem:[#allocation3 + $0xe80] sm:$0xff]  ;;  %v8066_v20 = vld [vmem:[#allocation3 + $0xe90] sm:$0xff] }
 0x1d7   :  { %v1324_v12 = vadd.f32 %v1323_v48, %v1322_v44  ;;  %v1352_v55 = vadd.f32 %v1351_v2, %v1350_v22  ;;  %v1380_v62 = vadd.f32 %v1379_v50, %v1378_v45  ;;  %v1408_v46 = vadd.f32 %v1407_v5, %v1406_v51 }
 0x1d8   :  { %v1436_v23 = vadd.f32 %v1435_v19, %v1434_v40  ;;  %v1464_v32 = vadd.f32 %v1463_v54, %v1462_v52  ;;  %v9315_v10 = vadd.f32 %v1268_v63, %v9291_v14  ;;  %v9318_v15 = vadd.f32 %v1296_v59, %v9294_v34  ;;  %v8051_v34 = vld [vmem:[#allocation3 + $0x80] sm:$0xff] }
 0x1d9   :  { %v9321_v57 = vadd.f32 %v1324_v12, %v9297_v31  ;;  %v9324_v8 = vadd.f32 %v1352_v55, %v9300_v17  ;;  %v9327_v42 = vadd.f32 %v1380_v62, %v9303_v0  ;;  %v9330_v1 = vadd.f32 %v1408_v46, %v9306_v7  ;;  %v8054_v17 = vld [vmem:[#allocation3 + $0x290] sm:$0xff]  ;;  %v8057_v7 = vld [vmem:[#allocation3 + $0x680] sm:$0xff] }
 0x1da   :  { %v9333_v41 = vadd.f32 %v1436_v23, %v9309_v33  ;;  %v9336_v14 = vadd.f32 %v1464_v32, %v9312_v60  ;;  %v1544_v21 = vunpack.c.h.bf16 %v8051_v34  ;;  %v1548_v31 = vunpack.c.h.bf16 %v8052_v28  ;;  %v8060_v60 = vld [vmem:[#allocation3 + $0x890] sm:$0xff] }
 0x1db   :  { %v1552_v29 = vunpack.c.h.bf16 %v8053_v16  ;;  %v1556_v11 = vunpack.c.h.bf16 %v8054_v17  ;;  %v1560_v0 = vunpack.c.h.bf16 %v8055_v43  ;;  %v1564_v53 = vunpack.c.h.bf16 %v8056_v56 }
 0x1dc   :  { %v1568_v27 = vunpack.c.h.bf16 %v8057_v7  ;;  %v1572_v33 = vunpack.c.h.bf16 %v8058_v4  ;;  %v1576_v58 = vunpack.c.h.bf16 %v8059_v26  ;;  %v1580_v13 = vunpack.c.h.bf16 %v8060_v60 }
 0x1dd   :  { %v1584_v18 = vunpack.c.h.bf16 %v8061_v6  ;;  %v1588_v9 = vunpack.c.h.bf16 %v8062_v47  ;;  %v1592_v36 = vunpack.c.h.bf16 %v8063_v49  ;;  %v1596_v39 = vunpack.c.h.bf16 %v8064_v24 }
 0x1de   :  { %v1600_v25 = vunpack.c.h.bf16 %v8065_v30  ;;  %v1604_v61 = vunpack.c.h.bf16 %v8066_v20  ;;  %v1614_v38 = vadd.f32 %v1548_v31, %v1544_v21  ;;  %v1642_v44 = vadd.f32 %v1556_v11, %v1552_v29 }
 0x1df   :  { %v1670_v22 = vadd.f32 %v1564_v53, %v1560_v0  ;;  %v1698_v45 = vadd.f32 %v1572_v33, %v1568_v27  ;;  %v1726_v51 = vadd.f32 %v1580_v13, %v1576_v58  ;;  %v1754_v35 = vadd.f32 %v1588_v9, %v1584_v18 }
 0x1e0   :  { %v1615_v3 = vrot.slane %v1614_v38, 4  ;;  %v1643_v40 = vrot.slane %v1642_v44, 4  ;;  %v1782_v52 = vadd.f32 %v1596_v39, %v1592_v36  ;;  %v1810_v48 = vadd.f32 %v1604_v61, %v1600_v25 }
 0x1e1   :  { %v1671_v2 = vrot.slane %v1670_v22, 4  ;;  %v1699_v50 = vrot.slane %v1698_v45, 4  ;;  %v1727_v5 = vrot.slane %v1726_v51, 4  ;;  %v1755_v63 = vrot.slane %v1754_v35, 4 }
 0x1e2   :  { %v1616_v59 = vadd.f32 %v1615_v3, %v1614_v38  ;;  %v1644_v19 = vadd.f32 %v1643_v40, %v1642_v44  ;;  %v1783_v54 = vrot.slane %v1782_v52, 4  ;;  %v1811_v12 = vrot.slane %v1810_v48, 4 }
 0x1e3   :  { %v1672_v55 = vadd.f32 %v1671_v2, %v1670_v22  ;;  %v1700_v62 = vadd.f32 %v1699_v50, %v1698_v45  ;;  %v1728_v46 = vadd.f32 %v1727_v5, %v1726_v51  ;;  %v1756_v23 = vadd.f32 %v1755_v63, %v1754_v35  ;;  %v8069_v2 = vld [vmem:[#allocation3 + $0x2a0] sm:$0xff] }
 0x1e4   :  { %v1617_v32 = vrot.slane %v1616_v59, 2  ;;  %v1645_v34 = vrot.slane %v1644_v19, 2  ;;  %v1784_v21 = vadd.f32 %v1783_v54, %v1782_v52  ;;  %v1812_v28 = vadd.f32 %v1811_v12, %v1810_v48  ;;  %v8068_v48 = vld [vmem:[#allocation3 + $0xb0] sm:$0xff]  ;;  %v8071_v63 = vld [vmem:[#allocation3 + $0x4a0] sm:$0xff] }
 0x1e5   :  { %v1673_v31 = vrot.slane %v1672_v55, 2  ;;  %v1701_v16 = vrot.slane %v1700_v62, 2  ;;  %v1729_v29 = vrot.slane %v1728_v46, 2  ;;  %v1757_v17 = vrot.slane %v1756_v23, 2  ;;  %v8074_v12 = vld [vmem:[#allocation3 + $0x6b0] sm:$0xff] }
 0x1e6   :  { %v1618_v11 = vadd.f32 %v1617_v32, %v1616_v59  ;;  %v1646_v43 = vadd.f32 %v1645_v34, %v1644_v19  ;;  %v1785_v0 = vrot.slane %v1784_v21, 2  ;;  %v1813_v56 = vrot.slane %v1812_v28, 2  ;;  %v8072_v59 = vld [vmem:[#allocation3 + $0x4b0] sm:$0xff] }
 0x1e7   :  { %v1674_v53 = vadd.f32 %v1673_v31, %v1672_v55  ;;  %v1702_v7 = vadd.f32 %v1701_v16, %v1700_v62  ;;  %v1730_v27 = vadd.f32 %v1729_v29, %v1728_v46  ;;  %v1758_v4 = vadd.f32 %v1757_v17, %v1756_v23  ;;  %v8075_v55 = vld [vmem:[#allocation3 + $0x8a0] sm:$0xff]  ;;  %v8078_v34 = vld [vmem:[#allocation3 + $0xab0] sm:$0xff] }
 0x1e8   :  { %v1619_v33 = vrot.slane %v1618_v11, 1  ;;  %v1647_v26 = vrot.slane %v1646_v43, 1  ;;  %v1786_v58 = vadd.f32 %v1785_v0, %v1784_v21  ;;  %v1814_v60 = vadd.f32 %v1813_v56, %v1812_v28  ;;  %v8077_v23 = vld [vmem:[#allocation3 + $0xaa0] sm:$0xff]  ;;  %v8080_v16 = vld [vmem:[#allocation3 + $0xcb0] sm:$0xff] }
 0x1e9   :  { %v1675_v13 = vrot.slane %v1674_v53, 1  ;;  %v1703_v6 = vrot.slane %v1702_v7, 1  ;;  %v1731_v18 = vrot.slane %v1730_v27, 1  ;;  %v1759_v47 = vrot.slane %v1758_v4, 1  ;;  %v8079_v28 = vld [vmem:[#allocation3 + $0xca0] sm:$0xff] }
 0x1ea   :  { %v1620_v9 = vadd.f32 %v1619_v33, %v1618_v11  ;;  %v1648_v49 = vadd.f32 %v1647_v26, %v1646_v43  ;;  %v1787_v36 = vrot.slane %v1786_v58, 1  ;;  %v1815_v24 = vrot.slane %v1814_v60, 1  ;;  %v8081_v17 = vld [vmem:[#allocation3 + $0xea0] sm:$0xff]  ;;  %v8082_v43 = vld [vmem:[#allocation3 + $0xeb0] sm:$0xff] }
 0x1eb   :  { %v1676_v39 = vadd.f32 %v1675_v13, %v1674_v53  ;;  %v1704_v30 = vadd.f32 %v1703_v6, %v1702_v7  ;;  %v1732_v25 = vadd.f32 %v1731_v18, %v1730_v27  ;;  %v1760_v20 = vadd.f32 %v1759_v47, %v1758_v4 }
 0x1ec   :  { %v1788_v61 = vadd.f32 %v1787_v36, %v1786_v58  ;;  %v1816_v38 = vadd.f32 %v1815_v24, %v1814_v60  ;;  %v9339_v44 = vadd.f32 %v1620_v9, %v9315_v10  ;;  %v9342_v22 = vadd.f32 %v1648_v49, %v9318_v15  ;;  %v8067_v15 = vld [vmem:[#allocation3 + $0xa0] sm:$0xff] }
 0x1ed   :  { %v9345_v45 = vadd.f32 %v1676_v39, %v9321_v57  ;;  %v9348_v51 = vadd.f32 %v1704_v30, %v9324_v8  ;;  %v9351_v35 = vadd.f32 %v1732_v25, %v9327_v42  ;;  %v9354_v3 = vadd.f32 %v1760_v20, %v9330_v1  ;;  %v8070_v8 = vld [vmem:[#allocation3 + $0x2b0] sm:$0xff]  ;;  %v8073_v1 = vld [vmem:[#allocation3 + $0x6a0] sm:$0xff] }
 0x1ee   :  { %v9357_v40 = vadd.f32 %v1788_v61, %v9333_v41  ;;  %v9360_v10 = vadd.f32 %v1816_v38, %v9336_v14  ;;  %v1896_v52 = vunpack.c.h.bf16 %v8067_v15  ;;  %v1900_v57 = vunpack.c.h.bf16 %v8068_v48  ;;  %v8076_v14 = vld [vmem:[#allocation3 + $0x8b0] sm:$0xff] }
 0x1ef   :  { %v1904_v50 = vunpack.c.h.bf16 %v8069_v2  ;;  %v1908_v5 = vunpack.c.h.bf16 %v8070_v8  ;;  %v1912_v42 = vunpack.c.h.bf16 %v8071_v63  ;;  %v1916_v19 = vunpack.c.h.bf16 %v8072_v59 }
 0x1f0   :  { %v1920_v54 = vunpack.c.h.bf16 %v8073_v1  ;;  %v1924_v41 = vunpack.c.h.bf16 %v8074_v12  ;;  %v1928_v62 = vunpack.c.h.bf16 %v8075_v55  ;;  %v1932_v46 = vunpack.c.h.bf16 %v8076_v14 }
 0x1f1   :  { %v1936_v32 = vunpack.c.h.bf16 %v8077_v23  ;;  %v1940_v21 = vunpack.c.h.bf16 %v8078_v34  ;;  %v1944_v31 = vunpack.c.h.bf16 %v8079_v28  ;;  %v1948_v29 = vunpack.c.h.bf16 %v8080_v16 }
 0x1f2   :  { %v1952_v11 = vunpack.c.h.bf16 %v8081_v17  ;;  %v1956_v0 = vunpack.c.h.bf16 %v8082_v43  ;;  %v1966_v56 = vadd.f32 %v1900_v57, %v1896_v52  ;;  %v1994_v53 = vadd.f32 %v1908_v5, %v1904_v50 }
 0x1f3   :  { %v2022_v7 = vadd.f32 %v1916_v19, %v1912_v42  ;;  %v2050_v27 = vadd.f32 %v1924_v41, %v1920_v54  ;;  %v2078_v4 = vadd.f32 %v1932_v46, %v1928_v62  ;;  %v2106_v33 = vadd.f32 %v1940_v21, %v1936_v32 }
 0x1f4   :  { %v1967_v26 = vrot.slane %v1966_v56, 4  ;;  %v1995_v58 = vrot.slane %v1994_v53, 4  ;;  %v2134_v60 = vadd.f32 %v1948_v29, %v1944_v31  ;;  %v2162_v13 = vadd.f32 %v1956_v0, %v1952_v11 }
 0x1f5   :  { %v2023_v6 = vrot.slane %v2022_v7, 4  ;;  %v2051_v18 = vrot.slane %v2050_v27, 4  ;;  %v2079_v47 = vrot.slane %v2078_v4, 4  ;;  %v2107_v9 = vrot.slane %v2106_v33, 4 }
 0x1f6   :  { %v1968_v49 = vadd.f32 %v1967_v26, %v1966_v56  ;;  %v1996_v36 = vadd.f32 %v1995_v58, %v1994_v53  ;;  %v2135_v24 = vrot.slane %v2134_v60, 4  ;;  %v2163_v39 = vrot.slane %v2162_v13, 4 }
 0x1f7   :  { %v2024_v30 = vadd.f32 %v2023_v6, %v2022_v7  ;;  %v2052_v25 = vadd.f32 %v2051_v18, %v2050_v27  ;;  %v2080_v20 = vadd.f32 %v2079_v47, %v2078_v4  ;;  %v2108_v61 = vadd.f32 %v2107_v9, %v2106_v33  ;;  %v8085_v6 = vld [vmem:[#allocation3 + $0x2c0] sm:$0xff] }
 0x1f8   :  { %v1969_v38 = vrot.slane %v1968_v49, 2  ;;  %v1997_v15 = vrot.slane %v1996_v36, 2  ;;  %v2136_v52 = vadd.f32 %v2135_v24, %v2134_v60  ;;  %v2164_v48 = vadd.f32 %v2163_v39, %v2162_v13  ;;  %v8084_v13 = vld [vmem:[#allocation3 + $0xd0] sm:$0xff]  ;;  %v8087_v9 = vld [vmem:[#allocation3 + $0x4c0] sm:$0xff] }
 0x1f9   :  { %v2025_v57 = vrot.slane %v2024_v30, 2  ;;  %v2053_v2 = vrot.slane %v2052_v25, 2  ;;  %v2081_v50 = vrot.slane %v2080_v20, 2  ;;  %v2109_v8 = vrot.slane %v2108_v61, 2  ;;  %v8090_v39 = vld [vmem:[#allocation3 + $0x6d0] sm:$0xff] }
 0x1fa   :  { %v1970_v5 = vadd.f32 %v1969_v38, %v1968_v49  ;;  %v1998_v63 = vadd.f32 %v1997_v15, %v1996_v36  ;;  %v2137_v42 = vrot.slane %v2136_v52, 2  ;;  %v2165_v59 = vrot.slane %v2164_v48, 2  ;;  %v8088_v49 = vld [vmem:[#allocation3 + $0x4d0] sm:$0xff] }
 0x1fb   :  { %v2026_v19 = vadd.f32 %v2025_v57, %v2024_v30  ;;  %v2054_v1 = vadd.f32 %v2053_v2, %v2052_v25  ;;  %v2082_v54 = vadd.f32 %v2081_v50, %v2080_v20  ;;  %v2110_v12 = vadd.f32 %v2109_v8, %v2108_v61  ;;  %v8091_v30 = vld [vmem:[#allocation3 + $0x8c0] sm:$0xff]  ;;  %v8094_v15 = vld [vmem:[#allocation3 + $0xad0] sm:$0xff] }
 0x1fc   :  { %v1971_v41 = vrot.slane %v1970_v5, 1  ;;  %v1999_v55 = vrot.slane %v1998_v63, 1  ;;  %v2138_v62 = vadd.f32 %v2137_v42, %v2136_v52  ;;  %v2166_v14 = vadd.f32 %v2165_v59, %v2164_v48  ;;  %v8093_v61 = vld [vmem:[#allocation3 + $0xac0] sm:$0xff]  ;;  %v8096_v2 = vld [vmem:[#allocation3 + $0xcd0] sm:$0xff] }
 0x1fd   :  { %v2027_v46 = vrot.slane %v2026_v19, 1  ;;  %v2055_v23 = vrot.slane %v2054_v1, 1  ;;  %v2083_v32 = vrot.slane %v2082_v54, 1  ;;  %v2111_v34 = vrot.slane %v2110_v12, 1  ;;  %v8095_v48 = vld [vmem:[#allocation3 + $0xcc0] sm:$0xff] }
 0x1fe   :  { %v1972_v21 = vadd.f32 %v1971_v41, %v1970_v5  ;;  %v2000_v28 = vadd.f32 %v1999_v55, %v1998_v63  ;;  %v2139_v31 = vrot.slane %v2138_v62, 1  ;;  %v2167_v16 = vrot.slane %v2166_v14, 1  ;;  %v8097_v8 = vld [vmem:[#allocation3 + $0xec0] sm:$0xff]  ;;  %v8098_v63 = vld [vmem:[#allocation3 + $0xed0] sm:$0xff] }
 0x1ff   :  { %v2028_v29 = vadd.f32 %v2027_v46, %v2026_v19  ;;  %v2056_v17 = vadd.f32 %v2055_v23, %v2054_v1  ;;  %v2084_v11 = vadd.f32 %v2083_v32, %v2082_v54  ;;  %v2112_v43 = vadd.f32 %v2111_v34, %v2110_v12 }
 0x200   :  { %v2140_v0 = vadd.f32 %v2139_v31, %v2138_v62  ;;  %v2168_v56 = vadd.f32 %v2167_v16, %v2166_v14  ;;  %v9363_v53 = vadd.f32 %v1972_v21, %v9339_v44  ;;  %v9366_v7 = vadd.f32 %v2000_v28, %v9342_v22  ;;  %v8083_v22 = vld [vmem:[#allocation3 + $0xc0] sm:$0xff] }
 0x201   :  { %v9369_v27 = vadd.f32 %v2028_v29, %v9345_v45  ;;  %v9372_v4 = vadd.f32 %v2056_v17, %v9348_v51  ;;  %v9375_v33 = vadd.f32 %v2084_v11, %v9351_v35  ;;  %v9378_v26 = vadd.f32 %v2112_v43, %v9354_v3  ;;  %v8086_v51 = vld [vmem:[#allocation3 + $0x2d0] sm:$0xff]  ;;  %v8089_v3 = vld [vmem:[#allocation3 + $0x6c0] sm:$0xff] }
 0x202   :  { %v9381_v58 = vadd.f32 %v2140_v0, %v9357_v40  ;;  %v9384_v44 = vadd.f32 %v2168_v56, %v9360_v10  ;;  %v2248_v60 = vunpack.c.h.bf16 %v8083_v22  ;;  %v2252_v45 = vunpack.c.h.bf16 %v8084_v13  ;;  %v8092_v10 = vld [vmem:[#allocation3 + $0x8d0] sm:$0xff] }
 0x203   :  { %v2256_v18 = vunpack.c.h.bf16 %v8085_v6  ;;  %v2260_v47 = vunpack.c.h.bf16 %v8086_v51  ;;  %v2264_v35 = vunpack.c.h.bf16 %v8087_v9  ;;  %v2268_v36 = vunpack.c.h.bf16 %v8088_v49 }
 0x204   :  { %v2272_v24 = vunpack.c.h.bf16 %v8089_v3  ;;  %v2276_v40 = vunpack.c.h.bf16 %v8090_v39  ;;  %v2280_v25 = vunpack.c.h.bf16 %v8091_v30  ;;  %v2284_v20 = vunpack.c.h.bf16 %v8092_v10 }
 0x205   :  { %v2288_v38 = vunpack.c.h.bf16 %v8093_v61  ;;  %v2292_v52 = vunpack.c.h.bf16 %v8094_v15  ;;  %v2296_v57 = vunpack.c.h.bf16 %v8095_v48  ;;  %v2300_v50 = vunpack.c.h.bf16 %v8096_v2 }
 0x206   :  { %v2304_v5 = vunpack.c.h.bf16 %v8097_v8  ;;  %v2308_v42 = vunpack.c.h.bf16 %v8098_v63  ;;  %v2318_v59 = vadd.f32 %v2252_v45, %v2248_v60  ;;  %v2346_v19 = vadd.f32 %v2260_v47, %v2256_v18 }
 0x207   :  { %v2374_v1 = vadd.f32 %v2268_v36, %v2264_v35  ;;  %v2402_v54 = vadd.f32 %v2276_v40, %v2272_v24  ;;  %v2430_v12 = vadd.f32 %v2284_v20, %v2280_v25  ;;  %v2458_v41 = vadd.f32 %v2292_v52, %v2288_v38 }
 0x208   :  { %v2319_v55 = vrot.slane %v2318_v59, 4  ;;  %v2347_v62 = vrot.slane %v2346_v19, 4  ;;  %v2486_v14 = vadd.f32 %v2300_v50, %v2296_v57  ;;  %v2514_v46 = vadd.f32 %v2308_v42, %v2304_v5 }
 0x209   :  { %v2375_v23 = vrot.slane %v2374_v1, 4  ;;  %v2403_v32 = vrot.slane %v2402_v54, 4  ;;  %v2431_v34 = vrot.slane %v2430_v12, 4  ;;  %v2459_v21 = vrot.slane %v2458_v41, 4 }
 0x20a   :  { %v2320_v28 = vadd.f32 %v2319_v55, %v2318_v59  ;;  %v2348_v31 = vadd.f32 %v2347_v62, %v2346_v19  ;;  %v2487_v16 = vrot.slane %v2486_v14, 4  ;;  %v2515_v29 = vrot.slane %v2514_v46, 4 }
 0x20b   :  { %v2376_v17 = vadd.f32 %v2375_v23, %v2374_v1  ;;  %v2404_v11 = vadd.f32 %v2403_v32, %v2402_v54  ;;  %v2432_v43 = vadd.f32 %v2431_v34, %v2430_v12  ;;  %v2460_v0 = vadd.f32 %v2459_v21, %v2458_v41  ;;  %v8101_v23 = vld [vmem:[#allocation3 + $0x2e0] sm:$0xff] }
 0x20c   :  { %v2321_v56 = vrot.slane %v2320_v28, 2  ;;  %v2349_v22 = vrot.slane %v2348_v31, 2  ;;  %v2488_v60 = vadd.f32 %v2487_v16, %v2486_v14  ;;  %v2516_v13 = vadd.f32 %v2515_v29, %v2514_v46  ;;  %v8100_v46 = vld [vmem:[#allocation3 + $0xf0] sm:$0xff]  ;;  %v8103_v21 = vld [vmem:[#allocation3 + $0x4e0] sm:$0xff] }
 0x20d   :  { %v2377_v45 = vrot.slane %v2376_v17, 2  ;;  %v2405_v6 = vrot.slane %v2404_v11, 2  ;;  %v2433_v18 = vrot.slane %v2432_v43, 2  ;;  %v2461_v51 = vrot.slane %v2460_v0, 2  ;;  %v8106_v29 = vld [vmem:[#allocation3 + $0x6f0] sm:$0xff] }
 0x20e   :  { %v2322_v47 = vadd.f32 %v2321_v56, %v2320_v28  ;;  %v2350_v9 = vadd.f32 %v2349_v22, %v2348_v31  ;;  %v2489_v35 = vrot.slane %v2488_v60, 2  ;;  %v2517_v49 = vrot.slane %v2516_v13, 2  ;;  %v8104_v28 = vld [vmem:[#allocation3 + $0x4f0] sm:$0xff] }
 0x20f   :  { %v2378_v36 = vadd.f32 %v2377_v45, %v2376_v17  ;;  %v2406_v3 = vadd.f32 %v2405_v6, %v2404_v11  ;;  %v2434_v24 = vadd.f32 %v2433_v18, %v2432_v43  ;;  %v2462_v39 = vadd.f32 %v2461_v51, %v2460_v0  ;;  %v8107_v17 = vld [vmem:[#allocation3 + $0x8e0] sm:$0xff]  ;;  %v8110_v22 = vld [vmem:[#allocation3 + $0xaf0] sm:$0xff] }
 0x210   :  { %v2323_v40 = vrot.slane %v2322_v47, 1  ;;  %v2351_v30 = vrot.slane %v2350_v9, 1  ;;  %v2490_v25 = vadd.f32 %v2489_v35, %v2488_v60  ;;  %v2518_v10 = vadd.f32 %v2517_v49, %v2516_v13  ;;  %v8109_v0 = vld [vmem:[#allocation3 + $0xae0] sm:$0xff]  ;;  %v8112_v6 = vld [vmem:[#allocation3 + $0xcf0] sm:$0xff] }
 0x211   :  { %v2379_v20 = vrot.slane %v2378_v36, 1  ;;  %v2407_v61 = vrot.slane %v2406_v3, 1  ;;  %v2435_v38 = vrot.slane %v2434_v24, 1  ;;  %v2463_v15 = vrot.slane %v2462_v39, 1  ;;  %v8111_v13 = vld [vmem:[#allocation3 + $0xce0] sm:$0xff] }
 0x212   :  { %v2324_v52 = vadd.f32 %v2323_v40, %v2322_v47  ;;  %v2352_v48 = vadd.f32 %v2351_v30, %v2350_v9  ;;  %v2491_v57 = vrot.slane %v2490_v25, 1  ;;  %v2519_v2 = vrot.slane %v2518_v10, 1  ;;  %v8113_v51 = vld [vmem:[#allocation3 + $0xee0] sm:$0xff]  ;;  %v8114_v9 = vld [vmem:[#allocation3 + $0xef0] sm:$0xff] }
 0x213   :  { %v2380_v50 = vadd.f32 %v2379_v20, %v2378_v36  ;;  %v2408_v8 = vadd.f32 %v2407_v61, %v2406_v3  ;;  %v2436_v5 = vadd.f32 %v2435_v38, %v2434_v24  ;;  %v2464_v63 = vadd.f32 %v2463_v15, %v2462_v39 }
 0x214   :  { %v2492_v42 = vadd.f32 %v2491_v57, %v2490_v25  ;;  %v2520_v59 = vadd.f32 %v2519_v2, %v2518_v10  ;;  %v9387_v19 = vadd.f32 %v2324_v52, %v9363_v53  ;;  %v9390_v1 = vadd.f32 %v2352_v48, %v9366_v7  ;;  %v8099_v7 = vld [vmem:[#allocation3 + $0xe0] sm:$0xff] }
 0x215   :  { %v9393_v54 = vadd.f32 %v2380_v50, %v9369_v27  ;;  %v9396_v12 = vadd.f32 %v2408_v8, %v9372_v4  ;;  %v9399_v41 = vadd.f32 %v2436_v5, %v9375_v33  ;;  %v9402_v55 = vadd.f32 %v2464_v63, %v9378_v26  ;;  %v8102_v4 = vld [vmem:[#allocation3 + $0x2f0] sm:$0xff]  ;;  %v8105_v26 = vld [vmem:[#allocation3 + $0x6e0] sm:$0xff] }
 0x216   :  { %v9405_v62 = vadd.f32 %v2492_v42, %v9381_v58  ;;  %v9408_v53 = vadd.f32 %v2520_v59, %v9384_v44  ;;  %v2600_v14 = vunpack.c.h.bf16 %v8099_v7  ;;  %v2604_v27 = vunpack.c.h.bf16 %v8100_v46  ;;  %v8108_v44 = vld [vmem:[#allocation3 + $0x8f0] sm:$0xff] }
 0x217   :  { %v2608_v32 = vunpack.c.h.bf16 %v8101_v23  ;;  %v2612_v34 = vunpack.c.h.bf16 %v8102_v4  ;;  %v2616_v33 = vunpack.c.h.bf16 %v8103_v21  ;;  %v2620_v31 = vunpack.c.h.bf16 %v8104_v28 }
 0x218   :  { %v2624_v16 = vunpack.c.h.bf16 %v8105_v26  ;;  %v2628_v58 = vunpack.c.h.bf16 %v8106_v29  ;;  %v2632_v11 = vunpack.c.h.bf16 %v8107_v17  ;;  %v2636_v43 = vunpack.c.h.bf16 %v8108_v44 }
 0x219   :  { %v2640_v56 = vunpack.c.h.bf16 %v8109_v0  ;;  %v2644_v60 = vunpack.c.h.bf16 %v8110_v22  ;;  %v2648_v45 = vunpack.c.h.bf16 %v8111_v13  ;;  %v2652_v18 = vunpack.c.h.bf16 %v8112_v6 }
 0x21a   :  { %v2656_v47 = vunpack.c.h.bf16 %v8113_v51  ;;  %v2660_v35 = vunpack.c.h.bf16 %v8114_v9  ;;  %v2670_v49 = vadd.f32 %v2604_v27, %v2600_v14  ;;  %v2698_v36 = vadd.f32 %v2612_v34, %v2608_v32 }
 0x21b   :  { %v2726_v3 = vadd.f32 %v2620_v31, %v2616_v33  ;;  %v2754_v24 = vadd.f32 %v2628_v58, %v2624_v16  ;;  %v2782_v39 = vadd.f32 %v2636_v43, %v2632_v11  ;;  %v2810_v40 = vadd.f32 %v2644_v60, %v2640_v56 }
 0x21c   :  { %v2671_v30 = vrot.slane %v2670_v49, 4  ;;  %v2699_v25 = vrot.slane %v2698_v36, 4  ;;  %v2838_v10 = vadd.f32 %v2652_v18, %v2648_v45  ;;  %v2866_v20 = vadd.f32 %v2660_v35, %v2656_v47 }
 0x21d   :  { %v2727_v61 = vrot.slane %v2726_v3, 4  ;;  %v2755_v38 = vrot.slane %v2754_v24, 4  ;;  %v2783_v15 = vrot.slane %v2782_v39, 4  ;;  %v2811_v52 = vrot.slane %v2810_v40, 4 }
 0x21e   :  { %v2672_v48 = vadd.f32 %v2671_v30, %v2670_v49  ;;  %v2700_v57 = vadd.f32 %v2699_v25, %v2698_v36  ;;  %v2839_v2 = vrot.slane %v2838_v10, 4  ;;  %v2867_v50 = vrot.slane %v2866_v20, 4 }
 0x21f   :  { %v2728_v8 = vadd.f32 %v2727_v61, %v2726_v3  ;;  %v2756_v5 = vadd.f32 %v2755_v38, %v2754_v24  ;;  %v2784_v63 = vadd.f32 %v2783_v15, %v2782_v39  ;;  %v2812_v42 = vadd.f32 %v2811_v52, %v2810_v40  ;;  %v8117_v61 = vld [vmem:[#allocation3 + $0x300] sm:$0xff] }
 0x220   :  { %v2673_v59 = vrot.slane %v2672_v48, 2  ;;  %v2701_v7 = vrot.slane %v2700_v57, 2  ;;  %v2840_v14 = vadd.f32 %v2839_v2, %v2838_v10  ;;  %v2868_v46 = vadd.f32 %v2867_v50, %v2866_v20  ;;  %v8116_v20 = vld [vmem:[#allocation3 + $0x110] sm:$0xff]  ;;  %v8119_v52 = vld [vmem:[#allocation3 + $0x500] sm:$0xff] }
 0x221   :  { %v2729_v27 = vrot.slane %v2728_v8, 2  ;;  %v2757_v23 = vrot.slane %v2756_v5, 2  ;;  %v2785_v32 = vrot.slane %v2784_v63, 2  ;;  %v2813_v4 = vrot.slane %v2812_v42, 2  ;;  %v8122_v50 = vld [vmem:[#allocation3 + $0x710] sm:$0xff] }
 0x222   :  { %v2674_v34 = vadd.f32 %v2673_v59, %v2672_v48  ;;  %v2702_v21 = vadd.f32 %v2701_v7, %v2700_v57  ;;  %v2841_v33 = vrot.slane %v2840_v14, 2  ;;  %v2869_v28 = vrot.slane %v2868_v46, 2  ;;  %v8120_v48 = vld [vmem:[#allocation3 + $0x510] sm:$0xff] }
 0x223   :  { %v2730_v31 = vadd.f32 %v2729_v27, %v2728_v8  ;;  %v2758_v26 = vadd.f32 %v2757_v23, %v2756_v5  ;;  %v2786_v16 = vadd.f32 %v2785_v32, %v2784_v63  ;;  %v2814_v29 = vadd.f32 %v2813_v4, %v2812_v42  ;;  %v8123_v8 = vld [vmem:[#allocation3 + $0x900] sm:$0xff]  ;;  %v8126_v7 = vld [vmem:[#allocation3 + $0xb10] sm:$0xff] }
 0x224   :  { %v2675_v58 = vrot.slane %v2674_v34, 1  ;;  %v2703_v17 = vrot.slane %v2702_v21, 1  ;;  %v2842_v11 = vadd.f32 %v2841_v33, %v2840_v14  ;;  %v2870_v44 = vadd.f32 %v2869_v28, %v2868_v46  ;;  %v8125_v42 = vld [vmem:[#allocation3 + $0xb00] sm:$0xff]  ;;  %v8128_v23 = vld [vmem:[#allocation3 + $0xd10] sm:$0xff] }
 0x225   :  { %v2731_v43 = vrot.slane %v2730_v31, 1  ;;  %v2759_v0 = vrot.slane %v2758_v26, 1  ;;  %v2787_v56 = vrot.slane %v2786_v16, 1  ;;  %v2815_v22 = vrot.slane %v2814_v29, 1  ;;  %v8127_v46 = vld [vmem:[#allocation3 + $0xd00] sm:$0xff] }
 0x226   :  { %v2676_v60 = vadd.f32 %v2675_v58, %v2674_v34  ;;  %v2704_v13 = vadd.f32 %v2703_v17, %v2702_v21  ;;  %v2843_v45 = vrot.slane %v2842_v11, 1  ;;  %v2871_v6 = vrot.slane %v2870_v44, 1  ;;  %v8129_v4 = vld [vmem:[#allocation3 + $0xf00] sm:$0xff]  ;;  %v8130_v21 = vld [vmem:[#allocation3 + $0xf10] sm:$0xff] }
 0x227   :  { %v2732_v18 = vadd.f32 %v2731_v43, %v2730_v31  ;;  %v2760_v51 = vadd.f32 %v2759_v0, %v2758_v26  ;;  %v2788_v47 = vadd.f32 %v2787_v56, %v2786_v16  ;;  %v2816_v9 = vadd.f32 %v2815_v22, %v2814_v29 }
 0x228   :  { %v2844_v35 = vadd.f32 %v2843_v45, %v2842_v11  ;;  %v2872_v49 = vadd.f32 %v2871_v6, %v2870_v44  ;;  %v9411_v36 = vadd.f32 %v2676_v60, %v9387_v19  ;;  %v9414_v3 = vadd.f32 %v2704_v13, %v9390_v1  ;;  %v8115_v1 = vld [vmem:[#allocation3 + $0x100] sm:$0xff] }
 0x229   :  { %v9417_v24 = vadd.f32 %v2732_v18, %v9393_v54  ;;  %v9420_v39 = vadd.f32 %v2760_v51, %v9396_v12  ;;  %v9423_v40 = vadd.f32 %v2788_v47, %v9399_v41  ;;  %v9426_v30 = vadd.f32 %v2816_v9, %v9402_v55  ;;  %v8118_v12 = vld [vmem:[#allocation3 + $0x310] sm:$0xff]  ;;  %v8121_v55 = vld [vmem:[#allocation3 + $0x700] sm:$0xff] }
 0x22a   :  { %v9429_v25 = vadd.f32 %v2844_v35, %v9405_v62  ;;  %v9432_v19 = vadd.f32 %v2872_v49, %v9408_v53  ;;  %v2952_v10 = vunpack.c.h.bf16 %v8115_v1  ;;  %v2956_v54 = vunpack.c.h.bf16 %v8116_v20  ;;  %v8124_v53 = vld [vmem:[#allocation3 + $0x910] sm:$0xff] }
 0x22b   :  { %v2960_v38 = vunpack.c.h.bf16 %v8117_v61  ;;  %v2964_v15 = vunpack.c.h.bf16 %v8118_v12  ;;  %v2968_v41 = vunpack.c.h.bf16 %v8119_v52  ;;  %v2972_v57 = vunpack.c.h.bf16 %v8120_v48 }
 0x22c   :  { %v2976_v2 = vunpack.c.h.bf16 %v8121_v55  ;;  %v2980_v62 = vunpack.c.h.bf16 %v8122_v50  ;;  %v2984_v5 = vunpack.c.h.bf16 %v8123_v8  ;;  %v2988_v63 = vunpack.c.h.bf16 %v8124_v53 }
 0x22d   :  { %v2992_v59 = vunpack.c.h.bf16 %v8125_v42  ;;  %v2996_v14 = vunpack.c.h.bf16 %v8126_v7  ;;  %v3000_v27 = vunpack.c.h.bf16 %v8127_v46  ;;  %v3004_v32 = vunpack.c.h.bf16 %v8128_v23 }
 0x22e   :  { %v3008_v34 = vunpack.c.h.bf16 %v8129_v4  ;;  %v3012_v33 = vunpack.c.h.bf16 %v8130_v21  ;;  %v3022_v28 = vadd.f32 %v2956_v54, %v2952_v10  ;;  %v3050_v31 = vadd.f32 %v2964_v15, %v2960_v38 }
 0x22f   :  { %v3078_v26 = vadd.f32 %v2972_v57, %v2968_v41  ;;  %v3106_v16 = vadd.f32 %v2980_v62, %v2976_v2  ;;  %v3134_v29 = vadd.f32 %v2988_v63, %v2984_v5  ;;  %v3162_v58 = vadd.f32 %v2996_v14, %v2992_v59 }
 0x230   :  { %v3023_v17 = vrot.slane %v3022_v28, 4  ;;  %v3051_v11 = vrot.slane %v3050_v31, 4  ;;  %v3190_v44 = vadd.f32 %v3004_v32, %v3000_v27  ;;  %v3218_v43 = vadd.f32 %v3012_v33, %v3008_v34 }
 0x231   :  { %v3079_v0 = vrot.slane %v3078_v26, 4  ;;  %v3107_v56 = vrot.slane %v3106_v16, 4  ;;  %v3135_v22 = vrot.slane %v3134_v29, 4  ;;  %v3163_v60 = vrot.slane %v3162_v58, 4 }
 0x232   :  { %v3024_v13 = vadd.f32 %v3023_v17, %v3022_v28  ;;  %v3052_v45 = vadd.f32 %v3051_v11, %v3050_v31  ;;  %v3191_v6 = vrot.slane %v3190_v44, 4  ;;  %v3219_v18 = vrot.slane %v3218_v43, 4 }
 0x233   :  { %v3080_v51 = vadd.f32 %v3079_v0, %v3078_v26  ;;  %v3108_v47 = vadd.f32 %v3107_v56, %v3106_v16  ;;  %v3136_v9 = vadd.f32 %v3135_v22, %v3134_v29  ;;  %v3164_v35 = vadd.f32 %v3163_v60, %v3162_v58  ;;  %v8133_v0 = vld [vmem:[#allocation3 + $0x320] sm:$0xff] }
 0x234   :  { %v3025_v49 = vrot.slane %v3024_v13, 2  ;;  %v3053_v1 = vrot.slane %v3052_v45, 2  ;;  %v3192_v10 = vadd.f32 %v3191_v6, %v3190_v44  ;;  %v3220_v20 = vadd.f32 %v3219_v18, %v3218_v43  ;;  %v8132_v43 = vld [vmem:[#allocation3 + $0x130] sm:$0xff]  ;;  %v8135_v60 = vld [vmem:[#allocation3 + $0x520] sm:$0xff] }
 0x235   :  { %v3081_v54 = vrot.slane %v3080_v51, 2  ;;  %v3109_v61 = vrot.slane %v3108_v47, 2  ;;  %v3137_v38 = vrot.slane %v3136_v9, 2  ;;  %v3165_v12 = vrot.slane %v3164_v35, 2  ;;  %v8138_v18 = vld [vmem:[#allocation3 + $0x730] sm:$0xff] }
 0x236   :  { %v3026_v15 = vadd.f32 %v3025_v49, %v3024_v13  ;;  %v3054_v52 = vadd.f32 %v3053_v1, %v3052_v45  ;;  %v3193_v41 = vrot.slane %v3192_v10, 2  ;;  %v3221_v48 = vrot.slane %v3220_v20, 2  ;;  %v8136_v13 = vld [vmem:[#allocation3 + $0x530] sm:$0xff] }
 0x237   :  { %v3082_v57 = vadd.f32 %v3081_v54, %v3080_v51  ;;  %v3110_v55 = vadd.f32 %v3109_v61, %v3108_v47  ;;  %v3138_v2 = vadd.f32 %v3137_v38, %v3136_v9  ;;  %v3166_v50 = vadd.f32 %v3165_v12, %v3164_v35  ;;  %v8139_v51 = vld [vmem:[#allocation3 + $0x920] sm:$0xff]  ;;  %v8142_v1 = vld [vmem:[#allocation3 + $0xb30] sm:$0xff] }
 0x238   :  { %v3027_v62 = vrot.slane %v3026_v15, 1  ;;  %v3055_v8 = vrot.slane %v3054_v52, 1  ;;  %v3194_v5 = vadd.f32 %v3193_v41, %v3192_v10  ;;  %v3222_v53 = vadd.f32 %v3221_v48, %v3220_v20  ;;  %v8141_v35 = vld [vmem:[#allocation3 + $0xb20] sm:$0xff]  ;;  %v8144_v61 = vld [vmem:[#allocation3 + $0xd30] sm:$0xff] }
 0x239   :  { %v3083_v63 = vrot.slane %v3082_v57, 1  ;;  %v3111_v42 = vrot.slane %v3110_v55, 1  ;;  %v3139_v59 = vrot.slane %v3138_v2, 1  ;;  %v3167_v7 = vrot.slane %v3166_v50, 1  ;;  %v8143_v20 = vld [vmem:[#allocation3 + $0xd20] sm:$0xff] }
 0x23a   :  { %v3028_v14 = vadd.f32 %v3027_v62, %v3026_v15  ;;  %v3056_v46 = vadd.f32 %v3055_v8, %v3054_v52  ;;  %v3195_v27 = vrot.slane %v3194_v5, 1  ;;  %v3223_v23 = vrot.slane %v3222_v53, 1  ;;  %v8145_v12 = vld [vmem:[#allocation3 + $0xf20] sm:$0xff]  ;;  %v8146_v52 = vld [vmem:[#allocation3 + $0xf30] sm:$0xff] }
 0x23b   :  { %v3084_v32 = vadd.f32 %v3083_v63, %v3082_v57  ;;  %v3112_v4 = vadd.f32 %v3111_v42, %v3110_v55  ;;  %v3140_v34 = vadd.f32 %v3139_v59, %v3138_v2  ;;  %v3168_v21 = vadd.f32 %v3167_v7, %v3166_v50 }
 0x23c   :  { %v3196_v33 = vadd.f32 %v3195_v27, %v3194_v5  ;;  %v3224_v28 = vadd.f32 %v3223_v23, %v3222_v53  ;;  %v9435_v31 = vadd.f32 %v3028_v14, %v9411_v36  ;;  %v9438_v26 = vadd.f32 %v3056_v46, %v9414_v3  ;;  %v8131_v3 = vld [vmem:[#allocation3 + $0x120] sm:$0xff] }
 0x23d   :  { %v9441_v16 = vadd.f32 %v3084_v32, %v9417_v24  ;;  %v9444_v29 = vadd.f32 %v3112_v4, %v9420_v39  ;;  %v9447_v58 = vadd.f32 %v3140_v34, %v9423_v40  ;;  %v9450_v17 = vadd.f32 %v3168_v21, %v9426_v30  ;;  %v8134_v39 = vld [vmem:[#allocation3 + $0x330] sm:$0xff]  ;;  %v8137_v30 = vld [vmem:[#allocation3 + $0x720] sm:$0xff] }
 0x23e   :  { %v9453_v11 = vadd.f32 %v3196_v33, %v9429_v25  ;;  %v9456_v36 = vadd.f32 %v3224_v28, %v9432_v19  ;;  %v3304_v44 = vunpack.c.h.bf16 %v8131_v3  ;;  %v3308_v24 = vunpack.c.h.bf16 %v8132_v43  ;;  %v8140_v19 = vld [vmem:[#allocation3 + $0x930] sm:$0xff] }
 0x23f   :  { %v3312_v56 = vunpack.c.h.bf16 %v8133_v0  ;;  %v3316_v22 = vunpack.c.h.bf16 %v8134_v39  ;;  %v3320_v40 = vunpack.c.h.bf16 %v8135_v60  ;;  %v3324_v45 = vunpack.c.h.bf16 %v8136_v13 }
 0x240   :  { %v3328_v6 = vunpack.c.h.bf16 %v8137_v30  ;;  %v3332_v25 = vunpack.c.h.bf16 %v8138_v18  ;;  %v3336_v47 = vunpack.c.h.bf16 %v8139_v51  ;;  %v3340_v9 = vunpack.c.h.bf16 %v8140_v19 }
 0x241   :  { %v3344_v49 = vunpack.c.h.bf16 %v8141_v35  ;;  %v3348_v10 = vunpack.c.h.bf16 %v8142_v1  ;;  %v3352_v54 = vunpack.c.h.bf16 %v8143_v20  ;;  %v3356_v38 = vunpack.c.h.bf16 %v8144_v61 }
 0x242   :  { %v3360_v15 = vunpack.c.h.bf16 %v8145_v12  ;;  %v3364_v41 = vunpack.c.h.bf16 %v8146_v52  ;;  %v3374_v48 = vadd.f32 %v3308_v24, %v3304_v44  ;;  %v3402_v57 = vadd.f32 %v3316_v22, %v3312_v56 }
 0x243   :  { %v3430_v55 = vadd.f32 %v3324_v45, %v3320_v40  ;;  %v3458_v2 = vadd.f32 %v3332_v25, %v3328_v6  ;;  %v3486_v50 = vadd.f32 %v3340_v9, %v3336_v47  ;;  %v3514_v62 = vadd.f32 %v3348_v10, %v3344_v49 }
 0x244   :  { %v3375_v8 = vrot.slane %v3374_v48, 4  ;;  %v3403_v5 = vrot.slane %v3402_v57, 4  ;;  %v3542_v53 = vadd.f32 %v3356_v38, %v3352_v54  ;;  %v3570_v63 = vadd.f32 %v3364_v41, %v3360_v15 }
 0x245   :  { %v3431_v42 = vrot.slane %v3430_v55, 4  ;;  %v3459_v59 = vrot.slane %v3458_v2, 4  ;;  %v3487_v7 = vrot.slane %v3486_v50, 4  ;;  %v3515_v14 = vrot.slane %v3514_v62, 4 }
 0x246   :  { %v3376_v46 = vadd.f32 %v3375_v8, %v3374_v48  ;;  %v3404_v27 = vadd.f32 %v3403_v5, %v3402_v57  ;;  %v3543_v23 = vrot.slane %v3542_v53, 4  ;;  %v3571_v32 = vrot.slane %v3570_v63, 4 }
 0x247   :  { %v3432_v4 = vadd.f32 %v3431_v42, %v3430_v55  ;;  %v3460_v34 = vadd.f32 %v3459_v59, %v3458_v2  ;;  %v3488_v21 = vadd.f32 %v3487_v7, %v3486_v50  ;;  %v3516_v33 = vadd.f32 %v3515_v14, %v3514_v62  ;;  %v8149_v42 = vld [vmem:[#allocation3 + $0x340] sm:$0xff] }
 0x248   :  { %v3377_v28 = vrot.slane %v3376_v46, 2  ;;  %v3405_v3 = vrot.slane %v3404_v27, 2  ;;  %v3544_v44 = vadd.f32 %v3543_v23, %v3542_v53  ;;  %v3572_v43 = vadd.f32 %v3571_v32, %v3570_v63  ;;  %v8148_v63 = vld [vmem:[#allocation3 + $0x150] sm:$0xff]  ;;  %v8151_v14 = vld [vmem:[#allocation3 + $0x540] sm:$0xff] }
 0x249   :  { %v3433_v24 = vrot.slane %v3432_v4, 2  ;;  %v3461_v0 = vrot.slane %v3460_v34, 2  ;;  %v3489_v56 = vrot.slane %v3488_v21, 2  ;;  %v3517_v39 = vrot.slane %v3516_v33, 2  ;;  %v8154_v32 = vld [vmem:[#allocation3 + $0x750] sm:$0xff] }
 0x24a   :  { %v3378_v22 = vadd.f32 %v3377_v28, %v3376_v46  ;;  %v3406_v60 = vadd.f32 %v3405_v3, %v3404_v27  ;;  %v3545_v40 = vrot.slane %v3544_v44, 2  ;;  %v3573_v13 = vrot.slane %v3572_v43, 2  ;;  %v8152_v46 = vld [vmem:[#allocation3 + $0x550] sm:$0xff] }
 0x24b   :  { %v3434_v45 = vadd.f32 %v3433_v24, %v3432_v4  ;;  %v3462_v30 = vadd.f32 %v3461_v0, %v3460_v34  ;;  %v3490_v6 = vadd.f32 %v3489_v56, %v3488_v21  ;;  %v3518_v18 = vadd.f32 %v3517_v39, %v3516_v33  ;;  %v8155_v4 = vld [vmem:[#allocation3 + $0x940] sm:$0xff]  ;;  %v8158_v3 = vld [vmem:[#allocation3 + $0xb50] sm:$0xff] }
 0x24c   :  { %v3379_v25 = vrot.slane %v3378_v22, 1  ;;  %v3407_v51 = vrot.slane %v3406_v60, 1  ;;  %v3546_v47 = vadd.f32 %v3545_v40, %v3544_v44  ;;  %v3574_v19 = vadd.f32 %v3573_v13, %v3572_v43  ;;  %v8157_v33 = vld [vmem:[#allocation3 + $0xb40] sm:$0xff]  ;;  %v8160_v0 = vld [vmem:[#allocation3 + $0xd50] sm:$0xff] }
 0x24d   :  { %v3435_v9 = vrot.slane %v3434_v45, 1  ;;  %v3463_v35 = vrot.slane %v3462_v30, 1  ;;  %v3491_v49 = vrot.slane %v3490_v6, 1  ;;  %v3519_v1 = vrot.slane %v3518_v18, 1  ;;  %v8159_v43 = vld [vmem:[#allocation3 + $0xd40] sm:$0xff] }
 0x24e   :  { %v3380_v10 = vadd.f32 %v3379_v25, %v3378_v22  ;;  %v3408_v20 = vadd.f32 %v3407_v51, %v3406_v60  ;;  %v3547_v54 = vrot.slane %v3546_v47, 1  ;;  %v3575_v61 = vrot.slane %v3574_v19, 1  ;;  %v8161_v39 = vld [vmem:[#allocation3 + $0xf40] sm:$0xff]  ;;  %v8162_v60 = vld [vmem:[#allocation3 + $0xf50] sm:$0xff] }
 0x24f   :  { %v3436_v38 = vadd.f32 %v3435_v9, %v3434_v45  ;;  %v3464_v12 = vadd.f32 %v3463_v35, %v3462_v30  ;;  %v3492_v15 = vadd.f32 %v3491_v49, %v3490_v6  ;;  %v3520_v52 = vadd.f32 %v3519_v1, %v3518_v18 }
 0x250   :  { %v3548_v41 = vadd.f32 %v3547_v54, %v3546_v47  ;;  %v3576_v48 = vadd.f32 %v3575_v61, %v3574_v19  ;;  %v9459_v57 = vadd.f32 %v3380_v10, %v9435_v31  ;;  %v9462_v55 = vadd.f32 %v3408_v20, %v9438_v26  ;;  %v8147_v26 = vld [vmem:[#allocation3 + $0x140] sm:$0xff] }
 0x251   :  { %v9465_v2 = vadd.f32 %v3436_v38, %v9441_v16  ;;  %v9468_v50 = vadd.f32 %v3464_v12, %v9444_v29  ;;  %v9471_v62 = vadd.f32 %v3492_v15, %v9447_v58  ;;  %v9474_v8 = vadd.f32 %v3520_v52, %v9450_v17  ;;  %v8150_v29 = vld [vmem:[#allocation3 + $0x350] sm:$0xff]  ;;  %v8153_v17 = vld [vmem:[#allocation3 + $0x740] sm:$0xff] }
 0x252   :  { %v9477_v5 = vadd.f32 %v3548_v41, %v9453_v11  ;;  %v9480_v31 = vadd.f32 %v3576_v48, %v9456_v36  ;;  %v3656_v53 = vunpack.c.h.bf16 %v8147_v26  ;;  %v3660_v16 = vunpack.c.h.bf16 %v8148_v63  ;;  %v8156_v36 = vld [vmem:[#allocation3 + $0x950] sm:$0xff] }
 0x253   :  { %v3664_v59 = vunpack.c.h.bf16 %v8149_v42  ;;  %v3668_v7 = vunpack.c.h.bf16 %v8150_v29  ;;  %v3672_v58 = vunpack.c.h.bf16 %v8151_v14  ;;  %v3676_v27 = vunpack.c.h.bf16 %v8152_v46 }
 0x254   :  { %v3680_v23 = vunpack.c.h.bf16 %v8153_v17  ;;  %v3684_v11 = vunpack.c.h.bf16 %v8154_v32  ;;  %v3688_v34 = vunpack.c.h.bf16 %v8155_v4  ;;  %v3692_v21 = vunpack.c.h.bf16 %v8156_v36 }
 0x255   :  { %v3696_v28 = vunpack.c.h.bf16 %v8157_v33  ;;  %v3700_v44 = vunpack.c.h.bf16 %v8158_v3  ;;  %v3704_v24 = vunpack.c.h.bf16 %v8159_v43  ;;  %v3708_v56 = vunpack.c.h.bf16 %v8160_v0 }
 0x256   :  { %v3712_v22 = vunpack.c.h.bf16 %v8161_v39  ;;  %v3716_v40 = vunpack.c.h.bf16 %v8162_v60  ;;  %v3726_v13 = vadd.f32 %v3660_v16, %v3656_v53  ;;  %v3754_v45 = vadd.f32 %v3668_v7, %v3664_v59 }
 0x257   :  { %v3782_v30 = vadd.f32 %v3676_v27, %v3672_v58  ;;  %v3810_v6 = vadd.f32 %v3684_v11, %v3680_v23  ;;  %v3838_v18 = vadd.f32 %v3692_v21, %v3688_v34  ;;  %v3866_v25 = vadd.f32 %v3700_v44, %v3696_v28 }
 0x258   :  { %v3727_v51 = vrot.slane %v3726_v13, 4  ;;  %v3755_v47 = vrot.slane %v3754_v45, 4  ;;  %v3894_v19 = vadd.f32 %v3708_v56, %v3704_v24  ;;  %v3922_v9 = vadd.f32 %v3716_v40, %v3712_v22 }
 0x259   :  { %v3783_v35 = vrot.slane %v3782_v30, 4  ;;  %v3811_v49 = vrot.slane %v3810_v6, 4  ;;  %v3839_v1 = vrot.slane %v3838_v18, 4  ;;  %v3867_v10 = vrot.slane %v3866_v25, 4 }
 0x25a   :  { %v3728_v20 = vadd.f32 %v3727_v51, %v3726_v13  ;;  %v3756_v54 = vadd.f32 %v3755_v47, %v3754_v45  ;;  %v3895_v61 = vrot.slane %v3894_v19, 4  ;;  %v3923_v38 = vrot.slane %v3922_v9, 4 }
 0x25b   :  { %v3784_v12 = vadd.f32 %v3783_v35, %v3782_v30  ;;  %v3812_v15 = vadd.f32 %v3811_v49, %v3810_v6  ;;  %v3840_v52 = vadd.f32 %v3839_v1, %v3838_v18  ;;  %v3868_v41 = vadd.f32 %v3867_v10, %v3866_v25  ;;  %v8165_v35 = vld [vmem:[#allocation3 + $0x360] sm:$0xff] }
 0x25c   :  { %v3729_v48 = vrot.slane %v3728_v20, 2  ;;  %v3757_v26 = vrot.slane %v3756_v54, 2  ;;  %v3896_v53 = vadd.f32 %v3895_v61, %v3894_v19  ;;  %v3924_v63 = vadd.f32 %v3923_v38, %v3922_v9  ;;  %v8164_v9 = vld [vmem:[#allocation3 + $0x170] sm:$0xff]  ;;  %v8167_v10 = vld [vmem:[#allocation3 + $0x560] sm:$0xff] }
 0x25d   :  { %v3785_v16 = vrot.slane %v3784_v12, 2  ;;  %v3813_v42 = vrot.slane %v3812_v15, 2  ;;  %v3841_v59 = vrot.slane %v3840_v52, 2  ;;  %v3869_v29 = vrot.slane %v3868_v41, 2  ;;  %v8170_v38 = vld [vmem:[#allocation3 + $0x770] sm:$0xff] }
 0x25e   :  { %v3730_v7 = vadd.f32 %v3729_v48, %v3728_v20  ;;  %v3758_v14 = vadd.f32 %v3757_v26, %v3756_v54  ;;  %v3897_v58 = vrot.slane %v3896_v53, 2  ;;  %v3925_v46 = vrot.slane %v3924_v63, 2  ;;  %v8168_v20 = vld [vmem:[#allocation3 + $0x570] sm:$0xff] }
 0x25f   :  { %v3786_v27 = vadd.f32 %v3785_v16, %v3784_v12  ;;  %v3814_v17 = vadd.f32 %v3813_v42, %v3812_v15  ;;  %v3842_v23 = vadd.f32 %v3841_v59, %v3840_v52  ;;  %v3870_v32 = vadd.f32 %v3869_v29, %v3868_v41  ;;  %v8171_v12 = vld [vmem:[#allocation3 + $0x960] sm:$0xff]  ;;  %v8174_v26 = vld [vmem:[#allocation3 + $0xb70] sm:$0xff] }
 0x260   :  { %v3731_v11 = vrot.slane %v3730_v7, 1  ;;  %v3759_v4 = vrot.slane %v3758_v14, 1  ;;  %v3898_v34 = vadd.f32 %v3897_v58, %v3896_v53  ;;  %v3926_v36 = vadd.f32 %v3925_v46, %v3924_v63  ;;  %v8173_v41 = vld [vmem:[#allocation3 + $0xb60] sm:$0xff]  ;;  %v8176_v42 = vld [vmem:[#allocation3 + $0xd70] sm:$0xff] }
 0x261   :  { %v3787_v21 = vrot.slane %v3786_v27, 1  ;;  %v3815_v33 = vrot.slane %v3814_v17, 1  ;;  %v3843_v28 = vrot.slane %v3842_v23, 1  ;;  %v3871_v3 = vrot.slane %v3870_v32, 1  ;;  %v8175_v63 = vld [vmem:[#allocation3 + $0xd60] sm:$0xff] }
 0x262   :  { %v3732_v44 = vadd.f32 %v3731_v11, %v3730_v7  ;;  %v3760_v43 = vadd.f32 %v3759_v4, %v3758_v14  ;;  %v3899_v24 = vrot.slane %v3898_v34, 1  ;;  %v3927_v0 = vrot.slane %v3926_v36, 1  ;;  %v8177_v29 = vld [vmem:[#allocation3 + $0xf60] sm:$0xff]  ;;  %v8178_v14 = vld [vmem:[#allocation3 + $0xf70] sm:$0xff] }
 0x263   :  { %v3788_v56 = vadd.f32 %v3787_v21, %v3786_v27  ;;  %v3816_v39 = vadd.f32 %v3815_v33, %v3814_v17  ;;  %v3844_v22 = vadd.f32 %v3843_v28, %v3842_v23  ;;  %v3872_v60 = vadd.f32 %v3871_v3, %v3870_v32 }
 0x264   :  { %v3900_v40 = vadd.f32 %v3899_v24, %v3898_v34  ;;  %v3928_v13 = vadd.f32 %v3927_v0, %v3926_v36  ;;  %v9483_v45 = vadd.f32 %v3732_v44, %v9459_v57  ;;  %v9486_v30 = vadd.f32 %v3760_v43, %v9462_v55  ;;  %v8163_v55 = vld [vmem:[#allocation3 + $0x160] sm:$0xff] }
 0x265   :  { %v9489_v6 = vadd.f32 %v3788_v56, %v9465_v2  ;;  %v9492_v18 = vadd.f32 %v3816_v39, %v9468_v50  ;;  %v9495_v25 = vadd.f32 %v3844_v22, %v9471_v62  ;;  %v9498_v51 = vadd.f32 %v3872_v60, %v9474_v8  ;;  %v8166_v50 = vld [vmem:[#allocation3 + $0x370] sm:$0xff]  ;;  %v8169_v8 = vld [vmem:[#allocation3 + $0x760] sm:$0xff] }
 0x266   :  { %v9501_v47 = vadd.f32 %v3900_v40, %v9477_v5  ;;  %v9504_v57 = vadd.f32 %v3928_v13, %v9480_v31  ;;  %v4008_v19 = vunpack.c.h.bf16 %v8163_v55  ;;  %v4012_v2 = vunpack.c.h.bf16 %v8164_v9  ;;  %v8172_v31 = vld [vmem:[#allocation3 + $0x970] sm:$0xff] }
 0x267   :  { %v4016_v49 = vunpack.c.h.bf16 %v8165_v35  ;;  %v4020_v1 = vunpack.c.h.bf16 %v8166_v50  ;;  %v4024_v62 = vunpack.c.h.bf16 %v8167_v10  ;;  %v4028_v54 = vunpack.c.h.bf16 %v8168_v20 }
 0x268   :  { %v4032_v61 = vunpack.c.h.bf16 %v8169_v8  ;;  %v4036_v5 = vunpack.c.h.bf16 %v8170_v38  ;;  %v4040_v15 = vunpack.c.h.bf16 %v8171_v12  ;;  %v4044_v52 = vunpack.c.h.bf16 %v8172_v31 }
 0x269   :  { %v4048_v48 = vunpack.c.h.bf16 %v8173_v41  ;;  %v4052_v53 = vunpack.c.h.bf16 %v8174_v26  ;;  %v4056_v16 = vunpack.c.h.bf16 %v8175_v63  ;;  %v4060_v59 = vunpack.c.h.bf16 %v8176_v42 }
 0x26a   :  { %v4064_v7 = vunpack.c.h.bf16 %v8177_v29  ;;  %v4068_v58 = vunpack.c.h.bf16 %v8178_v14  ;;  %v4078_v46 = vadd.f32 %v4012_v2, %v4008_v19  ;;  %v4106_v27 = vadd.f32 %v4020_v1, %v4016_v49 }
 0x26b   :  { %v4134_v17 = vadd.f32 %v4028_v54, %v4024_v62  ;;  %v4162_v23 = vadd.f32 %v4036_v5, %v4032_v61  ;;  %v4190_v32 = vadd.f32 %v4044_v52, %v4040_v15  ;;  %v4218_v11 = vadd.f32 %v4052_v53, %v4048_v48 }
 0x26c   :  { %v4079_v4 = vrot.slane %v4078_v46, 4  ;;  %v4107_v34 = vrot.slane %v4106_v27, 4  ;;  %v4246_v36 = vadd.f32 %v4060_v59, %v4056_v16  ;;  %v4274_v21 = vadd.f32 %v4068_v58, %v4064_v7 }
 0x26d   :  { %v4135_v33 = vrot.slane %v4134_v17, 4  ;;  %v4163_v28 = vrot.slane %v4162_v23, 4  ;;  %v4191_v3 = vrot.slane %v4190_v32, 4  ;;  %v4219_v44 = vrot.slane %v4218_v11, 4 }
 0x26e   :  { %v4080_v43 = vadd.f32 %v4079_v4, %v4078_v46  ;;  %v4108_v24 = vadd.f32 %v4107_v34, %v4106_v27  ;;  %v4247_v0 = vrot.slane %v4246_v36, 4  ;;  %v4275_v56 = vrot.slane %v4274_v21, 4 }
 0x26f   :  { %v4136_v39 = vadd.f32 %v4135_v33, %v4134_v17  ;;  %v4164_v22 = vadd.f32 %v4163_v28, %v4162_v23  ;;  %v4192_v60 = vadd.f32 %v4191_v3, %v4190_v32  ;;  %v4220_v40 = vadd.f32 %v4219_v44, %v4218_v11  ;;  %v8181_v33 = vld [vmem:[#allocation3 + $0x380] sm:$0xff] }
 0x270   :  { %v4081_v13 = vrot.slane %v4080_v43, 2  ;;  %v4109_v55 = vrot.slane %v4108_v24, 2  ;;  %v4248_v19 = vadd.f32 %v4247_v0, %v4246_v36  ;;  %v4276_v9 = vadd.f32 %v4275_v56, %v4274_v21  ;;  %v8180_v21 = vld [vmem:[#allocation3 + $0x190] sm:$0xff]  ;;  %v8183_v44 = vld [vmem:[#allocation3 + $0x580] sm:$0xff] }
 0x271   :  { %v4137_v2 = vrot.slane %v4136_v39, 2  ;;  %v4165_v35 = vrot.slane %v4164_v22, 2  ;;  %v4193_v49 = vrot.slane %v4192_v60, 2  ;;  %v4221_v50 = vrot.slane %v4220_v40, 2  ;;  %v8186_v56 = vld [vmem:[#allocation3 + $0x790] sm:$0xff] }
 0x272   :  { %v4082_v1 = vadd.f32 %v4081_v13, %v4080_v43  ;;  %v4110_v10 = vadd.f32 %v4109_v55, %v4108_v24  ;;  %v4249_v62 = vrot.slane %v4248_v19, 2  ;;  %v4277_v20 = vrot.slane %v4276_v9, 2  ;;  %v8184_v43 = vld [vmem:[#allocation3 + $0x590] sm:$0xff] }
 0x273   :  { %v4138_v54 = vadd.f32 %v4137_v2, %v4136_v39  ;;  %v4166_v8 = vadd.f32 %v4165_v35, %v4164_v22  ;;  %v4194_v61 = vadd.f32 %v4193_v49, %v4192_v60  ;;  %v4222_v38 = vadd.f32 %v4221_v50, %v4220_v40  ;;  %v8187_v39 = vld [vmem:[#allocation3 + $0x980] sm:$0xff]  ;;  %v8190_v55 = vld [vmem:[#allocation3 + $0xb90] sm:$0xff] }
 0x274   :  { %v4083_v5 = vrot.slane %v4082_v1, 1  ;;  %v4111_v12 = vrot.slane %v4110_v10, 1  ;;  %v4250_v15 = vadd.f32 %v4249_v62, %v4248_v19  ;;  %v4278_v31 = vadd.f32 %v4277_v20, %v4276_v9  ;;  %v8189_v40 = vld [vmem:[#allocation3 + $0xb80] sm:$0xff]  ;;  %v8192_v35 = vld [vmem:[#allocation3 + $0xd90] sm:$0xff] }
 0x275   :  { %v4139_v52 = vrot.slane %v4138_v54, 1  ;;  %v4167_v41 = vrot.slane %v4166_v8, 1  ;;  %v4195_v48 = vrot.slane %v4194_v61, 1  ;;  %v4223_v26 = vrot.slane %v4222_v38, 1  ;;  %v8191_v9 = vld [vmem:[#allocation3 + $0xd80] sm:$0xff] }
 0x276   :  { %v4084_v53 = vadd.f32 %v4083_v5, %v4082_v1  ;;  %v4112_v63 = vadd.f32 %v4111_v12, %v4110_v10  ;;  %v4251_v16 = vrot.slane %v4250_v15, 1  ;;  %v4279_v42 = vrot.slane %v4278_v31, 1  ;;  %v8193_v50 = vld [vmem:[#allocation3 + $0xf80] sm:$0xff]  ;;  %v8194_v10 = vld [vmem:[#allocation3 + $0xf90] sm:$0xff] }
 0x277   :  { %v4140_v59 = vadd.f32 %v4139_v52, %v4138_v54  ;;  %v4168_v29 = vadd.f32 %v4167_v41, %v4166_v8  ;;  %v4196_v7 = vadd.f32 %v4195_v48, %v4194_v61  ;;  %v4224_v14 = vadd.f32 %v4223_v26, %v4222_v38 }
 0x278   :  { %v4252_v58 = vadd.f32 %v4251_v16, %v4250_v15  ;;  %v4280_v46 = vadd.f32 %v4279_v42, %v4278_v31  ;;  %v9507_v27 = vadd.f32 %v4084_v53, %v9483_v45  ;;  %v9510_v17 = vadd.f32 %v4112_v63, %v9486_v30  ;;  %v8179_v30 = vld [vmem:[#allocation3 + $0x180] sm:$0xff] }
 0x279   :  { %v9513_v23 = vadd.f32 %v4140_v59, %v9489_v6  ;;  %v9516_v32 = vadd.f32 %v4168_v29, %v9492_v18  ;;  %v9519_v11 = vadd.f32 %v4196_v7, %v9495_v25  ;;  %v9522_v4 = vadd.f32 %v4224_v14, %v9498_v51  ;;  %v8182_v18 = vld [vmem:[#allocation3 + $0x390] sm:$0xff]  ;;  %v8185_v51 = vld [vmem:[#allocation3 + $0x780] sm:$0xff] }
 0x27a   :  { %v9525_v34 = vadd.f32 %v4252_v58, %v9501_v47  ;;  %v9528_v45 = vadd.f32 %v4280_v46, %v9504_v57  ;;  %v4360_v36 = vunpack.c.h.bf16 %v8179_v30  ;;  %v4364_v6 = vunpack.c.h.bf16 %v8180_v21  ;;  %v8188_v57 = vld [vmem:[#allocation3 + $0x990] sm:$0xff] }
 0x27b   :  { %v4368_v28 = vunpack.c.h.bf16 %v8181_v33  ;;  %v4372_v3 = vunpack.c.h.bf16 %v8182_v18  ;;  %v4376_v25 = vunpack.c.h.bf16 %v8183_v44  ;;  %v4380_v24 = vunpack.c.h.bf16 %v8184_v43 }
 0x27c   :  { %v4384_v0 = vunpack.c.h.bf16 %v8185_v51  ;;  %v4388_v47 = vunpack.c.h.bf16 %v8186_v56  ;;  %v4392_v22 = vunpack.c.h.bf16 %v8187_v39  ;;  %v4396_v60 = vunpack.c.h.bf16 %v8188_v57 }
 0x27d   :  { %v4400_v13 = vunpack.c.h.bf16 %v8189_v40  ;;  %v4404_v19 = vunpack.c.h.bf16 %v8190_v55  ;;  %v4408_v2 = vunpack.c.h.bf16 %v8191_v9  ;;  %v4412_v49 = vunpack.c.h.bf16 %v8192_v35 }
 0x27e   :  { %v4416_v1 = vunpack.c.h.bf16 %v8193_v50  ;;  %v4420_v62 = vunpack.c.h.bf16 %v8194_v10  ;;  %v4430_v20 = vadd.f32 %v4364_v6, %v4360_v36  ;;  %v4458_v54 = vadd.f32 %v4372_v3, %v4368_v28 }
 0x27f   :  { %v4486_v8 = vadd.f32 %v4380_v24, %v4376_v25  ;;  %v4514_v61 = vadd.f32 %v4388_v47, %v4384_v0  ;;  %v4542_v38 = vadd.f32 %v4396_v60, %v4392_v22  ;;  %v4570_v5 = vadd.f32 %v4404_v19, %v4400_v13 }
 0x280   :  { %v4431_v12 = vrot.slane %v4430_v20, 4  ;;  %v4459_v15 = vrot.slane %v4458_v54, 4  ;;  %v4598_v31 = vadd.f32 %v4412_v49, %v4408_v2  ;;  %v4626_v52 = vadd.f32 %v4420_v62, %v4416_v1 }
 0x281   :  { %v4487_v41 = vrot.slane %v4486_v8, 4  ;;  %v4515_v48 = vrot.slane %v4514_v61, 4  ;;  %v4543_v26 = vrot.slane %v4542_v38, 4  ;;  %v4571_v53 = vrot.slane %v4570_v5, 4 }
 0x282   :  { %v4432_v63 = vadd.f32 %v4431_v12, %v4430_v20  ;;  %v4460_v16 = vadd.f32 %v4459_v15, %v4458_v54  ;;  %v4599_v42 = vrot.slane %v4598_v31, 4  ;;  %v4627_v59 = vrot.slane %v4626_v52, 4 }
 0x283   :  { %v4488_v29 = vadd.f32 %v4487_v41, %v4486_v8  ;;  %v4516_v7 = vadd.f32 %v4515_v48, %v4514_v61  ;;  %v4544_v14 = vadd.f32 %v4543_v26, %v4542_v38  ;;  %v4572_v58 = vadd.f32 %v4571_v53, %v4570_v5  ;;  %v8197_v41 = vld [vmem:[#allocation3 + $0x3a0] sm:$0xff] }
 0x284   :  { %v4433_v46 = vrot.slane %v4432_v63, 2  ;;  %v4461_v30 = vrot.slane %v4460_v16, 2  ;;  %v4600_v36 = vadd.f32 %v4599_v42, %v4598_v31  ;;  %v4628_v21 = vadd.f32 %v4627_v59, %v4626_v52  ;;  %v8196_v52 = vld [vmem:[#allocation3 + $0x1b0] sm:$0xff]  ;;  %v8199_v53 = vld [vmem:[#allocation3 + $0x5a0] sm:$0xff] }
 0x285   :  { %v4489_v6 = vrot.slane %v4488_v29, 2  ;;  %v4517_v33 = vrot.slane %v4516_v7, 2  ;;  %v4545_v28 = vrot.slane %v4544_v14, 2  ;;  %v4573_v18 = vrot.slane %v4572_v58, 2  ;;  %v8202_v59 = vld [vmem:[#allocation3 + $0x7b0] sm:$0xff] }
 0x286   :  { %v4434_v3 = vadd.f32 %v4433_v46, %v4432_v63  ;;  %v4462_v44 = vadd.f32 %v4461_v30, %v4460_v16  ;;  %v4601_v25 = vrot.slane %v4600_v36, 2  ;;  %v4629_v43 = vrot.slane %v4628_v21, 2  ;;  %v8200_v63 = vld [vmem:[#allocation3 + $0x5b0] sm:$0xff] }
 0x287   :  { %v4490_v24 = vadd.f32 %v4489_v6, %v4488_v29  ;;  %v4518_v51 = vadd.f32 %v4517_v33, %v4516_v7  ;;  %v4546_v0 = vadd.f32 %v4545_v28, %v4544_v14  ;;  %v4574_v56 = vadd.f32 %v4573_v18, %v4572_v58  ;;  %v8203_v29 = vld [vmem:[#allocation3 + $0x9a0] sm:$0xff]  ;;  %v8206_v30 = vld [vmem:[#allocation3 + $0xbb0] sm:$0xff] }
 0x288   :  { %v4435_v47 = vrot.slane %v4434_v3, 1  ;;  %v4463_v39 = vrot.slane %v4462_v44, 1  ;;  %v4602_v22 = vadd.f32 %v4601_v25, %v4600_v36  ;;  %v4630_v57 = vadd.f32 %v4629_v43, %v4628_v21  ;;  %v8205_v58 = vld [vmem:[#allocation3 + $0xba0] sm:$0xff]  ;;  %v8208_v33 = vld [vmem:[#allocation3 + $0xdb0] sm:$0xff] }
 0x289   :  { %v4491_v60 = vrot.slane %v4490_v24, 1  ;;  %v4519_v40 = vrot.slane %v4518_v51, 1  ;;  %v4547_v13 = vrot.slane %v4546_v0, 1  ;;  %v4575_v55 = vrot.slane %v4574_v56, 1  ;;  %v8207_v21 = vld [vmem:[#allocation3 + $0xda0] sm:$0xff] }
 0x28a   :  { %v4436_v19 = vadd.f32 %v4435_v47, %v4434_v3  ;;  %v4464_v9 = vadd.f32 %v4463_v39, %v4462_v44  ;;  %v4603_v2 = vrot.slane %v4602_v22, 1  ;;  %v4631_v35 = vrot.slane %v4630_v57, 1  ;;  %v8209_v18 = vld [vmem:[#allocation3 + $0xfa0] sm:$0xff]  ;;  %v8210_v44 = vld [vmem:[#allocation3 + $0xfb0] sm:$0xff] }
 0x28b   :  { %v4492_v49 = vadd.f32 %v4491_v60, %v4490_v24  ;;  %v4520_v50 = vadd.f32 %v4519_v40, %v4518_v51  ;;  %v4548_v1 = vadd.f32 %v4547_v13, %v4546_v0  ;;  %v4576_v10 = vadd.f32 %v4575_v55, %v4574_v56 }
 0x28c   :  { %v4604_v62 = vadd.f32 %v4603_v2, %v4602_v22  ;;  %v4632_v20 = vadd.f32 %v4631_v35, %v4630_v57  ;;  %v9531_v54 = vadd.f32 %v4436_v19, %v9507_v27  ;;  %v9534_v8 = vadd.f32 %v4464_v9, %v9510_v17  ;;  %v8195_v17 = vld [vmem:[#allocation3 + $0x1a0] sm:$0xff] }
 0x28d   :  { %v9537_v61 = vadd.f32 %v4492_v49, %v9513_v23  ;;  %v9540_v38 = vadd.f32 %v4520_v50, %v9516_v32  ;;  %v9543_v5 = vadd.f32 %v4548_v1, %v9519_v11  ;;  %v9546_v12 = vadd.f32 %v4576_v10, %v9522_v4  ;;  %v8198_v32 = vld [vmem:[#allocation3 + $0x3b0] sm:$0xff]  ;;  %v8201_v4 = vld [vmem:[#allocation3 + $0x7a0] sm:$0xff] }
 0x28e   :  { %v9549_v15 = vadd.f32 %v4604_v62, %v9525_v34  ;;  %v9552_v27 = vadd.f32 %v4632_v20, %v9528_v45  ;;  %v4712_v31 = vunpack.c.h.bf16 %v8195_v17  ;;  %v4716_v23 = vunpack.c.h.bf16 %v8196_v52  ;;  %v8204_v45 = vld [vmem:[#allocation3 + $0x9b0] sm:$0xff] }
 0x28f   :  { %v4720_v48 = vunpack.c.h.bf16 %v8197_v41  ;;  %v4724_v26 = vunpack.c.h.bf16 %v8198_v32  ;;  %v4728_v11 = vunpack.c.h.bf16 %v8199_v53  ;;  %v4732_v16 = vunpack.c.h.bf16 %v8200_v63 }
 0x290   :  { %v4736_v42 = vunpack.c.h.bf16 %v8201_v4  ;;  %v4740_v34 = vunpack.c.h.bf16 %v8202_v59  ;;  %v4744_v7 = vunpack.c.h.bf16 %v8203_v29  ;;  %v4748_v14 = vunpack.c.h.bf16 %v8204_v45 }
 0x291   :  { %v4752_v46 = vunpack.c.h.bf16 %v8205_v58  ;;  %v4756_v36 = vunpack.c.h.bf16 %v8206_v30  ;;  %v4760_v6 = vunpack.c.h.bf16 %v8207_v21  ;;  %v4764_v28 = vunpack.c.h.bf16 %v8208_v33 }
 0x292   :  { %v4768_v3 = vunpack.c.h.bf16 %v8209_v18  ;;  %v4772_v25 = vunpack.c.h.bf16 %v8210_v44  ;;  %v4782_v43 = vadd.f32 %v4716_v23, %v4712_v31  ;;  %v4810_v24 = vadd.f32 %v4724_v26, %v4720_v48 }
 0x293   :  { %v4838_v51 = vadd.f32 %v4732_v16, %v4728_v11  ;;  %v4866_v0 = vadd.f32 %v4740_v34, %v4736_v42  ;;  %v4894_v56 = vadd.f32 %v4748_v14, %v4744_v7  ;;  %v4922_v47 = vadd.f32 %v4756_v36, %v4752_v46 }
 0x294   :  { %v4783_v39 = vrot.slane %v4782_v43, 4  ;;  %v4811_v22 = vrot.slane %v4810_v24, 4  ;;  %v4950_v57 = vadd.f32 %v4764_v28, %v4760_v6  ;;  %v4978_v60 = vadd.f32 %v4772_v25, %v4768_v3 }
 0x295   :  { %v4839_v40 = vrot.slane %v4838_v51, 4  ;;  %v4867_v13 = vrot.slane %v4866_v0, 4  ;;  %v4895_v55 = vrot.slane %v4894_v56, 4  ;;  %v4923_v19 = vrot.slane %v4922_v47, 4 }
 0x296   :  { %v4784_v9 = vadd.f32 %v4783_v39, %v4782_v43  ;;  %v4812_v2 = vadd.f32 %v4811_v22, %v4810_v24  ;;  %v4951_v35 = vrot.slane %v4950_v57, 4  ;;  %v4979_v49 = vrot.slane %v4978_v60, 4 }
 0x297   :  { %v4840_v50 = vadd.f32 %v4839_v40, %v4838_v51  ;;  %v4868_v1 = vadd.f32 %v4867_v13, %v4866_v0  ;;  %v4896_v10 = vadd.f32 %v4895_v55, %v4894_v56  ;;  %v4924_v62 = vadd.f32 %v4923_v19, %v4922_v47  ;;  %v8213_v40 = vld [vmem:[#allocation3 + $0x3c0] sm:$0xff] }
 0x298   :  { %v4785_v20 = vrot.slane %v4784_v9, 2  ;;  %v4813_v17 = vrot.slane %v4812_v2, 2  ;;  %v4952_v31 = vadd.f32 %v4951_v35, %v4950_v57  ;;  %v4980_v52 = vadd.f32 %v4979_v49, %v4978_v60  ;;  %v8212_v60 = vld [vmem:[#allocation3 + $0x1d0] sm:$0xff]  ;;  %v8215_v19 = vld [vmem:[#allocation3 + $0x5c0] sm:$0xff] }
 0x299   :  { %v4841_v23 = vrot.slane %v4840_v50, 2  ;;  %v4869_v41 = vrot.slane %v4868_v1, 2  ;;  %v4897_v48 = vrot.slane %v4896_v10, 2  ;;  %v4925_v32 = vrot.slane %v4924_v62, 2  ;;  %v8218_v49 = vld [vmem:[#allocation3 + $0x7d0] sm:$0xff] }
 0x29a   :  { %v4786_v26 = vadd.f32 %v4785_v20, %v4784_v9  ;;  %v4814_v53 = vadd.f32 %v4813_v17, %v4812_v2  ;;  %v4953_v11 = vrot.slane %v4952_v31, 2  ;;  %v4981_v63 = vrot.slane %v4980_v52, 2  ;;  %v8216_v9 = vld [vmem:[#allocation3 + $0x5d0] sm:$0xff] }
 0x29b   :  { %v4842_v16 = vadd.f32 %v4841_v23, %v4840_v50  ;;  %v4870_v4 = vadd.f32 %v4869_v41, %v4868_v1  ;;  %v4898_v42 = vadd.f32 %v4897_v48, %v4896_v10  ;;  %v4926_v59 = vadd.f32 %v4925_v32, %v4924_v62  ;;  %v8219_v50 = vld [vmem:[#allocation3 + $0x9c0] sm:$0xff]  ;;  %v8222_v17 = vld [vmem:[#allocation3 + $0xbd0] sm:$0xff] }
 0x29c   :  { %v4787_v34 = vrot.slane %v4786_v26, 1  ;;  %v4815_v29 = vrot.slane %v4814_v53, 1  ;;  %v4954_v7 = vadd.f32 %v4953_v11, %v4952_v31  ;;  %v4982_v45 = vadd.f32 %v4981_v63, %v4980_v52  ;;  %v8221_v62 = vld [vmem:[#allocation3 + $0xbc0] sm:$0xff]  ;;  %v8224_v41 = vld [vmem:[#allocation3 + $0xdd0] sm:$0xff] }
 0x29d   :  { %v4843_v14 = vrot.slane %v4842_v16, 1  ;;  %v4871_v58 = vrot.slane %v4870_v4, 1  ;;  %v4899_v46 = vrot.slane %v4898_v42, 1  ;;  %v4927_v30 = vrot.slane %v4926_v59, 1  ;;  %v8223_v52 = vld [vmem:[#allocation3 + $0xdc0] sm:$0xff] }
 0x29e   :  { %v4788_v36 = vadd.f32 %v4787_v34, %v4786_v26  ;;  %v4816_v21 = vadd.f32 %v4815_v29, %v4814_v53  ;;  %v4955_v6 = vrot.slane %v4954_v7, 1  ;;  %v4983_v33 = vrot.slane %v4982_v45, 1  ;;  %v8225_v32 = vld [vmem:[#allocation3 + $0xfc0] sm:$0xff]  ;;  %v8226_v53 = vld [vmem:[#allocation3 + $0xfd0] sm:$0xff] }
 0x29f   :  { %v4844_v28 = vadd.f32 %v4843_v14, %v4842_v16  ;;  %v4872_v18 = vadd.f32 %v4871_v58, %v4870_v4  ;;  %v4900_v3 = vadd.f32 %v4899_v46, %v4898_v42  ;;  %v4928_v44 = vadd.f32 %v4927_v30, %v4926_v59 }
 0x2a0   :  { %v4956_v25 = vadd.f32 %v4955_v6, %v4954_v7  ;;  %v4984_v43 = vadd.f32 %v4983_v33, %v4982_v45  ;;  %v9555_v24 = vadd.f32 %v4788_v36, %v9531_v54  ;;  %v9558_v51 = vadd.f32 %v4816_v21, %v9534_v8  ;;  %v8211_v8 = vld [vmem:[#allocation3 + $0x1c0] sm:$0xff] }
 0x2a1   :  { %v9561_v0 = vadd.f32 %v4844_v28, %v9537_v61  ;;  %v9564_v56 = vadd.f32 %v4872_v18, %v9540_v38  ;;  %v9567_v47 = vadd.f32 %v4900_v3, %v9543_v5  ;;  %v9570_v39 = vadd.f32 %v4928_v44, %v9546_v12  ;;  %v8214_v38 = vld [vmem:[#allocation3 + $0x3d0] sm:$0xff]  ;;  %v8217_v12 = vld [vmem:[#allocation3 + $0x7c0] sm:$0xff] }
 0x2a2   :  { %v9573_v22 = vadd.f32 %v4956_v25, %v9549_v15  ;;  %v9576_v54 = vadd.f32 %v4984_v43, %v9552_v27  ;;  %v5064_v57 = vunpack.c.h.bf16 %v8211_v8  ;;  %v5068_v61 = vunpack.c.h.bf16 %v8212_v60  ;;  %v8220_v27 = vld [vmem:[#allocation3 + $0x9d0] sm:$0xff] }
 0x2a3   :  { %v5072_v13 = vunpack.c.h.bf16 %v8213_v40  ;;  %v5076_v55 = vunpack.c.h.bf16 %v8214_v38  ;;  %v5080_v5 = vunpack.c.h.bf16 %v8215_v19  ;;  %v5084_v2 = vunpack.c.h.bf16 %v8216_v9 }
 0x2a4   :  { %v5088_v35 = vunpack.c.h.bf16 %v8217_v12  ;;  %v5092_v15 = vunpack.c.h.bf16 %v8218_v49  ;;  %v5096_v1 = vunpack.c.h.bf16 %v8219_v50  ;;  %v5100_v10 = vunpack.c.h.bf16 %v8220_v27 }
 0x2a5   :  { %v5104_v20 = vunpack.c.h.bf16 %v8221_v62  ;;  %v5108_v31 = vunpack.c.h.bf16 %v8222_v17  ;;  %v5112_v23 = vunpack.c.h.bf16 %v8223_v52  ;;  %v5116_v48 = vunpack.c.h.bf16 %v8224_v41 }
 0x2a6   :  { %v5120_v26 = vunpack.c.h.bf16 %v8225_v32  ;;  %v5124_v11 = vunpack.c.h.bf16 %v8226_v53  ;;  %v5134_v63 = vadd.f32 %v5068_v61, %v5064_v57  ;;  %v5162_v16 = vadd.f32 %v5076_v55, %v5072_v13 }
 0x2a7   :  { %v5190_v4 = vadd.f32 %v5084_v2, %v5080_v5  ;;  %v5218_v42 = vadd.f32 %v5092_v15, %v5088_v35  ;;  %v5246_v59 = vadd.f32 %v5100_v10, %v5096_v1  ;;  %v5274_v34 = vadd.f32 %v5108_v31, %v5104_v20 }
 0x2a8   :  { %v5135_v29 = vrot.slane %v5134_v63, 4  ;;  %v5163_v7 = vrot.slane %v5162_v16, 4  ;;  %v5302_v45 = vadd.f32 %v5116_v48, %v5112_v23  ;;  %v5330_v14 = vadd.f32 %v5124_v11, %v5120_v26 }
 0x2a9   :  { %v5191_v58 = vrot.slane %v5190_v4, 4  ;;  %v5219_v46 = vrot.slane %v5218_v42, 4  ;;  %v5247_v30 = vrot.slane %v5246_v59, 4  ;;  %v5275_v36 = vrot.slane %v5274_v34, 4 }
 0x2aa   :  { %v5136_v21 = vadd.f32 %v5135_v29, %v5134_v63  ;;  %v5164_v6 = vadd.f32 %v5163_v7, %v5162_v16  ;;  %v5303_v33 = vrot.slane %v5302_v45, 4  ;;  %v5331_v28 = vrot.slane %v5330_v14, 4 }
 0x2ab   :  { %v5192_v18 = vadd.f32 %v5191_v58, %v5190_v4  ;;  %v5220_v3 = vadd.f32 %v5219_v46, %v5218_v42  ;;  %v5248_v44 = vadd.f32 %v5247_v30, %v5246_v59  ;;  %v5276_v25 = vadd.f32 %v5275_v36, %v5274_v34  ;;  %v8229_v58 = vld [vmem:[#allocation3 + $0x3e0] sm:$0xff] }
 0x2ac   :  { %v5137_v43 = vrot.slane %v5136_v21, 2  ;;  %v5165_v8 = vrot.slane %v5164_v6, 2  ;;  %v5304_v57 = vadd.f32 %v5303_v33, %v5302_v45  ;;  %v5332_v60 = vadd.f32 %v5331_v28, %v5330_v14  ;;  %v8228_v14 = vld [vmem:[#allocation3 + $0x1f0] sm:$0xff]  ;;  %v8231_v36 = vld [vmem:[#allocation3 + $0x5e0] sm:$0xff] }
 0x2ad   :  { %v5193_v61 = vrot.slane %v5192_v18, 2  ;;  %v5221_v40 = vrot.slane %v5220_v3, 2  ;;  %v5249_v13 = vrot.slane %v5248_v44, 2  ;;  %v5277_v38 = vrot.slane %v5276_v25, 2  ;;  %v8234_v28 = vld [vmem:[#allocation3 + $0x7f0] sm:$0xff] }
 0x2ae   :  { %v5138_v55 = vadd.f32 %v5137_v43, %v5136_v21  ;;  %v5166_v19 = vadd.f32 %v5165_v8, %v5164_v6  ;;  %v5305_v5 = vrot.slane %v5304_v57, 2  ;;  %v5333_v9 = vrot.slane %v5332_v60, 2  ;;  %v8232_v21 = vld [vmem:[#allocation3 + $0x5f0] sm:$0xff] }
 0x2af   :  { %v5194_v2 = vadd.f32 %v5193_v61, %v5192_v18  ;;  %v5222_v12 = vadd.f32 %v5221_v40, %v5220_v3  ;;  %v5250_v35 = vadd.f32 %v5249_v13, %v5248_v44  ;;  %v5278_v49 = vadd.f32 %v5277_v38, %v5276_v25  ;;  %v8235_v18 = vld [vmem:[#allocation3 + $0x9e0] sm:$0xff]  ;;  %v8238_v8 = vld [vmem:[#allocation3 + $0xbf0] sm:$0xff] }
 0x2b0   :  { %v5139_v15 = vrot.slane %v5138_v55, 1  ;;  %v5167_v50 = vrot.slane %v5166_v19, 1  ;;  %v5306_v1 = vadd.f32 %v5305_v5, %v5304_v57  ;;  %v5334_v27 = vadd.f32 %v5333_v9, %v5332_v60  ;;  %v8237_v25 = vld [vmem:[#allocation3 + $0xbe0] sm:$0xff]  ;;  %v8240_v40 = vld [vmem:[#allocation3 + $0xdf0] sm:$0xff] }
 0x2b1   :  { %v5195_v10 = vrot.slane %v5194_v2, 1  ;;  %v5223_v62 = vrot.slane %v5222_v12, 1  ;;  %v5251_v20 = vrot.slane %v5250_v35, 1  ;;  %v5279_v17 = vrot.slane %v5278_v49, 1  ;;  %v8239_v60 = vld [vmem:[#allocation3 + $0xde0] sm:$0xff] }
 0x2b2   :  { %v5140_v31 = vadd.f32 %v5139_v15, %v5138_v55  ;;  %v5168_v52 = vadd.f32 %v5167_v50, %v5166_v19  ;;  %v5307_v23 = vrot.slane %v5306_v1, 1  ;;  %v5335_v41 = vrot.slane %v5334_v27, 1  ;;  %v8241_v38 = vld [vmem:[#allocation3 + $0xfe0] sm:$0xff]  ;;  %v8242_v19 = vld [vmem:[#allocation3 + $0xff0] sm:$0xff] }
 0x2b3   :  { %v5196_v48 = vadd.f32 %v5195_v10, %v5194_v2  ;;  %v5224_v32 = vadd.f32 %v5223_v62, %v5222_v12  ;;  %v5252_v26 = vadd.f32 %v5251_v20, %v5250_v35  ;;  %v5280_v53 = vadd.f32 %v5279_v17, %v5278_v49 }
 0x2b4   :  { %v5308_v11 = vadd.f32 %v5307_v23, %v5306_v1  ;;  %v5336_v63 = vadd.f32 %v5335_v41, %v5334_v27  ;;  %v9579_v16 = vadd.f32 %v5140_v31, %v9555_v24  ;;  %v9582_v4 = vadd.f32 %v5168_v52, %v9558_v51  ;;  %v8227_v51 = vld [vmem:[#allocation3 + $0x1e0] sm:$0xff] }
 0x2b5   :  { %v9585_v42 = vadd.f32 %v5196_v48, %v9561_v0  ;;  %v9588_v59 = vadd.f32 %v5224_v32, %v9564_v56  ;;  %v9591_v34 = vadd.f32 %v5252_v26, %v9567_v47  ;;  %v9594_v29 = vadd.f32 %v5280_v53, %v9570_v39  ;;  %v8230_v56 = vld [vmem:[#allocation3 + $0x3f0] sm:$0xff]  ;;  %v8233_v39 = vld [vmem:[#allocation3 + $0x7e0] sm:$0xff] }
 0x2b6   :  { %v9597_v7 = vadd.f32 %v5308_v11, %v9573_v22  ;;  %v9600_v24 = vadd.f32 %v5336_v63, %v9576_v54  ;;  %v5416_v45 = vunpack.c.h.bf16 %v8227_v51  ;;  %v5420_v0 = vunpack.c.h.bf16 %v8228_v14  ;;  %v8236_v54 = vld [vmem:[#allocation3 + $0x9f0] sm:$0xff] }
 0x2b7   :  { %v5424_v46 = vunpack.c.h.bf16 %v8229_v58  ;;  %v5428_v30 = vunpack.c.h.bf16 %v8230_v56  ;;  %v5432_v47 = vunpack.c.h.bf16 %v8231_v36  ;;  %v5436_v6 = vunpack.c.h.bf16 %v8232_v21 }
 0x2b8   :  { %v5440_v33 = vunpack.c.h.bf16 %v8233_v39  ;;  %v5444_v22 = vunpack.c.h.bf16 %v8234_v28  ;;  %v5448_v3 = vunpack.c.h.bf16 %v8235_v18  ;;  %v5452_v44 = vunpack.c.h.bf16 %v8236_v54 }
 0x2b9   :  { %v5456_v43 = vunpack.c.h.bf16 %v8237_v25  ;;  %v5460_v57 = vunpack.c.h.bf16 %v8238_v8  ;;  %v5464_v61 = vunpack.c.h.bf16 %v8239_v60  ;;  %v5468_v13 = vunpack.c.h.bf16 %v8240_v40 }
 0x2ba   :  { %v5472_v55 = vunpack.c.h.bf16 %v8241_v38  ;;  %v5476_v5 = vunpack.c.h.bf16 %v8242_v19  ;;  %v5486_v9 = vadd.f32 %v5420_v0, %v5416_v45  ;;  %v5514_v2 = vadd.f32 %v5428_v30, %v5424_v46 }
 0x2bb   :  { %v5542_v12 = vadd.f32 %v5436_v6, %v5432_v47  ;;  %v5570_v35 = vadd.f32 %v5444_v22, %v5440_v33  ;;  %v5598_v49 = vadd.f32 %v5452_v44, %v5448_v3  ;;  %v5626_v15 = vadd.f32 %v5460_v57, %v5456_v43 }
 0x2bc   :  { %v5487_v50 = vrot.slane %v5486_v9, 4  ;;  %v5515_v1 = vrot.slane %v5514_v2, 4  ;;  %v5654_v27 = vadd.f32 %v5468_v13, %v5464_v61  ;;  %v5682_v10 = vadd.f32 %v5476_v5, %v5472_v55  ;;  %v104_v5 = vld [vmem:[#allocation3 + $0x8] sm:$0xff] }
 0x2bd   :  { %v5543_v62 = vrot.slane %v5542_v12, 4  ;;  %v5571_v20 = vrot.slane %v5570_v35, 4  ;;  %v5599_v17 = vrot.slane %v5598_v49, 4  ;;  %v5627_v31 = vrot.slane %v5626_v15, 4 }
 0x2be   :  { %v5488_v52 = vadd.f32 %v5487_v50, %v5486_v9  ;;  %v5516_v23 = vadd.f32 %v5515_v1, %v5514_v2  ;;  %v5655_v41 = vrot.slane %v5654_v27, 4  ;;  %v5683_v48 = vrot.slane %v5682_v10, 4  ;;  %v110_v50 = vld [vmem:[#allocation3 + $0x218] sm:$0xff] }
 0x2bf   :  { %v5544_v32 = vadd.f32 %v5543_v62, %v5542_v12  ;;  %v5572_v26 = vadd.f32 %v5571_v20, %v5570_v35  ;;  %v5600_v53 = vadd.f32 %v5599_v17, %v5598_v49  ;;  %v5628_v11 = vadd.f32 %v5627_v31, %v5626_v15  ;;  %v106_v49 = vld [vmem:[#allocation3 + $0x18] sm:$0xff]  ;;  %v108_v15 = vld [vmem:[#allocation3 + $0x208] sm:$0xff] }
 0x2c0   :  { %v5489_v63 = vrot.slane %v5488_v52, 2  ;;  %v5517_v51 = vrot.slane %v5516_v23, 2  ;;  %v5656_v45 = vadd.f32 %v5655_v41, %v5654_v27  ;;  %v5684_v14 = vadd.f32 %v5683_v48, %v5682_v10  ;;  %v112_v20 = vld [vmem:[#allocation3 + $0x408] sm:$0xff]  ;;  %v114_v17 = vld [vmem:[#allocation3 + $0x418] sm:$0xff] }
 0x2c1   :  { %v5545_v0 = vrot.slane %v5544_v32, 2  ;;  %v5573_v58 = vrot.slane %v5572_v26, 2  ;;  %v5601_v46 = vrot.slane %v5600_v53, 2  ;;  %v5629_v56 = vrot.slane %v5628_v11, 2  ;;  %v116_v31 = vld [vmem:[#allocation3 + $0x608] sm:$0xff]  ;;  %v122_v48 = vld [vmem:[#allocation3 + $0x818] sm:$0xff] }
 0x2c2   :  { %v5490_v30 = vadd.f32 %v5489_v63, %v5488_v52  ;;  %v5518_v36 = vadd.f32 %v5517_v51, %v5516_v23  ;;  %v5657_v47 = vrot.slane %v5656_v45, 2  ;;  %v5685_v21 = vrot.slane %v5684_v14, 2  ;;  %v118_v23 = vld [vmem:[#allocation3 + $0x618] sm:$0xff]  ;;  %v120_v41 = vld [vmem:[#allocation3 + $0x808] sm:$0xff] }
 0x2c3   :  { %v5546_v6 = vadd.f32 %v5545_v0, %v5544_v32  ;;  %v5574_v39 = vadd.f32 %v5573_v58, %v5572_v26  ;;  %v5602_v33 = vadd.f32 %v5601_v46, %v5600_v53  ;;  %v5630_v28 = vadd.f32 %v5629_v56, %v5628_v11  ;;  %v126_v26 = vld [vmem:[#allocation3 + $0xa18] sm:$0xff] }
 0x2c4   :  { %v5491_v22 = vrot.slane %v5490_v30, 1  ;;  %v5519_v18 = vrot.slane %v5518_v36, 1  ;;  %v5658_v3 = vadd.f32 %v5657_v47, %v5656_v45  ;;  %v5686_v54 = vadd.f32 %v5685_v21, %v5684_v14  ;;  %v130_v51 = vld [vmem:[#allocation3 + $0xc18] sm:$0xff] }
 0x2c5   :  { %v5547_v44 = vrot.slane %v5546_v6, 1  ;;  %v5575_v25 = vrot.slane %v5574_v39, 1  ;;  %v5603_v43 = vrot.slane %v5602_v33, 1  ;;  %v5631_v8 = vrot.slane %v5630_v28, 1  ;;  %v134_v45 = vld [vmem:[#allocation3 + $0xe18] sm:$0xff] }
 0x2c6   :  { %v5492_v57 = vadd.f32 %v5491_v22, %v5490_v30  ;;  %v5520_v60 = vadd.f32 %v5519_v18, %v5518_v36  ;;  %v5659_v61 = vrot.slane %v5658_v3, 1  ;;  %v5687_v40 = vrot.slane %v5686_v54, 1 }
 0x2c7   :  { %v5548_v13 = vadd.f32 %v5547_v44, %v5546_v6  ;;  %v5576_v38 = vadd.f32 %v5575_v25, %v5574_v39  ;;  %v5604_v55 = vadd.f32 %v5603_v43, %v5602_v33  ;;  %v5632_v19 = vadd.f32 %v5631_v8, %v5630_v28 }
 0x2c8   :  { %v5660_v9 = vadd.f32 %v5659_v61, %v5658_v3  ;;  %v5688_v2 = vadd.f32 %v5687_v40, %v5686_v54  ;;  %v5704_v12 = vadd.f32 %v5492_v57, %v9579_v16  ;;  %v5708_v35 = vadd.f32 %v5520_v60, %v9582_v4 }
 0x2c9   :  { %v5712_v1 = vadd.f32 %v5548_v13, %v9585_v42  ;;  %v5716_v27 = vadd.f32 %v5576_v38, %v9588_v59  ;;  %v5720_v10 = vadd.f32 %v5604_v55, %v9591_v34  ;;  %v5724_v62 = vadd.f32 %v5632_v19, %v9594_v29  ;;  %v124_v59 = vld [vmem:[#allocation3 + $0xa08] sm:$0xff] }
 0x2ca   :  { %v5728_v52 = vadd.f32 %v5660_v9, %v9597_v7  ;;  %v5732_v16 = vadd.f32 %v5688_v2, %v9600_v24  ;;  %v5785_v4 = vsel %vm5771_vm0, %v5708_v35, %v5704_v12  ;;  %v137_v32 = vunpack.c.l.bf16 %v104_v5  ;;  %v128_v34 = vld [vmem:[#allocation3 + $0xc08] sm:$0xff] }
 0x2cb   :  { %v5786_v42 = vsel %vm5773_vm1, %v5712_v1, %v5785_v4  ;;  %v141_v53 = vunpack.c.l.bf16 %v106_v49  ;;  %v145_v29 = vunpack.c.l.bf16 %v108_v15  ;;  %v149_v11 = vunpack.c.l.bf16 %v110_v50  ;;  %v132_v7 = vld [vmem:[#allocation3 + $0xe08] sm:$0xff] }
 0x2cc   :  { %v5787_v63 = vsel %vm5775_vm2, %v5716_v27, %v5786_v42  ;;  %v153_v24 = vunpack.c.l.bf16 %v112_v20  ;;  %v157_v14 = vunpack.c.l.bf16 %v114_v17  ;;  %v161_v0 = vunpack.c.l.bf16 %v116_v31 }
 0x2cd   :  { %v5788_v58 = vsel %vm5777_vm3, %v5720_v10, %v5787_v63  ;;  %v165_v46 = vunpack.c.l.bf16 %v118_v23  ;;  %v169_v56 = vunpack.c.l.bf16 %v120_v41  ;;  %v173_v30 = vunpack.c.l.bf16 %v122_v48  ;;  %v456_v63 = vld [vmem:[#allocation3 + $0x28] sm:$0xff] }
 0x2ce   :  { %v5789_v36 = vsel %vm5779_vm4, %v5724_v62, %v5788_v58  ;;  %v177_v47 = vunpack.c.l.bf16 %v124_v59  ;;  %v181_v21 = vunpack.c.l.bf16 %v126_v26  ;;  %v185_v6 = vunpack.c.l.bf16 %v128_v34  ;;  %v462_v58 = vld [vmem:[#allocation3 + $0x238] sm:$0xff] }
 0x2cf   :  { %v5790_v39 = vsel %vm5781_vm5, %v5728_v52, %v5789_v36  ;;  %v189_v33 = vunpack.c.l.bf16 %v130_v51  ;;  %v193_v28 = vunpack.c.l.bf16 %v132_v7  ;;  %v197_v22 = vunpack.c.l.bf16 %v134_v45  ;;  %v458_v51 = vld [vmem:[#allocation3 + $0x38] sm:$0xff] }
 0x2d0   :  { %v5791_v18 = vsel %vm5783_vm6, %v5732_v16, %v5790_v39  ;;  %v213_v3 = vadd.f32 %v141_v53, %v137_v32  ;;  %v241_v54 = vadd.f32 %v149_v11, %v145_v29  ;;  %v269_v44 = vadd.f32 %v157_v14, %v153_v24 }
 0x2d1   :  { %v5826_v25 = vmul.f32 0.00390625, %v5791_v18  ;;  %v297_v43 = vadd.f32 %v165_v46, %v161_v0  ;;  %v325_v8 = vadd.f32 %v173_v30, %v169_v56  ;;  %v353_v57 = vadd.f32 %v181_v21, %v177_v47  ;;  %v460_v0 = vld [vmem:[#allocation3 + $0x228] sm:$0xff]  ;;  %v466_v21 = vld [vmem:[#allocation3 + $0x438] sm:$0xff] }
 0x2d2   :  { %v214_v60 = vrot.slane %v213_v3, 4  ;;  %v242_v61 = vrot.slane %v241_v54, 4  ;;  %v270_v40 = vrot.slane %v269_v44, 4  ;;  %v381_v13 = vadd.f32 %v189_v33, %v185_v6  ;;  %v464_v47 = vld [vmem:[#allocation3 + $0x428] sm:$0xff]  ;;  %v470_v18 = vld [vmem:[#allocation3 + $0x638] sm:$0xff] }
 0x2d3   :  { %v9617_v38 = vpack.c.bf16 %v5826_v25, %v5826_v25  ;;  %v298_v55 = vrot.slane %v297_v43, 4  ;;  %v326_v19 = vrot.slane %v325_v8, 4  ;;  %v354_v5 = vrot.slane %v353_v57, 4  ;;  %v468_v6 = vld [vmem:[#allocation3 + $0x628] sm:$0xff] }
 0x2d4   :  { %v215_v9 = vadd.f32 %v214_v60, %v213_v3  ;;  %v243_v2 = vadd.f32 %v242_v61, %v241_v54  ;;  %v271_v12 = vadd.f32 %v270_v40, %v269_v44  ;;  %v382_v35 = vrot.slane %v381_v13, 4  ;;  %v472_v3 = vld [vmem:[#allocation3 + $0x828] sm:$0xff]  ;;  %v474_v54 = vld [vmem:[#allocation3 + $0x838] sm:$0xff] }
 0x2d5   :  { %6632 = vmatmul.bf16.vlgmr.msra.gmra.mxu1 %v9617_v38  ;;  %v299_v49 = vadd.f32 %v298_v55, %v297_v43  ;;  %v327_v15 = vadd.f32 %v326_v19, %v325_v8  ;;  %v355_v50 = vadd.f32 %v354_v5, %v353_v57  ;;  %v409_v1 = vadd.f32 %v197_v22, %v193_v28  ;;  %v476_v25 = vld [vmem:[#allocation3 + $0xa28] sm:$0xff]  ;;  %v478_v43 = vld [vmem:[#allocation3 + $0xa38] sm:$0xff] }
 0x2d6   :  { %v216_v27 = vrot.slane %v215_v9, 2  ;;  %v244_v10 = vrot.slane %v243_v2, 2  ;;  %v272_v62 = vrot.slane %v271_v12, 2  ;;  %v383_v20 = vadd.f32 %v382_v35, %v381_v13  ;;  %v480_v8 = vld [vmem:[#allocation3 + $0xc28] sm:$0xff]  ;;  %v482_v13 = vld [vmem:[#allocation3 + $0xc38] sm:$0xff] }
 0x2d7   :  { %v300_v17 = vrot.slane %v299_v49, 2  ;;  %v328_v31 = vrot.slane %v327_v15, 2  ;;  %v356_v52 = vrot.slane %v355_v50, 2  ;;  %v410_v16 = vrot.slane %v409_v1, 4  ;;  %v484_v55 = vld [vmem:[#allocation3 + $0xe28] sm:$0xff]  ;;  %v486_v19 = vld [vmem:[#allocation3 + $0xe38] sm:$0xff] }
 0x2d8   :  { %v217_v4 = vadd.f32 %v216_v27, %v215_v9  ;;  %v245_v23 = vadd.f32 %v244_v10, %v243_v2  ;;  %v273_v41 = vadd.f32 %v272_v62, %v271_v12  ;;  %v384_v48 = vrot.slane %v383_v20, 2 }
 0x2d9   :  { %v301_v32 = vadd.f32 %v300_v17, %v299_v49  ;;  %v329_v42 = vadd.f32 %v328_v31, %v327_v15  ;;  %v357_v59 = vadd.f32 %v356_v52, %v355_v50  ;;  %v411_v26 = vadd.f32 %v410_v16, %v409_v1 }
 0x2da   :  { %v218_v34 = vrot.slane %v217_v4, 1  ;;  %v246_v53 = vrot.slane %v245_v23, 1  ;;  %v274_v29 = vrot.slane %v273_v41, 1  ;;  %v385_v11 = vadd.f32 %v384_v48, %v383_v20 }
 0x2db   :  { %v302_v7 = vrot.slane %v301_v32, 1  ;;  %v330_v45 = vrot.slane %v329_v42, 1  ;;  %v358_v24 = vrot.slane %v357_v59, 1  ;;  %v412_v14 = vrot.slane %v411_v26, 2 }
 0x2dc   :  { %v9620_v46 = vadd.f32 %v218_v34, %v217_v4  ;;  %v9622_v56 = vadd.f32 %v246_v53, %v245_v23  ;;  %v9624_v30 = vadd.f32 %v274_v29, %v273_v41  ;;  %v386_v36 = vrot.slane %v385_v11, 1 }
 0x2dd   :  { %v9626_v39 = vadd.f32 %v302_v7, %v301_v32  ;;  %v9628_v33 = vadd.f32 %v330_v45, %v329_v42  ;;  %v9630_v28 = vadd.f32 %v358_v24, %v357_v59  ;;  %v413_v22 = vadd.f32 %v412_v14, %v411_v26 }
 0x2de   :  { %v9632_v44 = vadd.f32 %v386_v36, %v385_v11  ;;  %v489_v57 = vunpack.c.l.bf16 %v456_v63  ;;  %v493_v60 = vunpack.c.l.bf16 %v458_v51  ;;  %v497_v61 = vunpack.c.l.bf16 %v460_v0 }
 0x2df   :  { %v414_v40 = vrot.slane %v413_v22, 1  ;;  %v501_v5 = vunpack.c.l.bf16 %v462_v58  ;;  %v505_v9 = vunpack.c.l.bf16 %v464_v47  ;;  %v509_v2 = vunpack.c.l.bf16 %v466_v21 }
 0x2e0   :  { %v513_v12 = vunpack.c.l.bf16 %v468_v6  ;;  %v517_v35 = vunpack.c.l.bf16 %v470_v18  ;;  %v521_v49 = vunpack.c.l.bf16 %v472_v3  ;;  %v525_v15 = vunpack.c.l.bf16 %v474_v54 }
 0x2e1   :  { %v9634_v50 = vadd.f32 %v414_v40, %v413_v22  ;;  %v529_v1 = vunpack.c.l.bf16 %v476_v25  ;;  %v533_v27 = vunpack.c.l.bf16 %v478_v43  ;;  %v537_v10 = vunpack.c.l.bf16 %v480_v8 }
 0x2e2   :  { %v541_v62 = vunpack.c.l.bf16 %v482_v13  ;;  %v545_v20 = vunpack.c.l.bf16 %v484_v55  ;;  %v549_v17 = vunpack.c.l.bf16 %v486_v19  ;;  %v565_v31 = vadd.f32 %v493_v60, %v489_v57 }
 0x2e3   :  { %v593_v52 = vadd.f32 %v501_v5, %v497_v61  ;;  %v621_v16 = vadd.f32 %v509_v2, %v505_v9  ;;  %v649_v4 = vadd.f32 %v517_v35, %v513_v12  ;;  %v677_v23 = vadd.f32 %v525_v15, %v521_v49 }
 0x2e4   :  { %v566_v41 = vrot.slane %v565_v31, 4  ;;  %v705_v48 = vadd.f32 %v533_v27, %v529_v1  ;;  %v733_v32 = vadd.f32 %v541_v62, %v537_v10  ;;  %v761_v42 = vadd.f32 %v549_v17, %v545_v20  ;;  %v808_v27 = vld [vmem:[#allocation3 + $0x48] sm:$0xff] }
 0x2e5   :  { %v594_v59 = vrot.slane %v593_v52, 4  ;;  %v622_v26 = vrot.slane %v621_v16, 4  ;;  %v650_v34 = vrot.slane %v649_v4, 4  ;;  %v678_v53 = vrot.slane %v677_v23, 4 }
 0x2e6   :  { %v567_v29 = vadd.f32 %v566_v41, %v565_v31  ;;  %v706_v11 = vrot.slane %v705_v48, 4  ;;  %v734_v63 = vrot.slane %v733_v32, 4  ;;  %v762_v51 = vrot.slane %v761_v42, 4  ;;  %v810_v31 = vld [vmem:[#allocation3 + $0x58] sm:$0xff] }
 0x2e7   :  { %v595_v7 = vadd.f32 %v594_v59, %v593_v52  ;;  %v623_v45 = vadd.f32 %v622_v26, %v621_v16  ;;  %v651_v24 = vadd.f32 %v650_v34, %v649_v4  ;;  %v679_v14 = vadd.f32 %v678_v53, %v677_v23  ;;  %v812_v52 = vld [vmem:[#allocation3 + $0x248] sm:$0xff]  ;;  %v814_v16 = vld [vmem:[#allocation3 + $0x258] sm:$0xff] }
 0x2e8   :  { %v568_v0 = vrot.slane %v567_v29, 2  ;;  %v707_v58 = vadd.f32 %v706_v11, %v705_v48  ;;  %v735_v36 = vadd.f32 %v734_v63, %v733_v32  ;;  %v763_v47 = vadd.f32 %v762_v51, %v761_v42  ;;  %v816_v32 = vld [vmem:[#allocation3 + $0x448] sm:$0xff]  ;;  %v818_v42 = vld [vmem:[#allocation3 + $0x458] sm:$0xff] }
 0x2e9   :  { %v596_v21 = vrot.slane %v595_v7, 2  ;;  %v624_v6 = vrot.slane %v623_v45, 2  ;;  %v652_v22 = vrot.slane %v651_v24, 2  ;;  %v680_v18 = vrot.slane %v679_v14, 2  ;;  %v820_v59 = vld [vmem:[#allocation3 + $0x648] sm:$0xff]  ;;  %v822_v11 = vld [vmem:[#allocation3 + $0x658] sm:$0xff] }
 0x2ea   :  { %v569_v3 = vadd.f32 %v568_v0, %v567_v29  ;;  %v708_v54 = vrot.slane %v707_v58, 2  ;;  %v736_v25 = vrot.slane %v735_v36, 2  ;;  %v764_v43 = vrot.slane %v763_v47, 2  ;;  %v824_v63 = vld [vmem:[#allocation3 + $0x848] sm:$0xff]  ;;  %v826_v51 = vld [vmem:[#allocation3 + $0x858] sm:$0xff] }
 0x2eb   :  { %v597_v8 = vadd.f32 %v596_v21, %v595_v7  ;;  %v625_v57 = vadd.f32 %v624_v6, %v623_v45  ;;  %v653_v60 = vadd.f32 %v652_v22, %v651_v24  ;;  %v681_v61 = vadd.f32 %v680_v18, %v679_v14  ;;  %v830_v45 = vld [vmem:[#allocation3 + $0xa58] sm:$0xff]  ;;  %v832_v24 = vld [vmem:[#allocation3 + $0xc48] sm:$0xff] }
 0x2ec   :  { %v570_v40 = vrot.slane %v569_v3, 1  ;;  %v709_v13 = vadd.f32 %v708_v54, %v707_v58  ;;  %v737_v55 = vadd.f32 %v736_v25, %v735_v36  ;;  %v765_v19 = vadd.f32 %v764_v43, %v763_v47  ;;  %v834_v14 = vld [vmem:[#allocation3 + $0xc58] sm:$0xff]  ;;  %v836_v0 = vld [vmem:[#allocation3 + $0xe48] sm:$0xff] }
 0x2ed   :  { %v598_v5 = vrot.slane %v597_v8, 1  ;;  %v626_v9 = vrot.slane %v625_v57, 1  ;;  %v654_v2 = vrot.slane %v653_v60, 1  ;;  %v682_v12 = vrot.slane %v681_v61, 1 }
 0x2ee   :  { %v571_v35 = vadd.f32 %v570_v40, %v569_v3  ;;  %v710_v49 = vrot.slane %v709_v13, 1  ;;  %v738_v15 = vrot.slane %v737_v55, 1  ;;  %v766_v1 = vrot.slane %v765_v19, 1 }
 0x2ef   :  { %v599_v10 = vadd.f32 %v598_v5, %v597_v8  ;;  %v627_v62 = vadd.f32 %v626_v9, %v625_v57  ;;  %v655_v20 = vadd.f32 %v654_v2, %v653_v60  ;;  %v683_v17 = vadd.f32 %v682_v12, %v681_v61 }
 0x2f0   :  { %v711_v4 = vadd.f32 %v710_v49, %v709_v13  ;;  %v739_v23 = vadd.f32 %v738_v15, %v737_v55  ;;  %v767_v41 = vadd.f32 %v766_v1, %v765_v19  ;;  %v9637_v48 = vadd.f32 %v571_v35, %v9620_v46 }
 0x2f1   :  { %v9640_v26 = vadd.f32 %v599_v10, %v9622_v56  ;;  %v9643_v34 = vadd.f32 %v627_v62, %v9624_v30  ;;  %v9646_v53 = vadd.f32 %v655_v20, %v9626_v39  ;;  %v9649_v29 = vadd.f32 %v683_v17, %v9628_v33  ;;  %v828_v30 = vld [vmem:[#allocation3 + $0xa48] sm:$0xff]  ;;  %v838_v33 = vld [vmem:[#allocation3 + $0xe58] sm:$0xff] }
 0x2f2   :  { %v9652_v46 = vadd.f32 %v711_v4, %v9630_v28  ;;  %v9655_v7 = vadd.f32 %v739_v23, %v9632_v44  ;;  %v9658_v56 = vadd.f32 %v767_v41, %v9634_v50  ;;  %v841_v39 = vunpack.c.l.bf16 %v808_v27 }
 0x2f3   :  { %v845_v58 = vunpack.c.l.bf16 %v810_v31  ;;  %v849_v36 = vunpack.c.l.bf16 %v812_v52  ;;  %v853_v47 = vunpack.c.l.bf16 %v814_v16  ;;  %v857_v21 = vunpack.c.l.bf16 %v816_v32 }
 0x2f4   :  { %v861_v6 = vunpack.c.l.bf16 %v818_v42  ;;  %v865_v28 = vunpack.c.l.bf16 %v820_v59  ;;  %v869_v22 = vunpack.c.l.bf16 %v822_v11  ;;  %v873_v18 = vunpack.c.l.bf16 %v824_v63 }
 0x2f5   :  { %v877_v44 = vunpack.c.l.bf16 %v826_v51  ;;  %v881_v3 = vunpack.c.l.bf16 %v828_v30  ;;  %v885_v54 = vunpack.c.l.bf16 %v830_v45  ;;  %v889_v50 = vunpack.c.l.bf16 %v832_v24 }
 0x2f6   :  { %v893_v25 = vunpack.c.l.bf16 %v834_v14  ;;  %v897_v43 = vunpack.c.l.bf16 %v836_v0  ;;  %v901_v8 = vunpack.c.l.bf16 %v838_v33  ;;  %v917_v57 = vadd.f32 %v845_v58, %v841_v39 }
 0x2f7   :  { %v945_v60 = vadd.f32 %v853_v47, %v849_v36  ;;  %v973_v61 = vadd.f32 %v861_v6, %v857_v21  ;;  %v1001_v40 = vadd.f32 %v869_v22, %v865_v28  ;;  %v1029_v13 = vadd.f32 %v877_v44, %v873_v18 }
 0x2f8   :  { %v918_v55 = vrot.slane %v917_v57, 4  ;;  %v1057_v19 = vadd.f32 %v885_v54, %v881_v3  ;;  %v1085_v5 = vadd.f32 %v893_v25, %v889_v50  ;;  %v1113_v9 = vadd.f32 %v901_v8, %v897_v43  ;;  %v1160_v54 = vld [vmem:[#allocation3 + $0x68] sm:$0xff] }
 0x2f9   :  { %v946_v2 = vrot.slane %v945_v60, 4  ;;  %v974_v12 = vrot.slane %v973_v61, 4  ;;  %v1002_v35 = vrot.slane %v1001_v40, 4  ;;  %v1030_v49 = vrot.slane %v1029_v13, 4 }
 0x2fa   :  { %v919_v15 = vadd.f32 %v918_v55, %v917_v57  ;;  %v1058_v1 = vrot.slane %v1057_v19, 4  ;;  %v1086_v27 = vrot.slane %v1085_v5, 4  ;;  %v1114_v10 = vrot.slane %v1113_v9, 4  ;;  %v1162_v57 = vld [vmem:[#allocation3 + $0x78] sm:$0xff] }
 0x2fb   :  { %v947_v62 = vadd.f32 %v946_v2, %v945_v60  ;;  %v975_v20 = vadd.f32 %v974_v12, %v973_v61  ;;  %v1003_v17 = vadd.f32 %v1002_v35, %v1001_v40  ;;  %v1031_v31 = vadd.f32 %v1030_v49, %v1029_v13  ;;  %v1164_v60 = vld [vmem:[#allocation3 + $0x268] sm:$0xff]  ;;  %v1166_v61 = vld [vmem:[#allocation3 + $0x278] sm:$0xff] }
 0x2fc   :  { %v920_v52 = vrot.slane %v919_v15, 2  ;;  %v1059_v16 = vadd.f32 %v1058_v1, %v1057_v19  ;;  %v1087_v4 = vadd.f32 %v1086_v27, %v1085_v5  ;;  %v1115_v23 = vadd.f32 %v1114_v10, %v1113_v9  ;;  %v1168_v5 = vld [vmem:[#allocation3 + $0x468] sm:$0xff]  ;;  %v1170_v9 = vld [vmem:[#allocation3 + $0x478] sm:$0xff] }
 0x2fd   :  { %v948_v41 = vrot.slane %v947_v62, 2  ;;  %v976_v32 = vrot.slane %v975_v20, 2  ;;  %v1004_v42 = vrot.slane %v1003_v17, 2  ;;  %v1032_v59 = vrot.slane %v1031_v31, 2  ;;  %v1172_v2 = vld [vmem:[#allocation3 + $0x668] sm:$0xff]  ;;  %v1174_v1 = vld [vmem:[#allocation3 + $0x678] sm:$0xff] }
 0x2fe   :  { %v921_v11 = vadd.f32 %v920_v52, %v919_v15  ;;  %v1060_v63 = vrot.slane %v1059_v16, 2  ;;  %v1088_v51 = vrot.slane %v1087_v4, 2  ;;  %v1116_v30 = vrot.slane %v1115_v23, 2  ;;  %v1176_v27 = vld [vmem:[#allocation3 + $0x868] sm:$0xff]  ;;  %v1178_v10 = vld [vmem:[#allocation3 + $0x878] sm:$0xff] }
 0x2ff   :  { %v949_v45 = vadd.f32 %v948_v41, %v947_v62  ;;  %v977_v24 = vadd.f32 %v976_v32, %v975_v20  ;;  %v1005_v39 = vadd.f32 %v1004_v42, %v1003_v17  ;;  %v1033_v14 = vadd.f32 %v1032_v59, %v1031_v31  ;;  %v1182_v20 = vld [vmem:[#allocation3 + $0xa78] sm:$0xff]  ;;  %v1184_v17 = vld [vmem:[#allocation3 + $0xc68] sm:$0xff] }
 0x300   :  { %v922_v0 = vrot.slane %v921_v11, 1  ;;  %v1061_v33 = vadd.f32 %v1060_v63, %v1059_v16  ;;  %v1089_v58 = vadd.f32 %v1088_v51, %v1087_v4  ;;  %v1117_v36 = vadd.f32 %v1116_v30, %v1115_v23  ;;  %v1186_v31 = vld [vmem:[#allocation3 + $0xc78] sm:$0xff]  ;;  %v1188_v52 = vld [vmem:[#allocation3 + $0xe68] sm:$0xff] }
 0x301   :  { %v950_v47 = vrot.slane %v949_v45, 1  ;;  %v978_v21 = vrot.slane %v977_v24, 1  ;;  %v1006_v6 = vrot.slane %v1005_v39, 1  ;;  %v1034_v28 = vrot.slane %v1033_v14, 1 }
 0x302   :  { %v923_v22 = vadd.f32 %v922_v0, %v921_v11  ;;  %v1062_v18 = vrot.slane %v1061_v33, 1  ;;  %v1090_v44 = vrot.slane %v1089_v58, 1  ;;  %v1118_v3 = vrot.slane %v1117_v36, 1 }
 0x303   :  { %v951_v50 = vadd.f32 %v950_v47, %v949_v45  ;;  %v979_v25 = vadd.f32 %v978_v21, %v977_v24  ;;  %v1007_v43 = vadd.f32 %v1006_v6, %v1005_v39  ;;  %v1035_v8 = vadd.f32 %v1034_v28, %v1033_v14 }
 0x304   :  { %v1063_v40 = vadd.f32 %v1062_v18, %v1061_v33  ;;  %v1091_v13 = vadd.f32 %v1090_v44, %v1089_v58  ;;  %v1119_v55 = vadd.f32 %v1118_v3, %v1117_v36  ;;  %v9661_v19 = vadd.f32 %v923_v22, %v9637_v48 }
 0x305   :  { %v9664_v12 = vadd.f32 %v951_v50, %v9640_v26  ;;  %v9667_v35 = vadd.f32 %v979_v25, %v9643_v34  ;;  %v9670_v49 = vadd.f32 %v1007_v43, %v9646_v53  ;;  %v9673_v15 = vadd.f32 %v1035_v8, %v9649_v29  ;;  %v1180_v34 = vld [vmem:[#allocation3 + $0xa68] sm:$0xff]  ;;  %v1190_v29 = vld [vmem:[#allocation3 + $0xe78] sm:$0xff] }
 0x306   :  { %v9676_v48 = vadd.f32 %v1063_v40, %v9652_v46  ;;  %v9679_v62 = vadd.f32 %v1091_v13, %v9655_v7  ;;  %v9682_v26 = vadd.f32 %v1119_v55, %v9658_v56  ;;  %v1193_v53 = vunpack.c.l.bf16 %v1160_v54 }
 0x307   :  { %v1197_v16 = vunpack.c.l.bf16 %v1162_v57  ;;  %v1201_v4 = vunpack.c.l.bf16 %v1164_v60  ;;  %v1205_v23 = vunpack.c.l.bf16 %v1166_v61  ;;  %v1209_v41 = vunpack.c.l.bf16 %v1168_v5 }
 0x308   :  { %v1213_v32 = vunpack.c.l.bf16 %v1170_v9  ;;  %v1217_v46 = vunpack.c.l.bf16 %v1172_v2  ;;  %v1221_v42 = vunpack.c.l.bf16 %v1174_v1  ;;  %v1225_v59 = vunpack.c.l.bf16 %v1176_v27 }
 0x309   :  { %v1229_v7 = vunpack.c.l.bf16 %v1178_v10  ;;  %v1233_v11 = vunpack.c.l.bf16 %v1180_v34  ;;  %v1237_v63 = vunpack.c.l.bf16 %v1182_v20  ;;  %v1241_v56 = vunpack.c.l.bf16 %v1184_v17 }
 0x30a   :  { %v1245_v51 = vunpack.c.l.bf16 %v1186_v31  ;;  %v1249_v30 = vunpack.c.l.bf16 %v1188_v52  ;;  %v1253_v45 = vunpack.c.l.bf16 %v1190_v29  ;;  %v1269_v24 = vadd.f32 %v1197_v16, %v1193_v53 }
 0x30b   :  { %v1297_v39 = vadd.f32 %v1205_v23, %v1201_v4  ;;  %v1325_v14 = vadd.f32 %v1213_v32, %v1209_v41  ;;  %v1353_v0 = vadd.f32 %v1221_v42, %v1217_v46  ;;  %v1381_v33 = vadd.f32 %v1229_v7, %v1225_v59 }
 0x30c   :  { %v1270_v58 = vrot.slane %v1269_v24, 4  ;;  %v1409_v36 = vadd.f32 %v1237_v63, %v1233_v11  ;;  %v1437_v47 = vadd.f32 %v1245_v51, %v1241_v56  ;;  %v1465_v21 = vadd.f32 %v1253_v45, %v1249_v30  ;;  %v1512_v63 = vld [vmem:[#allocation3 + $0x88] sm:$0xff] }
 0x30d   :  { %v1298_v6 = vrot.slane %v1297_v39, 4  ;;  %v1326_v28 = vrot.slane %v1325_v14, 4  ;;  %v1354_v22 = vrot.slane %v1353_v0, 4  ;;  %v1382_v18 = vrot.slane %v1381_v33, 4 }
 0x30e   :  { %v1271_v44 = vadd.f32 %v1270_v58, %v1269_v24  ;;  %v1410_v3 = vrot.slane %v1409_v36, 4  ;;  %v1438_v54 = vrot.slane %v1437_v47, 4  ;;  %v1466_v50 = vrot.slane %v1465_v21, 4  ;;  %v1514_v24 = vld [vmem:[#allocation3 + $0x98] sm:$0xff] }
 0x30f   :  { %v1299_v25 = vadd.f32 %v1298_v6, %v1297_v39  ;;  %v1327_v43 = vadd.f32 %v1326_v28, %v1325_v14  ;;  %v1355_v8 = vadd.f32 %v1354_v22, %v1353_v0  ;;  %v1383_v57 = vadd.f32 %v1382_v18, %v1381_v33  ;;  %v1516_v39 = vld [vmem:[#allocation3 + $0x288] sm:$0xff]  ;;  %v1518_v14 = vld [vmem:[#allocation3 + $0x298] sm:$0xff] }
 0x310   :  { %v1272_v60 = vrot.slane %v1271_v44, 2  ;;  %v1411_v61 = vadd.f32 %v1410_v3, %v1409_v36  ;;  %v1439_v40 = vadd.f32 %v1438_v54, %v1437_v47  ;;  %v1467_v13 = vadd.f32 %v1466_v50, %v1465_v21  ;;  %v1520_v47 = vld [vmem:[#allocation3 + $0x488] sm:$0xff]  ;;  %v1522_v21 = vld [vmem:[#allocation3 + $0x498] sm:$0xff] }
 0x311   :  { %v1300_v55 = vrot.slane %v1299_v25, 2  ;;  %v1328_v5 = vrot.slane %v1327_v43, 2  ;;  %v1356_v9 = vrot.slane %v1355_v8, 2  ;;  %v1384_v2 = vrot.slane %v1383_v57, 2  ;;  %v1524_v6 = vld [vmem:[#allocation3 + $0x688] sm:$0xff]  ;;  %v1526_v3 = vld [vmem:[#allocation3 + $0x698] sm:$0xff] }
 0x312   :  { %v1273_v1 = vadd.f32 %v1272_v60, %v1271_v44  ;;  %v1412_v27 = vrot.slane %v1411_v61, 2  ;;  %v1440_v10 = vrot.slane %v1439_v40, 2  ;;  %v1468_v34 = vrot.slane %v1467_v13, 2  ;;  %v1528_v54 = vld [vmem:[#allocation3 + $0x888] sm:$0xff]  ;;  %v1530_v50 = vld [vmem:[#allocation3 + $0x898] sm:$0xff] }
 0x313   :  { %v1301_v20 = vadd.f32 %v1300_v55, %v1299_v25  ;;  %v1329_v17 = vadd.f32 %v1328_v5, %v1327_v43  ;;  %v1357_v53 = vadd.f32 %v1356_v9, %v1355_v8  ;;  %v1385_v31 = vadd.f32 %v1384_v2, %v1383_v57  ;;  %v1534_v43 = vld [vmem:[#allocation3 + $0xa98] sm:$0xff]  ;;  %v1536_v8 = vld [vmem:[#allocation3 + $0xc88] sm:$0xff] }
 0x314   :  { %v1274_v52 = vrot.slane %v1273_v1, 1  ;;  %v1413_v29 = vadd.f32 %v1412_v27, %v1411_v61  ;;  %v1441_v16 = vadd.f32 %v1440_v10, %v1439_v40  ;;  %v1469_v4 = vadd.f32 %v1468_v34, %v1467_v13  ;;  %v1538_v57 = vld [vmem:[#allocation3 + $0xc98] sm:$0xff]  ;;  %v1540_v60 = vld [vmem:[#allocation3 + $0xe88] sm:$0xff] }
 0x315   :  { %v1302_v23 = vrot.slane %v1301_v20, 1  ;;  %v1330_v41 = vrot.slane %v1329_v17, 1  ;;  %v1358_v32 = vrot.slane %v1357_v53, 1  ;;  %v1386_v46 = vrot.slane %v1385_v31, 1 }
 0x316   :  { %v1275_v42 = vadd.f32 %v1274_v52, %v1273_v1  ;;  %v1414_v59 = vrot.slane %v1413_v29, 1  ;;  %v1442_v7 = vrot.slane %v1441_v16, 1  ;;  %v1470_v11 = vrot.slane %v1469_v4, 1 }
 0x317   :  { %v1303_v56 = vadd.f32 %v1302_v23, %v1301_v20  ;;  %v1331_v51 = vadd.f32 %v1330_v41, %v1329_v17  ;;  %v1359_v30 = vadd.f32 %v1358_v32, %v1357_v53  ;;  %v1387_v45 = vadd.f32 %v1386_v46, %v1385_v31 }
 0x318   :  { %v1415_v0 = vadd.f32 %v1414_v59, %v1413_v29  ;;  %v1443_v33 = vadd.f32 %v1442_v7, %v1441_v16  ;;  %v1471_v58 = vadd.f32 %v1470_v11, %v1469_v4  ;;  %v9685_v36 = vadd.f32 %v1275_v42, %v9661_v19 }
 0x319   :  { %v9688_v28 = vadd.f32 %v1303_v56, %v9664_v12  ;;  %v9691_v22 = vadd.f32 %v1331_v51, %v9667_v35  ;;  %v9694_v18 = vadd.f32 %v1359_v30, %v9670_v49  ;;  %v9697_v44 = vadd.f32 %v1387_v45, %v9673_v15  ;;  %v1532_v35 = vld [vmem:[#allocation3 + $0xa88] sm:$0xff]  ;;  %v1542_v15 = vld [vmem:[#allocation3 + $0xe98] sm:$0xff] }
 0x31a   :  { %v9700_v19 = vadd.f32 %v1415_v0, %v9676_v48  ;;  %v9703_v25 = vadd.f32 %v1443_v33, %v9679_v62  ;;  %v9706_v12 = vadd.f32 %v1471_v58, %v9682_v26  ;;  %v1545_v49 = vunpack.c.l.bf16 %v1512_v63 }
 0x31b   :  { %v1549_v61 = vunpack.c.l.bf16 %v1514_v24  ;;  %v1553_v40 = vunpack.c.l.bf16 %v1516_v39  ;;  %v1557_v13 = vunpack.c.l.bf16 %v1518_v14  ;;  %v1561_v55 = vunpack.c.l.bf16 %v1520_v47 }
 0x31c   :  { %v1565_v5 = vunpack.c.l.bf16 %v1522_v21  ;;  %v1569_v48 = vunpack.c.l.bf16 %v1524_v6  ;;  %v1573_v9 = vunpack.c.l.bf16 %v1526_v3  ;;  %v1577_v2 = vunpack.c.l.bf16 %v1528_v54 }
 0x31d   :  { %v1581_v62 = vunpack.c.l.bf16 %v1530_v50  ;;  %v1585_v1 = vunpack.c.l.bf16 %v1532_v35  ;;  %v1589_v27 = vunpack.c.l.bf16 %v1534_v43  ;;  %v1593_v26 = vunpack.c.l.bf16 %v1536_v8 }
 0x31e   :  { %v1597_v10 = vunpack.c.l.bf16 %v1538_v57  ;;  %v1601_v34 = vunpack.c.l.bf16 %v1540_v60  ;;  %v1605_v20 = vunpack.c.l.bf16 %v1542_v15  ;;  %v1621_v17 = vadd.f32 %v1549_v61, %v1545_v49 }
 0x31f   :  { %v1649_v53 = vadd.f32 %v1557_v13, %v1553_v40  ;;  %v1677_v31 = vadd.f32 %v1565_v5, %v1561_v55  ;;  %v1705_v52 = vadd.f32 %v1573_v9, %v1569_v48  ;;  %v1733_v29 = vadd.f32 %v1581_v62, %v1577_v2 }
 0x320   :  { %v1622_v16 = vrot.slane %v1621_v17, 4  ;;  %v1761_v4 = vadd.f32 %v1589_v27, %v1585_v1  ;;  %v1789_v23 = vadd.f32 %v1597_v10, %v1593_v26  ;;  %v1817_v41 = vadd.f32 %v1605_v20, %v1601_v34  ;;  %v1864_v27 = vld [vmem:[#allocation3 + $0xa8] sm:$0xff] }
 0x321   :  { %v1650_v32 = vrot.slane %v1649_v53, 4  ;;  %v1678_v46 = vrot.slane %v1677_v31, 4  ;;  %v1706_v42 = vrot.slane %v1705_v52, 4  ;;  %v1734_v59 = vrot.slane %v1733_v29, 4 }
 0x322   :  { %v1623_v7 = vadd.f32 %v1622_v16, %v1621_v17  ;;  %v1762_v11 = vrot.slane %v1761_v4, 4  ;;  %v1790_v63 = vrot.slane %v1789_v23, 4  ;;  %v1818_v56 = vrot.slane %v1817_v41, 4  ;;  %v1866_v17 = vld [vmem:[#allocation3 + $0xb8] sm:$0xff] }
 0x323   :  { %v1651_v51 = vadd.f32 %v1650_v32, %v1649_v53  ;;  %v1679_v30 = vadd.f32 %v1678_v46, %v1677_v31  ;;  %v1707_v45 = vadd.f32 %v1706_v42, %v1705_v52  ;;  %v1735_v24 = vadd.f32 %v1734_v59, %v1733_v29  ;;  %v1868_v53 = vld [vmem:[#allocation3 + $0x2a8] sm:$0xff]  ;;  %v1870_v31 = vld [vmem:[#allocation3 + $0x2b8] sm:$0xff] }
 0x324   :  { %v1624_v39 = vrot.slane %v1623_v7, 2  ;;  %v1763_v14 = vadd.f32 %v1762_v11, %v1761_v4  ;;  %v1791_v0 = vadd.f32 %v1790_v63, %v1789_v23  ;;  %v1819_v33 = vadd.f32 %v1818_v56, %v1817_v41  ;;  %v1872_v23 = vld [vmem:[#allocation3 + $0x4a8] sm:$0xff]  ;;  %v1874_v41 = vld [vmem:[#allocation3 + $0x4b8] sm:$0xff] }
 0x325   :  { %v1652_v58 = vrot.slane %v1651_v51, 2  ;;  %v1680_v47 = vrot.slane %v1679_v30, 2  ;;  %v1708_v21 = vrot.slane %v1707_v45, 2  ;;  %v1736_v6 = vrot.slane %v1735_v24, 2  ;;  %v1876_v32 = vld [vmem:[#allocation3 + $0x6a8] sm:$0xff]  ;;  %v1878_v11 = vld [vmem:[#allocation3 + $0x6b8] sm:$0xff] }
 0x326   :  { %v1625_v3 = vadd.f32 %v1624_v39, %v1623_v7  ;;  %v1764_v54 = vrot.slane %v1763_v14, 2  ;;  %v1792_v50 = vrot.slane %v1791_v0, 2  ;;  %v1820_v35 = vrot.slane %v1819_v33, 2  ;;  %v1880_v63 = vld [vmem:[#allocation3 + $0x8a8] sm:$0xff]  ;;  %v1882_v56 = vld [vmem:[#allocation3 + $0x8b8] sm:$0xff] }
 0x327   :  { %v1653_v43 = vadd.f32 %v1652_v58, %v1651_v51  ;;  %v1681_v8 = vadd.f32 %v1680_v47, %v1679_v30  ;;  %v1709_v49 = vadd.f32 %v1708_v21, %v1707_v45  ;;  %v1737_v57 = vadd.f32 %v1736_v6, %v1735_v24  ;;  %v1886_v30 = vld [vmem:[#allocation3 + $0xab8] sm:$0xff]  ;;  %v1888_v45 = vld [vmem:[#allocation3 + $0xca8] sm:$0xff] }
 0x328   :  { %v1626_v60 = vrot.slane %v1625_v3, 1  ;;  %v1765_v15 = vadd.f32 %v1764_v54, %v1763_v14  ;;  %v1793_v61 = vadd.f32 %v1792_v50, %v1791_v0  ;;  %v1821_v40 = vadd.f32 %v1820_v35, %v1819_v33  ;;  %v1890_v24 = vld [vmem:[#allocation3 + $0xcb8] sm:$0xff]  ;;  %v1892_v39 = vld [vmem:[#allocation3 + $0xea8] sm:$0xff] }
 0x329   :  { %v1654_v13 = vrot.slane %v1653_v43, 1  ;;  %v1682_v55 = vrot.slane %v1681_v8, 1  ;;  %v1710_v5 = vrot.slane %v1709_v49, 1  ;;  %v1738_v48 = vrot.slane %v1737_v57, 1 }
 0x32a   :  { %v1627_v9 = vadd.f32 %v1626_v60, %v1625_v3  ;;  %v1766_v2 = vrot.slane %v1765_v15, 1  ;;  %v1794_v62 = vrot.slane %v1793_v61, 1  ;;  %v1822_v1 = vrot.slane %v1821_v40, 1 }
 0x32b   :  { %v1655_v26 = vadd.f32 %v1654_v13, %v1653_v43  ;;  %v1683_v10 = vadd.f32 %v1682_v55, %v1681_v8  ;;  %v1711_v34 = vadd.f32 %v1710_v5, %v1709_v49  ;;  %v1739_v20 = vadd.f32 %v1738_v48, %v1737_v57 }
 0x32c   :  { %v1767_v52 = vadd.f32 %v1766_v2, %v1765_v15  ;;  %v1795_v29 = vadd.f32 %v1794_v62, %v1793_v61  ;;  %v1823_v16 = vadd.f32 %v1822_v1, %v1821_v40  ;;  %v9709_v4 = vadd.f32 %v1627_v9, %v9685_v36 }
 0x32d   :  { %v9712_v46 = vadd.f32 %v1655_v26, %v9688_v28  ;;  %v9715_v42 = vadd.f32 %v1683_v10, %v9691_v22  ;;  %v9718_v59 = vadd.f32 %v1711_v34, %v9694_v18  ;;  %v9721_v7 = vadd.f32 %v1739_v20, %v9697_v44  ;;  %v1884_v22 = vld [vmem:[#allocation3 + $0xaa8] sm:$0xff]  ;;  %v1894_v44 = vld [vmem:[#allocation3 + $0xeb8] sm:$0xff] }
 0x32e   :  { %v9724_v36 = vadd.f32 %v1767_v52, %v9700_v19  ;;  %v9727_v51 = vadd.f32 %v1795_v29, %v9703_v25  ;;  %v9730_v28 = vadd.f32 %v1823_v16, %v9706_v12  ;;  %v1897_v18 = vunpack.c.l.bf16 %v1864_v27 }
 0x32f   :  { %v1901_v14 = vunpack.c.l.bf16 %v1866_v17  ;;  %v1905_v0 = vunpack.c.l.bf16 %v1868_v53  ;;  %v1909_v33 = vunpack.c.l.bf16 %v1870_v31  ;;  %v1913_v58 = vunpack.c.l.bf16 %v1872_v23 }
 0x330   :  { %v1917_v47 = vunpack.c.l.bf16 %v1874_v41  ;;  %v1921_v19 = vunpack.c.l.bf16 %v1876_v32  ;;  %v1925_v21 = vunpack.c.l.bf16 %v1878_v11  ;;  %v1929_v6 = vunpack.c.l.bf16 %v1880_v63 }
 0x331   :  { %v1933_v25 = vunpack.c.l.bf16 %v1882_v56  ;;  %v1937_v3 = vunpack.c.l.bf16 %v1884_v22  ;;  %v1941_v54 = vunpack.c.l.bf16 %v1886_v30  ;;  %v1945_v12 = vunpack.c.l.bf16 %v1888_v45 }
 0x332   :  { %v1949_v50 = vunpack.c.l.bf16 %v1890_v24  ;;  %v1953_v35 = vunpack.c.l.bf16 %v1892_v39  ;;  %v1957_v43 = vunpack.c.l.bf16 %v1894_v44  ;;  %v1973_v8 = vadd.f32 %v1901_v14, %v1897_v18 }
 0x333   :  { %v2001_v49 = vadd.f32 %v1909_v33, %v1905_v0  ;;  %v2029_v57 = vadd.f32 %v1917_v47, %v1913_v58  ;;  %v2057_v60 = vadd.f32 %v1925_v21, %v1921_v19  ;;  %v2085_v15 = vadd.f32 %v1933_v25, %v1929_v6 }
 0x334   :  { %v1974_v61 = vrot.slane %v1973_v8, 4  ;;  %v2113_v40 = vadd.f32 %v1941_v54, %v1937_v3  ;;  %v2141_v13 = vadd.f32 %v1949_v50, %v1945_v12  ;;  %v2169_v55 = vadd.f32 %v1957_v43, %v1953_v35  ;;  %v2216_v54 = vld [vmem:[#allocation3 + $0xc8] sm:$0xff] }
 0x335   :  { %v2002_v5 = vrot.slane %v2001_v49, 4  ;;  %v2030_v48 = vrot.slane %v2029_v57, 4  ;;  %v2058_v9 = vrot.slane %v2057_v60, 4  ;;  %v2086_v2 = vrot.slane %v2085_v15, 4 }
 0x336   :  { %v1975_v62 = vadd.f32 %v1974_v61, %v1973_v8  ;;  %v2114_v1 = vrot.slane %v2113_v40, 4  ;;  %v2142_v27 = vrot.slane %v2141_v13, 4  ;;  %v2170_v26 = vrot.slane %v2169_v55, 4  ;;  %v2218_v8 = vld [vmem:[#allocation3 + $0xd8] sm:$0xff] }
 0x337   :  { %v2003_v10 = vadd.f32 %v2002_v5, %v2001_v49  ;;  %v2031_v34 = vadd.f32 %v2030_v48, %v2029_v57  ;;  %v2059_v20 = vadd.f32 %v2058_v9, %v2057_v60  ;;  %v2087_v17 = vadd.f32 %v2086_v2, %v2085_v15  ;;  %v2220_v49 = vld [vmem:[#allocation3 + $0x2c8] sm:$0xff]  ;;  %v2222_v57 = vld [vmem:[#allocation3 + $0x2d8] sm:$0xff] }
 0x338   :  { %v1976_v53 = vrot.slane %v1975_v62, 2  ;;  %v2115_v31 = vadd.f32 %v2114_v1, %v2113_v40  ;;  %v2143_v52 = vadd.f32 %v2142_v27, %v2141_v13  ;;  %v2171_v29 = vadd.f32 %v2170_v26, %v2169_v55  ;;  %v2224_v13 = vld [vmem:[#allocation3 + $0x4c8] sm:$0xff]  ;;  %v2226_v55 = vld [vmem:[#allocation3 + $0x4d8] sm:$0xff] }
 0x339   :  { %v2004_v16 = vrot.slane %v2003_v10, 2  ;;  %v2032_v23 = vrot.slane %v2031_v34, 2  ;;  %v2060_v41 = vrot.slane %v2059_v20, 2  ;;  %v2088_v32 = vrot.slane %v2087_v17, 2  ;;  %v2228_v5 = vld [vmem:[#allocation3 + $0x6c8] sm:$0xff]  ;;  %v2230_v1 = vld [vmem:[#allocation3 + $0x6d8] sm:$0xff] }
 0x33a   :  { %v1977_v11 = vadd.f32 %v1976_v53, %v1975_v62  ;;  %v2116_v63 = vrot.slane %v2115_v31, 2  ;;  %v2144_v56 = vrot.slane %v2143_v52, 2  ;;  %v2172_v22 = vrot.slane %v2171_v29, 2  ;;  %v2232_v27 = vld [vmem:[#allocation3 + $0x8c8] sm:$0xff]  ;;  %v2234_v26 = vld [vmem:[#allocation3 + $0x8d8] sm:$0xff] }
 0x33b   :  { %v2005_v30 = vadd.f32 %v2004_v16, %v2003_v10  ;;  %v2033_v45 = vadd.f32 %v2032_v23, %v2031_v34  ;;  %v2061_v18 = vadd.f32 %v2060_v41, %v2059_v20  ;;  %v2089_v24 = vadd.f32 %v2088_v32, %v2087_v17  ;;  %v2238_v34 = vld [vmem:[#allocation3 + $0xad8] sm:$0xff]  ;;  %v2240_v20 = vld [vmem:[#allocation3 + $0xcc8] sm:$0xff] }
 0x33c   :  { %v1978_v39 = vrot.slane %v1977_v11, 1  ;;  %v2117_v44 = vadd.f32 %v2116_v63, %v2115_v31  ;;  %v2145_v14 = vadd.f32 %v2144_v56, %v2143_v52  ;;  %v2173_v0 = vadd.f32 %v2172_v22, %v2171_v29  ;;  %v2242_v17 = vld [vmem:[#allocation3 + $0xcd8] sm:$0xff]  ;;  %v2244_v53 = vld [vmem:[#allocation3 + $0xec8] sm:$0xff] }
 0x33d   :  { %v2006_v33 = vrot.slane %v2005_v30, 1  ;;  %v2034_v58 = vrot.slane %v2033_v45, 1  ;;  %v2062_v47 = vrot.slane %v2061_v18, 1  ;;  %v2090_v19 = vrot.slane %v2089_v24, 1 }
 0x33e   :  { %v1979_v21 = vadd.f32 %v1978_v39, %v1977_v11  ;;  %v2118_v6 = vrot.slane %v2117_v44, 1  ;;  %v2146_v25 = vrot.slane %v2145_v14, 1  ;;  %v2174_v3 = vrot.slane %v2173_v0, 1 }
 0x33f   :  { %v2007_v12 = vadd.f32 %v2006_v33, %v2005_v30  ;;  %v2035_v50 = vadd.f32 %v2034_v58, %v2033_v45  ;;  %v2063_v35 = vadd.f32 %v2062_v47, %v2061_v18  ;;  %v2091_v43 = vadd.f32 %v2090_v19, %v2089_v24 }
 0x340   :  { %v2119_v60 = vadd.f32 %v2118_v6, %v2117_v44  ;;  %v2147_v15 = vadd.f32 %v2146_v25, %v2145_v14  ;;  %v2175_v61 = vadd.f32 %v2174_v3, %v2173_v0  ;;  %v9733_v40 = vadd.f32 %v1979_v21, %v9709_v4 }
 0x341   :  { %v9736_v48 = vadd.f32 %v2007_v12, %v9712_v46  ;;  %v9739_v9 = vadd.f32 %v2035_v50, %v9715_v42  ;;  %v9742_v2 = vadd.f32 %v2063_v35, %v9718_v59  ;;  %v9745_v62 = vadd.f32 %v2091_v43, %v9721_v7  ;;  %v2236_v42 = vld [vmem:[#allocation3 + $0xac8] sm:$0xff]  ;;  %v2246_v7 = vld [vmem:[#allocation3 + $0xed8] sm:$0xff] }
 0x342   :  { %v9748_v4 = vadd.f32 %v2119_v60, %v9724_v36  ;;  %v9751_v10 = vadd.f32 %v2147_v15, %v9727_v51  ;;  %v9754_v46 = vadd.f32 %v2175_v61, %v9730_v28  ;;  %v2249_v59 = vunpack.c.l.bf16 %v2216_v54 }
 0x343   :  { %v2253_v31 = vunpack.c.l.bf16 %v2218_v8  ;;  %v2257_v52 = vunpack.c.l.bf16 %v2220_v49  ;;  %v2261_v29 = vunpack.c.l.bf16 %v2222_v57  ;;  %v2265_v16 = vunpack.c.l.bf16 %v2224_v13 }
 0x344   :  { %v2269_v23 = vunpack.c.l.bf16 %v2226_v55  ;;  %v2273_v36 = vunpack.c.l.bf16 %v2228_v5  ;;  %v2277_v41 = vunpack.c.l.bf16 %v2230_v1  ;;  %v2281_v32 = vunpack.c.l.bf16 %v2232_v27 }
 0x345   :  { %v2285_v51 = vunpack.c.l.bf16 %v2234_v26  ;;  %v2289_v11 = vunpack.c.l.bf16 %v2236_v42  ;;  %v2293_v63 = vunpack.c.l.bf16 %v2238_v34  ;;  %v2297_v28 = vunpack.c.l.bf16 %v2240_v20 }
 0x346   :  { %v2301_v56 = vunpack.c.l.bf16 %v2242_v17  ;;  %v2305_v22 = vunpack.c.l.bf16 %v2244_v53  ;;  %v2309_v30 = vunpack.c.l.bf16 %v2246_v7  ;;  %v2325_v45 = vadd.f32 %v2253_v31, %v2249_v59 }
 0x347   :  { %v2353_v18 = vadd.f32 %v2261_v29, %v2257_v52  ;;  %v2381_v24 = vadd.f32 %v2269_v23, %v2265_v16  ;;  %v2409_v39 = vadd.f32 %v2277_v41, %v2273_v36  ;;  %v2437_v44 = vadd.f32 %v2285_v51, %v2281_v32 }
 0x348   :  { %v2326_v14 = vrot.slane %v2325_v45, 4  ;;  %v2465_v0 = vadd.f32 %v2293_v63, %v2289_v11  ;;  %v2493_v33 = vadd.f32 %v2301_v56, %v2297_v28  ;;  %v2521_v58 = vadd.f32 %v2309_v30, %v2305_v22  ;;  %v2568_v63 = vld [vmem:[#allocation3 + $0xe8] sm:$0xff] }
 0x349   :  { %v2354_v47 = vrot.slane %v2353_v18, 4  ;;  %v2382_v19 = vrot.slane %v2381_v24, 4  ;;  %v2410_v21 = vrot.slane %v2409_v39, 4  ;;  %v2438_v6 = vrot.slane %v2437_v44, 4 }
 0x34a   :  { %v2327_v25 = vadd.f32 %v2326_v14, %v2325_v45  ;;  %v2466_v3 = vrot.slane %v2465_v0, 4  ;;  %v2494_v54 = vrot.slane %v2493_v33, 4  ;;  %v2522_v12 = vrot.slane %v2521_v58, 4  ;;  %v2570_v45 = vld [vmem:[#allocation3 + $0xf8] sm:$0xff] }
 0x34b   :  { %v2355_v50 = vadd.f32 %v2354_v47, %v2353_v18  ;;  %v2383_v35 = vadd.f32 %v2382_v19, %v2381_v24  ;;  %v2411_v43 = vadd.f32 %v2410_v21, %v2409_v39  ;;  %v2439_v8 = vadd.f32 %v2438_v6, %v2437_v44  ;;  %v2572_v18 = vld [vmem:[#allocation3 + $0x2e8] sm:$0xff]  ;;  %v2574_v24 = vld [vmem:[#allocation3 + $0x2f8] sm:$0xff] }
 0x34c   :  { %v2328_v49 = vrot.slane %v2327_v25, 2  ;;  %v2467_v57 = vadd.f32 %v2466_v3, %v2465_v0  ;;  %v2495_v60 = vadd.f32 %v2494_v54, %v2493_v33  ;;  %v2523_v15 = vadd.f32 %v2522_v12, %v2521_v58  ;;  %v2576_v33 = vld [vmem:[#allocation3 + $0x4e8] sm:$0xff]  ;;  %v2578_v58 = vld [vmem:[#allocation3 + $0x4f8] sm:$0xff] }
 0x34d   :  { %v2356_v61 = vrot.slane %v2355_v50, 2  ;;  %v2384_v13 = vrot.slane %v2383_v35, 2  ;;  %v2412_v55 = vrot.slane %v2411_v43, 2  ;;  %v2440_v5 = vrot.slane %v2439_v8, 2  ;;  %v2580_v47 = vld [vmem:[#allocation3 + $0x6e8] sm:$0xff]  ;;  %v2582_v3 = vld [vmem:[#allocation3 + $0x6f8] sm:$0xff] }
 0x34e   :  { %v2329_v1 = vadd.f32 %v2328_v49, %v2327_v25  ;;  %v2468_v27 = vrot.slane %v2467_v57, 2  ;;  %v2496_v26 = vrot.slane %v2495_v60, 2  ;;  %v2524_v42 = vrot.slane %v2523_v15, 2  ;;  %v2584_v54 = vld [vmem:[#allocation3 + $0x8e8] sm:$0xff]  ;;  %v2586_v12 = vld [vmem:[#allocation3 + $0x8f8] sm:$0xff] }
 0x34f   :  { %v2357_v34 = vadd.f32 %v2356_v61, %v2355_v50  ;;  %v2385_v20 = vadd.f32 %v2384_v13, %v2383_v35  ;;  %v2413_v59 = vadd.f32 %v2412_v55, %v2411_v43  ;;  %v2441_v17 = vadd.f32 %v2440_v5, %v2439_v8  ;;  %v2590_v35 = vld [vmem:[#allocation3 + $0xaf8] sm:$0xff]  ;;  %v2592_v43 = vld [vmem:[#allocation3 + $0xce8] sm:$0xff] }
 0x350   :  { %v2330_v53 = vrot.slane %v2329_v1, 1  ;;  %v2469_v7 = vadd.f32 %v2468_v27, %v2467_v57  ;;  %v2497_v31 = vadd.f32 %v2496_v26, %v2495_v60  ;;  %v2525_v52 = vadd.f32 %v2524_v42, %v2523_v15  ;;  %v2594_v8 = vld [vmem:[#allocation3 + $0xcf8] sm:$0xff]  ;;  %v2596_v49 = vld [vmem:[#allocation3 + $0xee8] sm:$0xff] }
 0x351   :  { %v2358_v29 = vrot.slane %v2357_v34, 1  ;;  %v2386_v16 = vrot.slane %v2385_v20, 1  ;;  %v2414_v23 = vrot.slane %v2413_v59, 1  ;;  %v2442_v36 = vrot.slane %v2441_v17, 1 }
 0x352   :  { %v2331_v41 = vadd.f32 %v2330_v53, %v2329_v1  ;;  %v2470_v32 = vrot.slane %v2469_v7, 1  ;;  %v2498_v51 = vrot.slane %v2497_v31, 1  ;;  %v2526_v11 = vrot.slane %v2525_v52, 1 }
 0x353   :  { %v2359_v28 = vadd.f32 %v2358_v29, %v2357_v34  ;;  %v2387_v56 = vadd.f32 %v2386_v16, %v2385_v20  ;;  %v2415_v22 = vadd.f32 %v2414_v23, %v2413_v59  ;;  %v2443_v30 = vadd.f32 %v2442_v36, %v2441_v17 }
 0x354   :  { %v2471_v39 = vadd.f32 %v2470_v32, %v2469_v7  ;;  %v2499_v44 = vadd.f32 %v2498_v51, %v2497_v31  ;;  %v2527_v14 = vadd.f32 %v2526_v11, %v2525_v52  ;;  %v9757_v0 = vadd.f32 %v2331_v41, %v9733_v40 }
 0x355   :  { %v9760_v19 = vadd.f32 %v2359_v28, %v9736_v48  ;;  %v9763_v21 = vadd.f32 %v2387_v56, %v9739_v9  ;;  %v9766_v6 = vadd.f32 %v2415_v22, %v9742_v2  ;;  %v9769_v25 = vadd.f32 %v2443_v30, %v9745_v62  ;;  %v2588_v9 = vld [vmem:[#allocation3 + $0xae8] sm:$0xff]  ;;  %v2598_v62 = vld [vmem:[#allocation3 + $0xef8] sm:$0xff] }
 0x356   :  { %v9772_v40 = vadd.f32 %v2471_v39, %v9748_v4  ;;  %v9775_v50 = vadd.f32 %v2499_v44, %v9751_v10  ;;  %v9778_v48 = vadd.f32 %v2527_v14, %v9754_v46  ;;  %v2601_v2 = vunpack.c.l.bf16 %v2568_v63 }
 0x357   :  { %v2605_v57 = vunpack.c.l.bf16 %v2570_v45  ;;  %v2609_v60 = vunpack.c.l.bf16 %v2572_v18  ;;  %v2613_v15 = vunpack.c.l.bf16 %v2574_v24  ;;  %v2617_v61 = vunpack.c.l.bf16 %v2576_v33 }
 0x358   :  { %v2621_v13 = vunpack.c.l.bf16 %v2578_v58  ;;  %v2625_v4 = vunpack.c.l.bf16 %v2580_v47  ;;  %v2629_v55 = vunpack.c.l.bf16 %v2582_v3  ;;  %v2633_v5 = vunpack.c.l.bf16 %v2584_v54 }
 0x359   :  { %v2637_v10 = vunpack.c.l.bf16 %v2586_v12  ;;  %v2641_v1 = vunpack.c.l.bf16 %v2588_v9  ;;  %v2645_v27 = vunpack.c.l.bf16 %v2590_v35  ;;  %v2649_v46 = vunpack.c.l.bf16 %v2592_v43 }
 0x35a   :  { %v2653_v26 = vunpack.c.l.bf16 %v2594_v8  ;;  %v2657_v42 = vunpack.c.l.bf16 %v2596_v49  ;;  %v2661_v34 = vunpack.c.l.bf16 %v2598_v62  ;;  %v2677_v20 = vadd.f32 %v2605_v57, %v2601_v2 }
 0x35b   :  { %v2705_v59 = vadd.f32 %v2613_v15, %v2609_v60  ;;  %v2733_v17 = vadd.f32 %v2621_v13, %v2617_v61  ;;  %v2761_v53 = vadd.f32 %v2629_v55, %v2625_v4  ;;  %v2789_v7 = vadd.f32 %v2637_v10, %v2633_v5 }
 0x35c   :  { %v2678_v31 = vrot.slane %v2677_v20, 4  ;;  %v2817_v52 = vadd.f32 %v2645_v27, %v2641_v1  ;;  %v2845_v29 = vadd.f32 %v2653_v26, %v2649_v46  ;;  %v2873_v16 = vadd.f32 %v2661_v34, %v2657_v42  ;;  %v2920_v27 = vld [vmem:[#allocation3 + $0x108] sm:$0xff] }
 0x35d   :  { %v2706_v23 = vrot.slane %v2705_v59, 4  ;;  %v2734_v36 = vrot.slane %v2733_v17, 4  ;;  %v2762_v41 = vrot.slane %v2761_v53, 4  ;;  %v2790_v32 = vrot.slane %v2789_v7, 4 }
 0x35e   :  { %v2679_v51 = vadd.f32 %v2678_v31, %v2677_v20  ;;  %v2818_v11 = vrot.slane %v2817_v52, 4  ;;  %v2846_v63 = vrot.slane %v2845_v29, 4  ;;  %v2874_v28 = vrot.slane %v2873_v16, 4  ;;  %v2922_v20 = vld [vmem:[#allocation3 + $0x118] sm:$0xff] }
 0x35f   :  { %v2707_v56 = vadd.f32 %v2706_v23, %v2705_v59  ;;  %v2735_v22 = vadd.f32 %v2734_v36, %v2733_v17  ;;  %v2763_v30 = vadd.f32 %v2762_v41, %v2761_v53  ;;  %v2791_v45 = vadd.f32 %v2790_v32, %v2789_v7  ;;  %v2924_v59 = vld [vmem:[#allocation3 + $0x308] sm:$0xff]  ;;  %v2926_v17 = vld [vmem:[#allocation3 + $0x318] sm:$0xff] }
 0x360   :  { %v2680_v18 = vrot.slane %v2679_v51, 2  ;;  %v2819_v24 = vadd.f32 %v2818_v11, %v2817_v52  ;;  %v2847_v39 = vadd.f32 %v2846_v63, %v2845_v29  ;;  %v2875_v44 = vadd.f32 %v2874_v28, %v2873_v16  ;;  %v2928_v29 = vld [vmem:[#allocation3 + $0x508] sm:$0xff]  ;;  %v2930_v16 = vld [vmem:[#allocation3 + $0x518] sm:$0xff] }
 0x361   :  { %v2708_v14 = vrot.slane %v2707_v56, 2  ;;  %v2736_v33 = vrot.slane %v2735_v22, 2  ;;  %v2764_v58 = vrot.slane %v2763_v30, 2  ;;  %v2792_v47 = vrot.slane %v2791_v45, 2  ;;  %v2932_v23 = vld [vmem:[#allocation3 + $0x708] sm:$0xff]  ;;  %v2934_v11 = vld [vmem:[#allocation3 + $0x718] sm:$0xff] }
 0x362   :  { %v2681_v3 = vadd.f32 %v2680_v18, %v2679_v51  ;;  %v2820_v54 = vrot.slane %v2819_v24, 2  ;;  %v2848_v12 = vrot.slane %v2847_v39, 2  ;;  %v2876_v9 = vrot.slane %v2875_v44, 2  ;;  %v2936_v63 = vld [vmem:[#allocation3 + $0x908] sm:$0xff]  ;;  %v2938_v28 = vld [vmem:[#allocation3 + $0x918] sm:$0xff] }
 0x363   :  { %v2709_v35 = vadd.f32 %v2708_v14, %v2707_v56  ;;  %v2737_v43 = vadd.f32 %v2736_v33, %v2735_v22  ;;  %v2765_v2 = vadd.f32 %v2764_v58, %v2763_v30  ;;  %v2793_v8 = vadd.f32 %v2792_v47, %v2791_v45  ;;  %v2942_v22 = vld [vmem:[#allocation3 + $0xb18] sm:$0xff]  ;;  %v2944_v30 = vld [vmem:[#allocation3 + $0xd08] sm:$0xff] }
 0x364   :  { %v2682_v49 = vrot.slane %v2681_v3, 1  ;;  %v2821_v62 = vadd.f32 %v2820_v54, %v2819_v24  ;;  %v2849_v57 = vadd.f32 %v2848_v12, %v2847_v39  ;;  %v2877_v60 = vadd.f32 %v2876_v9, %v2875_v44  ;;  %v2946_v45 = vld [vmem:[#allocation3 + $0xd18] sm:$0xff]  ;;  %v2948_v18 = vld [vmem:[#allocation3 + $0xf08] sm:$0xff] }
 0x365   :  { %v2710_v15 = vrot.slane %v2709_v35, 1  ;;  %v2738_v61 = vrot.slane %v2737_v43, 1  ;;  %v2766_v13 = vrot.slane %v2765_v2, 1  ;;  %v2794_v4 = vrot.slane %v2793_v8, 1 }
 0x366   :  { %v2683_v55 = vadd.f32 %v2682_v49, %v2681_v3  ;;  %v2822_v5 = vrot.slane %v2821_v62, 1  ;;  %v2850_v10 = vrot.slane %v2849_v57, 1  ;;  %v2878_v1 = vrot.slane %v2877_v60, 1 }
 0x367   :  { %v2711_v46 = vadd.f32 %v2710_v15, %v2709_v35  ;;  %v2739_v26 = vadd.f32 %v2738_v61, %v2737_v43  ;;  %v2767_v42 = vadd.f32 %v2766_v13, %v2765_v2  ;;  %v2795_v34 = vadd.f32 %v2794_v4, %v2793_v8 }
 0x368   :  { %v2823_v53 = vadd.f32 %v2822_v5, %v2821_v62  ;;  %v2851_v7 = vadd.f32 %v2850_v10, %v2849_v57  ;;  %v2879_v31 = vadd.f32 %v2878_v1, %v2877_v60  ;;  %v9781_v52 = vadd.f32 %v2683_v55, %v9757_v0 }
 0x369   :  { %v9784_v36 = vadd.f32 %v2711_v46, %v9760_v19  ;;  %v9787_v41 = vadd.f32 %v2739_v26, %v9763_v21  ;;  %v9790_v32 = vadd.f32 %v2767_v42, %v9766_v6  ;;  %v9793_v51 = vadd.f32 %v2795_v34, %v9769_v25  ;;  %v2940_v21 = vld [vmem:[#allocation3 + $0xb08] sm:$0xff]  ;;  %v2950_v25 = vld [vmem:[#allocation3 + $0xf18] sm:$0xff] }
 0x36a   :  { %v9796_v0 = vadd.f32 %v2823_v53, %v9772_v40  ;;  %v9799_v56 = vadd.f32 %v2851_v7, %v9775_v50  ;;  %v9802_v19 = vadd.f32 %v2879_v31, %v9778_v48  ;;  %v2953_v6 = vunpack.c.l.bf16 %v2920_v27 }
 0x36b   :  { %v2957_v24 = vunpack.c.l.bf16 %v2922_v20  ;;  %v2961_v39 = vunpack.c.l.bf16 %v2924_v59  ;;  %v2965_v44 = vunpack.c.l.bf16 %v2926_v17  ;;  %v2969_v14 = vunpack.c.l.bf16 %v2928_v29 }
 0x36c   :  { %v2973_v33 = vunpack.c.l.bf16 %v2930_v16  ;;  %v2977_v40 = vunpack.c.l.bf16 %v2932_v23  ;;  %v2981_v58 = vunpack.c.l.bf16 %v2934_v11  ;;  %v2985_v47 = vunpack.c.l.bf16 %v2936_v63 }
 0x36d   :  { %v2989_v50 = vunpack.c.l.bf16 %v2938_v28  ;;  %v2993_v3 = vunpack.c.l.bf16 %v2940_v21  ;;  %v2997_v54 = vunpack.c.l.bf16 %v2942_v22  ;;  %v3001_v48 = vunpack.c.l.bf16 %v2944_v30 }
 0x36e   :  { %v3005_v12 = vunpack.c.l.bf16 %v2946_v45  ;;  %v3009_v9 = vunpack.c.l.bf16 %v2948_v18  ;;  %v3013_v35 = vunpack.c.l.bf16 %v2950_v25  ;;  %v3029_v43 = vadd.f32 %v2957_v24, %v2953_v6 }
 0x36f   :  { %v3057_v2 = vadd.f32 %v2965_v44, %v2961_v39  ;;  %v3085_v8 = vadd.f32 %v2973_v33, %v2969_v14  ;;  %v3113_v49 = vadd.f32 %v2981_v58, %v2977_v40  ;;  %v3141_v62 = vadd.f32 %v2989_v50, %v2985_v47 }
 0x370   :  { %v3030_v57 = vrot.slane %v3029_v43, 4  ;;  %v3169_v60 = vadd.f32 %v2997_v54, %v2993_v3  ;;  %v3197_v15 = vadd.f32 %v3005_v12, %v3001_v48  ;;  %v3225_v61 = vadd.f32 %v3013_v35, %v3009_v9  ;;  %v3272_v54 = vld [vmem:[#allocation3 + $0x128] sm:$0xff] }
 0x371   :  { %v3058_v13 = vrot.slane %v3057_v2, 4  ;;  %v3086_v4 = vrot.slane %v3085_v8, 4  ;;  %v3114_v55 = vrot.slane %v3113_v49, 4  ;;  %v3142_v5 = vrot.slane %v3141_v62, 4 }
 0x372   :  { %v3031_v10 = vadd.f32 %v3030_v57, %v3029_v43  ;;  %v3170_v1 = vrot.slane %v3169_v60, 4  ;;  %v3198_v27 = vrot.slane %v3197_v15, 4  ;;  %v3226_v46 = vrot.slane %v3225_v61, 4  ;;  %v3274_v43 = vld [vmem:[#allocation3 + $0x138] sm:$0xff] }
 0x373   :  { %v3059_v26 = vadd.f32 %v3058_v13, %v3057_v2  ;;  %v3087_v42 = vadd.f32 %v3086_v4, %v3085_v8  ;;  %v3115_v34 = vadd.f32 %v3114_v55, %v3113_v49  ;;  %v3143_v20 = vadd.f32 %v3142_v5, %v3141_v62  ;;  %v3276_v2 = vld [vmem:[#allocation3 + $0x328] sm:$0xff]  ;;  %v3278_v8 = vld [vmem:[#allocation3 + $0x338] sm:$0xff] }
 0x374   :  { %v3032_v59 = vrot.slane %v3031_v10, 2  ;;  %v3171_v17 = vadd.f32 %v3170_v1, %v3169_v60  ;;  %v3199_v53 = vadd.f32 %v3198_v27, %v3197_v15  ;;  %v3227_v7 = vadd.f32 %v3226_v46, %v3225_v61  ;;  %v3280_v15 = vld [vmem:[#allocation3 + $0x528] sm:$0xff]  ;;  %v3282_v61 = vld [vmem:[#allocation3 + $0x538] sm:$0xff] }
 0x375   :  { %v3060_v31 = vrot.slane %v3059_v26, 2  ;;  %v3088_v29 = vrot.slane %v3087_v42, 2  ;;  %v3116_v16 = vrot.slane %v3115_v34, 2  ;;  %v3144_v23 = vrot.slane %v3143_v20, 2  ;;  %v3284_v13 = vld [vmem:[#allocation3 + $0x728] sm:$0xff]  ;;  %v3286_v1 = vld [vmem:[#allocation3 + $0x738] sm:$0xff] }
 0x376   :  { %v3033_v11 = vadd.f32 %v3032_v59, %v3031_v10  ;;  %v3172_v63 = vrot.slane %v3171_v17, 2  ;;  %v3200_v28 = vrot.slane %v3199_v53, 2  ;;  %v3228_v21 = vrot.slane %v3227_v7, 2  ;;  %v3288_v27 = vld [vmem:[#allocation3 + $0x928] sm:$0xff]  ;;  %v3290_v46 = vld [vmem:[#allocation3 + $0x938] sm:$0xff] }
 0x377   :  { %v3061_v22 = vadd.f32 %v3060_v31, %v3059_v26  ;;  %v3089_v30 = vadd.f32 %v3088_v29, %v3087_v42  ;;  %v3117_v6 = vadd.f32 %v3116_v16, %v3115_v34  ;;  %v3145_v45 = vadd.f32 %v3144_v23, %v3143_v20  ;;  %v3294_v42 = vld [vmem:[#allocation3 + $0xb38] sm:$0xff]  ;;  %v3296_v34 = vld [vmem:[#allocation3 + $0xd28] sm:$0xff] }
 0x378   :  { %v3034_v18 = vrot.slane %v3033_v11, 1  ;;  %v3173_v25 = vadd.f32 %v3172_v63, %v3171_v17  ;;  %v3201_v24 = vadd.f32 %v3200_v28, %v3199_v53  ;;  %v3229_v39 = vadd.f32 %v3228_v21, %v3227_v7  ;;  %v3298_v20 = vld [vmem:[#allocation3 + $0xd38] sm:$0xff]  ;;  %v3300_v59 = vld [vmem:[#allocation3 + $0xf28] sm:$0xff] }
 0x379   :  { %v3062_v44 = vrot.slane %v3061_v22, 1  ;;  %v3090_v14 = vrot.slane %v3089_v30, 1  ;;  %v3118_v33 = vrot.slane %v3117_v6, 1  ;;  %v3146_v40 = vrot.slane %v3145_v45, 1 }
 0x37a   :  { %v3035_v58 = vadd.f32 %v3034_v18, %v3033_v11  ;;  %v3174_v47 = vrot.slane %v3173_v25, 1  ;;  %v3202_v50 = vrot.slane %v3201_v24, 1  ;;  %v3230_v3 = vrot.slane %v3229_v39, 1 }
 0x37b   :  { %v3063_v48 = vadd.f32 %v3062_v44, %v3061_v22  ;;  %v3091_v12 = vadd.f32 %v3090_v14, %v3089_v30  ;;  %v3119_v9 = vadd.f32 %v3118_v33, %v3117_v6  ;;  %v3147_v35 = vadd.f32 %v3146_v40, %v3145_v45 }
 0x37c   :  { %v3175_v49 = vadd.f32 %v3174_v47, %v3173_v25  ;;  %v3203_v62 = vadd.f32 %v3202_v50, %v3201_v24  ;;  %v3231_v57 = vadd.f32 %v3230_v3, %v3229_v39  ;;  %v9805_v60 = vadd.f32 %v3035_v58, %v9781_v52 }
 0x37d   :  { %v9808_v4 = vadd.f32 %v3063_v48, %v9784_v36  ;;  %v9811_v55 = vadd.f32 %v3091_v12, %v9787_v41  ;;  %v9814_v5 = vadd.f32 %v3119_v9, %v9790_v32  ;;  %v9817_v10 = vadd.f32 %v3147_v35, %v9793_v51  ;;  %v3292_v41 = vld [vmem:[#allocation3 + $0xb28] sm:$0xff]  ;;  %v3302_v51 = vld [vmem:[#allocation3 + $0xf38] sm:$0xff] }
 0x37e   :  { %v9820_v52 = vadd.f32 %v3175_v49, %v9796_v0  ;;  %v9823_v26 = vadd.f32 %v3203_v62, %v9799_v56  ;;  %v9826_v36 = vadd.f32 %v3231_v57, %v9802_v19  ;;  %v3305_v32 = vunpack.c.l.bf16 %v3272_v54 }
 0x37f   :  { %v3309_v17 = vunpack.c.l.bf16 %v3274_v43  ;;  %v3313_v53 = vunpack.c.l.bf16 %v3276_v2  ;;  %v3317_v7 = vunpack.c.l.bf16 %v3278_v8  ;;  %v3321_v31 = vunpack.c.l.bf16 %v3280_v15 }
 0x380   :  { %v3325_v29 = vunpack.c.l.bf16 %v3282_v61  ;;  %v3329_v0 = vunpack.c.l.bf16 %v3284_v13  ;;  %v3333_v16 = vunpack.c.l.bf16 %v3286_v1  ;;  %v3337_v23 = vunpack.c.l.bf16 %v3288_v27 }
 0x381   :  { %v3341_v56 = vunpack.c.l.bf16 %v3290_v46  ;;  %v3345_v11 = vunpack.c.l.bf16 %v3292_v41  ;;  %v3349_v63 = vunpack.c.l.bf16 %v3294_v42  ;;  %v3353_v19 = vunpack.c.l.bf16 %v3296_v34 }
 0x382   :  { %v3357_v28 = vunpack.c.l.bf16 %v3298_v20  ;;  %v3361_v21 = vunpack.c.l.bf16 %v3300_v59  ;;  %v3365_v22 = vunpack.c.l.bf16 %v3302_v51  ;;  %v3381_v30 = vadd.f32 %v3309_v17, %v3305_v32 }
 0x383   :  { %v3409_v6 = vadd.f32 %v3317_v7, %v3313_v53  ;;  %v3437_v45 = vadd.f32 %v3325_v29, %v3321_v31  ;;  %v3465_v18 = vadd.f32 %v3333_v16, %v3329_v0  ;;  %v3493_v25 = vadd.f32 %v3341_v56, %v3337_v23 }
 0x384   :  { %v3382_v24 = vrot.slane %v3381_v30, 4  ;;  %v3521_v39 = vadd.f32 %v3349_v63, %v3345_v11  ;;  %v3549_v44 = vadd.f32 %v3357_v28, %v3353_v19  ;;  %v3577_v14 = vadd.f32 %v3365_v22, %v3361_v21  ;;  %v3624_v63 = vld [vmem:[#allocation3 + $0x148] sm:$0xff] }
 0x385   :  { %v3410_v33 = vrot.slane %v3409_v6, 4  ;;  %v3438_v40 = vrot.slane %v3437_v45, 4  ;;  %v3466_v58 = vrot.slane %v3465_v18, 4  ;;  %v3494_v47 = vrot.slane %v3493_v25, 4 }
 0x386   :  { %v3383_v50 = vadd.f32 %v3382_v24, %v3381_v30  ;;  %v3522_v3 = vrot.slane %v3521_v39, 4  ;;  %v3550_v54 = vrot.slane %v3549_v44, 4  ;;  %v3578_v48 = vrot.slane %v3577_v14, 4  ;;  %v3626_v30 = vld [vmem:[#allocation3 + $0x158] sm:$0xff] }
 0x387   :  { %v3411_v12 = vadd.f32 %v3410_v33, %v3409_v6  ;;  %v3439_v9 = vadd.f32 %v3438_v40, %v3437_v45  ;;  %v3467_v35 = vadd.f32 %v3466_v58, %v3465_v18  ;;  %v3495_v43 = vadd.f32 %v3494_v47, %v3493_v25  ;;  %v3628_v6 = vld [vmem:[#allocation3 + $0x348] sm:$0xff]  ;;  %v3630_v45 = vld [vmem:[#allocation3 + $0x358] sm:$0xff] }
 0x388   :  { %v3384_v2 = vrot.slane %v3383_v50, 2  ;;  %v3523_v8 = vadd.f32 %v3522_v3, %v3521_v39  ;;  %v3551_v49 = vadd.f32 %v3550_v54, %v3549_v44  ;;  %v3579_v62 = vadd.f32 %v3578_v48, %v3577_v14  ;;  %v3632_v44 = vld [vmem:[#allocation3 + $0x548] sm:$0xff]  ;;  %v3634_v14 = vld [vmem:[#allocation3 + $0x558] sm:$0xff] }
 0x389   :  { %v3412_v57 = vrot.slane %v3411_v12, 2  ;;  %v3440_v15 = vrot.slane %v3439_v9, 2  ;;  %v3468_v61 = vrot.slane %v3467_v35, 2  ;;  %v3496_v13 = vrot.slane %v3495_v43, 2  ;;  %v3636_v33 = vld [vmem:[#allocation3 + $0x748] sm:$0xff]  ;;  %v3638_v3 = vld [vmem:[#allocation3 + $0x758] sm:$0xff] }
 0x38a   :  { %v3385_v1 = vadd.f32 %v3384_v2, %v3383_v50  ;;  %v3524_v27 = vrot.slane %v3523_v8, 2  ;;  %v3552_v46 = vrot.slane %v3551_v49, 2  ;;  %v3580_v41 = vrot.slane %v3579_v62, 2  ;;  %v3640_v54 = vld [vmem:[#allocation3 + $0x948] sm:$0xff]  ;;  %v3642_v48 = vld [vmem:[#allocation3 + $0x958] sm:$0xff] }
 0x38b   :  { %v3413_v42 = vadd.f32 %v3412_v57, %v3411_v12  ;;  %v3441_v34 = vadd.f32 %v3440_v15, %v3439_v9  ;;  %v3469_v32 = vadd.f32 %v3468_v61, %v3467_v35  ;;  %v3497_v20 = vadd.f32 %v3496_v13, %v3495_v43  ;;  %v3646_v9 = vld [vmem:[#allocation3 + $0xb58] sm:$0xff]  ;;  %v3648_v35 = vld [vmem:[#allocation3 + $0xd48] sm:$0xff] }
 0x38c   :  { %v3386_v59 = vrot.slane %v3385_v1, 1  ;;  %v3525_v51 = vadd.f32 %v3524_v27, %v3523_v8  ;;  %v3553_v17 = vadd.f32 %v3552_v46, %v3551_v49  ;;  %v3581_v53 = vadd.f32 %v3580_v41, %v3579_v62  ;;  %v3650_v43 = vld [vmem:[#allocation3 + $0xd58] sm:$0xff]  ;;  %v3652_v2 = vld [vmem:[#allocation3 + $0xf48] sm:$0xff] }
 0x38d   :  { %v3414_v7 = vrot.slane %v3413_v42, 1  ;;  %v3442_v31 = vrot.slane %v3441_v34, 1  ;;  %v3470_v29 = vrot.slane %v3469_v32, 1  ;;  %v3498_v0 = vrot.slane %v3497_v20, 1 }
 0x38e   :  { %v3387_v16 = vadd.f32 %v3386_v59, %v3385_v1  ;;  %v3526_v23 = vrot.slane %v3525_v51, 1  ;;  %v3554_v56 = vrot.slane %v3553_v17, 1  ;;  %v3582_v11 = vrot.slane %v3581_v53, 1 }
 0x38f   :  { %v3415_v19 = vadd.f32 %v3414_v7, %v3413_v42  ;;  %v3443_v28 = vadd.f32 %v3442_v31, %v3441_v34  ;;  %v3471_v21 = vadd.f32 %v3470_v29, %v3469_v32  ;;  %v3499_v22 = vadd.f32 %v3498_v0, %v3497_v20 }
 0x390   :  { %v3527_v18 = vadd.f32 %v3526_v23, %v3525_v51  ;;  %v3555_v25 = vadd.f32 %v3554_v56, %v3553_v17  ;;  %v3583_v24 = vadd.f32 %v3582_v11, %v3581_v53  ;;  %v9829_v39 = vadd.f32 %v3387_v16, %v9805_v60 }
 0x391   :  { %v9832_v40 = vadd.f32 %v3415_v19, %v9808_v4  ;;  %v9835_v58 = vadd.f32 %v3443_v28, %v9811_v55  ;;  %v9838_v47 = vadd.f32 %v3471_v21, %v9814_v5  ;;  %v9841_v50 = vadd.f32 %v3499_v22, %v9817_v10  ;;  %v3644_v55 = vld [vmem:[#allocation3 + $0xb48] sm:$0xff]  ;;  %v3654_v10 = vld [vmem:[#allocation3 + $0xf58] sm:$0xff] }
 0x392   :  { %v9844_v60 = vadd.f32 %v3527_v18, %v9820_v52  ;;  %v9847_v12 = vadd.f32 %v3555_v25, %v9823_v26  ;;  %v9850_v4 = vadd.f32 %v3583_v24, %v9826_v36  ;;  %v3657_v5 = vunpack.c.l.bf16 %v3624_v63 }
 0x393   :  { %v3661_v8 = vunpack.c.l.bf16 %v3626_v30  ;;  %v3665_v49 = vunpack.c.l.bf16 %v3628_v6  ;;  %v3669_v62 = vunpack.c.l.bf16 %v3630_v45  ;;  %v3673_v57 = vunpack.c.l.bf16 %v3632_v44 }
 0x394   :  { %v3677_v15 = vunpack.c.l.bf16 %v3634_v14  ;;  %v3681_v52 = vunpack.c.l.bf16 %v3636_v33  ;;  %v3685_v61 = vunpack.c.l.bf16 %v3638_v3  ;;  %v3689_v13 = vunpack.c.l.bf16 %v3640_v54 }
 0x395   :  { %v3693_v26 = vunpack.c.l.bf16 %v3642_v48  ;;  %v3697_v1 = vunpack.c.l.bf16 %v3644_v55  ;;  %v3701_v27 = vunpack.c.l.bf16 %v3646_v9  ;;  %v3705_v36 = vunpack.c.l.bf16 %v3648_v35 }
 0x396   :  { %v3709_v46 = vunpack.c.l.bf16 %v3650_v43  ;;  %v3713_v41 = vunpack.c.l.bf16 %v3652_v2  ;;  %v3717_v42 = vunpack.c.l.bf16 %v3654_v10  ;;  %v3733_v34 = vadd.f32 %v3661_v8, %v3657_v5 }
 0x397   :  { %v3761_v32 = vadd.f32 %v3669_v62, %v3665_v49  ;;  %v3789_v20 = vadd.f32 %v3677_v15, %v3673_v57  ;;  %v3817_v59 = vadd.f32 %v3685_v61, %v3681_v52  ;;  %v3845_v51 = vadd.f32 %v3693_v26, %v3689_v13 }
 0x398   :  { %v3734_v17 = vrot.slane %v3733_v34, 4  ;;  %v3873_v53 = vadd.f32 %v3701_v27, %v3697_v1  ;;  %v3901_v7 = vadd.f32 %v3709_v46, %v3705_v36  ;;  %v3929_v31 = vadd.f32 %v3717_v42, %v3713_v41  ;;  %v3976_v27 = vld [vmem:[#allocation3 + $0x168] sm:$0xff] }
 0x399   :  { %v3762_v29 = vrot.slane %v3761_v32, 4  ;;  %v3790_v0 = vrot.slane %v3789_v20, 4  ;;  %v3818_v16 = vrot.slane %v3817_v59, 4  ;;  %v3846_v23 = vrot.slane %v3845_v51, 4 }
 0x39a   :  { %v3735_v56 = vadd.f32 %v3734_v17, %v3733_v34  ;;  %v3874_v11 = vrot.slane %v3873_v53, 4  ;;  %v3902_v63 = vrot.slane %v3901_v7, 4  ;;  %v3930_v19 = vrot.slane %v3929_v31, 4  ;;  %v3978_v34 = vld [vmem:[#allocation3 + $0x178] sm:$0xff] }
 0x39b   :  { %v3763_v28 = vadd.f32 %v3762_v29, %v3761_v32  ;;  %v3791_v21 = vadd.f32 %v3790_v0, %v3789_v20  ;;  %v3819_v22 = vadd.f32 %v3818_v16, %v3817_v59  ;;  %v3847_v30 = vadd.f32 %v3846_v23, %v3845_v51  ;;  %v3980_v32 = vld [vmem:[#allocation3 + $0x368] sm:$0xff]  ;;  %v3982_v20 = vld [vmem:[#allocation3 + $0x378] sm:$0xff] }
 0x39c   :  { %v3736_v6 = vrot.slane %v3735_v56, 2  ;;  %v3875_v45 = vadd.f32 %v3874_v11, %v3873_v53  ;;  %v3903_v18 = vadd.f32 %v3902_v63, %v3901_v7  ;;  %v3931_v25 = vadd.f32 %v3930_v19, %v3929_v31  ;;  %v3984_v7 = vld [vmem:[#allocation3 + $0x568] sm:$0xff]  ;;  %v3986_v31 = vld [vmem:[#allocation3 + $0x578] sm:$0xff] }
 0x39d   :  { %v3764_v24 = vrot.slane %v3763_v28, 2  ;;  %v3792_v44 = vrot.slane %v3791_v21, 2  ;;  %v3820_v14 = vrot.slane %v3819_v22, 2  ;;  %v3848_v33 = vrot.slane %v3847_v30, 2  ;;  %v3988_v29 = vld [vmem:[#allocation3 + $0x768] sm:$0xff]  ;;  %v3990_v11 = vld [vmem:[#allocation3 + $0x778] sm:$0xff] }
 0x39e   :  { %v3737_v3 = vadd.f32 %v3736_v6, %v3735_v56  ;;  %v3876_v54 = vrot.slane %v3875_v45, 2  ;;  %v3904_v48 = vrot.slane %v3903_v18, 2  ;;  %v3932_v55 = vrot.slane %v3931_v25, 2  ;;  %v3992_v63 = vld [vmem:[#allocation3 + $0x968] sm:$0xff]  ;;  %v3994_v19 = vld [vmem:[#allocation3 + $0x978] sm:$0xff] }
 0x39f   :  { %v3765_v9 = vadd.f32 %v3764_v24, %v3763_v28  ;;  %v3793_v35 = vadd.f32 %v3792_v44, %v3791_v21  ;;  %v3821_v5 = vadd.f32 %v3820_v14, %v3819_v22  ;;  %v3849_v43 = vadd.f32 %v3848_v33, %v3847_v30  ;;  %v3998_v21 = vld [vmem:[#allocation3 + $0xb78] sm:$0xff]  ;;  %v4000_v22 = vld [vmem:[#allocation3 + $0xd68] sm:$0xff] }
 0x3a0   :  { %v3738_v2 = vrot.slane %v3737_v3, 1  ;;  %v3877_v10 = vadd.f32 %v3876_v54, %v3875_v45  ;;  %v3905_v8 = vadd.f32 %v3904_v48, %v3903_v18  ;;  %v3933_v49 = vadd.f32 %v3932_v55, %v3931_v25  ;;  %v4002_v30 = vld [vmem:[#allocation3 + $0xd78] sm:$0xff]  ;;  %v4004_v6 = vld [vmem:[#allocation3 + $0xf68] sm:$0xff] }
 0x3a1   :  { %v3766_v62 = vrot.slane %v3765_v9, 1  ;;  %v3794_v57 = vrot.slane %v3793_v35, 1  ;;  %v3822_v15 = vrot.slane %v3821_v5, 1  ;;  %v3850_v52 = vrot.slane %v3849_v43, 1 }
 0x3a2   :  { %v3739_v61 = vadd.f32 %v3738_v2, %v3737_v3  ;;  %v3878_v13 = vrot.slane %v3877_v10, 1  ;;  %v3906_v26 = vrot.slane %v3905_v8, 1  ;;  %v3934_v1 = vrot.slane %v3933_v49, 1 }
 0x3a3   :  { %v3767_v36 = vadd.f32 %v3766_v62, %v3765_v9  ;;  %v3795_v46 = vadd.f32 %v3794_v57, %v3793_v35  ;;  %v3823_v41 = vadd.f32 %v3822_v15, %v3821_v5  ;;  %v3851_v42 = vadd.f32 %v3850_v52, %v3849_v43 }
 0x3a4   :  { %v3879_v59 = vadd.f32 %v3878_v13, %v3877_v10  ;;  %v3907_v51 = vadd.f32 %v3906_v26, %v3905_v8  ;;  %v3935_v17 = vadd.f32 %v3934_v1, %v3933_v49  ;;  %v9853_v53 = vadd.f32 %v3739_v61, %v9829_v39 }
 0x3a5   :  { %v9856_v0 = vadd.f32 %v3767_v36, %v9832_v40  ;;  %v9859_v16 = vadd.f32 %v3795_v46, %v9835_v58  ;;  %v9862_v23 = vadd.f32 %v3823_v41, %v9838_v47  ;;  %v9865_v56 = vadd.f32 %v3851_v42, %v9841_v50  ;;  %v3996_v58 = vld [vmem:[#allocation3 + $0xb68] sm:$0xff]  ;;  %v4006_v50 = vld [vmem:[#allocation3 + $0xf78] sm:$0xff] }
 0x3a6   :  { %v9868_v39 = vadd.f32 %v3879_v59, %v9844_v60  ;;  %v9871_v28 = vadd.f32 %v3907_v51, %v9847_v12  ;;  %v9874_v40 = vadd.f32 %v3935_v17, %v9850_v4  ;;  %v4009_v47 = vunpack.c.l.bf16 %v3976_v27 }
 0x3a7   :  { %v4013_v45 = vunpack.c.l.bf16 %v3978_v34  ;;  %v4017_v18 = vunpack.c.l.bf16 %v3980_v32  ;;  %v4021_v25 = vunpack.c.l.bf16 %v3982_v20  ;;  %v4025_v24 = vunpack.c.l.bf16 %v3984_v7 }
 0x3a8   :  { %v4029_v44 = vunpack.c.l.bf16 %v3986_v31  ;;  %v4033_v60 = vunpack.c.l.bf16 %v3988_v29  ;;  %v4037_v14 = vunpack.c.l.bf16 %v3990_v11  ;;  %v4041_v33 = vunpack.c.l.bf16 %v3992_v63 }
 0x3a9   :  { %v4045_v12 = vunpack.c.l.bf16 %v3994_v19  ;;  %v4049_v3 = vunpack.c.l.bf16 %v3996_v58  ;;  %v4053_v54 = vunpack.c.l.bf16 %v3998_v21  ;;  %v4057_v4 = vunpack.c.l.bf16 %v4000_v22 }
 0x3aa   :  { %v4061_v48 = vunpack.c.l.bf16 %v4002_v30  ;;  %v4065_v55 = vunpack.c.l.bf16 %v4004_v6  ;;  %v4069_v9 = vunpack.c.l.bf16 %v4006_v50  ;;  %v4085_v35 = vadd.f32 %v4013_v45, %v4009_v47 }
 0x3ab   :  { %v4113_v5 = vadd.f32 %v4021_v25, %v4017_v18  ;;  %v4141_v43 = vadd.f32 %v4029_v44, %v4025_v24  ;;  %v4169_v2 = vadd.f32 %v4037_v14, %v4033_v60  ;;  %v4197_v10 = vadd.f32 %v4045_v12, %v4041_v33 }
 0x3ac   :  { %v4086_v8 = vrot.slane %v4085_v35, 4  ;;  %v4225_v49 = vadd.f32 %v4053_v54, %v4049_v3  ;;  %v4253_v62 = vadd.f32 %v4061_v48, %v4057_v4  ;;  %v4281_v57 = vadd.f32 %v4069_v9, %v4065_v55  ;;  %v4328_v54 = vld [vmem:[#allocation3 + $0x188] sm:$0xff] }
 0x3ad   :  { %v4114_v15 = vrot.slane %v4113_v5, 4  ;;  %v4142_v52 = vrot.slane %v4141_v43, 4  ;;  %v4170_v61 = vrot.slane %v4169_v2, 4  ;;  %v4198_v13 = vrot.slane %v4197_v10, 4 }
 0x3ae   :  { %v4087_v26 = vadd.f32 %v4086_v8, %v4085_v35  ;;  %v4226_v1 = vrot.slane %v4225_v49, 4  ;;  %v4254_v27 = vrot.slane %v4253_v62, 4  ;;  %v4282_v36 = vrot.slane %v4281_v57, 4  ;;  %v4330_v35 = vld [vmem:[#allocation3 + $0x198] sm:$0xff] }
 0x3af   :  { %v4115_v46 = vadd.f32 %v4114_v15, %v4113_v5  ;;  %v4143_v41 = vadd.f32 %v4142_v52, %v4141_v43  ;;  %v4171_v42 = vadd.f32 %v4170_v61, %v4169_v2  ;;  %v4199_v34 = vadd.f32 %v4198_v13, %v4197_v10  ;;  %v4332_v5 = vld [vmem:[#allocation3 + $0x388] sm:$0xff]  ;;  %v4334_v43 = vld [vmem:[#allocation3 + $0x398] sm:$0xff] }
 0x3b0   :  { %v4088_v32 = vrot.slane %v4087_v26, 2  ;;  %v4227_v20 = vadd.f32 %v4226_v1, %v4225_v49  ;;  %v4255_v59 = vadd.f32 %v4254_v27, %v4253_v62  ;;  %v4283_v51 = vadd.f32 %v4282_v36, %v4281_v57  ;;  %v4336_v62 = vld [vmem:[#allocation3 + $0x588] sm:$0xff]  ;;  %v4338_v57 = vld [vmem:[#allocation3 + $0x598] sm:$0xff] }
 0x3b1   :  { %v4116_v17 = vrot.slane %v4115_v46, 2  ;;  %v4144_v7 = vrot.slane %v4143_v41, 2  ;;  %v4172_v31 = vrot.slane %v4171_v42, 2  ;;  %v4200_v29 = vrot.slane %v4199_v34, 2  ;;  %v4340_v15 = vld [vmem:[#allocation3 + $0x788] sm:$0xff]  ;;  %v4342_v1 = vld [vmem:[#allocation3 + $0x798] sm:$0xff] }
 0x3b2   :  { %v4089_v11 = vadd.f32 %v4088_v32, %v4087_v26  ;;  %v4228_v63 = vrot.slane %v4227_v20, 2  ;;  %v4256_v19 = vrot.slane %v4255_v59, 2  ;;  %v4284_v58 = vrot.slane %v4283_v51, 2  ;;  %v4344_v27 = vld [vmem:[#allocation3 + $0x988] sm:$0xff]  ;;  %v4346_v36 = vld [vmem:[#allocation3 + $0x998] sm:$0xff] }
 0x3b3   :  { %v4117_v21 = vadd.f32 %v4116_v17, %v4115_v46  ;;  %v4145_v22 = vadd.f32 %v4144_v7, %v4143_v41  ;;  %v4173_v47 = vadd.f32 %v4172_v31, %v4171_v42  ;;  %v4201_v30 = vadd.f32 %v4200_v29, %v4199_v34  ;;  %v4350_v41 = vld [vmem:[#allocation3 + $0xb98] sm:$0xff]  ;;  %v4352_v42 = vld [vmem:[#allocation3 + $0xd88] sm:$0xff] }
 0x3b4   :  { %v4090_v6 = vrot.slane %v4089_v11, 1  ;;  %v4229_v50 = vadd.f32 %v4228_v63, %v4227_v20  ;;  %v4257_v45 = vadd.f32 %v4256_v19, %v4255_v59  ;;  %v4285_v18 = vadd.f32 %v4284_v58, %v4283_v51  ;;  %v4354_v34 = vld [vmem:[#allocation3 + $0xd98] sm:$0xff]  ;;  %v4356_v32 = vld [vmem:[#allocation3 + $0xf88] sm:$0xff] }
 0x3b5   :  { %v4118_v25 = vrot.slane %v4117_v21, 1  ;;  %v4146_v24 = vrot.slane %v4145_v22, 1  ;;  %v4174_v44 = vrot.slane %v4173_v47, 1  ;;  %v4202_v60 = vrot.slane %v4201_v30, 1 }
 0x3b6   :  { %v4091_v14 = vadd.f32 %v4090_v6, %v4089_v11  ;;  %v4230_v33 = vrot.slane %v4229_v50, 1  ;;  %v4258_v12 = vrot.slane %v4257_v45, 1  ;;  %v4286_v3 = vrot.slane %v4285_v18, 1 }
 0x3b7   :  { %v4119_v4 = vadd.f32 %v4118_v25, %v4117_v21  ;;  %v4147_v48 = vadd.f32 %v4146_v24, %v4145_v22  ;;  %v4175_v55 = vadd.f32 %v4174_v44, %v4173_v47  ;;  %v4203_v9 = vadd.f32 %v4202_v60, %v4201_v30 }
 0x3b8   :  { %v4231_v2 = vadd.f32 %v4230_v33, %v4229_v50  ;;  %v4259_v10 = vadd.f32 %v4258_v12, %v4257_v45  ;;  %v4287_v8 = vadd.f32 %v4286_v3, %v4285_v18  ;;  %v9877_v49 = vadd.f32 %v4091_v14, %v9853_v53 }
 0x3b9   :  { %v9880_v52 = vadd.f32 %v4119_v4, %v9856_v0  ;;  %v9883_v61 = vadd.f32 %v4147_v48, %v9859_v16  ;;  %v9886_v13 = vadd.f32 %v4175_v55, %v9862_v23  ;;  %v9889_v26 = vadd.f32 %v4203_v9, %v9865_v56  ;;  %v4348_v16 = vld [vmem:[#allocation3 + $0xb88] sm:$0xff]  ;;  %v4358_v56 = vld [vmem:[#allocation3 + $0xf98] sm:$0xff] }
 0x3ba   :  { %v9892_v53 = vadd.f32 %v4231_v2, %v9868_v39  ;;  %v9895_v46 = vadd.f32 %v4259_v10, %v9871_v28  ;;  %v9898_v0 = vadd.f32 %v4287_v8, %v9874_v40  ;;  %v4361_v23 = vunpack.c.l.bf16 %v4328_v54 }
 0x3bb   :  { %v4365_v20 = vunpack.c.l.bf16 %v4330_v35  ;;  %v4369_v59 = vunpack.c.l.bf16 %v4332_v5  ;;  %v4373_v51 = vunpack.c.l.bf16 %v4334_v43  ;;  %v4377_v17 = vunpack.c.l.bf16 %v4336_v62 }
 0x3bc   :  { %v4381_v7 = vunpack.c.l.bf16 %v4338_v57  ;;  %v4385_v39 = vunpack.c.l.bf16 %v4340_v15  ;;  %v4389_v31 = vunpack.c.l.bf16 %v4342_v1  ;;  %v4393_v29 = vunpack.c.l.bf16 %v4344_v27 }
 0x3bd   :  { %v4397_v28 = vunpack.c.l.bf16 %v4346_v36  ;;  %v4401_v11 = vunpack.c.l.bf16 %v4348_v16  ;;  %v4405_v63 = vunpack.c.l.bf16 %v4350_v41  ;;  %v4409_v40 = vunpack.c.l.bf16 %v4352_v42 }
 0x3be   :  { %v4413_v19 = vunpack.c.l.bf16 %v4354_v34  ;;  %v4417_v58 = vunpack.c.l.bf16 %v4356_v32  ;;  %v4421_v21 = vunpack.c.l.bf16 %v4358_v56  ;;  %v4437_v22 = vadd.f32 %v4365_v20, %v4361_v23 }
 0x3bf   :  { %v4465_v47 = vadd.f32 %v4373_v51, %v4369_v59  ;;  %v4493_v30 = vadd.f32 %v4381_v7, %v4377_v17  ;;  %v4521_v6 = vadd.f32 %v4389_v31, %v4385_v39  ;;  %v4549_v50 = vadd.f32 %v4397_v28, %v4393_v29 }
 0x3c0   :  { %v4438_v45 = vrot.slane %v4437_v22, 4  ;;  %v4577_v18 = vadd.f32 %v4405_v63, %v4401_v11  ;;  %v4605_v25 = vadd.f32 %v4413_v19, %v4409_v40  ;;  %v4633_v24 = vadd.f32 %v4421_v21, %v4417_v58  ;;  %v4680_v63 = vld [vmem:[#allocation3 + $0x1a8] sm:$0xff] }
 0x3c1   :  { %v4466_v44 = vrot.slane %v4465_v47, 4  ;;  %v4494_v60 = vrot.slane %v4493_v30, 4  ;;  %v4522_v14 = vrot.slane %v4521_v6, 4  ;;  %v4550_v33 = vrot.slane %v4549_v50, 4 }
 0x3c2   :  { %v4439_v12 = vadd.f32 %v4438_v45, %v4437_v22  ;;  %v4578_v3 = vrot.slane %v4577_v18, 4  ;;  %v4606_v54 = vrot.slane %v4605_v25, 4  ;;  %v4634_v4 = vrot.slane %v4633_v24, 4  ;;  %v4682_v22 = vld [vmem:[#allocation3 + $0x1b8] sm:$0xff] }
 0x3c3   :  { %v4467_v48 = vadd.f32 %v4466_v44, %v4465_v47  ;;  %v4495_v55 = vadd.f32 %v4494_v60, %v4493_v30  ;;  %v4523_v9 = vadd.f32 %v4522_v14, %v4521_v6  ;;  %v4551_v35 = vadd.f32 %v4550_v33, %v4549_v50  ;;  %v4684_v47 = vld [vmem:[#allocation3 + $0x3a8] sm:$0xff]  ;;  %v4686_v30 = vld [vmem:[#allocation3 + $0x3b8] sm:$0xff] }
 0x3c4   :  { %v4440_v5 = vrot.slane %v4439_v12, 2  ;;  %v4579_v43 = vadd.f32 %v4578_v3, %v4577_v18  ;;  %v4607_v2 = vadd.f32 %v4606_v54, %v4605_v25  ;;  %v4635_v10 = vadd.f32 %v4634_v4, %v4633_v24  ;;  %v4688_v25 = vld [vmem:[#allocation3 + $0x5a8] sm:$0xff]  ;;  %v4690_v24 = vld [vmem:[#allocation3 + $0x5b8] sm:$0xff] }
 0x3c5   :  { %v4468_v8 = vrot.slane %v4467_v48, 2  ;;  %v4496_v62 = vrot.slane %v4495_v55, 2  ;;  %v4524_v57 = vrot.slane %v4523_v9, 2  ;;  %v4552_v15 = vrot.slane %v4551_v35, 2  ;;  %v4692_v44 = vld [vmem:[#allocation3 + $0x7a8] sm:$0xff]  ;;  %v4694_v3 = vld [vmem:[#allocation3 + $0x7b8] sm:$0xff] }
 0x3c6   :  { %v4441_v1 = vadd.f32 %v4440_v5, %v4439_v12  ;;  %v4580_v27 = vrot.slane %v4579_v43, 2  ;;  %v4608_v36 = vrot.slane %v4607_v2, 2  ;;  %v4636_v16 = vrot.slane %v4635_v10, 2  ;;  %v4696_v54 = vld [vmem:[#allocation3 + $0x9a8] sm:$0xff]  ;;  %v4698_v4 = vld [vmem:[#allocation3 + $0x9b8] sm:$0xff] }
 0x3c7   :  { %v4469_v41 = vadd.f32 %v4468_v8, %v4467_v48  ;;  %v4497_v42 = vadd.f32 %v4496_v62, %v4495_v55  ;;  %v4525_v23 = vadd.f32 %v4524_v57, %v4523_v9  ;;  %v4553_v34 = vadd.f32 %v4552_v15, %v4551_v35  ;;  %v4702_v55 = vld [vmem:[#allocation3 + $0xbb8] sm:$0xff]  ;;  %v4704_v9 = vld [vmem:[#allocation3 + $0xda8] sm:$0xff] }
 0x3c8   :  { %v4442_v32 = vrot.slane %v4441_v1, 1  ;;  %v4581_v56 = vadd.f32 %v4580_v27, %v4579_v43  ;;  %v4609_v20 = vadd.f32 %v4608_v36, %v4607_v2  ;;  %v4637_v59 = vadd.f32 %v4636_v16, %v4635_v10  ;;  %v4706_v35 = vld [vmem:[#allocation3 + $0xdb8] sm:$0xff]  ;;  %v4708_v5 = vld [vmem:[#allocation3 + $0xfa8] sm:$0xff] }
 0x3c9   :  { %v4470_v51 = vrot.slane %v4469_v41, 1  ;;  %v4498_v17 = vrot.slane %v4497_v42, 1  ;;  %v4526_v7 = vrot.slane %v4525_v23, 1  ;;  %v4554_v39 = vrot.slane %v4553_v34, 1 }
 0x3ca   :  { %v4443_v31 = vadd.f32 %v4442_v32, %v4441_v1  ;;  %v4582_v29 = vrot.slane %v4581_v56, 1  ;;  %v4610_v28 = vrot.slane %v4609_v20, 1  ;;  %v4638_v11 = vrot.slane %v4637_v59, 1 }
 0x3cb   :  { %v4471_v40 = vadd.f32 %v4470_v51, %v4469_v41  ;;  %v4499_v19 = vadd.f32 %v4498_v17, %v4497_v42  ;;  %v4527_v58 = vadd.f32 %v4526_v7, %v4525_v23  ;;  %v4555_v21 = vadd.f32 %v4554_v39, %v4553_v34 }
 0x3cc   :  { %v4583_v6 = vadd.f32 %v4582_v29, %v4581_v56  ;;  %v4611_v50 = vadd.f32 %v4610_v28, %v4609_v20  ;;  %v4639_v45 = vadd.f32 %v4638_v11, %v4637_v59  ;;  %v9901_v18 = vadd.f32 %v4443_v31, %v9877_v49 }
 0x3cd   :  { %v9904_v60 = vadd.f32 %v4471_v40, %v9880_v52  ;;  %v9907_v14 = vadd.f32 %v4499_v19, %v9883_v61  ;;  %v9910_v33 = vadd.f32 %v4527_v58, %v9886_v13  ;;  %v9913_v12 = vadd.f32 %v4555_v21, %v9889_v26  ;;  %v4700_v61 = vld [vmem:[#allocation3 + $0xba8] sm:$0xff]  ;;  %v4710_v26 = vld [vmem:[#allocation3 + $0xfb8] sm:$0xff] }
 0x3ce   :  { %v9916_v49 = vadd.f32 %v4583_v6, %v9892_v53  ;;  %v9919_v48 = vadd.f32 %v4611_v50, %v9895_v46  ;;  %v9922_v52 = vadd.f32 %v4639_v45, %v9898_v0  ;;  %v4713_v13 = vunpack.c.l.bf16 %v4680_v63 }
 0x3cf   :  { %v4717_v43 = vunpack.c.l.bf16 %v4682_v22  ;;  %v4721_v2 = vunpack.c.l.bf16 %v4684_v47  ;;  %v4725_v10 = vunpack.c.l.bf16 %v4686_v30  ;;  %v4729_v8 = vunpack.c.l.bf16 %v4688_v25 }
 0x3d0   :  { %v4733_v62 = vunpack.c.l.bf16 %v4690_v24  ;;  %v4737_v53 = vunpack.c.l.bf16 %v4692_v44  ;;  %v4741_v57 = vunpack.c.l.bf16 %v4694_v3  ;;  %v4745_v15 = vunpack.c.l.bf16 %v4696_v54 }
 0x3d1   :  { %v4749_v46 = vunpack.c.l.bf16 %v4698_v4  ;;  %v4753_v1 = vunpack.c.l.bf16 %v4700_v61  ;;  %v4757_v27 = vunpack.c.l.bf16 %v4702_v55  ;;  %v4761_v0 = vunpack.c.l.bf16 %v4704_v9 }
 0x3d2   :  { %v4765_v36 = vunpack.c.l.bf16 %v4706_v35  ;;  %v4769_v16 = vunpack.c.l.bf16 %v4708_v5  ;;  %v4773_v41 = vunpack.c.l.bf16 %v4710_v26  ;;  %v4789_v42 = vadd.f32 %v4717_v43, %v4713_v13 }
 0x3d3   :  { %v4817_v23 = vadd.f32 %v4725_v10, %v4721_v2  ;;  %v4845_v34 = vadd.f32 %v4733_v62, %v4729_v8  ;;  %v4873_v32 = vadd.f32 %v4741_v57, %v4737_v53  ;;  %v4901_v56 = vadd.f32 %v4749_v46, %v4745_v15 }
 0x3d4   :  { %v4790_v20 = vrot.slane %v4789_v42, 4  ;;  %v4929_v59 = vadd.f32 %v4757_v27, %v4753_v1  ;;  %v4957_v51 = vadd.f32 %v4765_v36, %v4761_v0  ;;  %v4985_v17 = vadd.f32 %v4773_v41, %v4769_v16  ;;  %v5032_v27 = vld [vmem:[#allocation3 + $0x1c8] sm:$0xff] }
 0x3d5   :  { %v4818_v7 = vrot.slane %v4817_v23, 4  ;;  %v4846_v39 = vrot.slane %v4845_v34, 4  ;;  %v4874_v31 = vrot.slane %v4873_v32, 4  ;;  %v4902_v29 = vrot.slane %v4901_v56, 4 }
 0x3d6   :  { %v4791_v28 = vadd.f32 %v4790_v20, %v4789_v42  ;;  %v4930_v11 = vrot.slane %v4929_v59, 4  ;;  %v4958_v63 = vrot.slane %v4957_v51, 4  ;;  %v4986_v40 = vrot.slane %v4985_v17, 4  ;;  %v5034_v42 = vld [vmem:[#allocation3 + $0x1d8] sm:$0xff] }
 0x3d7   :  { %v4819_v19 = vadd.f32 %v4818_v7, %v4817_v23  ;;  %v4847_v58 = vadd.f32 %v4846_v39, %v4845_v34  ;;  %v4875_v21 = vadd.f32 %v4874_v31, %v4873_v32  ;;  %v4903_v22 = vadd.f32 %v4902_v29, %v4901_v56  ;;  %v5036_v23 = vld [vmem:[#allocation3 + $0x3c8] sm:$0xff]  ;;  %v5038_v34 = vld [vmem:[#allocation3 + $0x3d8] sm:$0xff] }
 0x3d8   :  { %v4792_v47 = vrot.slane %v4791_v28, 2  ;;  %v4931_v30 = vadd.f32 %v4930_v11, %v4929_v59  ;;  %v4959_v6 = vadd.f32 %v4958_v63, %v4957_v51  ;;  %v4987_v50 = vadd.f32 %v4986_v40, %v4985_v17  ;;  %v5040_v51 = vld [vmem:[#allocation3 + $0x5c8] sm:$0xff]  ;;  %v5042_v17 = vld [vmem:[#allocation3 + $0x5d8] sm:$0xff] }
 0x3d9   :  { %v4820_v45 = vrot.slane %v4819_v19, 2  ;;  %v4848_v25 = vrot.slane %v4847_v58, 2  ;;  %v4876_v24 = vrot.slane %v4875_v21, 2  ;;  %v4904_v44 = vrot.slane %v4903_v22, 2  ;;  %v5044_v7 = vld [vmem:[#allocation3 + $0x7c8] sm:$0xff]  ;;  %v5046_v11 = vld [vmem:[#allocation3 + $0x7d8] sm:$0xff] }
 0x3da   :  { %v4793_v3 = vadd.f32 %v4792_v47, %v4791_v28  ;;  %v4932_v54 = vrot.slane %v4931_v30, 2  ;;  %v4960_v4 = vrot.slane %v4959_v6, 2  ;;  %v4988_v61 = vrot.slane %v4987_v50, 2  ;;  %v5048_v63 = vld [vmem:[#allocation3 + $0x9c8] sm:$0xff]  ;;  %v5050_v40 = vld [vmem:[#allocation3 + $0x9d8] sm:$0xff] }
 0x3db   :  { %v4821_v55 = vadd.f32 %v4820_v45, %v4819_v19  ;;  %v4849_v9 = vadd.f32 %v4848_v25, %v4847_v58  ;;  %v4877_v13 = vadd.f32 %v4876_v24, %v4875_v21  ;;  %v4905_v35 = vadd.f32 %v4904_v44, %v4903_v22  ;;  %v5054_v58 = vld [vmem:[#allocation3 + $0xbd8] sm:$0xff]  ;;  %v5056_v21 = vld [vmem:[#allocation3 + $0xdc8] sm:$0xff] }
 0x3dc   :  { %v4794_v5 = vrot.slane %v4793_v3, 1  ;;  %v4933_v26 = vadd.f32 %v4932_v54, %v4931_v30  ;;  %v4961_v43 = vadd.f32 %v4960_v4, %v4959_v6  ;;  %v4989_v2 = vadd.f32 %v4988_v61, %v4987_v50  ;;  %v5058_v22 = vld [vmem:[#allocation3 + $0xdd8] sm:$0xff]  ;;  %v5060_v47 = vld [vmem:[#allocation3 + $0xfc8] sm:$0xff] }
 0x3dd   :  { %v4822_v10 = vrot.slane %v4821_v55, 1  ;;  %v4850_v8 = vrot.slane %v4849_v9, 1  ;;  %v4878_v62 = vrot.slane %v4877_v13, 1  ;;  %v4906_v53 = vrot.slane %v4905_v35, 1 }
 0x3de   :  { %v4795_v57 = vadd.f32 %v4794_v5, %v4793_v3  ;;  %v4934_v15 = vrot.slane %v4933_v26, 1  ;;  %v4962_v46 = vrot.slane %v4961_v43, 1  ;;  %v4990_v1 = vrot.slane %v4989_v2, 1 }
 0x3df   :  { %v4823_v0 = vadd.f32 %v4822_v10, %v4821_v55  ;;  %v4851_v36 = vadd.f32 %v4850_v8, %v4849_v9  ;;  %v4879_v16 = vadd.f32 %v4878_v62, %v4877_v13  ;;  %v4907_v41 = vadd.f32 %v4906_v53, %v4905_v35 }
 0x3e0   :  { %v4935_v32 = vadd.f32 %v4934_v15, %v4933_v26  ;;  %v4963_v56 = vadd.f32 %v4962_v46, %v4961_v43  ;;  %v4991_v20 = vadd.f32 %v4990_v1, %v4989_v2  ;;  %v9925_v59 = vadd.f32 %v4795_v57, %v9901_v18 }
 0x3e1   :  { %v9928_v39 = vadd.f32 %v4823_v0, %v9904_v60  ;;  %v9931_v31 = vadd.f32 %v4851_v36, %v9907_v14  ;;  %v9934_v29 = vadd.f32 %v4879_v16, %v9910_v33  ;;  %v9937_v28 = vadd.f32 %v4907_v41, %v9913_v12  ;;  %v5052_v14 = vld [vmem:[#allocation3 + $0xbc8] sm:$0xff]  ;;  %v5062_v12 = vld [vmem:[#allocation3 + $0xfd8] sm:$0xff] }
 0x3e2   :  { %v9940_v18 = vadd.f32 %v4935_v32, %v9916_v49  ;;  %v9943_v19 = vadd.f32 %v4963_v56, %v9919_v48  ;;  %v9946_v60 = vadd.f32 %v4991_v20, %v9922_v52  ;;  %v5065_v33 = vunpack.c.l.bf16 %v5032_v27 }
 0x3e3   :  { %v5069_v30 = vunpack.c.l.bf16 %v5034_v42  ;;  %v5073_v6 = vunpack.c.l.bf16 %v5036_v23  ;;  %v5077_v50 = vunpack.c.l.bf16 %v5038_v34  ;;  %v5081_v45 = vunpack.c.l.bf16 %v5040_v51 }
 0x3e4   :  { %v5085_v25 = vunpack.c.l.bf16 %v5042_v17  ;;  %v5089_v49 = vunpack.c.l.bf16 %v5044_v7  ;;  %v5093_v24 = vunpack.c.l.bf16 %v5046_v11  ;;  %v5097_v44 = vunpack.c.l.bf16 %v5048_v63 }
 0x3e5   :  { %v5101_v48 = vunpack.c.l.bf16 %v5050_v40  ;;  %v5105_v3 = vunpack.c.l.bf16 %v5052_v14  ;;  %v5109_v54 = vunpack.c.l.bf16 %v5054_v58  ;;  %v5113_v52 = vunpack.c.l.bf16 %v5056_v21 }
 0x3e6   :  { %v5117_v4 = vunpack.c.l.bf16 %v5058_v22  ;;  %v5121_v61 = vunpack.c.l.bf16 %v5060_v47  ;;  %v5125_v55 = vunpack.c.l.bf16 %v5062_v12  ;;  %v5141_v9 = vadd.f32 %v5069_v30, %v5065_v33 }
 0x3e7   :  { %v5169_v13 = vadd.f32 %v5077_v50, %v5073_v6  ;;  %v5197_v35 = vadd.f32 %v5085_v25, %v5081_v45  ;;  %v5225_v5 = vadd.f32 %v5093_v24, %v5089_v49  ;;  %v5253_v26 = vadd.f32 %v5101_v48, %v5097_v44 }
 0x3e8   :  { %v5142_v43 = vrot.slane %v5141_v9, 4  ;;  %v5281_v2 = vadd.f32 %v5109_v54, %v5105_v3  ;;  %v5309_v10 = vadd.f32 %v5117_v4, %v5113_v52  ;;  %v5337_v8 = vadd.f32 %v5125_v55, %v5121_v61  ;;  %v5384_v54 = vld [vmem:[#allocation3 + $0x1e8] sm:$0xff] }
 0x3e9   :  { %v5170_v62 = vrot.slane %v5169_v13, 4  ;;  %v5198_v53 = vrot.slane %v5197_v35, 4  ;;  %v5226_v57 = vrot.slane %v5225_v5, 4  ;;  %v5254_v15 = vrot.slane %v5253_v26, 4 }
 0x3ea   :  { %v5143_v46 = vadd.f32 %v5142_v43, %v5141_v9  ;;  %v5282_v1 = vrot.slane %v5281_v2, 4  ;;  %v5310_v27 = vrot.slane %v5309_v10, 4  ;;  %v5338_v0 = vrot.slane %v5337_v8, 4  ;;  %v5386_v9 = vld [vmem:[#allocation3 + $0x1f8] sm:$0xff] }
 0x3eb   :  { %v5171_v36 = vadd.f32 %v5170_v62, %v5169_v13  ;;  %v5199_v16 = vadd.f32 %v5198_v53, %v5197_v35  ;;  %v5227_v41 = vadd.f32 %v5226_v57, %v5225_v5  ;;  %v5255_v42 = vadd.f32 %v5254_v15, %v5253_v26  ;;  %v5388_v13 = vld [vmem:[#allocation3 + $0x3e8] sm:$0xff]  ;;  %v5390_v35 = vld [vmem:[#allocation3 + $0x3f8] sm:$0xff] }
 0x3ec   :  { %v5144_v23 = vrot.slane %v5143_v46, 2  ;;  %v5283_v34 = vadd.f32 %v5282_v1, %v5281_v2  ;;  %v5311_v32 = vadd.f32 %v5310_v27, %v5309_v10  ;;  %v5339_v56 = vadd.f32 %v5338_v0, %v5337_v8  ;;  %v5392_v10 = vld [vmem:[#allocation3 + $0x5e8] sm:$0xff]  ;;  %v5394_v8 = vld [vmem:[#allocation3 + $0x5f8] sm:$0xff] }
 0x3ed   :  { %v5172_v20 = vrot.slane %v5171_v36, 2  ;;  %v5200_v51 = vrot.slane %v5199_v16, 2  ;;  %v5228_v17 = vrot.slane %v5227_v41, 2  ;;  %v5256_v7 = vrot.slane %v5255_v42, 2  ;;  %v5396_v62 = vld [vmem:[#allocation3 + $0x7e8] sm:$0xff]  ;;  %v5398_v1 = vld [vmem:[#allocation3 + $0x7f8] sm:$0xff] }
 0x3ee   :  { %v5145_v11 = vadd.f32 %v5144_v23, %v5143_v46  ;;  %v5284_v63 = vrot.slane %v5283_v34, 2  ;;  %v5312_v40 = vrot.slane %v5311_v32, 2  ;;  %v5340_v14 = vrot.slane %v5339_v56, 2  ;;  %v5400_v27 = vld [vmem:[#allocation3 + $0x9e8] sm:$0xff]  ;;  %v5402_v0 = vld [vmem:[#allocation3 + $0x9f8] sm:$0xff] }
 0x3ef   :  { %v5173_v58 = vadd.f32 %v5172_v20, %v5171_v36  ;;  %v5201_v21 = vadd.f32 %v5200_v51, %v5199_v16  ;;  %v5229_v33 = vadd.f32 %v5228_v17, %v5227_v41  ;;  %v5257_v22 = vadd.f32 %v5256_v7, %v5255_v42  ;;  %v5406_v16 = vld [vmem:[#allocation3 + $0xbf8] sm:$0xff]  ;;  %v5408_v41 = vld [vmem:[#allocation3 + $0xde8] sm:$0xff] }
 0x3f0   :  { %v5146_v47 = vrot.slane %v5145_v11, 1  ;;  %v5285_v12 = vadd.f32 %v5284_v63, %v5283_v34  ;;  %v5313_v30 = vadd.f32 %v5312_v40, %v5311_v32  ;;  %v5341_v6 = vadd.f32 %v5340_v14, %v5339_v56  ;;  %v5410_v42 = vld [vmem:[#allocation3 + $0xdf8] sm:$0xff]  ;;  %v5412_v23 = vld [vmem:[#allocation3 + $0xfe8] sm:$0xff] }
 0x3f1   :  { %v5174_v50 = vrot.slane %v5173_v58, 1  ;;  %v5202_v45 = vrot.slane %v5201_v21, 1  ;;  %v5230_v25 = vrot.slane %v5229_v33, 1  ;;  %v5258_v49 = vrot.slane %v5257_v22, 1 }
 0x3f2   :  { %v5147_v24 = vadd.f32 %v5146_v47, %v5145_v11  ;;  %v5286_v44 = vrot.slane %v5285_v12, 1  ;;  %v5314_v48 = vrot.slane %v5313_v30, 1  ;;  %v5342_v3 = vrot.slane %v5341_v6, 1 }
 0x3f3   :  { %v5175_v52 = vadd.f32 %v5174_v50, %v5173_v58  ;;  %v5203_v4 = vadd.f32 %v5202_v45, %v5201_v21  ;;  %v5231_v61 = vadd.f32 %v5230_v25, %v5229_v33  ;;  %v5259_v55 = vadd.f32 %v5258_v49, %v5257_v22 }
 0x3f4   :  { %v5287_v5 = vadd.f32 %v5286_v44, %v5285_v12  ;;  %v5315_v26 = vadd.f32 %v5314_v48, %v5313_v30  ;;  %v5343_v43 = vadd.f32 %v5342_v3, %v5341_v6  ;;  %v9949_v2 = vadd.f32 %v5147_v24, %v9925_v59 }
 0x3f5   :  { %v9952_v53 = vadd.f32 %v5175_v52, %v9928_v39  ;;  %v9955_v57 = vadd.f32 %v5203_v4, %v9931_v31  ;;  %v9958_v15 = vadd.f32 %v5231_v61, %v9934_v29  ;;  %v9961_v46 = vadd.f32 %v5259_v55, %v9937_v28  ;;  %v5404_v31 = vld [vmem:[#allocation3 + $0xbe8] sm:$0xff]  ;;  %v5414_v28 = vld [vmem:[#allocation3 + $0xff8] sm:$0xff] }
 0x3f6   :  { %v9964_v59 = vadd.f32 %v5287_v5, %v9940_v18  ;;  %v9967_v36 = vadd.f32 %v5315_v26, %v9943_v19  ;;  %v9970_v39 = vadd.f32 %v5343_v43, %v9946_v60  ;;  %v5417_v29 = vunpack.c.l.bf16 %v5384_v54 }
 0x3f7   :  { %v5421_v34 = vunpack.c.l.bf16 %v5386_v9  ;;  %v5425_v32 = vunpack.c.l.bf16 %v5388_v13  ;;  %v5429_v56 = vunpack.c.l.bf16 %v5390_v35  ;;  %v5433_v20 = vunpack.c.l.bf16 %v5392_v10 }
 0x3f8   :  { %v5437_v51 = vunpack.c.l.bf16 %v5394_v8  ;;  %v5441_v18 = vunpack.c.l.bf16 %v5396_v62  ;;  %v5445_v17 = vunpack.c.l.bf16 %v5398_v1  ;;  %v5449_v7 = vunpack.c.l.bf16 %v5400_v27 }
 0x3f9   :  { %v5453_v19 = vunpack.c.l.bf16 %v5402_v0  ;;  %v5457_v11 = vunpack.c.l.bf16 %v5404_v31  ;;  %v5461_v63 = vunpack.c.l.bf16 %v5406_v16  ;;  %v5465_v60 = vunpack.c.l.bf16 %v5408_v41 }
 0x3fa   :  { %v5469_v40 = vunpack.c.l.bf16 %v5410_v42  ;;  %v5473_v14 = vunpack.c.l.bf16 %v5412_v23  ;;  %v5477_v58 = vunpack.c.l.bf16 %v5414_v28  ;;  %v5493_v21 = vadd.f32 %v5421_v34, %v5417_v29 }
 0x3fb   :  { %v5521_v33 = vadd.f32 %v5429_v56, %v5425_v32  ;;  %v5549_v22 = vadd.f32 %v5437_v51, %v5433_v20  ;;  %v5577_v47 = vadd.f32 %v5445_v17, %v5441_v18  ;;  %v5605_v12 = vadd.f32 %v5453_v19, %v5449_v7 }
 0x3fc   :  { %v5494_v30 = vrot.slane %v5493_v21, 4  ;;  %v5633_v6 = vadd.f32 %v5461_v63, %v5457_v11  ;;  %v5661_v50 = vadd.f32 %v5469_v40, %v5465_v60  ;;  %v5689_v45 = vadd.f32 %v5477_v58, %v5473_v14 }
 0x3fd   :  { %v5522_v25 = vrot.slane %v5521_v33, 4  ;;  %v5550_v49 = vrot.slane %v5549_v22, 4  ;;  %v5578_v24 = vrot.slane %v5577_v47, 4  ;;  %v5606_v44 = vrot.slane %v5605_v12, 4 }
 0x3fe   :  { %v5495_v48 = vadd.f32 %v5494_v30, %v5493_v21  ;;  %v5634_v3 = vrot.slane %v5633_v6, 4  ;;  %v5662_v54 = vrot.slane %v5661_v50, 4  ;;  %v5690_v52 = vrot.slane %v5689_v45, 4 }
 0x3ff   :  { %v5523_v4 = vadd.f32 %v5522_v25, %v5521_v33  ;;  %v5551_v61 = vadd.f32 %v5550_v49, %v5549_v22  ;;  %v5579_v55 = vadd.f32 %v5578_v24, %v5577_v47  ;;  %v5607_v9 = vadd.f32 %v5606_v44, %v5605_v12  ;;  %v8243_v49 = vld [vmem:[#allocation3 + $0x8] sm:$0xff] }
 0x400   :  { %v5496_v13 = vrot.slane %v5495_v48, 2  ;;  %v5635_v35 = vadd.f32 %v5634_v3, %v5633_v6  ;;  %v5663_v5 = vadd.f32 %v5662_v54, %v5661_v50  ;;  %v5691_v26 = vadd.f32 %v5690_v52, %v5689_v45  ;;  %v8245_v3 = vld [vmem:[#allocation3 + $0x208] sm:$0xff]  ;;  %v8246_v54 = vld [vmem:[#allocation3 + $0x218] sm:$0xff] }
 0x401   :  { %v5524_v43 = vrot.slane %v5523_v4, 2  ;;  %v5552_v10 = vrot.slane %v5551_v61, 2  ;;  %v5580_v8 = vrot.slane %v5579_v55, 2  ;;  %v5608_v62 = vrot.slane %v5607_v9, 2  ;;  %v8247_v52 = vld [vmem:[#allocation3 + $0x408] sm:$0xff] }
 0x402   :  { %v5497_v1 = vadd.f32 %v5496_v13, %v5495_v48  ;;  %v5636_v27 = vrot.slane %v5635_v35, 2  ;;  %v5664_v0 = vrot.slane %v5663_v5, 2  ;;  %v5692_v31 = vrot.slane %v5691_v26, 2  ;;  %v8244_v48 = vld [vmem:[#allocation3 + $0x18] sm:$0xff]  ;;  %v8251_v13 = vld [vmem:[#allocation3 + $0x808] sm:$0xff] }
 0x403   :  { %v5525_v16 = vadd.f32 %v5524_v43, %v5523_v4  ;;  %v5553_v41 = vadd.f32 %v5552_v10, %v5551_v61  ;;  %v5581_v29 = vadd.f32 %v5580_v8, %v5579_v55  ;;  %v5609_v42 = vadd.f32 %v5608_v62, %v5607_v9  ;;  %v8248_v4 = vld [vmem:[#allocation3 + $0x418] sm:$0xff]  ;;  %v8249_v61 = vld [vmem:[#allocation3 + $0x608] sm:$0xff] }
 0x404   :  { %v5498_v23 = vrot.slane %v5497_v1, 1  ;;  %v5637_v28 = vadd.f32 %v5636_v27, %v5635_v35  ;;  %v5665_v34 = vadd.f32 %v5664_v0, %v5663_v5  ;;  %v5693_v32 = vadd.f32 %v5692_v31, %v5691_v26  ;;  %v8250_v55 = vld [vmem:[#allocation3 + $0x618] sm:$0xff]  ;;  %v8253_v10 = vld [vmem:[#allocation3 + $0xa08] sm:$0xff] }
 0x405   :  { %v5526_v56 = vrot.slane %v5525_v16, 1  ;;  %v5554_v20 = vrot.slane %v5553_v41, 1  ;;  %v5582_v51 = vrot.slane %v5581_v29, 1  ;;  %v5610_v18 = vrot.slane %v5609_v42, 1  ;;  %v8252_v5 = vld [vmem:[#allocation3 + $0x818] sm:$0xff]  ;;  %v8255_v27 = vld [vmem:[#allocation3 + $0xc08] sm:$0xff] }
 0x406   :  { %v5499_v17 = vadd.f32 %v5498_v23, %v5497_v1  ;;  %v5638_v7 = vrot.slane %v5637_v28, 1  ;;  %v5666_v19 = vrot.slane %v5665_v34, 1  ;;  %v5694_v11 = vrot.slane %v5693_v32, 1  ;;  %v8254_v62 = vld [vmem:[#allocation3 + $0xa18] sm:$0xff] }
 0x407   :  { %v5527_v63 = vadd.f32 %v5526_v56, %v5525_v16  ;;  %v5555_v60 = vadd.f32 %v5554_v20, %v5553_v41  ;;  %v5583_v40 = vadd.f32 %v5582_v51, %v5581_v29  ;;  %v5611_v14 = vadd.f32 %v5610_v18, %v5609_v42  ;;  %v8256_v16 = vld [vmem:[#allocation3 + $0xc18] sm:$0xff]  ;;  %v8257_v29 = vld [vmem:[#allocation3 + $0xe08] sm:$0xff] }
 0x408   :  { %v5639_v58 = vadd.f32 %v5638_v7, %v5637_v28  ;;  %v5667_v21 = vadd.f32 %v5666_v19, %v5665_v34  ;;  %v5695_v33 = vadd.f32 %v5694_v11, %v5693_v32  ;;  %v5705_v22 = vadd.f32 %v5499_v17, %v9949_v2  ;;  %v8258_v23 = vld [vmem:[#allocation3 + $0xe18] sm:$0xff] }
 0x409   :  { %v5709_v47 = vadd.f32 %v5527_v63, %v9952_v53  ;;  %v5713_v12 = vadd.f32 %v5555_v60, %v9955_v57  ;;  %v5717_v30 = vadd.f32 %v5583_v40, %v9958_v15  ;;  %v5721_v6 = vadd.f32 %v5611_v14, %v9961_v46 }
 0x40a   :  { %v5725_v50 = vadd.f32 %v5639_v58, %v9964_v59  ;;  %v5729_v45 = vadd.f32 %v5667_v21, %v9967_v36  ;;  %v5733_v25 = vadd.f32 %v5695_v33, %v9970_v39  ;;  %v138_v24 = vunpack.c.h.bf16 %v8243_v49 }
 0x40b   :  { %v5792_v44 = vsel %vm5771_vm0, %v5709_v47, %v5705_v22  ;;  %v142_v2 = vunpack.c.h.bf16 %v8244_v48  ;;  %v146_v53 = vunpack.c.h.bf16 %v8245_v3  ;;  %v150_v57 = vunpack.c.h.bf16 %v8246_v54 }
 0x40c   :  { %v5793_v15 = vsel %vm5773_vm1, %v5713_v12, %v5792_v44  ;;  %v154_v46 = vunpack.c.h.bf16 %v8247_v52  ;;  %v158_v59 = vunpack.c.h.bf16 %v8248_v4  ;;  %v162_v36 = vunpack.c.h.bf16 %v8249_v61 }
 0x40d   :  { %v5794_v39 = vsel %vm5775_vm2, %v5717_v30, %v5793_v15  ;;  %v166_v9 = vunpack.c.h.bf16 %v8250_v55  ;;  %v170_v35 = vunpack.c.h.bf16 %v8251_v13  ;;  %v174_v26 = vunpack.c.h.bf16 %v8252_v5 }
 0x40e   :  { %v5795_v43 = vsel %vm5777_vm3, %v5721_v6, %v5794_v39  ;;  %v178_v8 = vunpack.c.h.bf16 %v8253_v10  ;;  %v182_v1 = vunpack.c.h.bf16 %v8254_v62  ;;  %v186_v0 = vunpack.c.h.bf16 %v8255_v27 }
 0x40f   :  { %v5796_v31 = vsel %vm5779_vm4, %v5725_v50, %v5795_v43  ;;  %v190_v41 = vunpack.c.h.bf16 %v8256_v16  ;;  %v194_v42 = vunpack.c.h.bf16 %v8257_v29  ;;  %v198_v28 = vunpack.c.h.bf16 %v8258_v23 }
 0x410   :  { %v5797_v34 = vsel %vm5781_vm5, %v5729_v45, %v5796_v31  ;;  %v220_v32 = vadd.f32 %v142_v2, %v138_v24  ;;  %v248_v56 = vadd.f32 %v150_v57, %v146_v53  ;;  %v276_v20 = vadd.f32 %v158_v59, %v154_v46 }
 0x411   :  { %v5798_v51 = vsel %vm5783_vm6, %v5733_v25, %v5797_v34  ;;  %v304_v18 = vadd.f32 %v166_v9, %v162_v36  ;;  %v332_v17 = vadd.f32 %v174_v26, %v170_v35  ;;  %v360_v7 = vadd.f32 %v182_v1, %v178_v8 }
 0x412   :  { %v5827_v19 = vmul.f32 0.00390625, %v5798_v51  ;;  %v221_v11 = vrot.slane %v220_v32, 4  ;;  %v249_v63 = vrot.slane %v248_v56, 4  ;;  %v277_v60 = vrot.slane %v276_v20, 4  ;;  %v8263_v51 = vld [vmem:[#allocation3 + $0x428] sm:$0xff] }
 0x413   :  { %v305_v40 = vrot.slane %v304_v18, 4  ;;  %v333_v14 = vrot.slane %v332_v17, 4  ;;  %v361_v58 = vrot.slane %v360_v7, 4  ;;  %v388_v21 = vadd.f32 %v190_v41, %v186_v0  ;;  %v8259_v41 = vld [vmem:[#allocation3 + $0x28] sm:$0xff] }
 0x414   :  { %v9987_v33 = vpack.c.bf16 %v5827_v19, %v5827_v19  ;;  %v222_v22 = vadd.f32 %v221_v11, %v220_v32  ;;  %v250_v47 = vadd.f32 %v249_v63, %v248_v56  ;;  %v278_v12 = vadd.f32 %v277_v60, %v276_v20  ;;  %v8262_v56 = vld [vmem:[#allocation3 + $0x238] sm:$0xff]  ;;  %v8265_v11 = vld [vmem:[#allocation3 + $0x628] sm:$0xff] }
 0x415   :  { %v306_v30 = vadd.f32 %v305_v40, %v304_v18  ;;  %v334_v6 = vadd.f32 %v333_v14, %v332_v17  ;;  %v362_v50 = vadd.f32 %v361_v58, %v360_v7  ;;  %v389_v45 = vrot.slane %v388_v21, 4  ;;  %v8264_v17 = vld [vmem:[#allocation3 + $0x438] sm:$0xff]  ;;  %v8267_v14 = vld [vmem:[#allocation3 + $0x828] sm:$0xff] }
 0x416   :  { %6645 = vmatmul.bf16.vlgmr.msra.gmra.mxu2 %v9987_v33  ;;  %v223_v25 = vrot.slane %v222_v22, 2  ;;  %v251_v49 = vrot.slane %v250_v47, 2  ;;  %v279_v24 = vrot.slane %v278_v12, 2  ;;  %v416_v44 = vadd.f32 %v198_v28, %v194_v42  ;;  %v8260_v42 = vld [vmem:[#allocation3 + $0x38] sm:$0xff]  ;;  %v8261_v28 = vld [vmem:[#allocation3 + $0x228] sm:$0xff] }
 0x417   :  { %v307_v48 = vrot.slane %v306_v30, 2  ;;  %v335_v2 = vrot.slane %v334_v6, 2  ;;  %v363_v3 = vrot.slane %v362_v50, 2  ;;  %v390_v53 = vadd.f32 %v389_v45, %v388_v21  ;;  %v8266_v60 = vld [vmem:[#allocation3 + $0x638] sm:$0xff] }
 0x418   :  { %v224_v54 = vadd.f32 %v223_v25, %v222_v22  ;;  %v252_v57 = vadd.f32 %v251_v49, %v250_v47  ;;  %v280_v15 = vadd.f32 %v279_v24, %v278_v12  ;;  %v417_v52 = vrot.slane %v416_v44, 4  ;;  %v8268_v21 = vld [vmem:[#allocation3 + $0x838] sm:$0xff]  ;;  %v8269_v47 = vld [vmem:[#allocation3 + $0xa28] sm:$0xff] }
 0x419   :  { %v308_v46 = vadd.f32 %v307_v48, %v306_v30  ;;  %v336_v4 = vadd.f32 %v335_v2, %v334_v6  ;;  %v364_v59 = vadd.f32 %v363_v3, %v362_v50  ;;  %v391_v61 = vrot.slane %v390_v53, 2  ;;  %v8270_v30 = vld [vmem:[#allocation3 + $0xa38] sm:$0xff]  ;;  %v8271_v50 = vld [vmem:[#allocation3 + $0xc28] sm:$0xff] }
 0x41a   :  { %v225_v36 = vrot.slane %v224_v54, 1  ;;  %v253_v39 = vrot.slane %v252_v57, 1  ;;  %v281_v55 = vrot.slane %v280_v15, 1  ;;  %v418_v9 = vadd.f32 %v417_v52, %v416_v44  ;;  %v8272_v49 = vld [vmem:[#allocation3 + $0xc38] sm:$0xff]  ;;  %v8273_v44 = vld [vmem:[#allocation3 + $0xe28] sm:$0xff] }
 0x41b   :  { %v309_v13 = vrot.slane %v308_v46, 1  ;;  %v337_v35 = vrot.slane %v336_v4, 1  ;;  %v365_v5 = vrot.slane %v364_v59, 1  ;;  %v392_v26 = vadd.f32 %v391_v61, %v390_v53  ;;  %v8274_v2 = vld [vmem:[#allocation3 + $0xe38] sm:$0xff] }
 0x41c   :  { %v9990_v43 = vadd.f32 %v225_v36, %v224_v54  ;;  %v9992_v10 = vadd.f32 %v253_v39, %v252_v57  ;;  %v9994_v8 = vadd.f32 %v281_v55, %v280_v15  ;;  %v419_v62 = vrot.slane %v418_v9, 2 }
 0x41d   :  { %v9996_v1 = vadd.f32 %v309_v13, %v308_v46  ;;  %v9998_v27 = vadd.f32 %v337_v35, %v336_v4  ;;  %v10000_v0 = vadd.f32 %v365_v5, %v364_v59  ;;  %v393_v31 = vrot.slane %v392_v26, 1 }
 0x41e   :  { %v420_v16 = vadd.f32 %v419_v62, %v418_v9  ;;  %v490_v29 = vunpack.c.h.bf16 %v8259_v41  ;;  %v494_v23 = vunpack.c.h.bf16 %v8260_v42  ;;  %v498_v34 = vunpack.c.h.bf16 %v8261_v28 }
 0x41f   :  { %v10002_v32 = vadd.f32 %v393_v31, %v392_v26  ;;  %v502_v20 = vunpack.c.h.bf16 %v8262_v56  ;;  %v506_v18 = vunpack.c.h.bf16 %v8263_v51  ;;  %v510_v7 = vunpack.c.h.bf16 %v8264_v17 }
 0x420   :  { %v421_v19 = vrot.slane %v420_v16, 1  ;;  %v514_v63 = vunpack.c.h.bf16 %v8265_v11  ;;  %v518_v40 = vunpack.c.h.bf16 %v8266_v60  ;;  %v522_v58 = vunpack.c.h.bf16 %v8267_v14 }
 0x421   :  { %v526_v22 = vunpack.c.h.bf16 %v8268_v21  ;;  %v530_v12 = vunpack.c.h.bf16 %v8269_v47  ;;  %v534_v6 = vunpack.c.h.bf16 %v8270_v30  ;;  %v538_v45 = vunpack.c.h.bf16 %v8271_v50 }
 0x422   :  { %v10004_v25 = vadd.f32 %v421_v19, %v420_v16  ;;  %v542_v24 = vunpack.c.h.bf16 %v8272_v49  ;;  %v546_v48 = vunpack.c.h.bf16 %v8273_v44  ;;  %v550_v3 = vunpack.c.h.bf16 %v8274_v2 }
 0x423   :  { %v572_v53 = vadd.f32 %v494_v23, %v490_v29  ;;  %v600_v54 = vadd.f32 %v502_v20, %v498_v34  ;;  %v628_v57 = vadd.f32 %v510_v7, %v506_v18  ;;  %v656_v15 = vadd.f32 %v518_v40, %v514_v63 }
 0x424   :  { %v684_v52 = vadd.f32 %v526_v22, %v522_v58  ;;  %v712_v46 = vadd.f32 %v534_v6, %v530_v12  ;;  %v740_v4 = vadd.f32 %v542_v24, %v538_v45  ;;  %v768_v59 = vadd.f32 %v550_v3, %v546_v48 }
 0x425   :  { %v573_v61 = vrot.slane %v572_v53, 4  ;;  %v601_v36 = vrot.slane %v600_v54, 4  ;;  %v629_v39 = vrot.slane %v628_v57, 4  ;;  %v657_v55 = vrot.slane %v656_v15, 4 }
 0x426   :  { %v685_v9 = vrot.slane %v684_v52, 4  ;;  %v713_v13 = vrot.slane %v712_v46, 4  ;;  %v741_v35 = vrot.slane %v740_v4, 4  ;;  %v769_v5 = vrot.slane %v768_v59, 4 }
 0x427   :  { %v574_v26 = vadd.f32 %v573_v61, %v572_v53  ;;  %v602_v62 = vadd.f32 %v601_v36, %v600_v54  ;;  %v630_v31 = vadd.f32 %v629_v39, %v628_v57  ;;  %v658_v16 = vadd.f32 %v657_v55, %v656_v15  ;;  %v8276_v55 = vld [vmem:[#allocation3 + $0x58] sm:$0xff] }
 0x428   :  { %v686_v41 = vadd.f32 %v685_v9, %v684_v52  ;;  %v714_v29 = vadd.f32 %v713_v13, %v712_v46  ;;  %v742_v42 = vadd.f32 %v741_v35, %v740_v4  ;;  %v770_v23 = vadd.f32 %v769_v5, %v768_v59  ;;  %v8277_v9 = vld [vmem:[#allocation3 + $0x248] sm:$0xff] }
 0x429   :  { %v575_v28 = vrot.slane %v574_v26, 2  ;;  %v603_v34 = vrot.slane %v602_v62, 2  ;;  %v631_v56 = vrot.slane %v630_v31, 2  ;;  %v659_v20 = vrot.slane %v658_v16, 2  ;;  %v8279_v5 = vld [vmem:[#allocation3 + $0x448] sm:$0xff] }
 0x42a   :  { %v687_v51 = vrot.slane %v686_v41, 2  ;;  %v715_v18 = vrot.slane %v714_v29, 2  ;;  %v743_v17 = vrot.slane %v742_v42, 2  ;;  %v771_v7 = vrot.slane %v770_v23, 2 }
 0x42b   :  { %v576_v19 = vadd.f32 %v575_v28, %v574_v26  ;;  %v604_v11 = vadd.f32 %v603_v34, %v602_v62  ;;  %v632_v63 = vadd.f32 %v631_v56, %v630_v31  ;;  %v660_v60 = vadd.f32 %v659_v20, %v658_v16  ;;  %v8280_v26 = vld [vmem:[#allocation3 + $0x458] sm:$0xff]  ;;  %v8287_v20 = vld [vmem:[#allocation3 + $0xc48] sm:$0xff] }
 0x42c   :  { %v688_v40 = vadd.f32 %v687_v51, %v686_v41  ;;  %v716_v14 = vadd.f32 %v715_v18, %v714_v29  ;;  %v744_v58 = vadd.f32 %v743_v17, %v742_v42  ;;  %v772_v21 = vadd.f32 %v771_v7, %v770_v23  ;;  %v8282_v16 = vld [vmem:[#allocation3 + $0x658] sm:$0xff]  ;;  %v8283_v41 = vld [vmem:[#allocation3 + $0x848] sm:$0xff] }
 0x42d   :  { %v577_v22 = vrot.slane %v576_v19, 1  ;;  %v605_v47 = vrot.slane %v604_v11, 1  ;;  %v633_v12 = vrot.slane %v632_v63, 1  ;;  %v661_v30 = vrot.slane %v660_v60, 1  ;;  %v8285_v23 = vld [vmem:[#allocation3 + $0xa48] sm:$0xff]  ;;  %v8286_v34 = vld [vmem:[#allocation3 + $0xa58] sm:$0xff] }
 0x42e   :  { %v689_v6 = vrot.slane %v688_v40, 1  ;;  %v717_v50 = vrot.slane %v716_v14, 1  ;;  %v745_v45 = vrot.slane %v744_v58, 1  ;;  %v773_v49 = vrot.slane %v772_v21, 1  ;;  %v8288_v18 = vld [vmem:[#allocation3 + $0xc58] sm:$0xff]  ;;  %v8289_v7 = vld [vmem:[#allocation3 + $0xe48] sm:$0xff] }
 0x42f   :  { %v578_v24 = vadd.f32 %v577_v22, %v576_v19  ;;  %v606_v44 = vadd.f32 %v605_v47, %v604_v11  ;;  %v634_v48 = vadd.f32 %v633_v12, %v632_v63  ;;  %v662_v2 = vadd.f32 %v661_v30, %v660_v60  ;;  %v8290_v11 = vld [vmem:[#allocation3 + $0xe58] sm:$0xff] }
 0x430   :  { %v690_v3 = vadd.f32 %v689_v6, %v688_v40  ;;  %v718_v53 = vadd.f32 %v717_v50, %v716_v14  ;;  %v746_v54 = vadd.f32 %v745_v45, %v744_v58  ;;  %v774_v57 = vadd.f32 %v773_v49, %v772_v21 }
 0x431   :  { %v10007_v15 = vadd.f32 %v578_v24, %v9990_v43  ;;  %v10010_v52 = vadd.f32 %v606_v44, %v9992_v10  ;;  %v10013_v46 = vadd.f32 %v634_v48, %v9994_v8  ;;  %v10016_v4 = vadd.f32 %v662_v2, %v9996_v1  ;;  %v8275_v10 = vld [vmem:[#allocation3 + $0x48] sm:$0xff]  ;;  %v8278_v1 = vld [vmem:[#allocation3 + $0x258] sm:$0xff] }
 0x432   :  { %v10019_v59 = vadd.f32 %v690_v3, %v9998_v27  ;;  %v10022_v61 = vadd.f32 %v718_v53, %v10000_v0  ;;  %v10025_v36 = vadd.f32 %v746_v54, %v10002_v32  ;;  %v10028_v43 = vadd.f32 %v774_v57, %v10004_v25  ;;  %v8281_v0 = vld [vmem:[#allocation3 + $0x648] sm:$0xff]  ;;  %v8284_v25 = vld [vmem:[#allocation3 + $0x858] sm:$0xff] }
 0x433   :  { %v842_v39 = vunpack.c.h.bf16 %v8275_v10  ;;  %v846_v8 = vunpack.c.h.bf16 %v8276_v55  ;;  %v850_v13 = vunpack.c.h.bf16 %v8277_v9  ;;  %v854_v35 = vunpack.c.h.bf16 %v8278_v1 }
 0x434   :  { %v858_v27 = vunpack.c.h.bf16 %v8279_v5  ;;  %v862_v62 = vunpack.c.h.bf16 %v8280_v26  ;;  %v866_v31 = vunpack.c.h.bf16 %v8281_v0  ;;  %v870_v32 = vunpack.c.h.bf16 %v8282_v16 }
 0x435   :  { %v874_v29 = vunpack.c.h.bf16 %v8283_v41  ;;  %v878_v42 = vunpack.c.h.bf16 %v8284_v25  ;;  %v882_v28 = vunpack.c.h.bf16 %v8285_v23  ;;  %v886_v56 = vunpack.c.h.bf16 %v8286_v34 }
 0x436   :  { %v890_v51 = vunpack.c.h.bf16 %v8287_v20  ;;  %v894_v17 = vunpack.c.h.bf16 %v8288_v18  ;;  %v898_v19 = vunpack.c.h.bf16 %v8289_v7  ;;  %v902_v63 = vunpack.c.h.bf16 %v8290_v11 }
 0x437   :  { %v924_v60 = vadd.f32 %v846_v8, %v842_v39  ;;  %v952_v40 = vadd.f32 %v854_v35, %v850_v13  ;;  %v980_v14 = vadd.f32 %v862_v62, %v858_v27  ;;  %v1008_v58 = vadd.f32 %v870_v32, %v866_v31 }
 0x438   :  { %v1036_v21 = vadd.f32 %v878_v42, %v874_v29  ;;  %v1064_v22 = vadd.f32 %v886_v56, %v882_v28  ;;  %v1092_v47 = vadd.f32 %v894_v17, %v890_v51  ;;  %v1120_v12 = vadd.f32 %v902_v63, %v898_v19 }
 0x439   :  { %v925_v30 = vrot.slane %v924_v60, 4  ;;  %v953_v6 = vrot.slane %v952_v40, 4  ;;  %v981_v50 = vrot.slane %v980_v14, 4  ;;  %v1009_v45 = vrot.slane %v1008_v58, 4 }
 0x43a   :  { %v1037_v49 = vrot.slane %v1036_v21, 4  ;;  %v1065_v24 = vrot.slane %v1064_v22, 4  ;;  %v1093_v44 = vrot.slane %v1092_v47, 4  ;;  %v1121_v48 = vrot.slane %v1120_v12, 4 }
 0x43b   :  { %v926_v2 = vadd.f32 %v925_v30, %v924_v60  ;;  %v954_v3 = vadd.f32 %v953_v6, %v952_v40  ;;  %v982_v53 = vadd.f32 %v981_v50, %v980_v14  ;;  %v1010_v54 = vadd.f32 %v1009_v45, %v1008_v58  ;;  %v8292_v45 = vld [vmem:[#allocation3 + $0x78] sm:$0xff] }
 0x43c   :  { %v1038_v57 = vadd.f32 %v1037_v49, %v1036_v21  ;;  %v1066_v10 = vadd.f32 %v1065_v24, %v1064_v22  ;;  %v1094_v39 = vadd.f32 %v1093_v44, %v1092_v47  ;;  %v1122_v55 = vadd.f32 %v1121_v48, %v1120_v12  ;;  %v8293_v49 = vld [vmem:[#allocation3 + $0x268] sm:$0xff] }
 0x43d   :  { %v927_v8 = vrot.slane %v926_v2, 2  ;;  %v955_v9 = vrot.slane %v954_v3, 2  ;;  %v983_v13 = vrot.slane %v982_v53, 2  ;;  %v1011_v1 = vrot.slane %v1010_v54, 2  ;;  %v8295_v48 = vld [vmem:[#allocation3 + $0x468] sm:$0xff] }
 0x43e   :  { %v1039_v35 = vrot.slane %v1038_v57, 2  ;;  %v1067_v5 = vrot.slane %v1066_v10, 2  ;;  %v1095_v27 = vrot.slane %v1094_v39, 2  ;;  %v1123_v26 = vrot.slane %v1122_v55, 2 }
 0x43f   :  { %v928_v62 = vadd.f32 %v927_v8, %v926_v2  ;;  %v956_v0 = vadd.f32 %v955_v9, %v954_v3  ;;  %v984_v31 = vadd.f32 %v983_v13, %v982_v53  ;;  %v1012_v16 = vadd.f32 %v1011_v1, %v1010_v54  ;;  %v8296_v2 = vld [vmem:[#allocation3 + $0x478] sm:$0xff]  ;;  %v8303_v1 = vld [vmem:[#allocation3 + $0xc68] sm:$0xff] }
 0x440   :  { %v1040_v32 = vadd.f32 %v1039_v35, %v1038_v57  ;;  %v1068_v41 = vadd.f32 %v1067_v5, %v1066_v10  ;;  %v1096_v29 = vadd.f32 %v1095_v27, %v1094_v39  ;;  %v1124_v25 = vadd.f32 %v1123_v26, %v1122_v55  ;;  %v8298_v54 = vld [vmem:[#allocation3 + $0x678] sm:$0xff]  ;;  %v8299_v57 = vld [vmem:[#allocation3 + $0x868] sm:$0xff] }
 0x441   :  { %v929_v42 = vrot.slane %v928_v62, 1  ;;  %v957_v23 = vrot.slane %v956_v0, 1  ;;  %v985_v28 = vrot.slane %v984_v31, 1  ;;  %v1013_v34 = vrot.slane %v1012_v16, 1  ;;  %v8301_v55 = vld [vmem:[#allocation3 + $0xa68] sm:$0xff]  ;;  %v8302_v9 = vld [vmem:[#allocation3 + $0xa78] sm:$0xff] }
 0x442   :  { %v1041_v56 = vrot.slane %v1040_v32, 1  ;;  %v1069_v20 = vrot.slane %v1068_v41, 1  ;;  %v1097_v51 = vrot.slane %v1096_v29, 1  ;;  %v1125_v18 = vrot.slane %v1124_v25, 1  ;;  %v8304_v5 = vld [vmem:[#allocation3 + $0xc78] sm:$0xff]  ;;  %v8305_v26 = vld [vmem:[#allocation3 + $0xe68] sm:$0xff] }
 0x443   :  { %v930_v17 = vadd.f32 %v929_v42, %v928_v62  ;;  %v958_v7 = vadd.f32 %v957_v23, %v956_v0  ;;  %v986_v19 = vadd.f32 %v985_v28, %v984_v31  ;;  %v1014_v11 = vadd.f32 %v1013_v34, %v1012_v16  ;;  %v8306_v0 = vld [vmem:[#allocation3 + $0xe78] sm:$0xff] }
 0x444   :  { %v1042_v63 = vadd.f32 %v1041_v56, %v1040_v32  ;;  %v1070_v60 = vadd.f32 %v1069_v20, %v1068_v41  ;;  %v1098_v40 = vadd.f32 %v1097_v51, %v1096_v29  ;;  %v1126_v14 = vadd.f32 %v1125_v18, %v1124_v25 }
 0x445   :  { %v10031_v58 = vadd.f32 %v930_v17, %v10007_v15  ;;  %v10034_v21 = vadd.f32 %v958_v7, %v10010_v52  ;;  %v10037_v22 = vadd.f32 %v986_v19, %v10013_v46  ;;  %v10040_v47 = vadd.f32 %v1014_v11, %v10016_v4  ;;  %v8291_v52 = vld [vmem:[#allocation3 + $0x68] sm:$0xff]  ;;  %v8294_v4 = vld [vmem:[#allocation3 + $0x278] sm:$0xff] }
 0x446   :  { %v10043_v12 = vadd.f32 %v1042_v63, %v10019_v59  ;;  %v10046_v30 = vadd.f32 %v1070_v60, %v10022_v61  ;;  %v10049_v6 = vadd.f32 %v1098_v40, %v10025_v36  ;;  %v10052_v15 = vadd.f32 %v1126_v14, %v10028_v43  ;;  %v8297_v61 = vld [vmem:[#allocation3 + $0x668] sm:$0xff]  ;;  %v8300_v43 = vld [vmem:[#allocation3 + $0x878] sm:$0xff] }
 0x447   :  { %v1194_v50 = vunpack.c.h.bf16 %v8291_v52  ;;  %v1198_v46 = vunpack.c.h.bf16 %v8292_v45  ;;  %v1202_v24 = vunpack.c.h.bf16 %v8293_v49  ;;  %v1206_v44 = vunpack.c.h.bf16 %v8294_v4 }
 0x448   :  { %v1210_v59 = vunpack.c.h.bf16 %v8295_v48  ;;  %v1214_v3 = vunpack.c.h.bf16 %v8296_v2  ;;  %v1218_v53 = vunpack.c.h.bf16 %v8297_v61  ;;  %v1222_v36 = vunpack.c.h.bf16 %v8298_v54 }
 0x449   :  { %v1226_v10 = vunpack.c.h.bf16 %v8299_v57  ;;  %v1230_v39 = vunpack.c.h.bf16 %v8300_v43  ;;  %v1234_v8 = vunpack.c.h.bf16 %v8301_v55  ;;  %v1238_v13 = vunpack.c.h.bf16 %v8302_v9 }
 0x44a   :  { %v1242_v35 = vunpack.c.h.bf16 %v8303_v1  ;;  %v1246_v27 = vunpack.c.h.bf16 %v8304_v5  ;;  %v1250_v62 = vunpack.c.h.bf16 %v8305_v26  ;;  %v1254_v31 = vunpack.c.h.bf16 %v8306_v0 }
 0x44b   :  { %v1276_v16 = vadd.f32 %v1198_v46, %v1194_v50  ;;  %v1304_v32 = vadd.f32 %v1206_v44, %v1202_v24  ;;  %v1332_v41 = vadd.f32 %v1214_v3, %v1210_v59  ;;  %v1360_v29 = vadd.f32 %v1222_v36, %v1218_v53 }
 0x44c   :  { %v1388_v25 = vadd.f32 %v1230_v39, %v1226_v10  ;;  %v1416_v42 = vadd.f32 %v1238_v13, %v1234_v8  ;;  %v1444_v23 = vadd.f32 %v1246_v27, %v1242_v35  ;;  %v1472_v28 = vadd.f32 %v1254_v31, %v1250_v62 }
 0x44d   :  { %v1277_v34 = vrot.slane %v1276_v16, 4  ;;  %v1305_v56 = vrot.slane %v1304_v32, 4  ;;  %v1333_v20 = vrot.slane %v1332_v41, 4  ;;  %v1361_v51 = vrot.slane %v1360_v29, 4 }
 0x44e   :  { %v1389_v18 = vrot.slane %v1388_v25, 4  ;;  %v1417_v17 = vrot.slane %v1416_v42, 4  ;;  %v1445_v7 = vrot.slane %v1444_v23, 4  ;;  %v1473_v19 = vrot.slane %v1472_v28, 4 }
 0x44f   :  { %v1278_v11 = vadd.f32 %v1277_v34, %v1276_v16  ;;  %v1306_v63 = vadd.f32 %v1305_v56, %v1304_v32  ;;  %v1334_v60 = vadd.f32 %v1333_v20, %v1332_v41  ;;  %v1362_v40 = vadd.f32 %v1361_v51, %v1360_v29  ;;  %v8308_v51 = vld [vmem:[#allocation3 + $0x98] sm:$0xff] }
 0x450   :  { %v1390_v14 = vadd.f32 %v1389_v18, %v1388_v25  ;;  %v1418_v52 = vadd.f32 %v1417_v17, %v1416_v42  ;;  %v1446_v50 = vadd.f32 %v1445_v7, %v1444_v23  ;;  %v1474_v45 = vadd.f32 %v1473_v19, %v1472_v28  ;;  %v8309_v18 = vld [vmem:[#allocation3 + $0x288] sm:$0xff] }
 0x451   :  { %v1279_v46 = vrot.slane %v1278_v11, 2  ;;  %v1307_v49 = vrot.slane %v1306_v63, 2  ;;  %v1335_v24 = vrot.slane %v1334_v60, 2  ;;  %v1363_v4 = vrot.slane %v1362_v40, 2  ;;  %v8311_v19 = vld [vmem:[#allocation3 + $0x488] sm:$0xff] }
 0x452   :  { %v1391_v44 = vrot.slane %v1390_v14, 2  ;;  %v1419_v48 = vrot.slane %v1418_v52, 2  ;;  %v1447_v59 = vrot.slane %v1446_v50, 2  ;;  %v1475_v2 = vrot.slane %v1474_v45, 2 }
 0x453   :  { %v1280_v3 = vadd.f32 %v1279_v46, %v1278_v11  ;;  %v1308_v61 = vadd.f32 %v1307_v49, %v1306_v63  ;;  %v1336_v53 = vadd.f32 %v1335_v24, %v1334_v60  ;;  %v1364_v54 = vadd.f32 %v1363_v4, %v1362_v40  ;;  %v8312_v11 = vld [vmem:[#allocation3 + $0x498] sm:$0xff]  ;;  %v8319_v4 = vld [vmem:[#allocation3 + $0xc88] sm:$0xff] }
 0x454   :  { %v1392_v36 = vadd.f32 %v1391_v44, %v1390_v14  ;;  %v1420_v57 = vadd.f32 %v1419_v48, %v1418_v52  ;;  %v1448_v10 = vadd.f32 %v1447_v59, %v1446_v50  ;;  %v1476_v43 = vadd.f32 %v1475_v2, %v1474_v45  ;;  %v8314_v40 = vld [vmem:[#allocation3 + $0x698] sm:$0xff]  ;;  %v8315_v14 = vld [vmem:[#allocation3 + $0x888] sm:$0xff] }
 0x455   :  { %v1281_v39 = vrot.slane %v1280_v3, 1  ;;  %v1309_v55 = vrot.slane %v1308_v61, 1  ;;  %v1337_v8 = vrot.slane %v1336_v53, 1  ;;  %v1365_v9 = vrot.slane %v1364_v54, 1  ;;  %v8317_v45 = vld [vmem:[#allocation3 + $0xa88] sm:$0xff]  ;;  %v8318_v49 = vld [vmem:[#allocation3 + $0xa98] sm:$0xff] }
 0x456   :  { %v1393_v13 = vrot.slane %v1392_v36, 1  ;;  %v1421_v1 = vrot.slane %v1420_v57, 1  ;;  %v1449_v35 = vrot.slane %v1448_v10, 1  ;;  %v1477_v5 = vrot.slane %v1476_v43, 1  ;;  %v8320_v48 = vld [vmem:[#allocation3 + $0xc98] sm:$0xff]  ;;  %v8321_v2 = vld [vmem:[#allocation3 + $0xe88] sm:$0xff] }
 0x457   :  { %v1282_v27 = vadd.f32 %v1281_v39, %v1280_v3  ;;  %v1310_v26 = vadd.f32 %v1309_v55, %v1308_v61  ;;  %v1338_v62 = vadd.f32 %v1337_v8, %v1336_v53  ;;  %v1366_v0 = vadd.f32 %v1365_v9, %v1364_v54  ;;  %v8322_v61 = vld [vmem:[#allocation3 + $0xe98] sm:$0xff] }
 0x458   :  { %v1394_v31 = vadd.f32 %v1393_v13, %v1392_v36  ;;  %v1422_v16 = vadd.f32 %v1421_v1, %v1420_v57  ;;  %v1450_v32 = vadd.f32 %v1449_v35, %v1448_v10  ;;  %v1478_v41 = vadd.f32 %v1477_v5, %v1476_v43 }
 0x459   :  { %v10055_v29 = vadd.f32 %v1282_v27, %v10031_v58  ;;  %v10058_v25 = vadd.f32 %v1310_v26, %v10034_v21  ;;  %v10061_v42 = vadd.f32 %v1338_v62, %v10037_v22  ;;  %v10064_v23 = vadd.f32 %v1366_v0, %v10040_v47  ;;  %v8307_v21 = vld [vmem:[#allocation3 + $0x88] sm:$0xff]  ;;  %v8310_v47 = vld [vmem:[#allocation3 + $0x298] sm:$0xff] }
 0x45a   :  { %v10067_v28 = vadd.f32 %v1394_v31, %v10043_v12  ;;  %v10070_v34 = vadd.f32 %v1422_v16, %v10046_v30  ;;  %v10073_v56 = vadd.f32 %v1450_v32, %v10049_v6  ;;  %v10076_v58 = vadd.f32 %v1478_v41, %v10052_v15  ;;  %v8313_v30 = vld [vmem:[#allocation3 + $0x688] sm:$0xff]  ;;  %v8316_v15 = vld [vmem:[#allocation3 + $0x898] sm:$0xff] }
 0x45b   :  { %v1546_v20 = vunpack.c.h.bf16 %v8307_v21  ;;  %v1550_v22 = vunpack.c.h.bf16 %v8308_v51  ;;  %v1554_v17 = vunpack.c.h.bf16 %v8309_v18  ;;  %v1558_v7 = vunpack.c.h.bf16 %v8310_v47 }
 0x45c   :  { %v1562_v12 = vunpack.c.h.bf16 %v8311_v19  ;;  %v1566_v63 = vunpack.c.h.bf16 %v8312_v11  ;;  %v1570_v60 = vunpack.c.h.bf16 %v8313_v30  ;;  %v1574_v6 = vunpack.c.h.bf16 %v8314_v40 }
 0x45d   :  { %v1578_v52 = vunpack.c.h.bf16 %v8315_v14  ;;  %v1582_v50 = vunpack.c.h.bf16 %v8316_v15  ;;  %v1586_v46 = vunpack.c.h.bf16 %v8317_v45  ;;  %v1590_v24 = vunpack.c.h.bf16 %v8318_v49 }
 0x45e   :  { %v1594_v44 = vunpack.c.h.bf16 %v8319_v4  ;;  %v1598_v59 = vunpack.c.h.bf16 %v8320_v48  ;;  %v1602_v3 = vunpack.c.h.bf16 %v8321_v2  ;;  %v1606_v53 = vunpack.c.h.bf16 %v8322_v61 }
 0x45f   :  { %v1628_v54 = vadd.f32 %v1550_v22, %v1546_v20  ;;  %v1656_v36 = vadd.f32 %v1558_v7, %v1554_v17  ;;  %v1684_v57 = vadd.f32 %v1566_v63, %v1562_v12  ;;  %v1712_v10 = vadd.f32 %v1574_v6, %v1570_v60 }
 0x460   :  { %v1740_v43 = vadd.f32 %v1582_v50, %v1578_v52  ;;  %v1768_v39 = vadd.f32 %v1590_v24, %v1586_v46  ;;  %v1796_v55 = vadd.f32 %v1598_v59, %v1594_v44  ;;  %v1824_v8 = vadd.f32 %v1606_v53, %v1602_v3 }
 0x461   :  { %v1629_v9 = vrot.slane %v1628_v54, 4  ;;  %v1657_v13 = vrot.slane %v1656_v36, 4  ;;  %v1685_v1 = vrot.slane %v1684_v57, 4  ;;  %v1713_v35 = vrot.slane %v1712_v10, 4 }
 0x462   :  { %v1741_v5 = vrot.slane %v1740_v43, 4  ;;  %v1769_v27 = vrot.slane %v1768_v39, 4  ;;  %v1797_v26 = vrot.slane %v1796_v55, 4  ;;  %v1825_v62 = vrot.slane %v1824_v8, 4 }
 0x463   :  { %v1630_v0 = vadd.f32 %v1629_v9, %v1628_v54  ;;  %v1658_v31 = vadd.f32 %v1657_v13, %v1656_v36  ;;  %v1686_v16 = vadd.f32 %v1685_v1, %v1684_v57  ;;  %v1714_v32 = vadd.f32 %v1713_v35, %v1712_v10  ;;  %v8324_v35 = vld [vmem:[#allocation3 + $0xb8] sm:$0xff] }
 0x464   :  { %v1742_v41 = vadd.f32 %v1741_v5, %v1740_v43  ;;  %v1770_v21 = vadd.f32 %v1769_v27, %v1768_v39  ;;  %v1798_v20 = vadd.f32 %v1797_v26, %v1796_v55  ;;  %v1826_v51 = vadd.f32 %v1825_v62, %v1824_v8  ;;  %v8325_v5 = vld [vmem:[#allocation3 + $0x2a8] sm:$0xff] }
 0x465   :  { %v1631_v22 = vrot.slane %v1630_v0, 2  ;;  %v1659_v18 = vrot.slane %v1658_v31, 2  ;;  %v1687_v17 = vrot.slane %v1686_v16, 2  ;;  %v1715_v47 = vrot.slane %v1714_v32, 2  ;;  %v8327_v62 = vld [vmem:[#allocation3 + $0x4a8] sm:$0xff] }
 0x466   :  { %v1743_v7 = vrot.slane %v1742_v41, 2  ;;  %v1771_v19 = vrot.slane %v1770_v21, 2  ;;  %v1799_v12 = vrot.slane %v1798_v20, 2  ;;  %v1827_v11 = vrot.slane %v1826_v51, 2 }
 0x467   :  { %v1632_v63 = vadd.f32 %v1631_v22, %v1630_v0  ;;  %v1660_v30 = vadd.f32 %v1659_v18, %v1658_v31  ;;  %v1688_v60 = vadd.f32 %v1687_v17, %v1686_v16  ;;  %v1716_v40 = vadd.f32 %v1715_v47, %v1714_v32  ;;  %v8328_v0 = vld [vmem:[#allocation3 + $0x4b8] sm:$0xff]  ;;  %v8335_v47 = vld [vmem:[#allocation3 + $0xca8] sm:$0xff] }
 0x468   :  { %v1744_v6 = vadd.f32 %v1743_v7, %v1742_v41  ;;  %v1772_v14 = vadd.f32 %v1771_v19, %v1770_v21  ;;  %v1800_v52 = vadd.f32 %v1799_v12, %v1798_v20  ;;  %v1828_v15 = vadd.f32 %v1827_v11, %v1826_v51  ;;  %v8330_v32 = vld [vmem:[#allocation3 + $0x6b8] sm:$0xff]  ;;  %v8331_v41 = vld [vmem:[#allocation3 + $0x8a8] sm:$0xff] }
 0x469   :  { %v1633_v50 = vrot.slane %v1632_v63, 1  ;;  %v1661_v45 = vrot.slane %v1660_v30, 1  ;;  %v1689_v46 = vrot.slane %v1688_v60, 1  ;;  %v1717_v49 = vrot.slane %v1716_v40, 1  ;;  %v8333_v51 = vld [vmem:[#allocation3 + $0xaa8] sm:$0xff]  ;;  %v8334_v18 = vld [vmem:[#allocation3 + $0xab8] sm:$0xff] }
 0x46a   :  { %v1745_v24 = vrot.slane %v1744_v6, 1  ;;  %v1773_v4 = vrot.slane %v1772_v14, 1  ;;  %v1801_v44 = vrot.slane %v1800_v52, 1  ;;  %v1829_v48 = vrot.slane %v1828_v15, 1  ;;  %v8336_v19 = vld [vmem:[#allocation3 + $0xcb8] sm:$0xff]  ;;  %v8337_v11 = vld [vmem:[#allocation3 + $0xea8] sm:$0xff] }
 0x46b   :  { %v1634_v59 = vadd.f32 %v1633_v50, %v1632_v63  ;;  %v1662_v2 = vadd.f32 %v1661_v45, %v1660_v30  ;;  %v1690_v3 = vadd.f32 %v1689_v46, %v1688_v60  ;;  %v1718_v61 = vadd.f32 %v1717_v49, %v1716_v40  ;;  %v8338_v30 = vld [vmem:[#allocation3 + $0xeb8] sm:$0xff] }
 0x46c   :  { %v1746_v53 = vadd.f32 %v1745_v24, %v1744_v6  ;;  %v1774_v54 = vadd.f32 %v1773_v4, %v1772_v14  ;;  %v1802_v36 = vadd.f32 %v1801_v44, %v1800_v52  ;;  %v1830_v57 = vadd.f32 %v1829_v48, %v1828_v15 }
 0x46d   :  { %v10079_v10 = vadd.f32 %v1634_v59, %v10055_v29  ;;  %v10082_v43 = vadd.f32 %v1662_v2, %v10058_v25  ;;  %v10085_v39 = vadd.f32 %v1690_v3, %v10061_v42  ;;  %v10088_v55 = vadd.f32 %v1718_v61, %v10064_v23  ;;  %v8323_v25 = vld [vmem:[#allocation3 + $0xa8] sm:$0xff]  ;;  %v8326_v23 = vld [vmem:[#allocation3 + $0x2b8] sm:$0xff] }
 0x46e   :  { %v10091_v8 = vadd.f32 %v1746_v53, %v10067_v28  ;;  %v10094_v9 = vadd.f32 %v1774_v54, %v10070_v34  ;;  %v10097_v13 = vadd.f32 %v1802_v36, %v10073_v56  ;;  %v10100_v29 = vadd.f32 %v1830_v57, %v10076_v58  ;;  %v8329_v34 = vld [vmem:[#allocation3 + $0x6a8] sm:$0xff]  ;;  %v8332_v58 = vld [vmem:[#allocation3 + $0x8b8] sm:$0xff] }
 0x46f   :  { %v1898_v1 = vunpack.c.h.bf16 %v8323_v25  ;;  %v1902_v42 = vunpack.c.h.bf16 %v8324_v35  ;;  %v1906_v27 = vunpack.c.h.bf16 %v8325_v5  ;;  %v1910_v26 = vunpack.c.h.bf16 %v8326_v23 }
 0x470   :  { %v1914_v28 = vunpack.c.h.bf16 %v8327_v62  ;;  %v1918_v31 = vunpack.c.h.bf16 %v8328_v0  ;;  %v1922_v16 = vunpack.c.h.bf16 %v8329_v34  ;;  %v1926_v56 = vunpack.c.h.bf16 %v8330_v32 }
 0x471   :  { %v1930_v21 = vunpack.c.h.bf16 %v8331_v41  ;;  %v1934_v20 = vunpack.c.h.bf16 %v8332_v58  ;;  %v1938_v22 = vunpack.c.h.bf16 %v8333_v51  ;;  %v1942_v17 = vunpack.c.h.bf16 %v8334_v18 }
 0x472   :  { %v1946_v7 = vunpack.c.h.bf16 %v8335_v47  ;;  %v1950_v12 = vunpack.c.h.bf16 %v8336_v19  ;;  %v1954_v63 = vunpack.c.h.bf16 %v8337_v11  ;;  %v1958_v60 = vunpack.c.h.bf16 %v8338_v30 }
 0x473   :  { %v1980_v40 = vadd.f32 %v1902_v42, %v1898_v1  ;;  %v2008_v6 = vadd.f32 %v1910_v26, %v1906_v27  ;;  %v2036_v14 = vadd.f32 %v1918_v31, %v1914_v28  ;;  %v2064_v52 = vadd.f32 %v1926_v56, %v1922_v16 }
 0x474   :  { %v2092_v15 = vadd.f32 %v1934_v20, %v1930_v21  ;;  %v2120_v50 = vadd.f32 %v1942_v17, %v1938_v22  ;;  %v2148_v45 = vadd.f32 %v1950_v12, %v1946_v7  ;;  %v2176_v46 = vadd.f32 %v1958_v60, %v1954_v63 }
 0x475   :  { %v1981_v49 = vrot.slane %v1980_v40, 4  ;;  %v2009_v24 = vrot.slane %v2008_v6, 4  ;;  %v2037_v4 = vrot.slane %v2036_v14, 4  ;;  %v2065_v44 = vrot.slane %v2064_v52, 4 }
 0x476   :  { %v2093_v48 = vrot.slane %v2092_v15, 4  ;;  %v2121_v59 = vrot.slane %v2120_v50, 4  ;;  %v2149_v2 = vrot.slane %v2148_v45, 4  ;;  %v2177_v3 = vrot.slane %v2176_v46, 4 }
 0x477   :  { %v1982_v61 = vadd.f32 %v1981_v49, %v1980_v40  ;;  %v2010_v53 = vadd.f32 %v2009_v24, %v2008_v6  ;;  %v2038_v54 = vadd.f32 %v2037_v4, %v2036_v14  ;;  %v2066_v36 = vadd.f32 %v2065_v44, %v2064_v52  ;;  %v8340_v44 = vld [vmem:[#allocation3 + $0xd8] sm:$0xff] }
 0x478   :  { %v2094_v57 = vadd.f32 %v2093_v48, %v2092_v15  ;;  %v2122_v25 = vadd.f32 %v2121_v59, %v2120_v50  ;;  %v2150_v1 = vadd.f32 %v2149_v2, %v2148_v45  ;;  %v2178_v35 = vadd.f32 %v2177_v3, %v2176_v46  ;;  %v8341_v48 = vld [vmem:[#allocation3 + $0x2c8] sm:$0xff] }
 0x479   :  { %v1983_v42 = vrot.slane %v1982_v61, 2  ;;  %v2011_v5 = vrot.slane %v2010_v53, 2  ;;  %v2039_v27 = vrot.slane %v2038_v54, 2  ;;  %v2067_v23 = vrot.slane %v2066_v36, 2  ;;  %v8343_v3 = vld [vmem:[#allocation3 + $0x4c8] sm:$0xff] }
 0x47a   :  { %v2095_v26 = vrot.slane %v2094_v57, 2  ;;  %v2123_v62 = vrot.slane %v2122_v25, 2  ;;  %v2151_v28 = vrot.slane %v2150_v1, 2  ;;  %v2179_v0 = vrot.slane %v2178_v35, 2 }
 0x47b   :  { %v1984_v31 = vadd.f32 %v1983_v42, %v1982_v61  ;;  %v2012_v34 = vadd.f32 %v2011_v5, %v2010_v53  ;;  %v2040_v16 = vadd.f32 %v2039_v27, %v2038_v54  ;;  %v2068_v32 = vadd.f32 %v2067_v23, %v2066_v36  ;;  %v8344_v61 = vld [vmem:[#allocation3 + $0x4d8] sm:$0xff]  ;;  %v8351_v23 = vld [vmem:[#allocation3 + $0xcc8] sm:$0xff] }
 0x47c   :  { %v2096_v56 = vadd.f32 %v2095_v26, %v2094_v57  ;;  %v2124_v41 = vadd.f32 %v2123_v62, %v2122_v25  ;;  %v2152_v21 = vadd.f32 %v2151_v28, %v2150_v1  ;;  %v2180_v58 = vadd.f32 %v2179_v0, %v2178_v35  ;;  %v8346_v36 = vld [vmem:[#allocation3 + $0x6d8] sm:$0xff]  ;;  %v8347_v57 = vld [vmem:[#allocation3 + $0x8c8] sm:$0xff] }
 0x47d   :  { %v1985_v20 = vrot.slane %v1984_v31, 1  ;;  %v2013_v51 = vrot.slane %v2012_v34, 1  ;;  %v2041_v22 = vrot.slane %v2040_v16, 1  ;;  %v2069_v18 = vrot.slane %v2068_v32, 1  ;;  %v8349_v35 = vld [vmem:[#allocation3 + $0xac8] sm:$0xff]  ;;  %v8350_v5 = vld [vmem:[#allocation3 + $0xad8] sm:$0xff] }
 0x47e   :  { %v2097_v17 = vrot.slane %v2096_v56, 1  ;;  %v2125_v47 = vrot.slane %v2124_v41, 1  ;;  %v2153_v7 = vrot.slane %v2152_v21, 1  ;;  %v2181_v19 = vrot.slane %v2180_v58, 1  ;;  %v8352_v62 = vld [vmem:[#allocation3 + $0xcd8] sm:$0xff]  ;;  %v8353_v0 = vld [vmem:[#allocation3 + $0xec8] sm:$0xff] }
 0x47f   :  { %v1986_v12 = vadd.f32 %v1985_v20, %v1984_v31  ;;  %v2014_v11 = vadd.f32 %v2013_v51, %v2012_v34  ;;  %v2042_v63 = vadd.f32 %v2041_v22, %v2040_v16  ;;  %v2070_v30 = vadd.f32 %v2069_v18, %v2068_v32  ;;  %v8354_v34 = vld [vmem:[#allocation3 + $0xed8] sm:$0xff] }
 0x480   :  { %v2098_v60 = vadd.f32 %v2097_v17, %v2096_v56  ;;  %v2126_v40 = vadd.f32 %v2125_v47, %v2124_v41  ;;  %v2154_v6 = vadd.f32 %v2153_v7, %v2152_v21  ;;  %v2182_v14 = vadd.f32 %v2181_v19, %v2180_v58 }
 0x481   :  { %v10103_v52 = vadd.f32 %v1986_v12, %v10079_v10  ;;  %v10106_v15 = vadd.f32 %v2014_v11, %v10082_v43  ;;  %v10109_v50 = vadd.f32 %v2042_v63, %v10085_v39  ;;  %v10112_v45 = vadd.f32 %v2070_v30, %v10088_v55  ;;  %v8339_v43 = vld [vmem:[#allocation3 + $0xc8] sm:$0xff]  ;;  %v8342_v55 = vld [vmem:[#allocation3 + $0x2d8] sm:$0xff] }
 0x482   :  { %v10115_v46 = vadd.f32 %v2098_v60, %v10091_v8  ;;  %v10118_v49 = vadd.f32 %v2126_v40, %v10094_v9  ;;  %v10121_v24 = vadd.f32 %v2154_v6, %v10097_v13  ;;  %v10124_v10 = vadd.f32 %v2182_v14, %v10100_v29  ;;  %v8345_v9 = vld [vmem:[#allocation3 + $0x6c8] sm:$0xff]  ;;  %v8348_v29 = vld [vmem:[#allocation3 + $0x8d8] sm:$0xff] }
 0x483   :  { %v2250_v4 = vunpack.c.h.bf16 %v8339_v43  ;;  %v2254_v39 = vunpack.c.h.bf16 %v8340_v44  ;;  %v2258_v59 = vunpack.c.h.bf16 %v8341_v48  ;;  %v2262_v2 = vunpack.c.h.bf16 %v8342_v55 }
 0x484   :  { %v2266_v8 = vunpack.c.h.bf16 %v8343_v3  ;;  %v2270_v53 = vunpack.c.h.bf16 %v8344_v61  ;;  %v2274_v54 = vunpack.c.h.bf16 %v8345_v9  ;;  %v2278_v13 = vunpack.c.h.bf16 %v8346_v36 }
 0x485   :  { %v2282_v25 = vunpack.c.h.bf16 %v8347_v57  ;;  %v2286_v1 = vunpack.c.h.bf16 %v8348_v29  ;;  %v2290_v42 = vunpack.c.h.bf16 %v8349_v35  ;;  %v2294_v27 = vunpack.c.h.bf16 %v8350_v5 }
 0x486   :  { %v2298_v26 = vunpack.c.h.bf16 %v8351_v23  ;;  %v2302_v28 = vunpack.c.h.bf16 %v8352_v62  ;;  %v2306_v31 = vunpack.c.h.bf16 %v8353_v0  ;;  %v2310_v16 = vunpack.c.h.bf16 %v8354_v34 }
 0x487   :  { %v2332_v32 = vadd.f32 %v2254_v39, %v2250_v4  ;;  %v2360_v56 = vadd.f32 %v2262_v2, %v2258_v59  ;;  %v2388_v41 = vadd.f32 %v2270_v53, %v2266_v8  ;;  %v2416_v21 = vadd.f32 %v2278_v13, %v2274_v54 }
 0x488   :  { %v2444_v58 = vadd.f32 %v2286_v1, %v2282_v25  ;;  %v2472_v20 = vadd.f32 %v2294_v27, %v2290_v42  ;;  %v2500_v51 = vadd.f32 %v2302_v28, %v2298_v26  ;;  %v2528_v22 = vadd.f32 %v2310_v16, %v2306_v31 }
 0x489   :  { %v2333_v18 = vrot.slane %v2332_v32, 4  ;;  %v2361_v17 = vrot.slane %v2360_v56, 4  ;;  %v2389_v47 = vrot.slane %v2388_v41, 4  ;;  %v2417_v7 = vrot.slane %v2416_v21, 4 }
 0x48a   :  { %v2445_v19 = vrot.slane %v2444_v58, 4  ;;  %v2473_v12 = vrot.slane %v2472_v20, 4  ;;  %v2501_v11 = vrot.slane %v2500_v51, 4  ;;  %v2529_v63 = vrot.slane %v2528_v22, 4 }
 0x48b   :  { %v2334_v30 = vadd.f32 %v2333_v18, %v2332_v32  ;;  %v2362_v60 = vadd.f32 %v2361_v17, %v2360_v56  ;;  %v2390_v40 = vadd.f32 %v2389_v47, %v2388_v41  ;;  %v2418_v6 = vadd.f32 %v2417_v7, %v2416_v21  ;;  %v8356_v7 = vld [vmem:[#allocation3 + $0xf8] sm:$0xff] }
 0x48c   :  { %v2446_v14 = vadd.f32 %v2445_v19, %v2444_v58  ;;  %v2474_v43 = vadd.f32 %v2473_v12, %v2472_v20  ;;  %v2502_v4 = vadd.f32 %v2501_v11, %v2500_v51  ;;  %v2530_v44 = vadd.f32 %v2529_v63, %v2528_v22  ;;  %v8357_v19 = vld [vmem:[#allocation3 + $0x2e8] sm:$0xff] }
 0x48d   :  { %v2335_v39 = vrot.slane %v2334_v30, 2  ;;  %v2363_v48 = vrot.slane %v2362_v60, 2  ;;  %v2391_v59 = vrot.slane %v2390_v40, 2  ;;  %v2419_v55 = vrot.slane %v2418_v6, 2  ;;  %v8359_v63 = vld [vmem:[#allocation3 + $0x4e8] sm:$0xff] }
 0x48e   :  { %v2447_v2 = vrot.slane %v2446_v14, 2  ;;  %v2475_v3 = vrot.slane %v2474_v43, 2  ;;  %v2503_v8 = vrot.slane %v2502_v4, 2  ;;  %v2531_v61 = vrot.slane %v2530_v44, 2 }
 0x48f   :  { %v2336_v53 = vadd.f32 %v2335_v39, %v2334_v30  ;;  %v2364_v9 = vadd.f32 %v2363_v48, %v2362_v60  ;;  %v2392_v54 = vadd.f32 %v2391_v59, %v2390_v40  ;;  %v2420_v36 = vadd.f32 %v2419_v55, %v2418_v6  ;;  %v8360_v30 = vld [vmem:[#allocation3 + $0x4f8] sm:$0xff]  ;;  %v8367_v55 = vld [vmem:[#allocation3 + $0xce8] sm:$0xff] }
 0x490   :  { %v2448_v13 = vadd.f32 %v2447_v2, %v2446_v14  ;;  %v2476_v57 = vadd.f32 %v2475_v3, %v2474_v43  ;;  %v2504_v25 = vadd.f32 %v2503_v8, %v2502_v4  ;;  %v2532_v29 = vadd.f32 %v2531_v61, %v2530_v44  ;;  %v8362_v6 = vld [vmem:[#allocation3 + $0x6f8] sm:$0xff]  ;;  %v8363_v14 = vld [vmem:[#allocation3 + $0x8e8] sm:$0xff] }
 0x491   :  { %v2337_v1 = vrot.slane %v2336_v53, 1  ;;  %v2365_v35 = vrot.slane %v2364_v9, 1  ;;  %v2393_v42 = vrot.slane %v2392_v54, 1  ;;  %v2421_v5 = vrot.slane %v2420_v36, 1  ;;  %v8365_v44 = vld [vmem:[#allocation3 + $0xae8] sm:$0xff]  ;;  %v8366_v48 = vld [vmem:[#allocation3 + $0xaf8] sm:$0xff] }
 0x492   :  { %v2449_v27 = vrot.slane %v2448_v13, 1  ;;  %v2477_v23 = vrot.slane %v2476_v57, 1  ;;  %v2505_v26 = vrot.slane %v2504_v25, 1  ;;  %v2533_v62 = vrot.slane %v2532_v29, 1  ;;  %v8368_v3 = vld [vmem:[#allocation3 + $0xcf8] sm:$0xff]  ;;  %v8369_v61 = vld [vmem:[#allocation3 + $0xee8] sm:$0xff] }
 0x493   :  { %v2338_v28 = vadd.f32 %v2337_v1, %v2336_v53  ;;  %v2366_v0 = vadd.f32 %v2365_v35, %v2364_v9  ;;  %v2394_v31 = vadd.f32 %v2393_v42, %v2392_v54  ;;  %v2422_v34 = vadd.f32 %v2421_v5, %v2420_v36  ;;  %v8370_v9 = vld [vmem:[#allocation3 + $0xef8] sm:$0xff] }
 0x494   :  { %v2450_v16 = vadd.f32 %v2449_v27, %v2448_v13  ;;  %v2478_v32 = vadd.f32 %v2477_v23, %v2476_v57  ;;  %v2506_v56 = vadd.f32 %v2505_v26, %v2504_v25  ;;  %v2534_v41 = vadd.f32 %v2533_v62, %v2532_v29 }
 0x495   :  { %v10127_v21 = vadd.f32 %v2338_v28, %v10103_v52  ;;  %v10130_v58 = vadd.f32 %v2366_v0, %v10106_v15  ;;  %v10133_v20 = vadd.f32 %v2394_v31, %v10109_v50  ;;  %v10136_v51 = vadd.f32 %v2422_v34, %v10112_v45  ;;  %v8355_v15 = vld [vmem:[#allocation3 + $0xe8] sm:$0xff]  ;;  %v8358_v45 = vld [vmem:[#allocation3 + $0x2f8] sm:$0xff] }
 0x496   :  { %v10139_v22 = vadd.f32 %v2450_v16, %v10115_v46  ;;  %v10142_v18 = vadd.f32 %v2478_v32, %v10118_v49  ;;  %v10145_v17 = vadd.f32 %v2506_v56, %v10121_v24  ;;  %v10148_v52 = vadd.f32 %v2534_v41, %v10124_v10  ;;  %v8361_v49 = vld [vmem:[#allocation3 + $0x6e8] sm:$0xff]  ;;  %v8364_v10 = vld [vmem:[#allocation3 + $0x8f8] sm:$0xff] }
 0x497   :  { %v2602_v47 = vunpack.c.h.bf16 %v8355_v15  ;;  %v2606_v50 = vunpack.c.h.bf16 %v8356_v7  ;;  %v2610_v12 = vunpack.c.h.bf16 %v8357_v19  ;;  %v2614_v11 = vunpack.c.h.bf16 %v8358_v45 }
 0x498   :  { %v2618_v46 = vunpack.c.h.bf16 %v8359_v63  ;;  %v2622_v60 = vunpack.c.h.bf16 %v8360_v30  ;;  %v2626_v40 = vunpack.c.h.bf16 %v8361_v49  ;;  %v2630_v24 = vunpack.c.h.bf16 %v8362_v6 }
 0x499   :  { %v2634_v43 = vunpack.c.h.bf16 %v8363_v14  ;;  %v2638_v4 = vunpack.c.h.bf16 %v8364_v10  ;;  %v2642_v39 = vunpack.c.h.bf16 %v8365_v44  ;;  %v2646_v59 = vunpack.c.h.bf16 %v8366_v48 }
 0x49a   :  { %v2650_v2 = vunpack.c.h.bf16 %v8367_v55  ;;  %v2654_v8 = vunpack.c.h.bf16 %v8368_v3  ;;  %v2658_v53 = vunpack.c.h.bf16 %v8369_v61  ;;  %v2662_v54 = vunpack.c.h.bf16 %v8370_v9 }
 0x49b   :  { %v2684_v36 = vadd.f32 %v2606_v50, %v2602_v47  ;;  %v2712_v13 = vadd.f32 %v2614_v11, %v2610_v12  ;;  %v2740_v57 = vadd.f32 %v2622_v60, %v2618_v46  ;;  %v2768_v25 = vadd.f32 %v2630_v24, %v2626_v40 }
 0x49c   :  { %v2796_v29 = vadd.f32 %v2638_v4, %v2634_v43  ;;  %v2824_v1 = vadd.f32 %v2646_v59, %v2642_v39  ;;  %v2852_v35 = vadd.f32 %v2654_v8, %v2650_v2  ;;  %v2880_v42 = vadd.f32 %v2662_v54, %v2658_v53 }
 0x49d   :  { %v2685_v5 = vrot.slane %v2684_v36, 4  ;;  %v2713_v27 = vrot.slane %v2712_v13, 4  ;;  %v2741_v23 = vrot.slane %v2740_v57, 4  ;;  %v2769_v26 = vrot.slane %v2768_v25, 4 }
 0x49e   :  { %v2797_v62 = vrot.slane %v2796_v29, 4  ;;  %v2825_v28 = vrot.slane %v2824_v1, 4  ;;  %v2853_v0 = vrot.slane %v2852_v35, 4  ;;  %v2881_v31 = vrot.slane %v2880_v42, 4 }
 0x49f   :  { %v2686_v34 = vadd.f32 %v2685_v5, %v2684_v36  ;;  %v2714_v16 = vadd.f32 %v2713_v27, %v2712_v13  ;;  %v2742_v32 = vadd.f32 %v2741_v23, %v2740_v57  ;;  %v2770_v56 = vadd.f32 %v2769_v26, %v2768_v25  ;;  %v8372_v26 = vld [vmem:[#allocation3 + $0x118] sm:$0xff] }
 0x4a0   :  { %v2798_v41 = vadd.f32 %v2797_v62, %v2796_v29  ;;  %v2826_v15 = vadd.f32 %v2825_v28, %v2824_v1  ;;  %v2854_v47 = vadd.f32 %v2853_v0, %v2852_v35  ;;  %v2882_v7 = vadd.f32 %v2881_v31, %v2880_v42  ;;  %v8373_v62 = vld [vmem:[#allocation3 + $0x308] sm:$0xff] }
 0x4a1   :  { %v2687_v50 = vrot.slane %v2686_v34, 2  ;;  %v2715_v19 = vrot.slane %v2714_v16, 2  ;;  %v2743_v12 = vrot.slane %v2742_v32, 2  ;;  %v2771_v45 = vrot.slane %v2770_v56, 2  ;;  %v8375_v31 = vld [vmem:[#allocation3 + $0x508] sm:$0xff] }
 0x4a2   :  { %v2799_v11 = vrot.slane %v2798_v41, 2  ;;  %v2827_v63 = vrot.slane %v2826_v15, 2  ;;  %v2855_v46 = vrot.slane %v2854_v47, 2  ;;  %v2883_v30 = vrot.slane %v2882_v7, 2 }
 0x4a3   :  { %v2688_v60 = vadd.f32 %v2687_v50, %v2686_v34  ;;  %v2716_v49 = vadd.f32 %v2715_v19, %v2714_v16  ;;  %v2744_v40 = vadd.f32 %v2743_v12, %v2742_v32  ;;  %v2772_v6 = vadd.f32 %v2771_v45, %v2770_v56  ;;  %v8376_v34 = vld [vmem:[#allocation3 + $0x518] sm:$0xff]  ;;  %v8383_v45 = vld [vmem:[#allocation3 + $0xd08] sm:$0xff] }
 0x4a4   :  { %v2800_v24 = vadd.f32 %v2799_v11, %v2798_v41  ;;  %v2828_v14 = vadd.f32 %v2827_v63, %v2826_v15  ;;  %v2856_v43 = vadd.f32 %v2855_v46, %v2854_v47  ;;  %v2884_v10 = vadd.f32 %v2883_v30, %v2882_v7  ;;  %v8378_v56 = vld [vmem:[#allocation3 + $0x718] sm:$0xff]  ;;  %v8379_v41 = vld [vmem:[#allocation3 + $0x908] sm:$0xff] }
 0x4a5   :  { %v2689_v4 = vrot.slane %v2688_v60, 1  ;;  %v2717_v44 = vrot.slane %v2716_v49, 1  ;;  %v2745_v39 = vrot.slane %v2744_v40, 1  ;;  %v2773_v48 = vrot.slane %v2772_v6, 1  ;;  %v8381_v7 = vld [vmem:[#allocation3 + $0xb08] sm:$0xff]  ;;  %v8382_v19 = vld [vmem:[#allocation3 + $0xb18] sm:$0xff] }
 0x4a6   :  { %v2801_v59 = vrot.slane %v2800_v24, 1  ;;  %v2829_v55 = vrot.slane %v2828_v14, 1  ;;  %v2857_v2 = vrot.slane %v2856_v43, 1  ;;  %v2885_v3 = vrot.slane %v2884_v10, 1  ;;  %v8384_v63 = vld [vmem:[#allocation3 + $0xd18] sm:$0xff]  ;;  %v8385_v30 = vld [vmem:[#allocation3 + $0xf08] sm:$0xff] }
 0x4a7   :  { %v2690_v8 = vadd.f32 %v2689_v4, %v2688_v60  ;;  %v2718_v61 = vadd.f32 %v2717_v44, %v2716_v49  ;;  %v2746_v53 = vadd.f32 %v2745_v39, %v2744_v40  ;;  %v2774_v9 = vadd.f32 %v2773_v48, %v2772_v6  ;;  %v8386_v49 = vld [vmem:[#allocation3 + $0xf18] sm:$0xff] }
 0x4a8   :  { %v2802_v54 = vadd.f32 %v2801_v59, %v2800_v24  ;;  %v2830_v36 = vadd.f32 %v2829_v55, %v2828_v14  ;;  %v2858_v13 = vadd.f32 %v2857_v2, %v2856_v43  ;;  %v2886_v57 = vadd.f32 %v2885_v3, %v2884_v10 }
 0x4a9   :  { %v10151_v25 = vadd.f32 %v2690_v8, %v10127_v21  ;;  %v10154_v29 = vadd.f32 %v2718_v61, %v10130_v58  ;;  %v10157_v1 = vadd.f32 %v2746_v53, %v10133_v20  ;;  %v10160_v35 = vadd.f32 %v2774_v9, %v10136_v51  ;;  %v8371_v58 = vld [vmem:[#allocation3 + $0x108] sm:$0xff]  ;;  %v8374_v51 = vld [vmem:[#allocation3 + $0x318] sm:$0xff] }
 0x4aa   :  { %v10163_v42 = vadd.f32 %v2802_v54, %v10139_v22  ;;  %v10166_v5 = vadd.f32 %v2830_v36, %v10142_v18  ;;  %v10169_v27 = vadd.f32 %v2858_v13, %v10145_v17  ;;  %v10172_v21 = vadd.f32 %v2886_v57, %v10148_v52  ;;  %v8377_v18 = vld [vmem:[#allocation3 + $0x708] sm:$0xff]  ;;  %v8380_v52 = vld [vmem:[#allocation3 + $0x918] sm:$0xff] }
 0x4ab   :  { %v2954_v23 = vunpack.c.h.bf16 %v8371_v58  ;;  %v2958_v20 = vunpack.c.h.bf16 %v8372_v26  ;;  %v2962_v28 = vunpack.c.h.bf16 %v8373_v62  ;;  %v2966_v0 = vunpack.c.h.bf16 %v8374_v51 }
 0x4ac   :  { %v2970_v22 = vunpack.c.h.bf16 %v8375_v31  ;;  %v2974_v16 = vunpack.c.h.bf16 %v8376_v34  ;;  %v2978_v32 = vunpack.c.h.bf16 %v8377_v18  ;;  %v2982_v17 = vunpack.c.h.bf16 %v8378_v56 }
 0x4ad   :  { %v2986_v15 = vunpack.c.h.bf16 %v8379_v41  ;;  %v2990_v47 = vunpack.c.h.bf16 %v8380_v52  ;;  %v2994_v50 = vunpack.c.h.bf16 %v8381_v7  ;;  %v2998_v12 = vunpack.c.h.bf16 %v8382_v19 }
 0x4ae   :  { %v3002_v11 = vunpack.c.h.bf16 %v8383_v45  ;;  %v3006_v46 = vunpack.c.h.bf16 %v8384_v63  ;;  %v3010_v60 = vunpack.c.h.bf16 %v8385_v30  ;;  %v3014_v40 = vunpack.c.h.bf16 %v8386_v49 }
 0x4af   :  { %v3036_v6 = vadd.f32 %v2958_v20, %v2954_v23  ;;  %v3064_v24 = vadd.f32 %v2966_v0, %v2962_v28  ;;  %v3092_v14 = vadd.f32 %v2974_v16, %v2970_v22  ;;  %v3120_v43 = vadd.f32 %v2982_v17, %v2978_v32 }
 0x4b0   :  { %v3148_v10 = vadd.f32 %v2990_v47, %v2986_v15  ;;  %v3176_v4 = vadd.f32 %v2998_v12, %v2994_v50  ;;  %v3204_v44 = vadd.f32 %v3006_v46, %v3002_v11  ;;  %v3232_v39 = vadd.f32 %v3014_v40, %v3010_v60 }
 0x4b1   :  { %v3037_v48 = vrot.slane %v3036_v6, 4  ;;  %v3065_v59 = vrot.slane %v3064_v24, 4  ;;  %v3093_v55 = vrot.slane %v3092_v14, 4  ;;  %v3121_v2 = vrot.slane %v3120_v43, 4 }
 0x4b2   :  { %v3149_v3 = vrot.slane %v3148_v10, 4  ;;  %v3177_v8 = vrot.slane %v3176_v4, 4  ;;  %v3205_v61 = vrot.slane %v3204_v44, 4  ;;  %v3233_v53 = vrot.slane %v3232_v39, 4 }
 0x4b3   :  { %v3038_v9 = vadd.f32 %v3037_v48, %v3036_v6  ;;  %v3066_v54 = vadd.f32 %v3065_v59, %v3064_v24  ;;  %v3094_v36 = vadd.f32 %v3093_v55, %v3092_v14  ;;  %v3122_v13 = vadd.f32 %v3121_v2, %v3120_v43  ;;  %v8388_v2 = vld [vmem:[#allocation3 + $0x138] sm:$0xff] }
 0x4b4   :  { %v3150_v57 = vadd.f32 %v3149_v3, %v3148_v10  ;;  %v3178_v58 = vadd.f32 %v3177_v8, %v3176_v4  ;;  %v3206_v23 = vadd.f32 %v3205_v61, %v3204_v44  ;;  %v3234_v26 = vadd.f32 %v3233_v53, %v3232_v39  ;;  %v8389_v3 = vld [vmem:[#allocation3 + $0x328] sm:$0xff] }
 0x4b5   :  { %v3039_v20 = vrot.slane %v3038_v9, 2  ;;  %v3067_v62 = vrot.slane %v3066_v54, 2  ;;  %v3095_v28 = vrot.slane %v3094_v36, 2  ;;  %v3123_v51 = vrot.slane %v3122_v13, 2  ;;  %v8391_v53 = vld [vmem:[#allocation3 + $0x528] sm:$0xff] }
 0x4b6   :  { %v3151_v0 = vrot.slane %v3150_v57, 2  ;;  %v3179_v31 = vrot.slane %v3178_v58, 2  ;;  %v3207_v22 = vrot.slane %v3206_v23, 2  ;;  %v3235_v34 = vrot.slane %v3234_v26, 2 }
 0x4b7   :  { %v3040_v16 = vadd.f32 %v3039_v20, %v3038_v9  ;;  %v3068_v18 = vadd.f32 %v3067_v62, %v3066_v54  ;;  %v3096_v32 = vadd.f32 %v3095_v28, %v3094_v36  ;;  %v3124_v56 = vadd.f32 %v3123_v51, %v3122_v13  ;;  %v8392_v9 = vld [vmem:[#allocation3 + $0x538] sm:$0xff]  ;;  %v8399_v51 = vld [vmem:[#allocation3 + $0xd28] sm:$0xff] }
 0x4b8   :  { %v3152_v17 = vadd.f32 %v3151_v0, %v3150_v57  ;;  %v3180_v41 = vadd.f32 %v3179_v31, %v3178_v58  ;;  %v3208_v15 = vadd.f32 %v3207_v22, %v3206_v23  ;;  %v3236_v52 = vadd.f32 %v3235_v34, %v3234_v26  ;;  %v8394_v13 = vld [vmem:[#allocation3 + $0x738] sm:$0xff]  ;;  %v8395_v57 = vld [vmem:[#allocation3 + $0x928] sm:$0xff] }
 0x4b9   :  { %v3041_v47 = vrot.slane %v3040_v16, 1  ;;  %v3069_v7 = vrot.slane %v3068_v18, 1  ;;  %v3097_v50 = vrot.slane %v3096_v32, 1  ;;  %v3125_v19 = vrot.slane %v3124_v56, 1  ;;  %v8397_v26 = vld [vmem:[#allocation3 + $0xb28] sm:$0xff]  ;;  %v8398_v62 = vld [vmem:[#allocation3 + $0xb38] sm:$0xff] }
 0x4ba   :  { %v3153_v12 = vrot.slane %v3152_v17, 1  ;;  %v3181_v45 = vrot.slane %v3180_v41, 1  ;;  %v3209_v11 = vrot.slane %v3208_v15, 1  ;;  %v3237_v63 = vrot.slane %v3236_v52, 1  ;;  %v8400_v31 = vld [vmem:[#allocation3 + $0xd38] sm:$0xff]  ;;  %v8401_v34 = vld [vmem:[#allocation3 + $0xf28] sm:$0xff] }
 0x4bb   :  { %v3042_v46 = vadd.f32 %v3041_v47, %v3040_v16  ;;  %v3070_v30 = vadd.f32 %v3069_v7, %v3068_v18  ;;  %v3098_v60 = vadd.f32 %v3097_v50, %v3096_v32  ;;  %v3126_v49 = vadd.f32 %v3125_v19, %v3124_v56  ;;  %v8402_v18 = vld [vmem:[#allocation3 + $0xf38] sm:$0xff] }
 0x4bc   :  { %v3154_v40 = vadd.f32 %v3153_v12, %v3152_v17  ;;  %v3182_v6 = vadd.f32 %v3181_v45, %v3180_v41  ;;  %v3210_v24 = vadd.f32 %v3209_v11, %v3208_v15  ;;  %v3238_v14 = vadd.f32 %v3237_v63, %v3236_v52 }
 0x4bd   :  { %v10175_v43 = vadd.f32 %v3042_v46, %v10151_v25  ;;  %v10178_v10 = vadd.f32 %v3070_v30, %v10154_v29  ;;  %v10181_v4 = vadd.f32 %v3098_v60, %v10157_v1  ;;  %v10184_v44 = vadd.f32 %v3126_v49, %v10160_v35  ;;  %v8387_v29 = vld [vmem:[#allocation3 + $0x128] sm:$0xff]  ;;  %v8390_v35 = vld [vmem:[#allocation3 + $0x338] sm:$0xff] }
 0x4be   :  { %v10187_v39 = vadd.f32 %v3154_v40, %v10163_v42  ;;  %v10190_v48 = vadd.f32 %v3182_v6, %v10166_v5  ;;  %v10193_v59 = vadd.f32 %v3210_v24, %v10169_v27  ;;  %v10196_v25 = vadd.f32 %v3238_v14, %v10172_v21  ;;  %v8393_v5 = vld [vmem:[#allocation3 + $0x728] sm:$0xff]  ;;  %v8396_v21 = vld [vmem:[#allocation3 + $0x938] sm:$0xff] }
 0x4bf   :  { %v3306_v55 = vunpack.c.h.bf16 %v8387_v29  ;;  %v3310_v1 = vunpack.c.h.bf16 %v8388_v2  ;;  %v3314_v8 = vunpack.c.h.bf16 %v8389_v3  ;;  %v3318_v61 = vunpack.c.h.bf16 %v8390_v35 }
 0x4c0   :  { %v3322_v42 = vunpack.c.h.bf16 %v8391_v53  ;;  %v3326_v54 = vunpack.c.h.bf16 %v8392_v9  ;;  %v3330_v36 = vunpack.c.h.bf16 %v8393_v5  ;;  %v3334_v27 = vunpack.c.h.bf16 %v8394_v13 }
 0x4c1   :  { %v3338_v58 = vunpack.c.h.bf16 %v8395_v57  ;;  %v3342_v23 = vunpack.c.h.bf16 %v8396_v21  ;;  %v3346_v20 = vunpack.c.h.bf16 %v8397_v26  ;;  %v3350_v28 = vunpack.c.h.bf16 %v8398_v62 }
 0x4c2   :  { %v3354_v0 = vunpack.c.h.bf16 %v8399_v51  ;;  %v3358_v22 = vunpack.c.h.bf16 %v8400_v31  ;;  %v3362_v16 = vunpack.c.h.bf16 %v8401_v34  ;;  %v3366_v32 = vunpack.c.h.bf16 %v8402_v18 }
 0x4c3   :  { %v3388_v56 = vadd.f32 %v3310_v1, %v3306_v55  ;;  %v3416_v17 = vadd.f32 %v3318_v61, %v3314_v8  ;;  %v3444_v41 = vadd.f32 %v3326_v54, %v3322_v42  ;;  %v3472_v15 = vadd.f32 %v3334_v27, %v3330_v36 }
 0x4c4   :  { %v3500_v52 = vadd.f32 %v3342_v23, %v3338_v58  ;;  %v3528_v47 = vadd.f32 %v3350_v28, %v3346_v20  ;;  %v3556_v7 = vadd.f32 %v3358_v22, %v3354_v0  ;;  %v3584_v50 = vadd.f32 %v3366_v32, %v3362_v16 }
 0x4c5   :  { %v3389_v19 = vrot.slane %v3388_v56, 4  ;;  %v3417_v12 = vrot.slane %v3416_v17, 4  ;;  %v3445_v45 = vrot.slane %v3444_v41, 4  ;;  %v3473_v11 = vrot.slane %v3472_v15, 4 }
 0x4c6   :  { %v3501_v63 = vrot.slane %v3500_v52, 4  ;;  %v3529_v46 = vrot.slane %v3528_v47, 4  ;;  %v3557_v30 = vrot.slane %v3556_v7, 4  ;;  %v3585_v60 = vrot.slane %v3584_v50, 4 }
 0x4c7   :  { %v3390_v49 = vadd.f32 %v3389_v19, %v3388_v56  ;;  %v3418_v40 = vadd.f32 %v3417_v12, %v3416_v17  ;;  %v3446_v6 = vadd.f32 %v3445_v45, %v3444_v41  ;;  %v3474_v24 = vadd.f32 %v3473_v11, %v3472_v15  ;;  %v8404_v11 = vld [vmem:[#allocation3 + $0x158] sm:$0xff] }
 0x4c8   :  { %v3502_v14 = vadd.f32 %v3501_v63, %v3500_v52  ;;  %v3530_v29 = vadd.f32 %v3529_v46, %v3528_v47  ;;  %v3558_v55 = vadd.f32 %v3557_v30, %v3556_v7  ;;  %v3586_v2 = vadd.f32 %v3585_v60, %v3584_v50  ;;  %v8405_v63 = vld [vmem:[#allocation3 + $0x348] sm:$0xff] }
 0x4c9   :  { %v3391_v1 = vrot.slane %v3390_v49, 2  ;;  %v3419_v3 = vrot.slane %v3418_v40, 2  ;;  %v3447_v8 = vrot.slane %v3446_v6, 2  ;;  %v3475_v35 = vrot.slane %v3474_v24, 2  ;;  %v8407_v60 = vld [vmem:[#allocation3 + $0x548] sm:$0xff] }
 0x4ca   :  { %v3503_v61 = vrot.slane %v3502_v14, 2  ;;  %v3531_v53 = vrot.slane %v3530_v29, 2  ;;  %v3559_v42 = vrot.slane %v3558_v55, 2  ;;  %v3587_v9 = vrot.slane %v3586_v2, 2 }
 0x4cb   :  { %v3392_v54 = vadd.f32 %v3391_v1, %v3390_v49  ;;  %v3420_v5 = vadd.f32 %v3419_v3, %v3418_v40  ;;  %v3448_v36 = vadd.f32 %v3447_v8, %v3446_v6  ;;  %v3476_v13 = vadd.f32 %v3475_v35, %v3474_v24  ;;  %v8408_v49 = vld [vmem:[#allocation3 + $0x558] sm:$0xff]  ;;  %v8415_v35 = vld [vmem:[#allocation3 + $0xd48] sm:$0xff] }
 0x4cc   :  { %v3504_v27 = vadd.f32 %v3503_v61, %v3502_v14  ;;  %v3532_v57 = vadd.f32 %v3531_v53, %v3530_v29  ;;  %v3560_v58 = vadd.f32 %v3559_v42, %v3558_v55  ;;  %v3588_v21 = vadd.f32 %v3587_v9, %v3586_v2  ;;  %v8410_v24 = vld [vmem:[#allocation3 + $0x758] sm:$0xff]  ;;  %v8411_v14 = vld [vmem:[#allocation3 + $0x948] sm:$0xff] }
 0x4cd   :  { %v3393_v23 = vrot.slane %v3392_v54, 1  ;;  %v3421_v26 = vrot.slane %v3420_v5, 1  ;;  %v3449_v20 = vrot.slane %v3448_v36, 1  ;;  %v3477_v62 = vrot.slane %v3476_v13, 1  ;;  %v8413_v2 = vld [vmem:[#allocation3 + $0xb48] sm:$0xff]  ;;  %v8414_v3 = vld [vmem:[#allocation3 + $0xb58] sm:$0xff] }
 0x4ce   :  { %v3505_v28 = vrot.slane %v3504_v27, 1  ;;  %v3533_v51 = vrot.slane %v3532_v57, 1  ;;  %v3561_v0 = vrot.slane %v3560_v58, 1  ;;  %v3589_v31 = vrot.slane %v3588_v21, 1  ;;  %v8416_v53 = vld [vmem:[#allocation3 + $0xd58] sm:$0xff]  ;;  %v8417_v9 = vld [vmem:[#allocation3 + $0xf48] sm:$0xff] }
 0x4cf   :  { %v3394_v22 = vadd.f32 %v3393_v23, %v3392_v54  ;;  %v3422_v34 = vadd.f32 %v3421_v26, %v3420_v5  ;;  %v3450_v16 = vadd.f32 %v3449_v20, %v3448_v36  ;;  %v3478_v18 = vadd.f32 %v3477_v62, %v3476_v13  ;;  %v8418_v5 = vld [vmem:[#allocation3 + $0xf58] sm:$0xff] }
 0x4d0   :  { %v3506_v32 = vadd.f32 %v3505_v28, %v3504_v27  ;;  %v3534_v56 = vadd.f32 %v3533_v51, %v3532_v57  ;;  %v3562_v17 = vadd.f32 %v3561_v0, %v3560_v58  ;;  %v3590_v41 = vadd.f32 %v3589_v31, %v3588_v21 }
 0x4d1   :  { %v10199_v15 = vadd.f32 %v3394_v22, %v10175_v43  ;;  %v10202_v52 = vadd.f32 %v3422_v34, %v10178_v10  ;;  %v10205_v47 = vadd.f32 %v3450_v16, %v10181_v4  ;;  %v10208_v7 = vadd.f32 %v3478_v18, %v10184_v44  ;;  %v8403_v10 = vld [vmem:[#allocation3 + $0x148] sm:$0xff]  ;;  %v8406_v44 = vld [vmem:[#allocation3 + $0x358] sm:$0xff] }
 0x4d2   :  { %v10211_v50 = vadd.f32 %v3506_v32, %v10187_v39  ;;  %v10214_v19 = vadd.f32 %v3534_v56, %v10190_v48  ;;  %v10217_v12 = vadd.f32 %v3562_v17, %v10193_v59  ;;  %v10220_v43 = vadd.f32 %v3590_v41, %v10196_v25  ;;  %v8409_v48 = vld [vmem:[#allocation3 + $0x748] sm:$0xff]  ;;  %v8412_v25 = vld [vmem:[#allocation3 + $0x958] sm:$0xff] }
 0x4d3   :  { %v3658_v45 = vunpack.c.h.bf16 %v8403_v10  ;;  %v3662_v4 = vunpack.c.h.bf16 %v8404_v11  ;;  %v3666_v46 = vunpack.c.h.bf16 %v8405_v63  ;;  %v3670_v30 = vunpack.c.h.bf16 %v8406_v44 }
 0x4d4   :  { %v3674_v39 = vunpack.c.h.bf16 %v8407_v60  ;;  %v3678_v40 = vunpack.c.h.bf16 %v8408_v49  ;;  %v3682_v6 = vunpack.c.h.bf16 %v8409_v48  ;;  %v3686_v59 = vunpack.c.h.bf16 %v8410_v24 }
 0x4d5   :  { %v3690_v29 = vunpack.c.h.bf16 %v8411_v14  ;;  %v3694_v55 = vunpack.c.h.bf16 %v8412_v25  ;;  %v3698_v1 = vunpack.c.h.bf16 %v8413_v2  ;;  %v3702_v8 = vunpack.c.h.bf16 %v8414_v3 }
 0x4d6   :  { %v3706_v61 = vunpack.c.h.bf16 %v8415_v35  ;;  %v3710_v42 = vunpack.c.h.bf16 %v8416_v53  ;;  %v3714_v54 = vunpack.c.h.bf16 %v8417_v9  ;;  %v3718_v36 = vunpack.c.h.bf16 %v8418_v5 }
 0x4d7   :  { %v3740_v13 = vadd.f32 %v3662_v4, %v3658_v45  ;;  %v3768_v27 = vadd.f32 %v3670_v30, %v3666_v46  ;;  %v3796_v57 = vadd.f32 %v3678_v40, %v3674_v39  ;;  %v3824_v58 = vadd.f32 %v3686_v59, %v3682_v6 }
 0x4d8   :  { %v3852_v21 = vadd.f32 %v3694_v55, %v3690_v29  ;;  %v3880_v23 = vadd.f32 %v3702_v8, %v3698_v1  ;;  %v3908_v26 = vadd.f32 %v3710_v42, %v3706_v61  ;;  %v3936_v20 = vadd.f32 %v3718_v36, %v3714_v54 }
 0x4d9   :  { %v3741_v62 = vrot.slane %v3740_v13, 4  ;;  %v3769_v28 = vrot.slane %v3768_v27, 4  ;;  %v3797_v51 = vrot.slane %v3796_v57, 4  ;;  %v3825_v0 = vrot.slane %v3824_v58, 4 }
 0x4da   :  { %v3853_v31 = vrot.slane %v3852_v21, 4  ;;  %v3881_v22 = vrot.slane %v3880_v23, 4  ;;  %v3909_v34 = vrot.slane %v3908_v26, 4  ;;  %v3937_v16 = vrot.slane %v3936_v20, 4 }
 0x4db   :  { %v3742_v18 = vadd.f32 %v3741_v62, %v3740_v13  ;;  %v3770_v32 = vadd.f32 %v3769_v28, %v3768_v27  ;;  %v3798_v56 = vadd.f32 %v3797_v51, %v3796_v57  ;;  %v3826_v17 = vadd.f32 %v3825_v0, %v3824_v58  ;;  %v8420_v0 = vld [vmem:[#allocation3 + $0x178] sm:$0xff] }
 0x4dc   :  { %v3854_v41 = vadd.f32 %v3853_v31, %v3852_v21  ;;  %v3882_v10 = vadd.f32 %v3881_v22, %v3880_v23  ;;  %v3910_v45 = vadd.f32 %v3909_v34, %v3908_v26  ;;  %v3938_v11 = vadd.f32 %v3937_v16, %v3936_v20  ;;  %v8421_v31 = vld [vmem:[#allocation3 + $0x368] sm:$0xff] }
 0x4dd   :  { %v3743_v4 = vrot.slane %v3742_v18, 2  ;;  %v3771_v63 = vrot.slane %v3770_v32, 2  ;;  %v3799_v46 = vrot.slane %v3798_v56, 2  ;;  %v3827_v44 = vrot.slane %v3826_v17, 2  ;;  %v8423_v16 = vld [vmem:[#allocation3 + $0x568] sm:$0xff] }
 0x4de   :  { %v3855_v30 = vrot.slane %v3854_v41, 2  ;;  %v3883_v60 = vrot.slane %v3882_v10, 2  ;;  %v3911_v39 = vrot.slane %v3910_v45, 2  ;;  %v3939_v49 = vrot.slane %v3938_v11, 2 }
 0x4df   :  { %v3744_v40 = vadd.f32 %v3743_v4, %v3742_v18  ;;  %v3772_v48 = vadd.f32 %v3771_v63, %v3770_v32  ;;  %v3800_v6 = vadd.f32 %v3799_v46, %v3798_v56  ;;  %v3828_v24 = vadd.f32 %v3827_v44, %v3826_v17  ;;  %v8424_v18 = vld [vmem:[#allocation3 + $0x578] sm:$0xff]  ;;  %v8431_v44 = vld [vmem:[#allocation3 + $0xd68] sm:$0xff] }
 0x4e0   :  { %v3856_v59 = vadd.f32 %v3855_v30, %v3854_v41  ;;  %v3884_v14 = vadd.f32 %v3883_v60, %v3882_v10  ;;  %v3912_v29 = vadd.f32 %v3911_v39, %v3910_v45  ;;  %v3940_v25 = vadd.f32 %v3939_v49, %v3938_v11  ;;  %v8426_v17 = vld [vmem:[#allocation3 + $0x778] sm:$0xff]  ;;  %v8427_v41 = vld [vmem:[#allocation3 + $0x968] sm:$0xff] }
 0x4e1   :  { %v3745_v55 = vrot.slane %v3744_v40, 1  ;;  %v3773_v2 = vrot.slane %v3772_v48, 1  ;;  %v3801_v1 = vrot.slane %v3800_v6, 1  ;;  %v3829_v3 = vrot.slane %v3828_v24, 1  ;;  %v8429_v11 = vld [vmem:[#allocation3 + $0xb68] sm:$0xff]  ;;  %v8430_v63 = vld [vmem:[#allocation3 + $0xb78] sm:$0xff] }
 0x4e2   :  { %v3857_v8 = vrot.slane %v3856_v59, 1  ;;  %v3885_v35 = vrot.slane %v3884_v14, 1  ;;  %v3913_v61 = vrot.slane %v3912_v29, 1  ;;  %v3941_v53 = vrot.slane %v3940_v25, 1  ;;  %v8432_v60 = vld [vmem:[#allocation3 + $0xd78] sm:$0xff]  ;;  %v8433_v49 = vld [vmem:[#allocation3 + $0xf68] sm:$0xff] }
 0x4e3   :  { %v3746_v42 = vadd.f32 %v3745_v55, %v3744_v40  ;;  %v3774_v9 = vadd.f32 %v3773_v2, %v3772_v48  ;;  %v3802_v54 = vadd.f32 %v3801_v1, %v3800_v6  ;;  %v3830_v5 = vadd.f32 %v3829_v3, %v3828_v24  ;;  %v8434_v48 = vld [vmem:[#allocation3 + $0xf78] sm:$0xff] }
 0x4e4   :  { %v3858_v36 = vadd.f32 %v3857_v8, %v3856_v59  ;;  %v3886_v13 = vadd.f32 %v3885_v35, %v3884_v14  ;;  %v3914_v27 = vadd.f32 %v3913_v61, %v3912_v29  ;;  %v3942_v57 = vadd.f32 %v3941_v53, %v3940_v25 }
 0x4e5   :  { %v10223_v58 = vadd.f32 %v3746_v42, %v10199_v15  ;;  %v10226_v21 = vadd.f32 %v3774_v9, %v10202_v52  ;;  %v10229_v23 = vadd.f32 %v3802_v54, %v10205_v47  ;;  %v10232_v26 = vadd.f32 %v3830_v5, %v10208_v7  ;;  %v8419_v52 = vld [vmem:[#allocation3 + $0x168] sm:$0xff]  ;;  %v8422_v7 = vld [vmem:[#allocation3 + $0x378] sm:$0xff] }
 0x4e6   :  { %v10235_v20 = vadd.f32 %v3858_v36, %v10211_v50  ;;  %v10238_v62 = vadd.f32 %v3886_v13, %v10214_v19  ;;  %v10241_v28 = vadd.f32 %v3914_v27, %v10217_v12  ;;  %v10244_v15 = vadd.f32 %v3942_v57, %v10220_v43  ;;  %v8425_v19 = vld [vmem:[#allocation3 + $0x768] sm:$0xff]  ;;  %v8428_v43 = vld [vmem:[#allocation3 + $0x978] sm:$0xff] }
 0x4e7   :  { %v4010_v51 = vunpack.c.h.bf16 %v8419_v52  ;;  %v4014_v47 = vunpack.c.h.bf16 %v8420_v0  ;;  %v4018_v22 = vunpack.c.h.bf16 %v8421_v31  ;;  %v4022_v34 = vunpack.c.h.bf16 %v8422_v7 }
 0x4e8   :  { %v4026_v50 = vunpack.c.h.bf16 %v8423_v16  ;;  %v4030_v32 = vunpack.c.h.bf16 %v8424_v18  ;;  %v4034_v56 = vunpack.c.h.bf16 %v8425_v19  ;;  %v4038_v12 = vunpack.c.h.bf16 %v8426_v17 }
 0x4e9   :  { %v4042_v10 = vunpack.c.h.bf16 %v8427_v41  ;;  %v4046_v45 = vunpack.c.h.bf16 %v8428_v43  ;;  %v4050_v4 = vunpack.c.h.bf16 %v8429_v11  ;;  %v4054_v46 = vunpack.c.h.bf16 %v8430_v63 }
 0x4ea   :  { %v4058_v30 = vunpack.c.h.bf16 %v8431_v44  ;;  %v4062_v39 = vunpack.c.h.bf16 %v8432_v60  ;;  %v4066_v40 = vunpack.c.h.bf16 %v8433_v49  ;;  %v4070_v6 = vunpack.c.h.bf16 %v8434_v48 }
 0x4eb   :  { %v4092_v24 = vadd.f32 %v4014_v47, %v4010_v51  ;;  %v4120_v59 = vadd.f32 %v4022_v34, %v4018_v22  ;;  %v4148_v14 = vadd.f32 %v4030_v32, %v4026_v50  ;;  %v4176_v29 = vadd.f32 %v4038_v12, %v4034_v56 }
 0x4ec   :  { %v4204_v25 = vadd.f32 %v4046_v45, %v4042_v10  ;;  %v4232_v55 = vadd.f32 %v4054_v46, %v4050_v4  ;;  %v4260_v2 = vadd.f32 %v4062_v39, %v4058_v30  ;;  %v4288_v1 = vadd.f32 %v4070_v6, %v4066_v40 }
 0x4ed   :  { %v4093_v3 = vrot.slane %v4092_v24, 4  ;;  %v4121_v8 = vrot.slane %v4120_v59, 4  ;;  %v4149_v35 = vrot.slane %v4148_v14, 4  ;;  %v4177_v61 = vrot.slane %v4176_v29, 4 }
 0x4ee   :  { %v4205_v53 = vrot.slane %v4204_v25, 4  ;;  %v4233_v42 = vrot.slane %v4232_v55, 4  ;;  %v4261_v9 = vrot.slane %v4260_v2, 4  ;;  %v4289_v54 = vrot.slane %v4288_v1, 4 }
 0x4ef   :  { %v4094_v5 = vadd.f32 %v4093_v3, %v4092_v24  ;;  %v4122_v36 = vadd.f32 %v4121_v8, %v4120_v59  ;;  %v4150_v13 = vadd.f32 %v4149_v35, %v4148_v14  ;;  %v4178_v27 = vadd.f32 %v4177_v61, %v4176_v29  ;;  %v8436_v61 = vld [vmem:[#allocation3 + $0x198] sm:$0xff] }
 0x4f0   :  { %v4206_v57 = vadd.f32 %v4205_v53, %v4204_v25  ;;  %v4234_v52 = vadd.f32 %v4233_v42, %v4232_v55  ;;  %v4262_v51 = vadd.f32 %v4261_v9, %v4260_v2  ;;  %v4290_v0 = vadd.f32 %v4289_v54, %v4288_v1  ;;  %v8437_v53 = vld [vmem:[#allocation3 + $0x388] sm:$0xff] }
 0x4f1   :  { %v4095_v47 = vrot.slane %v4094_v5, 2  ;;  %v4123_v31 = vrot.slane %v4122_v36, 2  ;;  %v4151_v22 = vrot.slane %v4150_v13, 2  ;;  %v4179_v7 = vrot.slane %v4178_v27, 2  ;;  %v8439_v54 = vld [vmem:[#allocation3 + $0x588] sm:$0xff] }
 0x4f2   :  { %v4207_v34 = vrot.slane %v4206_v57, 2  ;;  %v4235_v16 = vrot.slane %v4234_v52, 2  ;;  %v4263_v50 = vrot.slane %v4262_v51, 2  ;;  %v4291_v18 = vrot.slane %v4290_v0, 2 }
 0x4f3   :  { %v4096_v32 = vadd.f32 %v4095_v47, %v4094_v5  ;;  %v4124_v19 = vadd.f32 %v4123_v31, %v4122_v36  ;;  %v4152_v56 = vadd.f32 %v4151_v22, %v4150_v13  ;;  %v4180_v17 = vadd.f32 %v4179_v7, %v4178_v27  ;;  %v8440_v5 = vld [vmem:[#allocation3 + $0x598] sm:$0xff]  ;;  %v8447_v7 = vld [vmem:[#allocation3 + $0xd88] sm:$0xff] }
 0x4f4   :  { %v4208_v12 = vadd.f32 %v4207_v34, %v4206_v57  ;;  %v4236_v41 = vadd.f32 %v4235_v16, %v4234_v52  ;;  %v4264_v10 = vadd.f32 %v4263_v50, %v4262_v51  ;;  %v4292_v43 = vadd.f32 %v4291_v18, %v4290_v0  ;;  %v8442_v27 = vld [vmem:[#allocation3 + $0x798] sm:$0xff]  ;;  %v8443_v57 = vld [vmem:[#allocation3 + $0x988] sm:$0xff] }
 0x4f5   :  { %v4097_v45 = vrot.slane %v4096_v32, 1  ;;  %v4125_v11 = vrot.slane %v4124_v19, 1  ;;  %v4153_v4 = vrot.slane %v4152_v56, 1  ;;  %v4181_v63 = vrot.slane %v4180_v17, 1  ;;  %v8445_v0 = vld [vmem:[#allocation3 + $0xb88] sm:$0xff]  ;;  %v8446_v31 = vld [vmem:[#allocation3 + $0xb98] sm:$0xff] }
 0x4f6   :  { %v4209_v46 = vrot.slane %v4208_v12, 1  ;;  %v4237_v44 = vrot.slane %v4236_v41, 1  ;;  %v4265_v30 = vrot.slane %v4264_v10, 1  ;;  %v4293_v60 = vrot.slane %v4292_v43, 1  ;;  %v8448_v16 = vld [vmem:[#allocation3 + $0xd98] sm:$0xff]  ;;  %v8449_v18 = vld [vmem:[#allocation3 + $0xf88] sm:$0xff] }
 0x4f7   :  { %v4098_v39 = vadd.f32 %v4097_v45, %v4096_v32  ;;  %v4126_v49 = vadd.f32 %v4125_v11, %v4124_v19  ;;  %v4154_v40 = vadd.f32 %v4153_v4, %v4152_v56  ;;  %v4182_v48 = vadd.f32 %v4181_v63, %v4180_v17  ;;  %v8450_v19 = vld [vmem:[#allocation3 + $0xf98] sm:$0xff] }
 0x4f8   :  { %v4210_v6 = vadd.f32 %v4209_v46, %v4208_v12  ;;  %v4238_v24 = vadd.f32 %v4237_v44, %v4236_v41  ;;  %v4266_v59 = vadd.f32 %v4265_v30, %v4264_v10  ;;  %v4294_v14 = vadd.f32 %v4293_v60, %v4292_v43 }
 0x4f9   :  { %v10247_v29 = vadd.f32 %v4098_v39, %v10223_v58  ;;  %v10250_v25 = vadd.f32 %v4126_v49, %v10226_v21  ;;  %v10253_v55 = vadd.f32 %v4154_v40, %v10229_v23  ;;  %v10256_v2 = vadd.f32 %v4182_v48, %v10232_v26  ;;  %v8435_v21 = vld [vmem:[#allocation3 + $0x188] sm:$0xff]  ;;  %v8438_v26 = vld [vmem:[#allocation3 + $0x398] sm:$0xff] }
 0x4fa   :  { %v10259_v1 = vadd.f32 %v4210_v6, %v10235_v20  ;;  %v10262_v3 = vadd.f32 %v4238_v24, %v10238_v62  ;;  %v10265_v8 = vadd.f32 %v4266_v59, %v10241_v28  ;;  %v10268_v58 = vadd.f32 %v4294_v14, %v10244_v15  ;;  %v8441_v62 = vld [vmem:[#allocation3 + $0x788] sm:$0xff]  ;;  %v8444_v15 = vld [vmem:[#allocation3 + $0x998] sm:$0xff] }
 0x4fb   :  { %v4362_v35 = vunpack.c.h.bf16 %v8435_v21  ;;  %v4366_v23 = vunpack.c.h.bf16 %v8436_v61  ;;  %v4370_v42 = vunpack.c.h.bf16 %v8437_v53  ;;  %v4374_v9 = vunpack.c.h.bf16 %v8438_v26 }
 0x4fc   :  { %v4378_v20 = vunpack.c.h.bf16 %v8439_v54  ;;  %v4382_v36 = vunpack.c.h.bf16 %v8440_v5  ;;  %v4386_v13 = vunpack.c.h.bf16 %v8441_v62  ;;  %v4390_v28 = vunpack.c.h.bf16 %v8442_v27 }
 0x4fd   :  { %v4394_v52 = vunpack.c.h.bf16 %v8443_v57  ;;  %v4398_v51 = vunpack.c.h.bf16 %v8444_v15  ;;  %v4402_v47 = vunpack.c.h.bf16 %v8445_v0  ;;  %v4406_v22 = vunpack.c.h.bf16 %v8446_v31 }
 0x4fe   :  { %v4410_v34 = vunpack.c.h.bf16 %v8447_v7  ;;  %v4414_v50 = vunpack.c.h.bf16 %v8448_v16  ;;  %v4418_v32 = vunpack.c.h.bf16 %v8449_v18  ;;  %v4422_v56 = vunpack.c.h.bf16 %v8450_v19 }
 0x4ff   :  { %v4444_v17 = vadd.f32 %v4366_v23, %v4362_v35  ;;  %v4472_v12 = vadd.f32 %v4374_v9, %v4370_v42  ;;  %v4500_v41 = vadd.f32 %v4382_v36, %v4378_v20  ;;  %v4528_v10 = vadd.f32 %v4390_v28, %v4386_v13 }
 0x500   :  { %v4556_v43 = vadd.f32 %v4398_v51, %v4394_v52  ;;  %v4584_v45 = vadd.f32 %v4406_v22, %v4402_v47  ;;  %v4612_v11 = vadd.f32 %v4414_v50, %v4410_v34  ;;  %v4640_v4 = vadd.f32 %v4422_v56, %v4418_v32 }
 0x501   :  { %v4445_v63 = vrot.slane %v4444_v17, 4  ;;  %v4473_v46 = vrot.slane %v4472_v12, 4  ;;  %v4501_v44 = vrot.slane %v4500_v41, 4  ;;  %v4529_v30 = vrot.slane %v4528_v10, 4 }
 0x502   :  { %v4557_v60 = vrot.slane %v4556_v43, 4  ;;  %v4585_v39 = vrot.slane %v4584_v45, 4  ;;  %v4613_v49 = vrot.slane %v4612_v11, 4  ;;  %v4641_v40 = vrot.slane %v4640_v4, 4 }
 0x503   :  { %v4446_v48 = vadd.f32 %v4445_v63, %v4444_v17  ;;  %v4474_v6 = vadd.f32 %v4473_v46, %v4472_v12  ;;  %v4502_v24 = vadd.f32 %v4501_v44, %v4500_v41  ;;  %v4530_v59 = vadd.f32 %v4529_v30, %v4528_v10  ;;  %v8452_v30 = vld [vmem:[#allocation3 + $0x1b8] sm:$0xff] }
 0x504   :  { %v4558_v14 = vadd.f32 %v4557_v60, %v4556_v43  ;;  %v4586_v21 = vadd.f32 %v4585_v39, %v4584_v45  ;;  %v4614_v35 = vadd.f32 %v4613_v49, %v4612_v11  ;;  %v4642_v61 = vadd.f32 %v4641_v40, %v4640_v4  ;;  %v8453_v60 = vld [vmem:[#allocation3 + $0x3a8] sm:$0xff] }
 0x505   :  { %v4447_v23 = vrot.slane %v4446_v48, 2  ;;  %v4475_v53 = vrot.slane %v4474_v6, 2  ;;  %v4503_v42 = vrot.slane %v4502_v24, 2  ;;  %v4531_v26 = vrot.slane %v4530_v59, 2  ;;  %v8455_v40 = vld [vmem:[#allocation3 + $0x5a8] sm:$0xff] }
 0x506   :  { %v4559_v9 = vrot.slane %v4558_v14, 2  ;;  %v4587_v54 = vrot.slane %v4586_v21, 2  ;;  %v4615_v20 = vrot.slane %v4614_v35, 2  ;;  %v4643_v5 = vrot.slane %v4642_v61, 2 }
 0x507   :  { %v4448_v36 = vadd.f32 %v4447_v23, %v4446_v48  ;;  %v4476_v62 = vadd.f32 %v4475_v53, %v4474_v6  ;;  %v4504_v13 = vadd.f32 %v4503_v42, %v4502_v24  ;;  %v4532_v27 = vadd.f32 %v4531_v26, %v4530_v59  ;;  %v8456_v48 = vld [vmem:[#allocation3 + $0x5b8] sm:$0xff]  ;;  %v8463_v26 = vld [vmem:[#allocation3 + $0xda8] sm:$0xff] }
 0x508   :  { %v4560_v28 = vadd.f32 %v4559_v9, %v4558_v14  ;;  %v4588_v57 = vadd.f32 %v4587_v54, %v4586_v21  ;;  %v4616_v52 = vadd.f32 %v4615_v20, %v4614_v35  ;;  %v4644_v15 = vadd.f32 %v4643_v5, %v4642_v61  ;;  %v8458_v59 = vld [vmem:[#allocation3 + $0x7b8] sm:$0xff]  ;;  %v8459_v14 = vld [vmem:[#allocation3 + $0x9a8] sm:$0xff] }
 0x509   :  { %v4449_v51 = vrot.slane %v4448_v36, 1  ;;  %v4477_v0 = vrot.slane %v4476_v62, 1  ;;  %v4505_v47 = vrot.slane %v4504_v13, 1  ;;  %v4533_v31 = vrot.slane %v4532_v27, 1  ;;  %v8461_v61 = vld [vmem:[#allocation3 + $0xba8] sm:$0xff]  ;;  %v8462_v53 = vld [vmem:[#allocation3 + $0xbb8] sm:$0xff] }
 0x50a   :  { %v4561_v22 = vrot.slane %v4560_v28, 1  ;;  %v4589_v7 = vrot.slane %v4588_v57, 1  ;;  %v4617_v34 = vrot.slane %v4616_v52, 1  ;;  %v4645_v16 = vrot.slane %v4644_v15, 1  ;;  %v8464_v54 = vld [vmem:[#allocation3 + $0xdb8] sm:$0xff]  ;;  %v8465_v5 = vld [vmem:[#allocation3 + $0xfa8] sm:$0xff] }
 0x50b   :  { %v4450_v50 = vadd.f32 %v4449_v51, %v4448_v36  ;;  %v4478_v18 = vadd.f32 %v4477_v0, %v4476_v62  ;;  %v4506_v32 = vadd.f32 %v4505_v47, %v4504_v13  ;;  %v4534_v19 = vadd.f32 %v4533_v31, %v4532_v27  ;;  %v8466_v62 = vld [vmem:[#allocation3 + $0xfb8] sm:$0xff] }
 0x50c   :  { %v4562_v56 = vadd.f32 %v4561_v22, %v4560_v28  ;;  %v4590_v17 = vadd.f32 %v4589_v7, %v4588_v57  ;;  %v4618_v12 = vadd.f32 %v4617_v34, %v4616_v52  ;;  %v4646_v41 = vadd.f32 %v4645_v16, %v4644_v15 }
 0x50d   :  { %v10271_v10 = vadd.f32 %v4450_v50, %v10247_v29  ;;  %v10274_v43 = vadd.f32 %v4478_v18, %v10250_v25  ;;  %v10277_v45 = vadd.f32 %v4506_v32, %v10253_v55  ;;  %v10280_v11 = vadd.f32 %v4534_v19, %v10256_v2  ;;  %v8451_v25 = vld [vmem:[#allocation3 + $0x1a8] sm:$0xff]  ;;  %v8454_v2 = vld [vmem:[#allocation3 + $0x3b8] sm:$0xff] }
 0x50e   :  { %v10283_v4 = vadd.f32 %v4562_v56, %v10259_v1  ;;  %v10286_v63 = vadd.f32 %v4590_v17, %v10262_v3  ;;  %v10289_v46 = vadd.f32 %v4618_v12, %v10265_v8  ;;  %v10292_v29 = vadd.f32 %v4646_v41, %v10268_v58  ;;  %v8457_v3 = vld [vmem:[#allocation3 + $0x7a8] sm:$0xff]  ;;  %v8460_v58 = vld [vmem:[#allocation3 + $0x9b8] sm:$0xff] }
 0x50f   :  { %v4714_v44 = vunpack.c.h.bf16 %v8451_v25  ;;  %v4718_v55 = vunpack.c.h.bf16 %v8452_v30  ;;  %v4722_v39 = vunpack.c.h.bf16 %v8453_v60  ;;  %v4726_v49 = vunpack.c.h.bf16 %v8454_v2 }
 0x510   :  { %v4730_v1 = vunpack.c.h.bf16 %v8455_v40  ;;  %v4734_v6 = vunpack.c.h.bf16 %v8456_v48  ;;  %v4738_v24 = vunpack.c.h.bf16 %v8457_v3  ;;  %v4742_v8 = vunpack.c.h.bf16 %v8458_v59 }
 0x511   :  { %v4746_v21 = vunpack.c.h.bf16 %v8459_v14  ;;  %v4750_v35 = vunpack.c.h.bf16 %v8460_v58  ;;  %v4754_v23 = vunpack.c.h.bf16 %v8461_v61  ;;  %v4758_v42 = vunpack.c.h.bf16 %v8462_v53 }
 0x512   :  { %v4762_v9 = vunpack.c.h.bf16 %v8463_v26  ;;  %v4766_v20 = vunpack.c.h.bf16 %v8464_v54  ;;  %v4770_v36 = vunpack.c.h.bf16 %v8465_v5  ;;  %v4774_v13 = vunpack.c.h.bf16 %v8466_v62 }
 0x513   :  { %v4796_v27 = vadd.f32 %v4718_v55, %v4714_v44  ;;  %v4824_v28 = vadd.f32 %v4726_v49, %v4722_v39  ;;  %v4852_v57 = vadd.f32 %v4734_v6, %v4730_v1  ;;  %v4880_v52 = vadd.f32 %v4742_v8, %v4738_v24 }
 0x514   :  { %v4908_v15 = vadd.f32 %v4750_v35, %v4746_v21  ;;  %v4936_v51 = vadd.f32 %v4758_v42, %v4754_v23  ;;  %v4964_v0 = vadd.f32 %v4766_v20, %v4762_v9  ;;  %v4992_v47 = vadd.f32 %v4774_v13, %v4770_v36 }
 0x515   :  { %v4797_v31 = vrot.slane %v4796_v27, 4  ;;  %v4825_v22 = vrot.slane %v4824_v28, 4  ;;  %v4853_v7 = vrot.slane %v4852_v57, 4  ;;  %v4881_v34 = vrot.slane %v4880_v52, 4 }
 0x516   :  { %v4909_v16 = vrot.slane %v4908_v15, 4  ;;  %v4937_v50 = vrot.slane %v4936_v51, 4  ;;  %v4965_v18 = vrot.slane %v4964_v0, 4  ;;  %v4993_v32 = vrot.slane %v4992_v47, 4 }
 0x517   :  { %v4798_v19 = vadd.f32 %v4797_v31, %v4796_v27  ;;  %v4826_v56 = vadd.f32 %v4825_v22, %v4824_v28  ;;  %v4854_v17 = vadd.f32 %v4853_v7, %v4852_v57  ;;  %v4882_v12 = vadd.f32 %v4881_v34, %v4880_v52  ;;  %v8468_v34 = vld [vmem:[#allocation3 + $0x1d8] sm:$0xff] }
 0x518   :  { %v4910_v41 = vadd.f32 %v4909_v16, %v4908_v15  ;;  %v4938_v25 = vadd.f32 %v4937_v50, %v4936_v51  ;;  %v4966_v44 = vadd.f32 %v4965_v18, %v4964_v0  ;;  %v4994_v30 = vadd.f32 %v4993_v32, %v4992_v47  ;;  %v8469_v16 = vld [vmem:[#allocation3 + $0x3c8] sm:$0xff] }
 0x519   :  { %v4799_v55 = vrot.slane %v4798_v19, 2  ;;  %v4827_v60 = vrot.slane %v4826_v56, 2  ;;  %v4855_v39 = vrot.slane %v4854_v17, 2  ;;  %v4883_v2 = vrot.slane %v4882_v12, 2  ;;  %v8471_v32 = vld [vmem:[#allocation3 + $0x5c8] sm:$0xff] }
 0x51a   :  { %v4911_v49 = vrot.slane %v4910_v41, 2  ;;  %v4939_v40 = vrot.slane %v4938_v25, 2  ;;  %v4967_v1 = vrot.slane %v4966_v44, 2  ;;  %v4995_v48 = vrot.slane %v4994_v30, 2 }
 0x51b   :  { %v4800_v6 = vadd.f32 %v4799_v55, %v4798_v19  ;;  %v4828_v3 = vadd.f32 %v4827_v60, %v4826_v56  ;;  %v4856_v24 = vadd.f32 %v4855_v39, %v4854_v17  ;;  %v4884_v59 = vadd.f32 %v4883_v2, %v4882_v12  ;;  %v8472_v19 = vld [vmem:[#allocation3 + $0x5d8] sm:$0xff]  ;;  %v8479_v2 = vld [vmem:[#allocation3 + $0xdc8] sm:$0xff] }
 0x51c   :  { %v4912_v8 = vadd.f32 %v4911_v49, %v4910_v41  ;;  %v4940_v14 = vadd.f32 %v4939_v40, %v4938_v25  ;;  %v4968_v21 = vadd.f32 %v4967_v1, %v4966_v44  ;;  %v4996_v58 = vadd.f32 %v4995_v48, %v4994_v30  ;;  %v8474_v12 = vld [vmem:[#allocation3 + $0x7d8] sm:$0xff]  ;;  %v8475_v41 = vld [vmem:[#allocation3 + $0x9c8] sm:$0xff] }
 0x51d   :  { %v4801_v35 = vrot.slane %v4800_v6, 1  ;;  %v4829_v61 = vrot.slane %v4828_v3, 1  ;;  %v4857_v23 = vrot.slane %v4856_v24, 1  ;;  %v4885_v53 = vrot.slane %v4884_v59, 1  ;;  %v8477_v30 = vld [vmem:[#allocation3 + $0xbc8] sm:$0xff]  ;;  %v8478_v60 = vld [vmem:[#allocation3 + $0xbd8] sm:$0xff] }
 0x51e   :  { %v4913_v42 = vrot.slane %v4912_v8, 1  ;;  %v4941_v26 = vrot.slane %v4940_v14, 1  ;;  %v4969_v9 = vrot.slane %v4968_v21, 1  ;;  %v4997_v54 = vrot.slane %v4996_v58, 1  ;;  %v8480_v40 = vld [vmem:[#allocation3 + $0xdd8] sm:$0xff]  ;;  %v8481_v48 = vld [vmem:[#allocation3 + $0xfc8] sm:$0xff] }
 0x51f   :  { %v4802_v20 = vadd.f32 %v4801_v35, %v4800_v6  ;;  %v4830_v5 = vadd.f32 %v4829_v61, %v4828_v3  ;;  %v4858_v36 = vadd.f32 %v4857_v23, %v4856_v24  ;;  %v4886_v62 = vadd.f32 %v4885_v53, %v4884_v59  ;;  %v8482_v3 = vld [vmem:[#allocation3 + $0xfd8] sm:$0xff] }
 0x520   :  { %v4914_v13 = vadd.f32 %v4913_v42, %v4912_v8  ;;  %v4942_v27 = vadd.f32 %v4941_v26, %v4940_v14  ;;  %v4970_v28 = vadd.f32 %v4969_v9, %v4968_v21  ;;  %v4998_v57 = vadd.f32 %v4997_v54, %v4996_v58 }
 0x521   :  { %v10295_v52 = vadd.f32 %v4802_v20, %v10271_v10  ;;  %v10298_v15 = vadd.f32 %v4830_v5, %v10274_v43  ;;  %v10301_v51 = vadd.f32 %v4858_v36, %v10277_v45  ;;  %v10304_v0 = vadd.f32 %v4886_v62, %v10280_v11  ;;  %v8467_v43 = vld [vmem:[#allocation3 + $0x1c8] sm:$0xff]  ;;  %v8470_v11 = vld [vmem:[#allocation3 + $0x3d8] sm:$0xff] }
 0x522   :  { %v10307_v47 = vadd.f32 %v4914_v13, %v10283_v4  ;;  %v10310_v31 = vadd.f32 %v4942_v27, %v10286_v63  ;;  %v10313_v22 = vadd.f32 %v4970_v28, %v10289_v46  ;;  %v10316_v10 = vadd.f32 %v4998_v57, %v10292_v29  ;;  %v8473_v63 = vld [vmem:[#allocation3 + $0x7c8] sm:$0xff]  ;;  %v8476_v29 = vld [vmem:[#allocation3 + $0x9d8] sm:$0xff] }
 0x523   :  { %v5066_v7 = vunpack.c.h.bf16 %v8467_v43  ;;  %v5070_v45 = vunpack.c.h.bf16 %v8468_v34  ;;  %v5074_v50 = vunpack.c.h.bf16 %v8469_v16  ;;  %v5078_v18 = vunpack.c.h.bf16 %v8470_v11 }
 0x524   :  { %v5082_v4 = vunpack.c.h.bf16 %v8471_v32  ;;  %v5086_v56 = vunpack.c.h.bf16 %v8472_v19  ;;  %v5090_v17 = vunpack.c.h.bf16 %v8473_v63  ;;  %v5094_v46 = vunpack.c.h.bf16 %v8474_v12 }
 0x525   :  { %v5098_v25 = vunpack.c.h.bf16 %v8475_v41  ;;  %v5102_v44 = vunpack.c.h.bf16 %v8476_v29  ;;  %v5106_v55 = vunpack.c.h.bf16 %v8477_v30  ;;  %v5110_v39 = vunpack.c.h.bf16 %v8478_v60 }
 0x526   :  { %v5114_v49 = vunpack.c.h.bf16 %v8479_v2  ;;  %v5118_v1 = vunpack.c.h.bf16 %v8480_v40  ;;  %v5122_v6 = vunpack.c.h.bf16 %v8481_v48  ;;  %v5126_v24 = vunpack.c.h.bf16 %v8482_v3 }
 0x527   :  { %v5148_v59 = vadd.f32 %v5070_v45, %v5066_v7  ;;  %v5176_v8 = vadd.f32 %v5078_v18, %v5074_v50  ;;  %v5204_v14 = vadd.f32 %v5086_v56, %v5082_v4  ;;  %v5232_v21 = vadd.f32 %v5094_v46, %v5090_v17 }
 0x528   :  { %v5260_v58 = vadd.f32 %v5102_v44, %v5098_v25  ;;  %v5288_v35 = vadd.f32 %v5110_v39, %v5106_v55  ;;  %v5316_v61 = vadd.f32 %v5118_v1, %v5114_v49  ;;  %v5344_v23 = vadd.f32 %v5126_v24, %v5122_v6 }
 0x529   :  { %v5149_v53 = vrot.slane %v5148_v59, 4  ;;  %v5177_v42 = vrot.slane %v5176_v8, 4  ;;  %v5205_v26 = vrot.slane %v5204_v14, 4  ;;  %v5233_v9 = vrot.slane %v5232_v21, 4 }
 0x52a   :  { %v5261_v54 = vrot.slane %v5260_v58, 4  ;;  %v5289_v20 = vrot.slane %v5288_v35, 4  ;;  %v5317_v5 = vrot.slane %v5316_v61, 4  ;;  %v5345_v36 = vrot.slane %v5344_v23, 4 }
 0x52b   :  { %v5150_v62 = vadd.f32 %v5149_v53, %v5148_v59  ;;  %v5178_v13 = vadd.f32 %v5177_v42, %v5176_v8  ;;  %v5206_v27 = vadd.f32 %v5205_v26, %v5204_v14  ;;  %v5234_v28 = vadd.f32 %v5233_v9, %v5232_v21  ;;  %v8484_v9 = vld [vmem:[#allocation3 + $0x1f8] sm:$0xff] }
 0x52c   :  { %v5262_v57 = vadd.f32 %v5261_v54, %v5260_v58  ;;  %v5290_v43 = vadd.f32 %v5289_v20, %v5288_v35  ;;  %v5318_v7 = vadd.f32 %v5317_v5, %v5316_v61  ;;  %v5346_v34 = vadd.f32 %v5345_v36, %v5344_v23  ;;  %v8485_v54 = vld [vmem:[#allocation3 + $0x3e8] sm:$0xff] }
 0x52d   :  { %v5151_v45 = vrot.slane %v5150_v62, 2  ;;  %v5179_v16 = vrot.slane %v5178_v13, 2  ;;  %v5207_v50 = vrot.slane %v5206_v27, 2  ;;  %v5235_v11 = vrot.slane %v5234_v28, 2  ;;  %v8487_v36 = vld [vmem:[#allocation3 + $0x5e8] sm:$0xff] }
 0x52e   :  { %v5263_v18 = vrot.slane %v5262_v57, 2  ;;  %v5291_v32 = vrot.slane %v5290_v43, 2  ;;  %v5319_v4 = vrot.slane %v5318_v7, 2  ;;  %v5347_v19 = vrot.slane %v5346_v34, 2 }
 0x52f   :  { %v5152_v56 = vadd.f32 %v5151_v45, %v5150_v62  ;;  %v5180_v63 = vadd.f32 %v5179_v16, %v5178_v13  ;;  %v5208_v17 = vadd.f32 %v5207_v50, %v5206_v27  ;;  %v5236_v12 = vadd.f32 %v5235_v11, %v5234_v28  ;;  %v8488_v62 = vld [vmem:[#allocation3 + $0x5f8] sm:$0xff]  ;;  %v8495_v11 = vld [vmem:[#allocation3 + $0xde8] sm:$0xff] }
 0x530   :  { %v5264_v46 = vadd.f32 %v5263_v18, %v5262_v57  ;;  %v5292_v41 = vadd.f32 %v5291_v32, %v5290_v43  ;;  %v5320_v25 = vadd.f32 %v5319_v4, %v5318_v7  ;;  %v5348_v29 = vadd.f32 %v5347_v19, %v5346_v34  ;;  %v8490_v28 = vld [vmem:[#allocation3 + $0x7f8] sm:$0xff]  ;;  %v8491_v57 = vld [vmem:[#allocation3 + $0x9e8] sm:$0xff] }
 0x531   :  { %v5153_v44 = vrot.slane %v5152_v56, 1  ;;  %v5181_v30 = vrot.slane %v5180_v63, 1  ;;  %v5209_v55 = vrot.slane %v5208_v17, 1  ;;  %v5237_v60 = vrot.slane %v5236_v12, 1  ;;  %v8493_v34 = vld [vmem:[#allocation3 + $0xbe8] sm:$0xff]  ;;  %v8494_v16 = vld [vmem:[#allocation3 + $0xbf8] sm:$0xff] }
 0x532   :  { %v5265_v39 = vrot.slane %v5264_v46, 1  ;;  %v5293_v2 = vrot.slane %v5292_v41, 1  ;;  %v5321_v49 = vrot.slane %v5320_v25, 1  ;;  %v5349_v40 = vrot.slane %v5348_v29, 1  ;;  %v8496_v32 = vld [vmem:[#allocation3 + $0xdf8] sm:$0xff]  ;;  %v8497_v19 = vld [vmem:[#allocation3 + $0xfe8] sm:$0xff] }
 0x533   :  { %v5154_v1 = vadd.f32 %v5153_v44, %v5152_v56  ;;  %v5182_v48 = vadd.f32 %v5181_v30, %v5180_v63  ;;  %v5210_v6 = vadd.f32 %v5209_v55, %v5208_v17  ;;  %v5238_v3 = vadd.f32 %v5237_v60, %v5236_v12  ;;  %v8498_v63 = vld [vmem:[#allocation3 + $0xff8] sm:$0xff] }
 0x534   :  { %v5266_v24 = vadd.f32 %v5265_v39, %v5264_v46  ;;  %v5294_v59 = vadd.f32 %v5293_v2, %v5292_v41  ;;  %v5322_v8 = vadd.f32 %v5321_v49, %v5320_v25  ;;  %v5350_v14 = vadd.f32 %v5349_v40, %v5348_v29 }
 0x535   :  { %v10319_v21 = vadd.f32 %v5154_v1, %v10295_v52  ;;  %v10322_v58 = vadd.f32 %v5182_v48, %v10298_v15  ;;  %v10325_v35 = vadd.f32 %v5210_v6, %v10301_v51  ;;  %v10328_v61 = vadd.f32 %v5238_v3, %v10304_v0  ;;  %v8483_v15 = vld [vmem:[#allocation3 + $0x1e8] sm:$0xff]  ;;  %v8486_v0 = vld [vmem:[#allocation3 + $0x3f8] sm:$0xff] }
 0x536   :  { %v10331_v23 = vadd.f32 %v5266_v24, %v10307_v47  ;;  %v10334_v53 = vadd.f32 %v5294_v59, %v10310_v31  ;;  %v10337_v42 = vadd.f32 %v5322_v8, %v10313_v22  ;;  %v10340_v52 = vadd.f32 %v5350_v14, %v10316_v10  ;;  %v8489_v31 = vld [vmem:[#allocation3 + $0x7e8] sm:$0xff]  ;;  %v8492_v10 = vld [vmem:[#allocation3 + $0x9f8] sm:$0xff] }
 0x537   :  { %v5418_v26 = vunpack.c.h.bf16 %v8483_v15  ;;  %v5422_v51 = vunpack.c.h.bf16 %v8484_v9  ;;  %v5426_v20 = vunpack.c.h.bf16 %v8485_v54  ;;  %v5430_v5 = vunpack.c.h.bf16 %v8486_v0 }
 0x538   :  { %v5434_v47 = vunpack.c.h.bf16 %v8487_v36  ;;  %v5438_v13 = vunpack.c.h.bf16 %v8488_v62  ;;  %v5442_v27 = vunpack.c.h.bf16 %v8489_v31  ;;  %v5446_v22 = vunpack.c.h.bf16 %v8490_v28 }
 0x539   :  { %v5450_v43 = vunpack.c.h.bf16 %v8491_v57  ;;  %v5454_v7 = vunpack.c.h.bf16 %v8492_v10  ;;  %v5458_v45 = vunpack.c.h.bf16 %v8493_v34  ;;  %v5462_v50 = vunpack.c.h.bf16 %v8494_v16 }
 0x53a   :  { %v5466_v18 = vunpack.c.h.bf16 %v8495_v11  ;;  %v5470_v4 = vunpack.c.h.bf16 %v8496_v32  ;;  %v5474_v56 = vunpack.c.h.bf16 %v8497_v19  ;;  %v5478_v17 = vunpack.c.h.bf16 %v8498_v63  ;;  %v7178_v19 = vld [vmem:[#allocation6 + $0x10] sm:$0xf0] }
 0x53b   :  { %v5500_v12 = vadd.f32 %v5422_v51, %v5418_v26  ;;  %v5528_v46 = vadd.f32 %v5430_v5, %v5426_v20  ;;  %v5556_v41 = vadd.f32 %v5438_v13, %v5434_v47  ;;  %v5584_v25 = vadd.f32 %v5446_v22, %v5442_v27 }
 0x53c   :  { %v5612_v29 = vadd.f32 %v5454_v7, %v5450_v43  ;;  %v5640_v44 = vadd.f32 %v5462_v50, %v5458_v45  ;;  %v5668_v30 = vadd.f32 %v5470_v4, %v5466_v18  ;;  %v5696_v55 = vadd.f32 %v5478_v17, %v5474_v56  ;;  %v7814_v4 = vld [vmem:[#allocation6 + $0x4] sm:$0xf] }
 0x53d   :  { %v5501_v60 = vrot.slane %v5500_v12, 4  ;;  %v5529_v39 = vrot.slane %v5528_v46, 4  ;;  %v5557_v2 = vrot.slane %v5556_v41, 4  ;;  %v5585_v49 = vrot.slane %v5584_v25, 4  ;;  %v7846_v56 = vld [vmem:[#allocation6 + $0x104] sm:$0xf] }
 0x53e   :  { %v5613_v40 = vrot.slane %v5612_v29, 4  ;;  %v5641_v1 = vrot.slane %v5640_v44, 4  ;;  %v5669_v48 = vrot.slane %v5668_v30, 4  ;;  %v5697_v6 = vrot.slane %v5696_v55, 4 }
 0x53f   :  { %v5502_v3 = vadd.f32 %v5501_v60, %v5500_v12  ;;  %v5530_v24 = vadd.f32 %v5529_v39, %v5528_v46  ;;  %v5558_v59 = vadd.f32 %v5557_v2, %v5556_v41  ;;  %v5586_v8 = vadd.f32 %v5585_v49, %v5584_v25  ;;  %v7306_v41 = vld [vmem:[#allocation6 + $0x110] sm:$0xf0]  ;;  %v7878_v25 = vld [vmem:[#allocation6 + $0x204] sm:$0xf]  ;;  %v7296_v49 = vld [vmem:[#allocation6 + $0xe8] sm:$0xf] }
 0x540   :  { %v5614_v14 = vadd.f32 %v5613_v40, %v5612_v29  ;;  %v5642_v15 = vadd.f32 %v5641_v1, %v5640_v44  ;;  %v5670_v26 = vadd.f32 %v5669_v48, %v5668_v30  ;;  %v5698_v9 = vadd.f32 %v5697_v6, %v5696_v55  ;;  %v7434_v29 = vld [vmem:[#allocation6 + $0x210] sm:$0xf0]  ;;  %v7910_v39 = vld [vmem:[#allocation6 + $0x304] sm:$0xf] }
 0x541   :  { %v5503_v51 = vrot.slane %v5502_v3, 2  ;;  %v5531_v54 = vrot.slane %v5530_v24, 2  ;;  %v5559_v20 = vrot.slane %v5558_v59, 2  ;;  %v5587_v0 = vrot.slane %v5586_v8, 2  ;;  %v7562_v2 = vld [vmem:[#allocation6 + $0x310] sm:$0xf0] }
 0x542   :  { %v5615_v5 = vrot.slane %v5614_v14, 2  ;;  %v5643_v36 = vrot.slane %v5642_v15, 2  ;;  %v5671_v47 = vrot.slane %v5670_v26, 2  ;;  %v5699_v62 = vrot.slane %v5698_v9, 2 }
 0x543   :  { %v5504_v13 = vadd.f32 %v5503_v51, %v5502_v3  ;;  %v5532_v31 = vadd.f32 %v5531_v54, %v5530_v24  ;;  %v5560_v27 = vadd.f32 %v5559_v20, %v5558_v59  ;;  %v5588_v28 = vadd.f32 %v5587_v0, %v5586_v8  ;;  %v7845_v3 = vld [vmem:[#allocation6 + $0xf4] sm:$0xf0]  ;;  %v7424_v24 = vld [vmem:[#allocation6 + $0x1e8] sm:$0xf] }
 0x544   :  { %v5616_v22 = vadd.f32 %v5615_v5, %v5614_v14  ;;  %v5644_v57 = vadd.f32 %v5643_v36, %v5642_v15  ;;  %v5672_v43 = vadd.f32 %v5671_v47, %v5670_v26  ;;  %v5700_v10 = vadd.f32 %v5699_v62, %v5698_v9  ;;  %v7877_v59 = vld [vmem:[#allocation6 + $0x1f4] sm:$0xf0]  ;;  %v7552_v26 = vld [vmem:[#allocation6 + $0x2e8] sm:$0xf] }
 0x545   :  { %v5505_v7 = vrot.slane %v5504_v13, 1  ;;  %v5533_v34 = vrot.slane %v5532_v31, 1  ;;  %v5561_v45 = vrot.slane %v5560_v27, 1  ;;  %v5589_v16 = vrot.slane %v5588_v28, 1  ;;  %v7909_v9 = vld [vmem:[#allocation6 + $0x2f4] sm:$0xf0] }
 0x546   :  { %v5617_v50 = vrot.slane %v5616_v22, 1  ;;  %v5645_v11 = vrot.slane %v5644_v57, 1  ;;  %v5673_v18 = vrot.slane %v5672_v43, 1  ;;  %v5701_v32 = vrot.slane %v5700_v10, 1  ;;  %v7280_v20 = vld [vmem:[#allocation6 + $0xc8] sm:$0xf] }
 0x547   :  { %v5506_v63 = vadd.f32 %v5505_v7, %v5504_v13  ;;  %v5534_v17 = vadd.f32 %v5533_v34, %v5532_v31  ;;  %v5562_v12 = vadd.f32 %v5561_v45, %v5560_v27  ;;  %v5590_v46 = vadd.f32 %v5589_v16, %v5588_v28  ;;  %v7841_v36 = vld [vmem:[#allocation6 + $0xd4] sm:$0xf0]  ;;  %v7408_v47 = vld [vmem:[#allocation6 + $0x1c8] sm:$0xf] }
 0x548   :  { %v5618_v44 = vadd.f32 %v5617_v50, %v5616_v22  ;;  %v5646_v30 = vadd.f32 %v5645_v11, %v5644_v57  ;;  %v5674_v55 = vadd.f32 %v5673_v18, %v5672_v43  ;;  %v5702_v60 = vadd.f32 %v5701_v32, %v5700_v10  ;;  %v7536_v13 = vld [vmem:[#allocation6 + $0x2c8] sm:$0xf]  ;;  %v7905_v31 = vld [vmem:[#allocation6 + $0x2d4] sm:$0xf0] }
 0x549   :  { %v5706_v40 = vadd.f32 %v5506_v63, %v10319_v21  ;;  %v5710_v1 = vadd.f32 %v5534_v17, %v10322_v58  ;;  %v5714_v48 = vadd.f32 %v5562_v12, %v10325_v35  ;;  %v5718_v6 = vadd.f32 %v5590_v46, %v10328_v61  ;;  %v7680_v22 = vld [vmem:[#allocation6 + $0x3e8] sm:$0xf]  ;;  %v7941_v57 = vld [vmem:[#allocation6 + $0x3f4] sm:$0xf0] }
 0x54a   :  { %v5722_v8 = vadd.f32 %v5618_v44, %v10331_v23  ;;  %v5726_v14 = vadd.f32 %v5646_v30, %v10334_v53  ;;  %v5730_v15 = vadd.f32 %v5674_v55, %v10337_v42  ;;  %v7181_v21 = vor.u32 %v7814_v4, %v7178_v19  ;;  %v7873_v23 = vld [vmem:[#allocation6 + $0x1d4] sm:$0xf0]  ;;  %v7264_v34 = vld [vmem:[#allocation6 + $0xa8] sm:$0xf] }
 0x54b   :  { %v5799_v51 = vsel %vm5771_vm0, %v5710_v1, %v5706_v40  ;;  %v7309_v54 = vor.u32 %v7846_v56, %v7306_v41  ;;  %v7437_v58 = vor.u32 %v7878_v25, %v7434_v29  ;;  %v7565_v61 = vor.u32 %v7910_v39, %v7562_v2  ;;  %v7837_v45 = vld [vmem:[#allocation6 + $0xb4] sm:$0xf0]  ;;  %v7392_v16 = vld [vmem:[#allocation6 + $0x1a8] sm:$0xf] }
 0x54c   :  { %v5800_v35 = vsel %vm5773_vm1, %v5714_v48, %v5799_v51  ;;  %v7297_v0 = vor.u32 %v7845_v3, %v7296_v49  ;;  %v7425_v5 = vor.u32 %v7877_v59, %v7424_v24  ;;  %v5734_v53 = vadd.f32 %v5702_v60, %v10340_v52  ;;  %6670 = vmatpush.bf16.msrb.mxu0 %v7181_v21  ;;  %v7869_v11 = vld [vmem:[#allocation6 + $0x1b4] sm:$0xf0]  ;;  %v7520_v18 = vld [vmem:[#allocation6 + $0x2a8] sm:$0xf] }
 0x54d   :  { %v5801_v42 = vsel %vm5775_vm2, %v5718_v6, %v5800_v35  ;;  %6683 = vmatpush.bf16.msrb.mxu1 %v7309_v54  ;;  %v7553_v62 = vor.u32 %v7909_v9, %v7552_v26  ;;  %6696 = vmatpush.bf16.msrb.mxu2 %v7437_v58  ;;  %v7281_v43 = vor.u32 %v7841_v36, %v7280_v20  ;;  %v7901_v32 = vld [vmem:[#allocation6 + $0x2b4] sm:$0xf0]  ;;  %v7664_v56 = vld [vmem:[#allocation6 + $0x3c8] sm:$0xf] }
 0x54e   :  { %v5802_v27 = vsel %vm5777_vm3, %v5722_v8, %v5801_v42  ;;  %6709 = vmatpush.bf16.msrb.mxu3 %v7565_v61  ;;  %v7409_v10 = vor.u32 %v7873_v23, %v7408_v47  ;;  %v7537_v7 = vor.u32 %v7905_v31, %v7536_v13  ;;  %v7681_v19 = vor.u32 %v7941_v57, %v7680_v22  ;;  %v7937_v63 = vld [vmem:[#allocation6 + $0x3d4] sm:$0xf0]  ;;  %v7248_v25 = vld [vmem:[#allocation6 + $0x88] sm:$0xf] }
 0x54f   :  { %v5803_v28 = vsel %vm5779_vm4, %v5726_v14, %v5802_v27  ;;  %6671 = vmatmul.bf16.vlgmr.msrb.gmra.mxu0 %v9247_v37  ;;  %v7265_v17 = vor.u32 %v7837_v45, %v7264_v34  ;;  %v7393_v46 = vor.u32 %v7869_v11, %v7392_v16  ;;  %v7521_v41 = vor.u32 %v7901_v32, %v7520_v18  ;;  %v7833_v29 = vld [vmem:[#allocation6 + $0x94] sm:$0xf0]  ;;  %v7376_v44 = vld [vmem:[#allocation6 + $0x188] sm:$0xf] }
 0x550   :  { %6715 = vmatpush.bf16.msra.mxu0 %v7297_v0  ;;  %v5804_v52 = vsel %vm5781_vm5, %v5730_v15, %v5803_v28  ;;  %6697 = vmatmul.bf16.vlgmr.msrb.gmra.mxu2 %v9987_v33  ;;  %v7865_v30 = vld [vmem:[#allocation6 + $0x194] sm:$0xf0]  ;;  %v7504_v55 = vld [vmem:[#allocation6 + $0x288] sm:$0xf]  ;;  %v7665_v39 = vor.u32 %v7937_v63, %v7664_v56  ;;  %v7249_v40 = vor.u32 %v7833_v29, %v7248_v25  ;;  %v7298_v56 = vld [vmem:[#allocation6 + $0xf8] sm:$0xf0] }
 0x551   :  { %6728 = vmatpush.bf16.msra.mxu1 %v7425_v5  ;;  %6741 = vmatpush.bf16.msra.mxu2 %v7553_v62  ;;  %v5805_v50 = vsel %vm5783_vm6, %v5734_v53, %v5804_v52  ;;  %v7897_v60 = vld [vmem:[#allocation6 + $0x294] sm:$0xf0]  ;;  %v7648_v2 = vld [vmem:[#allocation6 + $0x3a8] sm:$0xf]  ;;  %v7377_v1 = vor.u32 %v7865_v30, %v7376_v44  ;;  %v7875_v63 = vld [vmem:[#allocation6 + $0x1ec] sm:$0xf] }
 0x552   :  { %v5828_v4 = vmul.f32 0.00390625, %v5805_v50  ;;  %6684 = vmatmul.bf16.vlgmr.msrb.gmra.mxu1 %v9617_v38  ;;  %v7933_v49 = vld [vmem:[#allocation6 + $0x3b4] sm:$0xf0]  ;;  %v7505_v48 = vor.u32 %v7897_v60, %v7504_v55  ;;  %v7232_v6 = vld [vmem:[#allocation6 + $0x68] sm:$0xf] }
 0x553   :  { %v7829_v3 = vld [vmem:[#allocation6 + $0x74] sm:$0xf0]  ;;  %v7360_v24 = vld [vmem:[#allocation6 + $0x168] sm:$0xf]  ;;  %v7649_v15 = vor.u32 %v7933_v49, %v7648_v2  ;;  %v7907_v25 = vld [vmem:[#allocation6 + $0x2ec] sm:$0xf] }
 0x554   :  { %6716 = vmatpush.bf16.msra.mxu0 %v7281_v43  ;;  %v10360_v12 = vpack.c.bf16 %v5828_v4, %v5828_v4  ;;  %v7861_v59 = vld [vmem:[#allocation6 + $0x174] sm:$0xf0]  ;;  %v7488_v8 = vld [vmem:[#allocation6 + $0x268] sm:$0xf]  ;;  %v7233_v51 = vor.u32 %v7829_v3, %v7232_v6  ;;  %v7554_v29 = vld [vmem:[#allocation6 + $0x2f8] sm:$0xf0] }
 0x555   :  { %6729 = vmatpush.bf16.msra.mxu1 %v7409_v10  ;;  %6742 = vmatpush.bf16.msra.mxu2 %v7537_v7  ;;  %v7893_v14 = vld [vmem:[#allocation6 + $0x274] sm:$0xf0]  ;;  %v7632_v26 = vld [vmem:[#allocation6 + $0x388] sm:$0xf]  ;;  %v7361_v21 = vor.u32 %v7861_v59, %v7360_v24  ;;  %v7839_v49 = vld [vmem:[#allocation6 + $0xcc] sm:$0xf] }
 0x556   :  { %6658 = vmatmul.bf16.vlgmr.msra.gmra.mxu3 %v10360_v12  ;;  %v7929_v9 = vld [vmem:[#allocation6 + $0x394] sm:$0xf0]  ;;  %v7489_v54 = vor.u32 %v7893_v14, %v7488_v8  ;;  %v7216_v58 = vld [vmem:[#allocation6 + $0x48] sm:$0xf]  ;;  %v7410_v6 = vld [vmem:[#allocation6 + $0x1d8] sm:$0xf0] }
 0x557   :  { %6754 = vmatpush.bf16.msra.mxu3 %v7681_v19  ;;  %v7825_v20 = vld [vmem:[#allocation6 + $0x54] sm:$0xf0]  ;;  %v7344_v35 = vld [vmem:[#allocation6 + $0x148] sm:$0xf]  ;;  %v7633_v36 = vor.u32 %v7929_v9, %v7632_v26  ;;  %v7843_v19 = vld [vmem:[#allocation6 + $0xec] sm:$0xf] }
 0x558   :  { %6717 = vmatpush.bf16.msra.mxu0 %v7265_v17  ;;  %v7857_v61 = vld [vmem:[#allocation6 + $0x154] sm:$0xf0]  ;;  %v7472_v0 = vld [vmem:[#allocation6 + $0x248] sm:$0xf]  ;;  %v7217_v53 = vor.u32 %v7825_v20, %v7216_v58  ;;  %v7426_v17 = vld [vmem:[#allocation6 + $0x1f8] sm:$0xf0] }
 0x559   :  { %6730 = vmatpush.bf16.msra.mxu1 %v7393_v46  ;;  %6743 = vmatpush.bf16.msra.mxu2 %v7521_v41  ;;  %v7889_v5 = vld [vmem:[#allocation6 + $0x254] sm:$0xf0]  ;;  %v7616_v47 = vld [vmem:[#allocation6 + $0x368] sm:$0xf]  ;;  %v7345_v42 = vor.u32 %v7857_v61, %v7344_v35  ;;  %v7429_v2 = vor.u32 %v7875_v63, %v7426_v17  ;;  %v7903_v24 = vld [vmem:[#allocation6 + $0x2cc] sm:$0xf] }
 0x55a   :  { %v7925_v23 = vld [vmem:[#allocation6 + $0x374] sm:$0xf0]  ;;  %v7473_v62 = vor.u32 %v7889_v5, %v7472_v0  ;;  %v7200_v13 = vld [vmem:[#allocation6 + $0x28] sm:$0xf]  ;;  %v7538_v59 = vld [vmem:[#allocation6 + $0x2d8] sm:$0xf0] }
 0x55b   :  { %6755 = vmatpush.bf16.msra.mxu3 %v7665_v39  ;;  %v7821_v31 = vld [vmem:[#allocation6 + $0x34] sm:$0xf0]  ;;  %v7328_v27 = vld [vmem:[#allocation6 + $0x128] sm:$0xf]  ;;  %v7617_v43 = vor.u32 %v7925_v23, %v7616_v47  ;;  %v7301_v39 = vor.u32 %v7843_v19, %v7298_v56  ;;  %v7682_v26 = vld [vmem:[#allocation6 + $0x3f8] sm:$0xf0]  ;;  %v6633_v19 = vpop.f32.mrf.mxu1 }
 0x55c   :  { %6718 = vmatpush.bf16.msra.mxu0 %v7249_v40  ;;  %v7853_v28 = vld [vmem:[#allocation6 + $0x134] sm:$0xf0]  ;;  %v7456_v22 = vld [vmem:[#allocation6 + $0x228] sm:$0xf]  ;;  %v7201_v7 = vor.u32 %v7821_v31, %v7200_v13  ;;  %v7557_v40 = vor.u32 %v7907_v25, %v7554_v29  ;;  %v7266_v58 = vld [vmem:[#allocation6 + $0xb8] sm:$0xf0] }
 0x55d   :  { %6731 = vmatpush.bf16.msra.mxu1 %v7377_v1  ;;  %6744 = vmatpush.bf16.msra.mxu2 %v7505_v48  ;;  %v7885_v57 = vld [vmem:[#allocation6 + $0x234] sm:$0xf0]  ;;  %v7600_v10 = vld [vmem:[#allocation6 + $0x348] sm:$0xf]  ;;  %v7329_v45 = vor.u32 %v7853_v28, %v7328_v27  ;;  %v7282_v1 = vld [vmem:[#allocation6 + $0xd8] sm:$0xf0] }
 0x55e   :  { %v7921_v52 = vld [vmem:[#allocation6 + $0x354] sm:$0xf0]  ;;  %v7184_v34 = vld [vmem:[#allocation6 + $0x8] sm:$0xf]  ;;  %v7457_v16 = vor.u32 %v7885_v57, %v7456_v22  ;;  %v7871_v48 = vld [vmem:[#allocation6 + $0x1cc] sm:$0xf]  ;;  %v7285_v9 = vor.u32 %v7839_v49, %v7282_v1 }
 0x55f   :  { %6756 = vmatpush.bf16.msra.mxu3 %v7649_v15  ;;  %v7817_v50 = vld [vmem:[#allocation6 + $0x14] sm:$0xf0]  ;;  %v7312_v11 = vld [vmem:[#allocation6 + $0x108] sm:$0xf]  ;;  %v7601_v46 = vor.u32 %v7921_v52, %v7600_v10  ;;  %v7939_v15 = vld [vmem:[#allocation6 + $0x3ec] sm:$0xf] }
 0x560   :  { %6719 = vmatpush.bf16.msra.mxu0 %v7233_v51  ;;  %v7849_v18 = vld [vmem:[#allocation6 + $0x114] sm:$0xf0]  ;;  %v7440_v32 = vld [vmem:[#allocation6 + $0x208] sm:$0xf]  ;;  %v7185_v41 = vor.u32 %v7817_v50, %v7184_v34  ;;  %v7413_v51 = vor.u32 %v7871_v48, %v7410_v6  ;;  %v7867_v20 = vld [vmem:[#allocation6 + $0x1ac] sm:$0xf] }
 0x561   :  { %6732 = vmatpush.bf16.msra.mxu1 %v7361_v21  ;;  %6745 = vmatpush.bf16.msra.mxu2 %v7489_v54  ;;  %v7881_v4 = vld [vmem:[#allocation6 + $0x214] sm:$0xf0]  ;;  %v7584_v44 = vld [vmem:[#allocation6 + $0x328] sm:$0xf]  ;;  %v7313_v55 = vor.u32 %v7849_v18, %v7312_v11  ;;  %v7835_v21 = vld [vmem:[#allocation6 + $0xac] sm:$0xf]  ;;  %v7541_v54 = vor.u32 %v7903_v24, %v7538_v59 }
 0x562   :  { %v7917_v30 = vld [vmem:[#allocation6 + $0x334] sm:$0xf0]  ;;  %v7441_v60 = vor.u32 %v7881_v4, %v7440_v32  ;;  %v7568_v8 = vld [vmem:[#allocation6 + $0x308] sm:$0xf]  ;;  %v7394_v35 = vld [vmem:[#allocation6 + $0x1b8] sm:$0xf0]  ;;  %v6620_v4 = vpop.f32.mrf.mxu0 }
 0x563   :  { %6757 = vmatpush.bf16.msra.mxu3 %v7633_v36  ;;  %v7585_v3 = vor.u32 %v7917_v30, %v7584_v44  ;;  %v7913_v14 = vld [vmem:[#allocation6 + $0x314] sm:$0xf0]  ;;  %v7899_v0 = vld [vmem:[#allocation6 + $0x2ac] sm:$0xf]  ;;  %v7522_v5 = vld [vmem:[#allocation6 + $0x2b8] sm:$0xf0]  ;;  %v7685_v36 = vor.u32 %v7939_v15, %v7682_v26 }
 0x564   :  { %6720 = vmatpush.bf16.msra.mxu0 %v7217_v53  ;;  %v7569_v61 = vor.u32 %v7913_v14, %v7568_v8  ;;  %v7935_v47 = vld [vmem:[#allocation6 + $0x3cc] sm:$0xf]  ;;  %v7666_v23 = vld [vmem:[#allocation6 + $0x3d8] sm:$0xf0]  ;;  %v7269_v53 = vor.u32 %v7835_v21, %v7266_v58  ;;  %v7525_v13 = vor.u32 %v7899_v0, %v7522_v5  ;;  %v10368_v32 = vld [vmem:[#allocation8] sm:$0xf]  ;;  %v6646_v21 = vpop.f32.mrf.mxu2 }
 0x565   :  { %6733 = vmatpush.bf16.msra.mxu1 %v7345_v42  ;;  %6746 = vmatpush.bf16.msra.mxu2 %v7473_v62  ;;  %v7397_v42 = vor.u32 %v7867_v20, %v7394_v35  ;;  %v7831_v62 = vld [vmem:[#allocation6 + $0x8c] sm:$0xf]  ;;  %v7250_v31 = vld [vmem:[#allocation6 + $0x98] sm:$0xf0]  ;;  %v5963_v17 = vperm.slane %v10368_v32, 0 }
 0x566   :  { %6710 = vmatmul.bf16.vlgmr.msrb.gmra.mxu3 %v10360_v12  ;;  %v7863_v27 = vld [vmem:[#allocation6 + $0x18c] sm:$0xf]  ;;  %v7378_v28 = vld [vmem:[#allocation6 + $0x198] sm:$0xf0] }
 0x567   :  { %6758 = vmatpush.bf16.msra.mxu3 %v7617_v43  ;;  %v7895_v22 = vld [vmem:[#allocation6 + $0x28c] sm:$0xf]  ;;  %v7506_v57 = vld [vmem:[#allocation6 + $0x298] sm:$0xf0]  ;;  %v7669_v43 = vor.u32 %v7935_v47, %v7666_v23  ;;  %v7381_v34 = vor.u32 %v7863_v27, %v7378_v28 }
 0x568   :  { %6721 = vmatpush.bf16.msra.mxu0 %v7201_v7  ;;  %v7931_v10 = vld [vmem:[#allocation6 + $0x3ac] sm:$0xf]  ;;  %v7650_v52 = vld [vmem:[#allocation6 + $0x3b8] sm:$0xf0]  ;;  %v7253_v7 = vor.u32 %v7831_v62, %v7250_v31  ;;  %v7509_v50 = vor.u32 %v7895_v22, %v7506_v57 }
 0x569   :  { %6734 = vmatpush.bf16.msra.mxu1 %v7329_v45  ;;  %6747 = vmatpush.bf16.msra.mxu2 %v7457_v16  ;;  %v7827_v45 = vld [vmem:[#allocation6 + $0x6c] sm:$0xf]  ;;  %v7234_v16 = vld [vmem:[#allocation6 + $0x78] sm:$0xf0] }
 0x56a   :  { %v7859_v11 = vld [vmem:[#allocation6 + $0x16c] sm:$0xf]  ;;  %v7362_v18 = vld [vmem:[#allocation6 + $0x178] sm:$0xf0]  ;;  %v7237_v29 = vor.u32 %v7827_v45, %v7234_v16 }
 0x56b   :  { %6759 = vmatpush.bf16.msra.mxu3 %v7601_v46  ;;  %v7891_v56 = vld [vmem:[#allocation6 + $0x26c] sm:$0xf]  ;;  %v7490_v63 = vld [vmem:[#allocation6 + $0x278] sm:$0xf0]  ;;  %v7653_v46 = vor.u32 %v7931_v10, %v7650_v52  ;;  %v7365_v44 = vor.u32 %v7859_v11, %v7362_v18 }
 0x56c   :  { %6722 = vmatpush.bf16.msra.mxu0 %v7185_v41  ;;  %v7927_v41 = vld [vmem:[#allocation6 + $0x38c] sm:$0xf]  ;;  %v7634_v25 = vld [vmem:[#allocation6 + $0x398] sm:$0xf0]  ;;  %v6648_v45 = vpop.f32.mrf.mxu2 }
 0x56d   :  { %6735 = vmatpush.bf16.msra.mxu1 %v7313_v55  ;;  %6748 = vmatpush.bf16.msra.mxu2 %v7441_v60  ;;  %v7823_v30 = vld [vmem:[#allocation6 + $0x4c] sm:$0xf]  ;;  %v6621_v55 = vadd.f32 %v6620_v4, %v5963_v17  ;;  %v7493_v60 = vor.u32 %v7891_v56, %v7490_v63  ;;  %v7346_v49 = vld [vmem:[#allocation6 + $0x158] sm:$0xf0]  ;;  %v7637_v6 = vor.u32 %v7927_v41, %v7634_v25  ;;  %v7948_v4 = vld [vmem:[#allocation9 + $0x30] sm:$0xff] }
 0x56e   :  { %v7474_v1 = vld [vmem:[#allocation6 + $0x258] sm:$0xf0]  ;;  %v7819_v14 = vld [vmem:[#allocation6 + $0x2c] sm:$0xf]  ;;  %v7946_v17 = vld [vmem:[#allocation9 + $0x20] sm:$0xff] }
 0x56f   :  { %6723 = vmatmul.bf16.vlgmr.msra.gmra.mxu0 %v9247_v37  ;;  %6760 = vmatpush.bf16.msra.mxu3 %v7585_v3  ;;  %v6634_v48 = vadd.f32 %v6633_v19, %v6621_v55  ;;  %v7923_v3 = vld [vmem:[#allocation6 + $0x36c] sm:$0xf]  ;;  %v7618_v24 = vld [vmem:[#allocation6 + $0x378] sm:$0xf0]  ;;  %v7956_v19 = vld [vmem:[#allocation9 + $0x70] sm:$0xff] }
 0x570   :  { %6767 = vmatpush.bf16.msrb.mxu0 %v7301_v39  ;;  %6749 = vmatmul.bf16.vlgmr.msra.gmra.mxu2 %v9987_v33  ;;  %v7218_v39 = vld [vmem:[#allocation6 + $0x58] sm:$0xf0]  ;;  %v7883_v58 = vld [vmem:[#allocation6 + $0x22c] sm:$0xf]  ;;  %v7621_v0 = vor.u32 %v7923_v3, %v7618_v24  ;;  %v7944_v41 = vld [vmem:[#allocation9 + $0x10] sm:$0xff] }
 0x571   :  { %6780 = vmatpush.bf16.msrb.mxu1 %v7429_v2  ;;  %6793 = vmatpush.bf16.msrb.mxu2 %v7557_v40  ;;  %v7855_v2 = vld [vmem:[#allocation6 + $0x14c] sm:$0xf]  ;;  %v7221_v59 = vor.u32 %v7823_v30, %v7218_v39  ;;  %v7202_v26 = vld [vmem:[#allocation6 + $0x38] sm:$0xf0]  ;;  %v10371_v35 = vadd.f32 %v6646_v21, %v6634_v48  ;;  %v7952_v30 = vld [vmem:[#allocation9 + $0x50] sm:$0xff] }
 0x572   :  { %6736 = vmatmul.bf16.vlgmr.msra.gmra.mxu1 %v9617_v38  ;;  %v7887_v40 = vld [vmem:[#allocation6 + $0x24c] sm:$0xf]  ;;  %v7349_v8 = vor.u32 %v7855_v2, %v7346_v49  ;;  %v7458_v20 = vld [vmem:[#allocation6 + $0x238] sm:$0xf0]  ;;  %v7205_v47 = vor.u32 %v7819_v14, %v7202_v26  ;;  %v7964_v55 = vld [vmem:[#allocation9 + $0xb0] sm:$0xff]  ;;  %v5964_v14 = vperm.slane %v10368_v32, 1 }
 0x573   :  { %6761 = vmatpush.bf16.msra.mxu3 %v7569_v61  ;;  %v7477_v15 = vor.u32 %v7887_v40, %v7474_v1  ;;  %v6635_v61 = vpop.f32.mrf.mxu1  ;;  %v7919_v5 = vld [vmem:[#allocation6 + $0x34c] sm:$0xf]  ;;  %v7186_v62 = vld [vmem:[#allocation6 + $0x18] sm:$0xf0]  ;;  %v7950_v39 = vld [vmem:[#allocation9 + $0x40] sm:$0xff] }
 0x574   :  { %6768 = vmatpush.bf16.msrb.mxu0 %v7285_v9  ;;  %v7851_v9 = vld [vmem:[#allocation6 + $0x12c] sm:$0xf]  ;;  %v7314_v31 = vld [vmem:[#allocation6 + $0x118] sm:$0xf0]  ;;  %v7962_v2 = vld [vmem:[#allocation9 + $0xa0] sm:$0xff] }
 0x575   :  { %6781 = vmatpush.bf16.msrb.mxu1 %v7413_v51  ;;  %6794 = vmatpush.bf16.msrb.mxu2 %v7541_v54  ;;  %v7330_v51 = vld [vmem:[#allocation6 + $0x138] sm:$0xf0]  ;;  %v6622_v54 = vpop.f32.mrf.mxu0  ;;  %v7879_v27 = vld [vmem:[#allocation6 + $0x20c] sm:$0xf] }
 0x576   :  { %6762 = vmatmul.bf16.vlgmr.msra.gmra.mxu3 %v10360_v12  ;;  %v7333_v23 = vor.u32 %v7851_v9, %v7330_v51  ;;  %v7442_v28 = vld [vmem:[#allocation6 + $0x218] sm:$0xf0]  ;;  %v7915_v57 = vld [vmem:[#allocation6 + $0x32c] sm:$0xf]  ;;  %v7958_v54 = vld [vmem:[#allocation9 + $0x80] sm:$0xff] }
 0x577   :  { %6806 = vmatpush.bf16.msrb.mxu3 %v7685_v36  ;;  %v7602_v36 = vld [vmem:[#allocation6 + $0x358] sm:$0xf0]  ;;  %v7911_v11 = vld [vmem:[#allocation6 + $0x30c] sm:$0xf] }
 0x578   :  { %6769 = vmatpush.bf16.msrb.mxu0 %v7269_v53  ;;  %v7815_v53 = vld [vmem:[#allocation6 + $0xc] sm:$0xf]  ;;  %v7605_v22 = vor.u32 %v7919_v5, %v7602_v36  ;;  %v7957_v16 = vld [vmem:[#allocation9 + $0x78] sm:$0xff] }
 0x579   :  { %6782 = vmatpush.bf16.msrb.mxu1 %v7397_v42  ;;  %6795 = vmatpush.bf16.msrb.mxu2 %v7525_v13  ;;  %v7461_v42 = vor.u32 %v7883_v58, %v7458_v20  ;;  %v7847_v13 = vld [vmem:[#allocation6 + $0x10c] sm:$0xf]  ;;  %v7189_v10 = vor.u32 %v7815_v53, %v7186_v62  ;;  %v7570_v18 = vld [vmem:[#allocation6 + $0x318] sm:$0xf0]  ;;  %v7972_v20 = vld [vmem:[#allocation9 + $0xf0] sm:$0xff]  ;;  %v5965_v53 = vperm.slane %v10368_v32, 2 }
 0x57a   :  { %v7317_v52 = vor.u32 %v7847_v13, %v7314_v31  ;;  %v7573_v56 = vor.u32 %v7911_v11, %v7570_v18  ;;  %v7947_v63 = vld [vmem:[#allocation9 + $0x28] sm:$0xff]  ;;  %v7961_v1 = vld [vmem:[#allocation9 + $0x98] sm:$0xff]  ;;  %v7966_v18 = vld [vmem:[#allocation9 + $0xc0] sm:$0xff] }
 0x57b   :  { %6807 = vmatpush.bf16.msrb.mxu3 %v7669_v43  ;;  %v7586_v43 = vld [vmem:[#allocation6 + $0x338] sm:$0xf0]  ;;  %v7943_v25 = vld [vmem:[#allocation9 + $0x8] sm:$0xff] }
 0x57c   :  { %6770 = vmatpush.bf16.msrb.mxu0 %v7253_v7  ;;  %v7445_v7 = vor.u32 %v7879_v27, %v7442_v28  ;;  %v7973_v58 = vld [vmem:[#allocation9 + $0xf8] sm:$0xff]  ;;  %v7971_v5 = vld [vmem:[#allocation9 + $0xe8] sm:$0xff] }
 0x57d   :  { %6783 = vmatpush.bf16.msrb.mxu1 %v7381_v34  ;;  %6796 = vmatpush.bf16.msrb.mxu2 %v7509_v50  ;;  %v7949_v34 = vld [vmem:[#allocation9 + $0x38] sm:$0xff]  ;;  %v7589_v50 = vor.u32 %v7915_v57, %v7586_v43  ;;  %v7967_v45 = vld [vmem:[#allocation9 + $0xc8] sm:$0xff] }
 0x57e   :  { %v7969_v13 = vld [vmem:[#allocation9 + $0xd8] sm:$0xff] }
 0x57f   :  { %6808 = vmatpush.bf16.msrb.mxu3 %v7653_v46  ;;  %v7945_v46 = vld [vmem:[#allocation9 + $0x18] sm:$0xff] }
 0x580   :  { %6771 = vmatpush.bf16.msrb.mxu0 %v7237_v29  ;;  %v7955_v29 = vld [vmem:[#allocation9 + $0x68] sm:$0xff] }
 0x581   :  { %6784 = vmatpush.bf16.msrb.mxu1 %v7365_v44  ;;  %6797 = vmatpush.bf16.msrb.mxu2 %v7493_v60  ;;  %v7965_v44 = vld [vmem:[#allocation9 + $0xb8] sm:$0xff]  ;;  %v7963_v60 = vld [vmem:[#allocation9 + $0xa8] sm:$0xff] }
 0x583   :  { %6809 = vmatpush.bf16.msrb.mxu3 %v7637_v6  ;;  %v7960_v6 = vld [vmem:[#allocation9 + $0x90] sm:$0xff] }
 0x584   :  { %6772 = vmatpush.bf16.msrb.mxu0 %v7221_v59 }
 0x585   :  { %6785 = vmatpush.bf16.msrb.mxu1 %v7349_v8  ;;  %6798 = vmatpush.bf16.msrb.mxu2 %v7477_v15  ;;  %v7959_v15 = vld [vmem:[#allocation9 + $0x88] sm:$0xff] }
 0x587   :  { %6810 = vmatpush.bf16.msrb.mxu3 %v7621_v0 }
 0x588   :  { %6773 = vmatpush.bf16.msrb.mxu0 %v7205_v47 }
 0x589   :  { %6786 = vmatpush.bf16.msrb.mxu1 %v7333_v23  ;;  %6799 = vmatpush.bf16.msrb.mxu2 %v7461_v42 }
 0x58b   :  { %6811 = vmatpush.bf16.msrb.mxu3 %v7605_v22  ;;  %v7968_v22 = vld [vmem:[#allocation9 + $0xd0] sm:$0xff] }
 0x58c   :  { %6774 = vmatpush.bf16.msrb.mxu0 %v7189_v10 }
 0x58d   :  { %6787 = vmatpush.bf16.msrb.mxu1 %v7317_v52  ;;  %6800 = vmatpush.bf16.msrb.mxu2 %v7445_v7 }
 0x58f   :  { %6812 = vmatpush.bf16.msrb.mxu3 %v7589_v50  ;;  %6775 = vmatmul.bf16.vlgmr.msrb.gmra.mxu0 %v9247_v37  ;;  %v7942_v37 = vld [vmem:[#allocation9] sm:$0xff] }
 0x590   :  { %7087 = vmatpush.bf16.msra.mxu0 %v7949_v34  ;;  %6788 = vmatmul.bf16.vlgmr.msrb.gmra.mxu1 %v9617_v38  ;;  %v7954_v38 = vld [vmem:[#allocation9 + $0x60] sm:$0xff] }
 0x591   :  { %7100 = vmatpush.bf16.msra.mxu1 %v7957_v16  ;;  %6801 = vmatmul.bf16.vlgmr.msrb.gmra.mxu2 %v9987_v33  ;;  %v7953_v33 = vld [vmem:[#allocation9 + $0x58] sm:$0xff] }
 0x592   :  { %7113 = vmatpush.bf16.msra.mxu2 %v7965_v44 }
 0x593   :  { %6813 = vmatpush.bf16.msrb.mxu3 %v7573_v56 }
 0x594   :  { %7088 = vmatpush.bf16.msra.mxu0 %v7948_v4 }
 0x595   :  { %7101 = vmatpush.bf16.msra.mxu1 %v7956_v19 }
 0x596   :  { %6814 = vmatmul.bf16.vlgmr.msrb.gmra.mxu3 %v10360_v12  ;;  %7114 = vmatpush.bf16.msra.mxu2 %v7964_v55  ;;  %v7951_v12 = vld [vmem:[#allocation9 + $0x48] sm:$0xff] }
 0x597   :  { %7126 = vmatpush.bf16.msra.mxu3 %v7973_v58 }
 0x598   :  { %7089 = vmatpush.bf16.msra.mxu0 %v7947_v63  ;;  %v5966_v63 = vperm.slane %v10368_v32, 3 }
 0x599   :  { %7102 = vmatpush.bf16.msra.mxu1 %v7955_v29 }
 0x59a   :  { %7115 = vmatpush.bf16.msra.mxu2 %v7963_v60 }
 0x59b   :  { %7127 = vmatpush.bf16.msra.mxu3 %v7972_v20 }
 0x59c   :  { %7090 = vmatpush.bf16.msra.mxu0 %v7946_v17 }
 0x59d   :  { %7103 = vmatpush.bf16.msra.mxu1 %v7954_v38 }
 0x59e   :  { %7116 = vmatpush.bf16.msra.mxu2 %v7962_v2 }
 0x59f   :  { %7128 = vmatpush.bf16.msra.mxu3 %v7971_v5 }
 0x5a0   :  { %7091 = vmatpush.bf16.msra.mxu0 %v7945_v46 }
 0x5a1   :  { %7104 = vmatpush.bf16.msra.mxu1 %v7953_v33 }
 0x5a2   :  { %7117 = vmatpush.bf16.msra.mxu2 %v7961_v1 }
 0x5a4   :  { %7092 = vmatpush.bf16.msra.mxu0 %v7944_v41 }
 0x5a5   :  { %7105 = vmatpush.bf16.msra.mxu1 %v7952_v30 }
 0x5a6   :  { %7118 = vmatpush.bf16.msra.mxu2 %v7960_v6  ;;  %v7984_v6 = vld [vmem:[#allocation11] ss:$0 sm:$0xff] }
 0x5a8   :  { %7093 = vmatpush.bf16.msra.mxu0 %v7943_v25 }
 0x5a9   :  { %7106 = vmatpush.bf16.msra.mxu1 %v7951_v12 }
 0x5aa   :  { %7119 = vmatpush.bf16.msra.mxu2 %v7959_v15 }
 0x5ac   :  { %7094 = vmatpush.bf16.msra.mxu0 %v7942_v37 }
 0x5ad   :  { %7107 = vmatpush.bf16.msra.mxu1 %v7950_v39 }
 0x5ae   :  { %7120 = vmatpush.bf16.msra.mxu2 %v7958_v54 }
 0x5cc   :  { %v6672_v49 = vpop.f32.mrf.mxu0 }
 0x5cd   :  { %v6673_v21 = vadd.f32 %v6672_v49, %v5964_v14 }
 0x5cf   :  { %v6685_v40 = vpop.f32.mrf.mxu1 }
 0x5d0   :  { %v6686_v0 = vadd.f32 %v6685_v40, %v6673_v21 }
 0x5d3   :  { %v6698_v48 = vpop.f32.mrf.mxu2 }
 0x5d4   :  { %v6674_v3 = vpop.f32.mrf.mxu0  ;;  %v6699_v36 = vadd.f32 %v6698_v48, %v6686_v0 }
 0x5d7   :  { %v6687_v24 = vpop.f32.mrf.mxu1 }
 0x5d9   :  { %v6659_v59 = vpop.f32.mrf.mxu3 }
 0x5da   :  { %v6660_v8 = vadd.f32 %v6659_v59, %v10371_v35  ;;  %v7970_v35 = vld [vmem:[#allocation9 + $0xe0] sm:$0xff] }
 0x5db   :  { %v6700_v9 = vpop.f32.mrf.mxu2  ;;  %7129 = vmatpush.bf16.msra.mxu3 %v7970_v35 }
 0x5dc   :  { %v6819_v26 = vmax.f32 %v6660_v8, 0.0 }
 0x5de   :  { %v6823_v51 = vpack.c.bf16 %v6819_v26, %v6819_v26 }
 0x5df   :  { %7130 = vmatpush.bf16.msra.mxu3 %v7969_v13 }
 0x5e0   :  { %7095 = vmatmul.bf16.vlgmr.msra.gmra.mxu0 %v6823_v51 }
 0x5e1   :  { %v6661_v61 = vpop.f32.mrf.mxu3 }
 0x5e3   :  { %7131 = vmatpush.bf16.msra.mxu3 %v7968_v22 }
 0x5e7   :  { %7132 = vmatpush.bf16.msra.mxu3 %v7967_v45 }
 0x5e9   :  { %v6711_v47 = vpop.f32.mrf.mxu3 }
 0x5ea   :  { %v6712_v23 = vadd.f32 %v6711_v47, %v6699_v36 }
 0x5eb   :  { %7133 = vmatpush.bf16.msra.mxu3 %v7966_v18 }
 0x5ec   :  { %v6724_v42 = vpop.f32.mrf.mxu0  ;;  %v6820_v62 = vmax.f32 %v6712_v23, 0.0 }
 0x5ed   :  { %v6725_v28 = vadd.f32 %v6724_v42, %v5965_v53 }
 0x5ee   :  { %v6824_v27 = vpack.c.bf16 %v6820_v62, %v6820_v62 }
 0x5ef   :  { %v6737_v31 = vpop.f32.mrf.mxu1 }
 0x5f0   :  { %7108 = vmatmul.bf16.vlgmr.msra.gmra.mxu1 %v6824_v27  ;;  %v6738_v43 = vadd.f32 %v6737_v31, %v6725_v28 }
 0x5f1   :  { %v6713_v57 = vpop.f32.mrf.mxu3 }
 0x5f3   :  { %v6750_v10 = vpop.f32.mrf.mxu2 }
 0x5f4   :  { %v6726_v52 = vpop.f32.mrf.mxu0  ;;  %v6751_v34 = vadd.f32 %v6750_v10, %v6738_v43 }
 0x5f7   :  { %v6739_v7 = vpop.f32.mrf.mxu1 }
 0x5f9   :  { %v6763_v16 = vpop.f32.mrf.mxu3 }
 0x5fa   :  { %v6764_v50 = vadd.f32 %v6763_v16, %v6751_v34 }
 0x5fb   :  { %v6752_v11 = vpop.f32.mrf.mxu2 }
 0x5fc   :  { %v6821_v4 = vmax.f32 %v6764_v50, 0.0 }
 0x5fe   :  { %v6825_v19 = vpack.c.bf16 %v6821_v4, %v6821_v4 }
 0x600   :  { %7121 = vmatmul.bf16.vlgmr.msra.gmra.mxu2 %v6825_v19 }
 0x601   :  { %v6765_v56 = vpop.f32.mrf.mxu3 }
 0x60c   :  { %v6776_v17 = vpop.f32.mrf.mxu0 }
 0x60d   :  { %v6789_v46 = vpop.f32.mrf.mxu1  ;;  %v6777_v41 = vadd.f32 %v6776_v17, %v5966_v63 }
 0x60f   :  { %v6790_v25 = vadd.f32 %v6789_v46, %v6777_v41 }
 0x614   :  { %v6802_v29 = vpop.f32.mrf.mxu2  ;;  %v6778_v37 = vpop.f32.mrf.mxu0 }
 0x615   :  { %v6791_v38 = vpop.f32.mrf.mxu1  ;;  %v6803_v33 = vadd.f32 %v6802_v29, %v6790_v25 }
 0x619   :  { %v6815_v44 = vpop.f32.mrf.mxu3 }
 0x61a   :  { %v6816_v30 = vadd.f32 %v6815_v44, %v6803_v33 }
 0x61c   :  { %v6804_v55 = vpop.f32.mrf.mxu2  ;;  %v6822_v12 = vmax.f32 %v6816_v30, 0.0 }
 0x61e   :  { %v6826_v60 = vpack.c.bf16 %v6822_v12, %v6822_v12 }
 0x620   :  { %7134 = vmatmul.bf16.vlgmr.msra.gmra.mxu3 %v6826_v60 }
 0x621   :  { %v6817_v39 = vpop.f32.mrf.mxu3 }
 0x65d   :  { %v7096_v2 = vpop.f32.mrf.mxu0 }
 0x65e   :  { %v7097_v3 = vadd.f32 %v7984_v6, %v7096_v2 }
 0x665   :  { %v7098_v49 = vpop.f32.mrf.mxu0 }
 0x66d   :  { %v7109_v40 = vpop.f32.mrf.mxu1 }
 0x66e   :  { %v7110_v24 = vadd.f32 %v7109_v40, %v7097_v3 }
 0x675   :  { %v7111_v1 = vpop.f32.mrf.mxu1 }
 0x683   :  { %v7122_v32 = vpop.f32.mrf.mxu2 }
 0x684   :  { %v7123_v59 = vadd.f32 %v7122_v32, %v7110_v24 }
 0x68b   :  { %v7124_v48 = vpop.f32.mrf.mxu2 }
 0x6a3   :  { %v7135_v8 = vpop.f32.mrf.mxu3 }
 0x6a4   :  { %v7136_v14 = vadd.f32 %v7135_v8, %v7123_v59 }
 0x6a6   :  { %v7139_v15 = vmul.f32 %v7136_v14, %v7136_v14 }
 0x6a8   :  { %7140 = vadd.xlane.f32.xlu0 %v7139_v15 }
 0x6ab   :  { %v7137_v26 = vpop.f32.mrf.mxu3 }
 0x71b   :  { %v7141_v9 = vpop.xlane.xlu0 %7140 }
 0x71c   :  { %v7142_v51 = vmax.f32 %v7141_v9, 1e-24 }
 0x71e   :  { %7985 = vrsqrt.f32 %v7142_v51  ;;  %vm7149_vm8 = vweird.f32 %v7142_v51 }
 0x724   :  { %v7986_v21 = vpop.eup %7985 }
 0x725   :  { %v7144_v54 = vmul.f32 %v7986_v21, %v7142_v51  ;;  %vm7150_vm7 = vweird.f32 %v7986_v21 }
 0x726   :  { %vm7151_vm9 = vmor %vm7149_vm8, %vm7150_vm7 }
 0x727   :  { %v7145_v58 = vmul.f32 %v7986_v21, %v7144_v54 }
 0x729   :  { %v7146_v20 = vmul.f32 0.5, %v7145_v58 }
 0x72b   :  { %v7147_v61 = vsub.f32 1.5, %v7146_v20 }
 0x72d   :  { %v7148_v0 = vmul.f32 %v7986_v21, %v7147_v61 }
 0x72f   :  { %v7152_v5 = vsel %vm7151_vm9, %v7986_v21, %v7148_v0 }
 0x730   :  { %v7153_v36 = vmul.f32 %v7152_v5, %v7136_v14 }
 0x732   :  { %7154 = vst [vmem:[#allocation12] sm:$0xff] %v7153_v36 }
 0x733   :  { %7165 = dma.vmem_to_hbm [thread:$0]  %s7161_s4, 128, %s7163_s21, [#allocation5]  }
 0x734   :  { %8649 = dma.done.wait [#allocation5], 128  }
 0x735   :  { %8650 = vsyncadd [#allocation5], 4294967168 }
 0x736   :  { %7170 = vsyncpa [#allocation4], 1 }
 0x737   :  { %7171 = vsyncpa [#allocation7], 1 }
 0x738   :  { %7172 = vsyncpa [#allocation10], 1 }
 0x739   :  { %7173 = vsyncpa [#allocation5], 1 }

</bundles_post_ra>
